<compile_context>
chip_gen: v7x
topology: tpu7x:2x2x1
jax: 0.10.0
libtpu: 0.0.40
codegen_flags: <defaults>
</compile_context>

<pallas_src>
import functools
import numpy as np

import jax
import jax.numpy as jnp
from jax import lax
from jax.experimental import pallas as pl
from jax.experimental.pallas import tpu as pltpu


# ----------------------------------------------------------------------------
# Pallas kernel: G windows per grid step, fused QKV / fused output projection.
# ----------------------------------------------------------------------------
def _window_attn_kernel(x_ref,       # VMEM (G, N, C)   mxu dtype (bf16 by default)
                        wqkv_ref,    # VMEM (C, 3C)     mxu dtype  (= qkv.weight.T)
                        bqkv_ref,    # VMEM (1, 3C)     f32  [q_bias | 0 | v_bias]
                        nmask_ref,   # VMEM (C, C)      f32  block-diag per-head ones
                        scale_ref,   # VMEM (1, C)      f32  logit scale, head-repeated
                        bias_ref,    # VMEM (nH, N, N)  f32  16*sigmoid(rel pos bias)
                        wproj_ref,   # VMEM (C, C)      mxu dtype  (= proj.weight.T)
                        bproj_ref,   # VMEM (1, C)      f32
                        o_ref,       # VMEM (G, N, C)   f32
                        attn_scr,    # VMEM (G*N, C)    mxu dtype scratch (head concat)
                        *, num_heads, head_dim, dim, block_b, seq):
    G, N, C = block_b, seq, dim
    GN = G * N
    mxu_dt = wqkv_ref.dtype

    x2 = x_ref[...].reshape(GN, C)                          # leading-dim merge (free)

    # ---- fused QKV projection: single (GN,C)@(C,3C) MXU pass + fused bias ----
    qkv = jnp.dot(x2, wqkv_ref[...],
                  preferred_element_type=jnp.float32) + bqkv_ref[...]    # (GN,3C) f32
    q = qkv[:, :C]
    k = qkv[:, C:2 * C]
    v = qkv[:, 2 * C:]

    # ---- cosine-attention normalization, lane-dense (no (GN,nH,hd) relayout) ----
    # Per-head sum-of-squares via block-diagonal ones matmul.  F.normalize(eps=1e-12)
    # == x * rsqrt(max(sumsq, 1e-24)).  Per-head logit scale folded into q so it
    # scales GN*C elements instead of GN*N scores.
    nm = nmask_ref[...]
    qss = jnp.dot(q * q, nm, preferred_element_type=jnp.float32)
    kss = jnp.dot(k * k, nm, preferred_element_type=jnp.float32)
    qn = (q * lax.rsqrt(jnp.maximum(qss, 1e-24)) * scale_ref[...]).astype(mxu_dt)
    kn = (k * lax.rsqrt(jnp.maximum(kss, 1e-24))).astype(mxu_dt)
    vb = v.astype(mxu_dt)

    # ---- per-head attention (G-batched einsums; nH is small here, unroll is fine) ----
    # TODO(synk): for large nH (real Swin stages, nH=12-24) switch to lax.fori_loop
    # or a fully head-batched einsum to keep the basic block / vreg pressure small.
    for h in range(num_heads):
        lo = h * head_dim
        qh = qn[:, lo:lo + head_dim].reshape(G, N, head_dim)
        kh = kn[:, lo:lo + head_dim].reshape(G, N, head_dim)
        vh = vb[:, lo:lo + head_dim].reshape(G, N, head_dim)

        s = jnp.einsum('gnd,gmd->gnm', qh, kh,
                       preferred_element_type=jnp.float32)               # (G, N, N)
        s = s + bias_ref[h][None, :, :]
        # TODO(synk): shifted-window (0/-inf) per-window mask add would go here;
        # mask is None in this configuration.
        s = s - jnp.max(s, axis=-1, keepdims=True)
        e = jnp.exp(s)
        p = (e * pl.reciprocal(jnp.sum(e, axis=-1, keepdims=True),
                               approx=True)).astype(mxu_dt)
        oh = jnp.einsum('gnm,gmd->gnd', p, vh,
                        preferred_element_type=jnp.float32)              # (G, N, hd)
        # Stash head output at its lane offset -> one K=C proj matmul afterwards.
        attn_scr[:, lo:lo + head_dim] = oh.reshape(GN, head_dim).astype(attn_scr.dtype)

    # ---- fused output projection: single (GN,C)@(C,C) MXU pass ----
    y = jnp.dot(attn_scr[...], wproj_ref[...],
                preferred_element_type=jnp.float32) + bproj_ref[...]
    o_ref[...] = y.reshape(G, N, C).astype(o_ref.dtype)


def window_attention_pallas(x, wqkv, bqkv, scale, bias, wproj, bproj,
                            *, num_heads, block_b=None,
                            mxu_dtype=jnp.bfloat16, split_for_megacore=True):
    """x: (B_, N, C); wqkv: (3C, C); bqkv: (1, 3C) = [q_bias | 0 | v_bias];
    scale: (nH,) clamped+exp'd logit scale; bias: (nH, N, N); wproj: (C, C);
    bproj: (1, C)."""
    B_, N, C = x.shape
    nH = num_heads
    hd = C // nH
    mxu_dtype = jnp.dtype(mxu_dtype)
    in_bytes = mxu_dtype.itemsize

    # --- window-batch size G (= block_b windows per grid step) ---
    if block_b is None:
        # Largest divisor of B_ whose double-buffered x/out blocks fit ~8 MiB.
        per_win = N * C * (in_bytes + 4) * 2
        block_b = max(1, min(B_, (8 << 20) // max(per_win, 1)))
        if split_for_megacore and B_ >= 2:
            # v7x: keep grid a multiple of 2 so both TensorCores get work.
            # (Single-TC v5e/v6e: costs at most one extra ~0.35us grid step.)
            block_b = min(block_b, max(1, B_ // 2))
    block_b = min(block_b, B_)
    while B_ % block_b:
        block_b -= 1

    # --- wrapper-side (one-time) parameter layout / casts ---
    x_in = x.astype(mxu_dtype)
    wqkvT = wqkv.T.astype(mxu_dtype)                         # (C, 3C)
    bqkv_f = bqkv.reshape(1, 3 * C).astype(jnp.float32)      # fused qkv bias
    wprojT = wproj.T.astype(mxu_dtype)                       # (C, C)
    bproj_f = bproj.reshape(1, C).astype(jnp.float32)
    bias_f = bias.astype(jnp.float32)
    # block-diagonal per-head ones -> per-head sum-of-squares as one matmul
    nmask = jnp.asarray(np.kron(np.eye(nH, dtype=np.float32),
                                np.ones((hd, hd), dtype=np.float32)))   # (C, C)
    scale_lanes = jnp.repeat(scale.astype(jnp.float32), hd).reshape(1, C)

    kernel = functools.partial(_window_attn_kernel, num_heads=nH, head_dim=hd,
                               dim=C, block_b=block_b, seq=N)

    # --- VMEM budget from block sizes (cap 48 MiB: v7x has 64 MiB/TC;
    #     v5e/v6e can be raised toward ~112 MiB for very large blocks) ---
    blk_io = block_b * N * C * (in_bytes + 4) * 2            # double-buffered x+out
    params = ((3 * C * C + C * C) * in_bytes
              + (3 * C + C * C + C + C) * 4 + nH * N * N * 4) * 2
    interm = block_b * N * (3 * C) * 4 * 4 + block_b * N * N * 4 * 4
    vmem_limit = int(min(48 << 20, max(32 << 20, 2 * (blk_io + params + interm))))

    # --- advisory cost estimate so XLA can overlap neighbouring ops ---
    flops = (2 * B_ * N * C * 3 * C                  # fused qkv projection
             + 2 * 2 * B_ * N * C * C                # per-head sumsq matmuls (q, k)
             + 2 * 2 * B_ * nH * N * N * hd          # scores + PV
             + 2 * B_ * N * C * C)                   # output projection
    transcendentals = B_ * nH * N * N + 2 * B_ * N * C + B_ * nH * N
    bytes_accessed = (x_in.size * in_bytes + B_ * N * C * 4
                      + (wqkvT.size + wprojT.size) * in_bytes
                      + (bqkv_f.size + bproj_f.size + nmask.size
                         + scale_lanes.size + bias_f.size) * 4)

    # TODO(synk): on v7x at real Swin widths, single-buffer the grid-invariant
    # weight/bias inputs (pipeline_mode=pl.Buffered(1)) to reclaim VMEM, and
    # consider a lane-dense (B_, N*C) output slab when C < 128.
    return pl.pallas_call(
        kernel,
        out_shape=jax.ShapeDtypeStruct((B_, N, C), jnp.float32),
        grid_spec=pltpu.PrefetchScalarGridSpec(
            num_scalar_prefetch=0,
            grid=(B_ // block_b,),
            in_specs=[
                pl.BlockSpec((block_b, N, C), lambda b: (b, 0, 0)),     # x
                pl.BlockSpec((C, 3 * C), lambda b: (0, 0)),             # qkv.weight.T
                pl.BlockSpec((1, 3 * C), lambda b: (0, 0)),             # fused qkv bias
                pl.BlockSpec((C, C), lambda b: (0, 0)),                 # head-block ones
                pl.BlockSpec((1, C), lambda b: (0, 0)),                 # logit scale lanes
                pl.BlockSpec((nH, N, N), lambda b: (0, 0, 0)),          # rel-pos bias
                pl.BlockSpec((C, C), lambda b: (0, 0)),                 # proj.weight.T
                pl.BlockSpec((1, C), lambda b: (0, 0)),                 # proj bias
            ],
            out_specs=pl.BlockSpec((block_b, N, C), lambda b: (b, 0, 0)),
            scratch_shapes=[pltpu.VMEM((block_b * N, C), mxu_dtype)],
        ),
        compiler_params=pltpu.CompilerParams(
            dimension_semantics=("parallel",),
            vmem_limit_bytes=vmem_limit,
        ),
        cost_estimate=pl.CostEstimate(flops=flops,
                                      transcendentals=transcendentals,
                                      bytes_accessed=bytes_accessed),
    )(x_in, wqkvT, bqkv_f, nmask, scale_lanes, bias_f, wprojT, bproj_f)


# ----------------------------------------------------------------------------
# Parameter setup (plain JAX): cpb MLP -> relative position bias, logit scale.
# ----------------------------------------------------------------------------
def build_relative_position_bias(window_size, num_heads, cpb_w1, cpb_b1, cpb_w2):
    Wh, Ww = window_size
    N = Wh * Ww
    # relative_coords_table, normalized & log-spaced (pretrained_window_size = [0, 0])
    rch = jnp.arange(-(Wh - 1), Wh, dtype=jnp.float32)
    rcw = jnp.arange(-(Ww - 1), Ww, dtype=jnp.float32)
    table = jnp.stack(jnp.meshgrid(rch, rcw, indexing="ij"), axis=-1)     # (2Wh-1, 2Ww-1, 2)
    table = table / jnp.array([Wh - 1, Ww - 1], dtype=jnp.float32)
    table = table * 8.0
    table = jnp.sign(table) * jnp.log2(jnp.abs(table) + 1.0) / np.log2(8)

    # cpb_mlp: Linear(2,512)+ReLU -> Linear(512,nH, no bias)
    h = jnp.maximum(table @ cpb_w1.T + cpb_b1, 0.0)
    rpb_table = (h @ cpb_w2.T).reshape(-1, num_heads)                     # ((2Wh-1)(2Ww-1), nH)

    # relative_position_index
    coords = jnp.stack(jnp.meshgrid(jnp.arange(Wh), jnp.arange(Ww), indexing="ij"))
    cf = coords.reshape(2, -1)                                            # (2, N)
    rel = (cf[:, :, None] - cf[:, None, :]).transpose(1, 2, 0)            # (N, N, 2)
    rel = rel + jnp.array([Wh - 1, Ww - 1])
    idx = rel[..., 0] * (2 * Ww - 1) + rel[..., 1]                        # (N, N)

    rpb = rpb_table[idx.reshape(-1)].reshape(N, N, num_heads).transpose(2, 0, 1)
    return 16.0 * jax.nn.sigmoid(rpb)                                     # (nH, N, N)


# ----------------------------------------------------------------------------
# Pure-JAX reference (mirrors the PyTorch forward) for correctness check.
# ----------------------------------------------------------------------------
def reference(x, wqkv, bqkv, logit_scale, bias, wproj, bproj, num_heads):
    B_, N, C = x.shape
    hd = C // num_heads
    qkv = x @ wqkv.T + bqkv[0]
    qkv = qkv.reshape(B_, N, 3, num_heads, hd).transpose(2, 0, 3, 1, 4)
    q, k, v = qkv[0], qkv[1], qkv[2]
    qn = q / jnp.maximum(jnp.linalg.norm(q, axis=-1, keepdims=True), 1e-12)
    kn = k / jnp.maximum(jnp.linalg.norm(k, axis=-1, keepdims=True), 1e-12)
    attn = qn @ kn.transpose(0, 1, 3, 2)
    scale = jnp.exp(jnp.minimum(logit_scale, jnp.log(100.0)))             # (nH,1,1)
    attn = attn * scale[None]
    attn = attn + bias[None]
    attn = jax.nn.softmax(attn, axis=-1)
    out = (attn @ v).transpose(0, 2, 1, 3).reshape(B_, N, C)
    return out @ wproj.T + bproj[0]


if __name__ == "__main__":
    # small shapes consistent with the module
    dim = 32
    window_size = (8, 8)          # N = 64
    num_heads = 4
    B_ = 8                        # num_windows * batch
    N = window_size[0] * window_size[1]

    key = jax.random.PRNGKey(0)
    ks = jax.random.split(key, 10)

    x = jax.random.normal(ks[0], (B_, N, dim), dtype=jnp.float32)

    # parameters (deterministic init)
    wqkv = jax.random.normal(ks[1], (3 * dim, dim), dtype=jnp.float32) * 0.05
    q_bias = jax.random.normal(ks[2], (dim,), dtype=jnp.float32) * 0.05
    v_bias = jax.random.normal(ks[3], (dim,), dtype=jnp.float32) * 0.05
    bqkv = jnp.concatenate([q_bias, jnp.zeros((dim,), jnp.float32), v_bias])[None, :]   # (1, 3C)

    logit_scale = jnp.log(10.0 * jnp.ones((num_heads, 1, 1), jnp.float32))              # as in __init__
    scale = jnp.exp(jnp.minimum(logit_scale, jnp.log(100.0))).reshape(num_heads)        # (nH,)

    cpb_w1 = jax.random.normal(ks[4], (512, 2), dtype=jnp.float32) * 0.05
    cpb_b1 = jax.random.normal(ks[5], (512,), dtype=jnp.float32) * 0.05
    cpb_w2 = jax.random.normal(ks[6], (num_heads, 512), dtype=jnp.float32) * 0.05
    bias = build_relative_position_bias(window_size, num_heads, cpb_w1, cpb_b1, cpb_w2)  # (nH, N, N)

    wproj = jax.random.normal(ks[7], (dim, dim), dtype=jnp.float32) * 0.05
    bproj = (jax.random.normal(ks[8], (dim,), dtype=jnp.float32) * 0.05)[None, :]        # (1, C)

    out = window_attention_pallas(x, wqkv, bqkv, scale, bias, wproj, bproj,
                                  num_heads=num_heads, block_b=4)   # grid=(2,) — pipeline + megacore
    out = jax.block_until_ready(out)

    ref = reference(x, wqkv, bqkv, logit_scale, bias, wproj, bproj, num_heads)
    # bf16 MXU inputs (~2x MXU throughput, half the x/weight DMA bytes) plus the
    # approximate EUP reciprocal give ~1e-2-level agreement with the f32 reference;
    # pass mxu_dtype=jnp.float32 to window_attention_pallas for ~2e-3 parity.
    np.testing.assert_allclose(np.asarray(out), np.asarray(ref), rtol=3e-2, atol=3e-2)

    print("KERNEL_OK")
</pallas_src>

<mosaic_0001>
module attributes {stable_mosaic.version = 11 : i64} {
  func.func @_window_attn_kernel(%arg0: i32, %arg1: memref<4x64x32xbf16, #tpu.memory_space<vmem>>, %arg2: memref<32x96xbf16, #tpu.memory_space<vmem>>, %arg3: memref<1x96xf32, #tpu.memory_space<vmem>>, %arg4: memref<32x32xf32, #tpu.memory_space<vmem>>, %arg5: memref<1x32xf32, #tpu.memory_space<vmem>>, %arg6: memref<4x64x64xf32, #tpu.memory_space<vmem>>, %arg7: memref<32x32xbf16, #tpu.memory_space<vmem>>, %arg8: memref<1x32xf32, #tpu.memory_space<vmem>>, %arg9: memref<4x64x32xf32, #tpu.memory_space<vmem>>, %arg10: memref<256x32xbf16, #tpu.memory_space<vmem>>) attributes {dimension_semantics = [#tpu.dimension_semantics<parallel>], iteration_bounds = array<i64: 2>, scalar_prefetch = 0 : i64, scratch_operands = 1 : i64, tpu.core_type = #tpu.core_type<tc>, window_params = [{transform_indices = @transform_0, window_bounds = array<i64: 4, 64, 32>}, {pipeline_mode = #tpu.pipeline_mode<synchronous>, transform_indices = @transform_1, window_bounds = array<i64: 32, 96>}, {pipeline_mode = #tpu.pipeline_mode<synchronous>, transform_indices = @transform_2, window_bounds = array<i64: 1, 96>}, {pipeline_mode = #tpu.pipeline_mode<synchronous>, transform_indices = @transform_3, window_bounds = array<i64: 32, 32>}, {pipeline_mode = #tpu.pipeline_mode<synchronous>, transform_indices = @transform_4, window_bounds = array<i64: 1, 32>}, {pipeline_mode = #tpu.pipeline_mode<synchronous>, transform_indices = @transform_5, window_bounds = array<i64: 4, 64, 64>}, {pipeline_mode = #tpu.pipeline_mode<synchronous>, transform_indices = @transform_6, window_bounds = array<i64: 32, 32>}, {pipeline_mode = #tpu.pipeline_mode<synchronous>, transform_indices = @transform_7, window_bounds = array<i64: 1, 32>}, {transform_indices = @transform_8, window_bounds = array<i64: 4, 64, 32>}]} {
    %c0 = arith.constant 0 : index
    %c0_0 = arith.constant 0 : index
    %c0_1 = arith.constant 0 : index
    %0 = vector.load %arg1[%c0, %c0_0, %c0_1] : memref<4x64x32xbf16, #tpu.memory_space<vmem>>, vector<4x64x32xbf16>
    %1 = vector.shape_cast %0 : vector<4x64x32xbf16> to vector<256x32xbf16>
    %c0_2 = arith.constant 0 : index
    %c0_3 = arith.constant 0 : index
    %2 = vector.load %arg2[%c0_2, %c0_3] : memref<32x96xbf16, #tpu.memory_space<vmem>>, vector<32x96xbf16>
    %cst = arith.constant dense<0.000000e+00> : vector<256x96xf32>
    %3 = tpu.matmul %1, %2, %cst {dimension_numbers = #tpu.dot_dimension_numbers<[1], [0], [0], [1], [0, 0, 1, 1], [], []>} : vector<256x32xbf16>, vector<32x96xbf16>, vector<256x96xf32> -> vector<256x96xf32>
    %c0_4 = arith.constant 0 : index
    %c0_5 = arith.constant 0 : index
    %4 = vector.load %arg3[%c0_4, %c0_5] : memref<1x96xf32, #tpu.memory_space<vmem>>, vector<1x96xf32>
    %5 = vector.broadcast %4 : vector<1x96xf32> to vector<256x96xf32>
    %6 = arith.addf %3, %5 : vector<256x96xf32>
    %7 = vector.extract_strided_slice %6 {offsets = [0, 0], sizes = [256, 32], strides = [1, 1]} : vector<256x96xf32> to vector<256x32xf32>
    %8 = vector.extract_strided_slice %6 {offsets = [0, 32], sizes = [256, 32], strides = [1, 1]} : vector<256x96xf32> to vector<256x32xf32>
    %9 = vector.extract_strided_slice %6 {offsets = [0, 64], sizes = [256, 32], strides = [1, 1]} : vector<256x96xf32> to vector<256x32xf32>
    %c0_6 = arith.constant 0 : index
    %c0_7 = arith.constant 0 : index
    %10 = vector.load %arg4[%c0_6, %c0_7] : memref<32x32xf32, #tpu.memory_space<vmem>>, vector<32x32xf32>
    %11 = arith.mulf %7, %7 : vector<256x32xf32>
    %cst_8 = arith.constant dense<0.000000e+00> : vector<256x32xf32>
    %12 = tpu.matmul %11, %10, %cst_8 {dimension_numbers = #tpu.dot_dimension_numbers<[1], [0], [0], [1], [0, 0, 1, 1], [], []>} : vector<256x32xf32>, vector<32x32xf32>, vector<256x32xf32> -> vector<256x32xf32>
    %13 = arith.mulf %8, %8 : vector<256x32xf32>
    %cst_9 = arith.constant dense<0.000000e+00> : vector<256x32xf32>
    %14 = tpu.matmul %13, %10, %cst_9 {dimension_numbers = #tpu.dot_dimension_numbers<[1], [0], [0], [1], [0, 0, 1, 1], [], []>} : vector<256x32xf32>, vector<32x32xf32>, vector<256x32xf32> -> vector<256x32xf32>
    %cst_10 = arith.constant 1.000000e-24 : f32
    %15 = vector.broadcast %cst_10 : f32 to vector<256x32xf32>
    %16 = arith.maximumf %12, %15 : vector<256x32xf32>
    %17 = math.rsqrt %16 : vector<256x32xf32>
    %18 = arith.mulf %7, %17 : vector<256x32xf32>
    %c0_11 = arith.constant 0 : index
    %c0_12 = arith.constant 0 : index
    %19 = vector.load %arg5[%c0_11, %c0_12] : memref<1x32xf32, #tpu.memory_space<vmem>>, vector<1x32xf32>
    %20 = vector.broadcast %19 : vector<1x32xf32> to vector<256x32xf32>
    %21 = arith.mulf %18, %20 : vector<256x32xf32>
    %22 = arith.truncf %21 : vector<256x32xf32> to vector<256x32xbf16>
    %cst_13 = arith.constant 1.000000e-24 : f32
    %23 = vector.broadcast %cst_13 : f32 to vector<256x32xf32>
    %24 = arith.maximumf %14, %23 : vector<256x32xf32>
    %25 = math.rsqrt %24 : vector<256x32xf32>
    %26 = arith.mulf %8, %25 : vector<256x32xf32>
    %27 = arith.truncf %26 : vector<256x32xf32> to vector<256x32xbf16>
    %28 = arith.truncf %9 : vector<256x32xf32> to vector<256x32xbf16>
    %29 = vector.extract_strided_slice %22 {offsets = [0, 0], sizes = [256, 8], strides = [1, 1]} : vector<256x32xbf16> to vector<256x8xbf16>
    %30 = vector.shape_cast %29 : vector<256x8xbf16> to vector<4x64x8xbf16>
    %31 = vector.extract_strided_slice %27 {offsets = [0, 0], sizes = [256, 8], strides = [1, 1]} : vector<256x32xbf16> to vector<256x8xbf16>
    %32 = vector.shape_cast %31 : vector<256x8xbf16> to vector<4x64x8xbf16>
    %33 = vector.extract_strided_slice %28 {offsets = [0, 0], sizes = [256, 8], strides = [1, 1]} : vector<256x32xbf16> to vector<256x8xbf16>
    %34 = vector.shape_cast %33 : vector<256x8xbf16> to vector<4x64x8xbf16>
    "tpu.trace_start"() <{level = 10 : i32, message = "gnd,gmd->gnm"}> : () -> ()
    %cst_14 = arith.constant dense<0.000000e+00> : vector<4x64x64xf32>
    %35 = tpu.matmul %30, %32, %cst_14 {dimension_numbers = #tpu.dot_dimension_numbers<[2], [2], [1], [1], [0, 0, 0, 1, 1, 1], [0], [0]>} : vector<4x64x8xbf16>, vector<4x64x8xbf16>, vector<4x64x64xf32> -> vector<4x64x64xf32>
    "tpu.trace_stop"() : () -> ()
    %c0_15 = arith.constant 0 : index
    %c0_16 = arith.constant 0 : index
    %c0_17 = arith.constant 0 : index
    %36 = vector.load %arg6[%c0_15, %c0_16, %c0_17] : memref<4x64x64xf32, #tpu.memory_space<vmem>>, vector<1x64x64xf32>
    %37 = vector.shape_cast %36 : vector<1x64x64xf32> to vector<64x64xf32>
    %38 = vector.shape_cast %37 : vector<64x64xf32> to vector<1x64x64xf32>
    %39 = vector.broadcast %38 : vector<1x64x64xf32> to vector<4x64x64xf32>
    %40 = arith.addf %35, %39 : vector<4x64x64xf32>
    %cst_18 = arith.constant dense<0xFF800000> : vector<4x64xf32>
    %41 = vector.multi_reduction <maximumf>, %40, %cst_18 [2] : vector<4x64x64xf32> to vector<4x64xf32>
    %42 = vector.shape_cast %41 : vector<4x64xf32> to vector<4x64x1xf32>
    %43 = vector.broadcast %42 : vector<4x64x1xf32> to vector<4x64x64xf32>
    %44 = arith.subf %40, %43 : vector<4x64x64xf32>
    %45 = math.exp %44 : vector<4x64x64xf32>
    %cst_19 = arith.constant dense<0.000000e+00> : vector<4x64xf32>
    %46 = vector.multi_reduction <add>, %45, %cst_19 [2] : vector<4x64x64xf32> to vector<4x64xf32>
    %47 = vector.shape_cast %46 : vector<4x64xf32> to vector<4x64x1xf32>
    %48 = tpu.reciprocal %47 {approx = true} : vector<4x64x1xf32> -> vector<4x64x1xf32>
    %49 = vector.broadcast %48 : vector<4x64x1xf32> to vector<4x64x64xf32>
    %50 = arith.mulf %45, %49 : vector<4x64x64xf32>
    %51 = arith.truncf %50 : vector<4x64x64xf32> to vector<4x64x64xbf16>
    "tpu.trace_start"() <{level = 10 : i32, message = "gnm,gmd->gnd"}> : () -> ()
    %cst_20 = arith.constant dense<0.000000e+00> : vector<4x64x8xf32>
    %52 = tpu.matmul %51, %34, %cst_20 {dimension_numbers = #tpu.dot_dimension_numbers<[2], [1], [1], [2], [0, 0, 0, 1, 1, 2], [0], [0]>} : vector<4x64x64xbf16>, vector<4x64x8xbf16>, vector<4x64x8xf32> -> vector<4x64x8xf32>
    "tpu.trace_stop"() : () -> ()
    %53 = vector.shape_cast %52 : vector<4x64x8xf32> to vector<256x8xf32>
    %54 = arith.truncf %53 : vector<256x8xf32> to vector<256x8xbf16>
    %c0_21 = arith.constant 0 : index
    %c0_22 = arith.constant 0 : index
    %55 = vector.load %arg10[%c0_21, %c0_22] : memref<256x32xbf16, #tpu.memory_space<vmem>>, vector<256x8xbf16>
    tpu.vector_store %arg10[%c0_21, %c0_22], %54 {strides = array<i32>} : memref<256x32xbf16, #tpu.memory_space<vmem>>, vector<256x8xbf16>,
    %56 = vector.extract_strided_slice %22 {offsets = [0, 8], sizes = [256, 8], strides = [1, 1]} : vector<256x32xbf16> to vector<256x8xbf16>
    %57 = vector.shape_cast %56 : vector<256x8xbf16> to vector<4x64x8xbf16>
    %58 = vector.extract_strided_slice %27 {offsets = [0, 8], sizes = [256, 8], strides = [1, 1]} : vector<256x32xbf16> to vector<256x8xbf16>
    %59 = vector.shape_cast %58 : vector<256x8xbf16> to vector<4x64x8xbf16>
    %60 = vector.extract_strided_slice %28 {offsets = [0, 8], sizes = [256, 8], strides = [1, 1]} : vector<256x32xbf16> to vector<256x8xbf16>
    %61 = vector.shape_cast %60 : vector<256x8xbf16> to vector<4x64x8xbf16>
    "tpu.trace_start"() <{level = 10 : i32, message = "gnd,gmd->gnm"}> : () -> ()
    %cst_23 = arith.constant dense<0.000000e+00> : vector<4x64x64xf32>
    %62 = tpu.matmul %57, %59, %cst_23 {dimension_numbers = #tpu.dot_dimension_numbers<[2], [2], [1], [1], [0, 0, 0, 1, 1, 1], [0], [0]>} : vector<4x64x8xbf16>, vector<4x64x8xbf16>, vector<4x64x64xf32> -> vector<4x64x64xf32>
    "tpu.trace_stop"() : () -> ()
    %c1 = arith.constant 1 : index
    %c0_24 = arith.constant 0 : index
    %c0_25 = arith.constant 0 : index
    %63 = vector.load %arg6[%c1, %c0_24, %c0_25] : memref<4x64x64xf32, #tpu.memory_space<vmem>>, vector<1x64x64xf32>
    %64 = vector.shape_cast %63 : vector<1x64x64xf32> to vector<64x64xf32>
    %65 = vector.shape_cast %64 : vector<64x64xf32> to vector<1x64x64xf32>
    %66 = vector.broadcast %65 : vector<1x64x64xf32> to vector<4x64x64xf32>
    %67 = arith.addf %62, %66 : vector<4x64x64xf32>
    %cst_26 = arith.constant dense<0xFF800000> : vector<4x64xf32>
    %68 = vector.multi_reduction <maximumf>, %67, %cst_26 [2] : vector<4x64x64xf32> to vector<4x64xf32>
    %69 = vector.shape_cast %68 : vector<4x64xf32> to vector<4x64x1xf32>
    %70 = vector.broadcast %69 : vector<4x64x1xf32> to vector<4x64x64xf32>
    %71 = arith.subf %67, %70 : vector<4x64x64xf32>
    %72 = math.exp %71 : vector<4x64x64xf32>
    %cst_27 = arith.constant dense<0.000000e+00> : vector<4x64xf32>
    %73 = vector.multi_reduction <add>, %72, %cst_27 [2] : vector<4x64x64xf32> to vector<4x64xf32>
    %74 = vector.shape_cast %73 : vector<4x64xf32> to vector<4x64x1xf32>
    %75 = tpu.reciprocal %74 {approx = true} : vector<4x64x1xf32> -> vector<4x64x1xf32>
    %76 = vector.broadcast %75 : vector<4x64x1xf32> to vector<4x64x64xf32>
    %77 = arith.mulf %72, %76 : vector<4x64x64xf32>
    %78 = arith.truncf %77 : vector<4x64x64xf32> to vector<4x64x64xbf16>
    "tpu.trace_start"() <{level = 10 : i32, message = "gnm,gmd->gnd"}> : () -> ()
    %cst_28 = arith.constant dense<0.000000e+00> : vector<4x64x8xf32>
    %79 = tpu.matmul %78, %61, %cst_28 {dimension_numbers = #tpu.dot_dimension_numbers<[2], [1], [1], [2], [0, 0, 0, 1, 1, 2], [0], [0]>} : vector<4x64x64xbf16>, vector<4x64x8xbf16>, vector<4x64x8xf32> -> vector<4x64x8xf32>
    "tpu.trace_stop"() : () -> ()
    %80 = vector.shape_cast %79 : vector<4x64x8xf32> to vector<256x8xf32>
    %81 = arith.truncf %80 : vector<256x8xf32> to vector<256x8xbf16>
    %c0_29 = arith.constant 0 : index
    %c8 = arith.constant 8 : index
    %82 = vector.load %arg10[%c0_29, %c8] : memref<256x32xbf16, #tpu.memory_space<vmem>>, vector<256x8xbf16>
    tpu.vector_store %arg10[%c0_29, %c8], %81 {strides = array<i32>} : memref<256x32xbf16, #tpu.memory_space<vmem>>, vector<256x8xbf16>,
    %83 = vector.extract_strided_slice %22 {offsets = [0, 16], sizes = [256, 8], strides = [1, 1]} : vector<256x32xbf16> to vector<256x8xbf16>
    %84 = vector.shape_cast %83 : vector<256x8xbf16> to vector<4x64x8xbf16>
    %85 = vector.extract_strided_slice %27 {offsets = [0, 16], sizes = [256, 8], strides = [1, 1]} : vector<256x32xbf16> to vector<256x8xbf16>
    %86 = vector.shape_cast %85 : vector<256x8xbf16> to vector<4x64x8xbf16>
    %87 = vector.extract_strided_slice %28 {offsets = [0, 16], sizes = [256, 8], strides = [1, 1]} : vector<256x32xbf16> to vector<256x8xbf16>
    %88 = vector.shape_cast %87 : vector<256x8xbf16> to vector<4x64x8xbf16>
    "tpu.trace_start"() <{level = 10 : i32, message = "gnd,gmd->gnm"}> : () -> ()
    %cst_30 = arith.constant dense<0.000000e+00> : vector<4x64x64xf32>
    %89 = tpu.matmul %84, %86, %cst_30 {dimension_numbers = #tpu.dot_dimension_numbers<[2], [2], [1], [1], [0, 0, 0, 1, 1, 1], [0], [0]>} : vector<4x64x8xbf16>, vector<4x64x8xbf16>, vector<4x64x64xf32> -> vector<4x64x64xf32>
    "tpu.trace_stop"() : () -> ()
    %c2 = arith.constant 2 : index
    %c0_31 = arith.constant 0 : index
    %c0_32 = arith.constant 0 : index
    %90 = vector.load %arg6[%c2, %c0_31, %c0_32] : memref<4x64x64xf32, #tpu.memory_space<vmem>>, vector<1x64x64xf32>
    %91 = vector.shape_cast %90 : vector<1x64x64xf32> to vector<64x64xf32>
    %92 = vector.shape_cast %91 : vector<64x64xf32> to vector<1x64x64xf32>
    %93 = vector.broadcast %92 : vector<1x64x64xf32> to vector<4x64x64xf32>
    %94 = arith.addf %89, %93 : vector<4x64x64xf32>
    %cst_33 = arith.constant dense<0xFF800000> : vector<4x64xf32>
    %95 = vector.multi_reduction <maximumf>, %94, %cst_33 [2] : vector<4x64x64xf32> to vector<4x64xf32>
    %96 = vector.shape_cast %95 : vector<4x64xf32> to vector<4x64x1xf32>
    %97 = vector.broadcast %96 : vector<4x64x1xf32> to vector<4x64x64xf32>
    %98 = arith.subf %94, %97 : vector<4x64x64xf32>
    %99 = math.exp %98 : vector<4x64x64xf32>
    %cst_34 = arith.constant dense<0.000000e+00> : vector<4x64xf32>
    %100 = vector.multi_reduction <add>, %99, %cst_34 [2] : vector<4x64x64xf32> to vector<4x64xf32>
    %101 = vector.shape_cast %100 : vector<4x64xf32> to vector<4x64x1xf32>
    %102 = tpu.reciprocal %101 {approx = true} : vector<4x64x1xf32> -> vector<4x64x1xf32>
    %103 = vector.broadcast %102 : vector<4x64x1xf32> to vector<4x64x64xf32>
    %104 = arith.mulf %99, %103 : vector<4x64x64xf32>
    %105 = arith.truncf %104 : vector<4x64x64xf32> to vector<4x64x64xbf16>
    "tpu.trace_start"() <{level = 10 : i32, message = "gnm,gmd->gnd"}> : () -> ()
    %cst_35 = arith.constant dense<0.000000e+00> : vector<4x64x8xf32>
    %106 = tpu.matmul %105, %88, %cst_35 {dimension_numbers = #tpu.dot_dimension_numbers<[2], [1], [1], [2], [0, 0, 0, 1, 1, 2], [0], [0]>} : vector<4x64x64xbf16>, vector<4x64x8xbf16>, vector<4x64x8xf32> -> vector<4x64x8xf32>
    "tpu.trace_stop"() : () -> ()
    %107 = vector.shape_cast %106 : vector<4x64x8xf32> to vector<256x8xf32>
    %108 = arith.truncf %107 : vector<256x8xf32> to vector<256x8xbf16>
    %c0_36 = arith.constant 0 : index
    %c16 = arith.constant 16 : index
    %109 = vector.load %arg10[%c0_36, %c16] : memref<256x32xbf16, #tpu.memory_space<vmem>>, vector<256x8xbf16>
    tpu.vector_store %arg10[%c0_36, %c16], %108 {strides = array<i32>} : memref<256x32xbf16, #tpu.memory_space<vmem>>, vector<256x8xbf16>,
    %110 = vector.extract_strided_slice %22 {offsets = [0, 24], sizes = [256, 8], strides = [1, 1]} : vector<256x32xbf16> to vector<256x8xbf16>
    %111 = vector.shape_cast %110 : vector<256x8xbf16> to vector<4x64x8xbf16>
    %112 = vector.extract_strided_slice %27 {offsets = [0, 24], sizes = [256, 8], strides = [1, 1]} : vector<256x32xbf16> to vector<256x8xbf16>
    %113 = vector.shape_cast %112 : vector<256x8xbf16> to vector<4x64x8xbf16>
    %114 = vector.extract_strided_slice %28 {offsets = [0, 24], sizes = [256, 8], strides = [1, 1]} : vector<256x32xbf16> to vector<256x8xbf16>
    %115 = vector.shape_cast %114 : vector<256x8xbf16> to vector<4x64x8xbf16>
    "tpu.trace_start"() <{level = 10 : i32, message = "gnd,gmd->gnm"}> : () -> ()
    %cst_37 = arith.constant dense<0.000000e+00> : vector<4x64x64xf32>
    %116 = tpu.matmul %111, %113, %cst_37 {dimension_numbers = #tpu.dot_dimension_numbers<[2], [2], [1], [1], [0, 0, 0, 1, 1, 1], [0], [0]>} : vector<4x64x8xbf16>, vector<4x64x8xbf16>, vector<4x64x64xf32> -> vector<4x64x64xf32>
    "tpu.trace_stop"() : () -> ()
    %c3 = arith.constant 3 : index
    %c0_38 = arith.constant 0 : index
    %c0_39 = arith.constant 0 : index
    %117 = vector.load %arg6[%c3, %c0_38, %c0_39] : memref<4x64x64xf32, #tpu.memory_space<vmem>>, vector<1x64x64xf32>
    %118 = vector.shape_cast %117 : vector<1x64x64xf32> to vector<64x64xf32>
    %119 = vector.shape_cast %118 : vector<64x64xf32> to vector<1x64x64xf32>
    %120 = vector.broadcast %119 : vector<1x64x64xf32> to vector<4x64x64xf32>
    %121 = arith.addf %116, %120 : vector<4x64x64xf32>
    %cst_40 = arith.constant dense<0xFF800000> : vector<4x64xf32>
    %122 = vector.multi_reduction <maximumf>, %121, %cst_40 [2] : vector<4x64x64xf32> to vector<4x64xf32>
    %123 = vector.shape_cast %122 : vector<4x64xf32> to vector<4x64x1xf32>
    %124 = vector.broadcast %123 : vector<4x64x1xf32> to vector<4x64x64xf32>
    %125 = arith.subf %121, %124 : vector<4x64x64xf32>
    %126 = math.exp %125 : vector<4x64x64xf32>
    %cst_41 = arith.constant dense<0.000000e+00> : vector<4x64xf32>
    %127 = vector.multi_reduction <add>, %126, %cst_41 [2] : vector<4x64x64xf32> to vector<4x64xf32>
    %128 = vector.shape_cast %127 : vector<4x64xf32> to vector<4x64x1xf32>
    %129 = tpu.reciprocal %128 {approx = true} : vector<4x64x1xf32> -> vector<4x64x1xf32>
    %130 = vector.broadcast %129 : vector<4x64x1xf32> to vector<4x64x64xf32>
    %131 = arith.mulf %126, %130 : vector<4x64x64xf32>
    %132 = arith.truncf %131 : vector<4x64x64xf32> to vector<4x64x64xbf16>
    "tpu.trace_start"() <{level = 10 : i32, message = "gnm,gmd->gnd"}> : () -> ()
    %cst_42 = arith.constant dense<0.000000e+00> : vector<4x64x8xf32>
    %133 = tpu.matmul %132, %115, %cst_42 {dimension_numbers = #tpu.dot_dimension_numbers<[2], [1], [1], [2], [0, 0, 0, 1, 1, 2], [0], [0]>} : vector<4x64x64xbf16>, vector<4x64x8xbf16>, vector<4x64x8xf32> -> vector<4x64x8xf32>
    "tpu.trace_stop"() : () -> ()
    %134 = vector.shape_cast %133 : vector<4x64x8xf32> to vector<256x8xf32>
    %135 = arith.truncf %134 : vector<256x8xf32> to vector<256x8xbf16>
    %c0_43 = arith.constant 0 : index
    %c24 = arith.constant 24 : index
    %136 = vector.load %arg10[%c0_43, %c24] : memref<256x32xbf16, #tpu.memory_space<vmem>>, vector<256x8xbf16>
    tpu.vector_store %arg10[%c0_43, %c24], %135 {strides = array<i32>} : memref<256x32xbf16, #tpu.memory_space<vmem>>, vector<256x8xbf16>,
    %c0_44 = arith.constant 0 : index
    %c0_45 = arith.constant 0 : index
    %137 = vector.load %arg10[%c0_44, %c0_45] : memref<256x32xbf16, #tpu.memory_space<vmem>>, vector<256x32xbf16>
    %c0_46 = arith.constant 0 : index
    %c0_47 = arith.constant 0 : index
    %138 = vector.load %arg7[%c0_46, %c0_47] : memref<32x32xbf16, #tpu.memory_space<vmem>>, vector<32x32xbf16>
    %cst_48 = arith.constant dense<0.000000e+00> : vector<256x32xf32>
    %139 = tpu.matmul %137, %138, %cst_48 {dimension_numbers = #tpu.dot_dimension_numbers<[1], [0], [0], [1], [0, 0, 1, 1], [], []>} : vector<256x32xbf16>, vector<32x32xbf16>, vector<256x32xf32> -> vector<256x32xf32>
    %c0_49 = arith.constant 0 : index
    %c0_50 = arith.constant 0 : index
    %140 = vector.load %arg8[%c0_49, %c0_50] : memref<1x32xf32, #tpu.memory_space<vmem>>, vector<1x32xf32>
    %141 = vector.broadcast %140 : vector<1x32xf32> to vector<256x32xf32>
    %142 = arith.addf %139, %141 : vector<256x32xf32>
    %143 = vector.shape_cast %142 : vector<256x32xf32> to vector<4x64x32xf32>
    %c0_51 = arith.constant 0 : index
    %c0_52 = arith.constant 0 : index
    %c0_53 = arith.constant 0 : index
    %144 = vector.load %arg9[%c0_51, %c0_52, %c0_53] : memref<4x64x32xf32, #tpu.memory_space<vmem>>, vector<4x64x32xf32>
    tpu.vector_store %arg9[%c0_51, %c0_52, %c0_53], %143 {strides = array<i32>} : memref<4x64x32xf32, #tpu.memory_space<vmem>>, vector<4x64x32xf32>,
    return
  }
  func.func @transform_0(%arg0: i32) -> (i32, i32, i32) {
    %c0_i32 = arith.constant 0 : i32
    %c0_i32_0 = arith.constant 0 : i32
    %c0_i32_1 = arith.constant 0 : i32
    return %arg0, %c0_i32, %c0_i32_0 : i32, i32, i32
  }
  func.func @transform_1(%arg0: i32) -> (i32, i32) {
    %c0_i32 = arith.constant 0 : i32
    %c0_i32_0 = arith.constant 0 : i32
    %c0_i32_1 = arith.constant 0 : i32
    return %c0_i32, %c0_i32_0 : i32, i32
  }
  func.func @transform_2(%arg0: i32) -> (i32, i32) {
    %c0_i32 = arith.constant 0 : i32
    %c0_i32_0 = arith.constant 0 : i32
    %c0_i32_1 = arith.constant 0 : i32
    return %c0_i32, %c0_i32_0 : i32, i32
  }
  func.func @transform_3(%arg0: i32) -> (i32, i32) {
    %c0_i32 = arith.constant 0 : i32
    %c0_i32_0 = arith.constant 0 : i32
    %c0_i32_1 = arith.constant 0 : i32
    return %c0_i32, %c0_i32_0 : i32, i32
  }
  func.func @transform_4(%arg0: i32) -> (i32, i32) {
    %c0_i32 = arith.constant 0 : i32
    %c0_i32_0 = arith.constant 0 : i32
    %c0_i32_1 = arith.constant 0 : i32
    return %c0_i32, %c0_i32_0 : i32, i32
  }
  func.func @transform_5(%arg0: i32) -> (i32, i32, i32) {
    %c0_i32 = arith.constant 0 : i32
    %c0_i32_0 = arith.constant 0 : i32
    %c0_i32_1 = arith.constant 0 : i32
    %c0_i32_2 = arith.constant 0 : i32
    return %c0_i32, %c0_i32_0, %c0_i32_1 : i32, i32, i32
  }
  func.func @transform_6(%arg0: i32) -> (i32, i32) {
    %c0_i32 = arith.constant 0 : i32
    %c0_i32_0 = arith.constant 0 : i32
    %c0_i32_1 = arith.constant 0 : i32
    return %c0_i32, %c0_i32_0 : i32, i32
  }
  func.func @transform_7(%arg0: i32) -> (i32, i32) {
    %c0_i32 = arith.constant 0 : i32
    %c0_i32_0 = arith.constant 0 : i32
    %c0_i32_1 = arith.constant 0 : i32
    return %c0_i32, %c0_i32_0 : i32, i32
  }
  func.func @transform_8(%arg0: i32) -> (i32, i32, i32) {
    %c0_i32 = arith.constant 0 : i32
    %c0_i32_0 = arith.constant 0 : i32
    %c0_i32_1 = arith.constant 0 : i32
    return %arg0, %c0_i32, %c0_i32_0 : i32, i32, i32
  }
}

</mosaic_0001>

<bundles_post_ra>
// kernel: tpu_custom_call.1
= control target key start
LH: loop header
LB: loop body
LE: loop exit
PB: predicated region body
PF: predicated region fallthrough
CT: control target
= control target key end

     0   :  { %s9248_s27 = smov 0   ;;  %s12812_s0 = inlined_call_operand.vmem [shape: bf16[8,64,32], index: 0, kind: input, shape index: {}]   ;;  %s12813_s1 = inlined_call_operand.vmem [shape: bf16[32,96], index: 1, kind: input, shape index: {}]   ;;  %s12814_s2 = inlined_call_operand.vmem [shape: f32[1,96], index: 2, kind: input, shape index: {}]   ;;  %s12815_s3 = inlined_call_operand.vmem [shape: f32[32,32], index: 3, kind: input, shape index: {}]   ;;  %s12816_s4 = inlined_call_operand.vmem [shape: f32[1,32], index: 4, kind: input, shape index: {}]   ;;  %s12817_s5 = inlined_call_operand.vmem [shape: f32[4,64,64], index: 5, kind: input, shape index: {}]   ;;  %s12818_s6 = inlined_call_operand.vmem [shape: bf16[32,32], index: 6, kind: input, shape index: {}]   ;;  %s12819_s7 = inlined_call_operand.vmem [shape: f32[1,32], index: 7, kind: input, shape index: {}]   ;;  %s12820_s8 = inlined_call_operand.vmem [shape: f32[8,64,32], index: 8, kind: output, shape index: {}]  }
   0x1 LB: > { %s7067_s28 = sadd.s32 4294967295, %s9186_s27   ;;  %p7071_p0 = scmp.ge.s32.totalorder %s9186_s27, 1  ;;  %s9186_s27 = sphi %s9248_s27, %s18_s27  }
   0x2   : > { %p264_p1 = scmp.lt.s32.totalorder %s9186_s27, 3 }
   0x4   : > { %p265_p2 = pnand %p7071_p0, %p264_p1 }
   0x6   : > { %268 = sbr.rel (%p265_p2) target bundleno = 4036 (0xfc4), region = 52 }
   0xd   : > { %v8520_v0 = vld [vmem:[%s12813_s1] sm:$0xff]   ;;  %s7072_s9 = sshll.u32 %s7067_s28, 2  ;;  %v8521_v1 = vld [vmem:[%s12813_s1 + $0x8] sm:$0xff]   ;;  %vm450_vm0 = vcmask 261120   ;;  %v662_v21 = vld [vmem:[%s12815_s3 + $0x10] sm:$0xff]  ;;  %s9188_s26 = smov 96  }
   0xe   : > { %p301_p3 = scmp.lt.s32.totalorder %s7072_s9, 7  ;;  %7717 = vmatprep.subr.bf16.mxu0 %v8520_v0  ;;  %8429 = vmatprep.subr.bf16.mxu1 %v8520_v0  ;;  %v660_v18 = vld [vmem:[%s12815_s3] sm:$0xff]  ;;  %v661_v19 = vld [vmem:[%s12815_s3 + $0x8] sm:$0xff]  ;;  %v663_v22 = vld [vmem:[%s12815_s3 + $0x18] sm:$0xff]  ;;  %vm1797_vm1 = vcmask 64512   ;;  %s9189_s30 = smov 32  }
   0xf   : > { %7718 = vmatpush3.bf16.msra.mxu0 %v8520_v0  ;;  %8431 = vmatpush3.bf16.msra.mxu1 %v8520_v0  ;;  %v8413_v20 = vpack.c.bf16 %v661_v19, %v660_v18  ;;  %v8417_v23 = vpack.c.bf16 %v663_v22, %v662_v21  ;;  %v9317_v24 = vld [vmem:[%s12814_s2] ss:$0 sm:$0xff]  ;;  %s9190_s10 = smov 64   ;;  %s9191_s11 = smov 88   ;;  %vm2190_vm2 = vcmask 523264   ;;  %vm4212_vm3 = vcmask 130112  }
  0x10   : > { %s13341_s9 = smov (!%p301_p3, %s7072_s9), 7  ;;  %7719 = vmatprep.subr.bf16.mxu0 %v8521_v1  ;;  %8430 = vmatprep.subr.bf16.mxu1 %v8521_v1  ;;  %s9196_s29 = smov 48   ;;  %vm5462_vm4 = vcmask 195712   ;;  %vm6712_vm5 = vcmask 261312  }
  0x11   : > { %s7351_s12 = sshll.u32 %s13341_s9, 5  ;;  %s9199_s28 = smov 40  }
  0x12   : > { %s9268_s15 = scalar_lea.vmem %s12812_s0, %s7351_s12  ;;  %s9192_s12 = smov 120  }
  0x13   : > { %7720 = vmatpush3.bf16.msra.mxu0 %v8521_v1  ;;  %v8522_v2 = vld [vmem:[%s9268_s15] sm:$0xff]   ;;  %8432 = vmatpush3.bf16.msra.mxu1 %v8521_v1  ;;  %v8523_v3 = vld [vmem:[%s9268_s15 + $0x8] sm:$0xff]   ;;  %v8524_v4 = vld [vmem:[%s9268_s15 + $0x10] sm:$0xff]   ;;  %s9200_s24 = smov 8   ;;  %s9201_s25 = smov 16  }
  0x14   : > { %7721 = vmatprep.mubr.msk.bf16.mxu0 %vm450_vm0, %v8522_v2  ;;  %v8525_v5 = vld [vmem:[%s9268_s15 + $0x18] sm:$0xff]   ;;  %v8526_v6 = vld [vmem:[%s9268_s15 + $0x20] sm:$0xff]   ;;  %v8531_v8 = vld [vmem:[%s9268_s15 + $0x48] sm:$0xff]   ;;  %8414 = vmatprep.subr.bf16.mxu1 %v8413_v20 }
  0x15   : > { %v8530_v7 = vld [vmem:[%s9268_s15 + $0x40] sm:$0xff]   ;;  %v8532_v9 = vld [vmem:[%s9268_s15 + $0x50] sm:$0xff]   ;;  %v8527_v10 = vld [vmem:[%s9268_s15 + $0x28] sm:$0xff]   ;;  %8422 = vmatprep.subr.bf16.mxu0 %v8413_v20 }
  0x16   : > { %7722 = vmatmul.mubr.msk.bf16.vlgmr.msra.gmra.mrb[0].mxu0 %vm450_vm0, %v8523_v3  ;;  %7737 = vmatprep.mubr.msk.bf16.mxu1 %vm450_vm0, %v8530_v7  ;;  %v8533_v11 = vld [vmem:[%s9268_s15 + $0x58] sm:$0xff]   ;;  %v8528_v12 = vld [vmem:[%s9268_s15 + $0x30] sm:$0xff]   ;;  %v8534_v13 = vld [vmem:[%s9268_s15 + $0x60] sm:$0xff]  }
  0x17   : > { %7725 = vmatprep.mubr.msk.bf16.mxu0 %vm450_vm0, %v8524_v4  ;;  %7738 = vmatmul.mubr.msk.bf16.vlgmr.msra.gmra.mrb[0].mxu1 %vm450_vm0, %v8531_v8  ;;  %v8529_v14 = vld [vmem:[%s9268_s15 + $0x38] sm:$0xff]   ;;  %v8535_v15 = vld [vmem:[%s9268_s15 + $0x68] sm:$0xff]   ;;  %v8536_v16 = vld [vmem:[%s9268_s15 + $0x70] sm:$0xff]  }
  0x18   : > { %7741 = vmatprep.mubr.msk.bf16.mxu1 %vm450_vm0, %v8532_v9  ;;  %v8537_v17 = vld [vmem:[%s9268_s15 + $0x78] sm:$0xff]   ;;  %8416 = vmatpush3.bf16.msra.mxu1 %v8413_v20 }
  0x19   : > { %8424 = vmatpush3.bf16.msra.mxu0 %v8413_v20  ;;  %8418 = vmatprep.subr.bf16.mxu1 %v8417_v23 }
  0x1a   : > { %8426 = vmatprep.subr.bf16.mxu0 %v8417_v23 }
  0x1c   : > { %8420 = vmatpush3.bf16.msra.mxu1 %v8417_v23 }
  0x1d   : > { %8428 = vmatpush3.bf16.msra.mxu0 %v8417_v23 }
  0x1e   : > { %7726 = vmatmul.mubr.msk.bf16.gmra.mrb[4].mxu0 %vm450_vm0, %v8525_v5 }
  0x1f   : > { %7729 = vmatprep.mubr.msk.bf16.mxu0 %vm450_vm0, %v8526_v6  ;;  %7742 = vmatmul.mubr.msk.bf16.gmra.mrb[4].mxu1 %vm450_vm0, %v8533_v11 }
  0x20   : > { %7745 = vmatprep.mubr.msk.bf16.mxu1 %vm450_vm0, %v8534_v13 }
  0x26   : > { %7730 = vmatmul.mubr.msk.bf16.gmra.mrb[8].mxu0 %vm450_vm0, %v8527_v10 }
  0x27   : > { %7733 = vmatprep.mubr.msk.bf16.mxu0 %vm450_vm0, %v8528_v12  ;;  %7746 = vmatmul.mubr.msk.bf16.gmra.mrb[8].mxu1 %vm450_vm0, %v8535_v15 }
  0x28   : > { %7749 = vmatprep.mubr.msk.bf16.mxu1 %vm450_vm0, %v8536_v16 }
  0x2e   : > { %7734 = vmatmul.mubr.msk.bf16.gmra.mrb[12].mxu0 %vm450_vm0, %v8529_v14 }
  0x2f   : > { %7750 = vmatmul.mubr.msk.bf16.gmra.mrb[12].mxu1 %vm450_vm0, %v8537_v17 }
  0xe9   : > { %v7723_v25 = vpop.f32.mrb[0].mxu0 }
  0xea   : > { %v9320_v26 = vadd.f32 %v7723_v25, %v9317_v24  ;;  %v533_v27 = vpop.f32.mrb[1].mxu0  ;;  %v9343_v38 = vpop.f32.mrb[0].mxu1 }
  0xeb   : > { %v9323_v28 = vadd.f32 %v9317_v24, %v533_v27  ;;  %v7724_v29 = vpop.f32.mrb[2].mxu0  ;;  %v597_v41 = vpop.f32.mrb[1].mxu1  ;;  %v9443_v25 = vadd.f32 %v9343_v38, %v9317_v24 }
  0xec   : > { %v9326_v30 = vadd.f32 %v7724_v29, %v9317_v24  ;;  %v536_v31 = vpop.f32.mrb[3].mxu0  ;;  %v666_v32 = vmul.f32 %v9320_v26, %v9320_v26  ;;  %v9354_v44 = vpop.f32.mrb[2].mxu1  ;;  %v9426_v18 = vadd.f32 %v9317_v24, %v597_v41 }
  0xed   : > { %v9331_v33 = vadd.f32 %v9317_v24, %v536_v31  ;;  %v664_v34 = vmul.f32 %v9323_v28, %v9323_v28  ;;  %v600_v46 = vpop.f32.mrb[3].mxu1 }
  0xee   : > { %1021 = vrot.lane.b32.xlu1 %v666_v32, %s9188_s26  ;;  %v667_v36 = vmul.f32 %v9326_v30, %v9326_v30  ;;  %v9437_v21 = vadd.f32 %v9317_v24, %v600_v46  ;;  %v680_v27 = vmul.f32 %v9426_v18, %v9426_v18 }
  0xef   : > { %v665_v35 = vmul.f32 %v9331_v33, %v9331_v33  ;;  %1017 = vrot.lane.b32.xlu0 %v664_v34, %s9188_s26  ;;  %7761 = vmatprep.mubr.msk.f32.mxu1 %vm450_vm0, %v664_v34  ;;  %v9451_v34 = vadd.f32 %v9354_v44, %v9317_v24 }
  0xf1   : > { %v7727_v37 = vpop.f32.mrb[4].mxu0  ;;  %7762 = vmatmul.mubr.msk.f32.vlgmr.msra.gmra.mrb[16].mxu1 %vm450_vm0, %v665_v35 }
  0xf2   : > { %v9346_v39 = vadd.f32 %v7727_v37, %v9317_v24  ;;  %1023 = vrot.lane.b32.xlu1 %v667_v36, %s9188_s26  ;;  %v549_v40 = vpop.f32.mrb[5].mxu0  ;;  %7764 = vmatprep.mubr.msk.f32.mxu1 %vm450_vm0, %v666_v32  ;;  %v9375_v54 = vpop.f32.mrb[4].mxu1  ;;  %v682_v37 = vmul.f32 %v9443_v25, %v9443_v25 }
  0xf3   : > { %v9351_v42 = vadd.f32 %v9317_v24, %v549_v40  ;;  %v7728_v43 = vpop.f32.mrb[6].mxu0  ;;  %1019 = vrot.lane.b32.xlu0 %v665_v35, %s9188_s26  ;;  %v613_v57 = vpop.f32.mrb[5].mxu1  ;;  %v681_v35 = vmul.f32 %v9437_v21, %v9437_v21  ;;  %v683_v40 = vmul.f32 %v9451_v34, %v9451_v34  ;;  %v9473_v41 = vadd.f32 %v9375_v54, %v9317_v24 }
  0xf4   : > { %v552_v45 = vpop.f32.mrb[7].mxu0  ;;  %v9357_v47 = vadd.f32 %v7728_v43, %v9317_v24  ;;  %v670_v50 = vmul.f32 %v9346_v39, %v9346_v39  ;;  %v9385_v60 = vpop.f32.mrb[6].mxu1 }
  0xf5   : > { %v9360_v48 = vadd.f32 %v9317_v24, %v552_v45  ;;  %7765 = vmatmul.mubr.msk.f32.gmra.mrb[18].mxu1 %vm450_vm0, %v667_v36  ;;  %v668_v49 = vmul.f32 %v9351_v42, %v9351_v42  ;;  %v616_v62 = vpop.f32.mrb[7].mxu1  ;;  %v9459_v36 = vadd.f32 %v9317_v24, %v613_v57  ;;  %v9481_v44 = vadd.f32 %v9385_v60, %v9317_v24 }
  0xf6   : > { %v671_v53 = vmul.f32 %v9357_v47, %v9357_v47  ;;  %v9467_v38 = vadd.f32 %v9317_v24, %v616_v62 }
  0xf7   : > { %7767 = vmatprep.mubr.msk.f32.mxu1 %vm450_vm0, %v668_v49  ;;  %v669_v51 = vmul.f32 %v9360_v48, %v9360_v48  ;;  %1025 = vrot.lane.b32.xlu0 %v668_v49, %s9188_s26  ;;  %v684_v43 = vmul.f32 %v9459_v36, %v9459_v36  ;;  %v686_v49 = vmul.f32 %v9473_v41, %v9473_v41 }
  0xf8   : > { %v685_v45 = vmul.f32 %v9467_v38, %v9467_v38 }
  0xf9   : > { %v7731_v52 = vpop.f32.mrb[8].mxu0  ;;  %7768 = vmatmul.mubr.msk.f32.gmra.mrb[20].mxu1 %vm450_vm0, %v669_v51  ;;  %1027 = vrot.lane.b32.xlu1 %v669_v51, %s9188_s26  ;;  %v687_v51 = vmul.f32 %v9481_v44, %v9481_v44 }
  0xfa   : > { %v9378_v55 = vadd.f32 %v7731_v52, %v9317_v24  ;;  %v565_v56 = vpop.f32.mrb[9].mxu0  ;;  %7770 = vmatprep.mubr.msk.f32.mxu1 %vm450_vm0, %v670_v50  ;;  %v7747_v6 = vpop.f32.mrb[8].mxu1 }
  0xfb   : > { %v9382_v58 = vadd.f32 %v9317_v24, %v565_v56  ;;  %v7732_v59 = vpop.f32.mrb[10].mxu0  ;;  %1029 = vrot.lane.b32.xlu0 %v670_v50, %s9188_s26  ;;  %v629_v9 = vpop.f32.mrb[9].mxu1  ;;  %v9502_v52 = vadd.f32 %v7747_v6, %v9317_v24 }
  0xfc   : > { %v568_v61 = vpop.f32.mrb[11].mxu0  ;;  %v9388_v63 = vadd.f32 %v7732_v59, %v9317_v24  ;;  %v674_v2 = vmul.f32 %v9378_v55, %v9378_v55  ;;  %v7748_v12 = vpop.f32.mrb[10].mxu1  ;;  %v9489_v46 = vadd.f32 %v9317_v24, %v629_v9 }
  0xfd   : > { %v9391_v0 = vadd.f32 %v9317_v24, %v568_v61  ;;  %7771 = vmatmul.mubr.msk.f32.gmra.mrb[22].mxu1 %vm450_vm0, %v671_v53  ;;  %1031 = vrot.lane.b32.xlu1 %v671_v53, %s9188_s26  ;;  %v672_v1 = vmul.f32 %v9382_v58, %v9382_v58  ;;  %v632_v14 = vpop.f32.mrb[11].mxu1  ;;  %v9509_v54 = vadd.f32 %v7748_v12, %v9317_v24 }
  0xfe   : > { %v675_v5 = vmul.f32 %v9388_v63, %v9388_v63  ;;  %v9497_v50 = vadd.f32 %v9317_v24, %v632_v14  ;;  %v688_v53 = vmul.f32 %v9489_v46, %v9489_v46  ;;  %v690_v59 = vmul.f32 %v9502_v52, %v9502_v52 }
  0xff   : > { %7773 = vmatprep.mubr.msk.f32.mxu1 %vm450_vm0, %v672_v1  ;;  %v673_v3 = vmul.f32 %v9391_v0, %v9391_v0  ;;  %1033 = vrot.lane.b32.xlu0 %v672_v1, %s9188_s26  ;;  %v691_v61 = vmul.f32 %v9509_v54, %v9509_v54 }
 0x100   : > { %v689_v56 = vmul.f32 %v9497_v50, %v9497_v50 }
 0x101   : > { %v7735_v4 = vpop.f32.mrb[12].mxu0  ;;  %7774 = vmatmul.mubr.msk.f32.gmra.mrb[24].mxu1 %vm450_vm0, %v673_v3  ;;  %1035 = vrot.lane.b32.xlu1 %v673_v3, %s9188_s26 }
 0x102   : > { %v9408_v7 = vadd.f32 %v7735_v4, %v9317_v24  ;;  %v581_v8 = vpop.f32.mrb[13].mxu0  ;;  %7776 = vmatprep.mubr.msk.f32.mxu1 %vm450_vm0, %v674_v2  ;;  %v7751_v23 = vpop.f32.mrb[12].mxu1 }
 0x103   : > { %v9412_v10 = vadd.f32 %v9317_v24, %v581_v8  ;;  %v7736_v11 = vpop.f32.mrb[14].mxu0  ;;  %1037 = vrot.lane.b32.xlu0 %v674_v2, %s9188_s26  ;;  %v645_v29 = vpop.f32.mrb[13].mxu1  ;;  %v9530_v62 = vadd.f32 %v7751_v23, %v9317_v24 }
 0x104   : > { %v584_v13 = vpop.f32.mrb[15].mxu0  ;;  %v9416_v15 = vadd.f32 %v7736_v11, %v9317_v24  ;;  %v678_v19 = vmul.f32 %v9408_v7, %v9408_v7  ;;  %v7752_v31 = vpop.f32.mrb[14].mxu1  ;;  %v9517_v57 = vadd.f32 %v9317_v24, %v645_v29 }
 0x105   : > { %v9419_v16 = vadd.f32 %v9317_v24, %v584_v13  ;;  %7777 = vmatmul.mubr.msk.f32.gmra.mrb[26].mxu1 %vm450_vm0, %v675_v5  ;;  %1039 = vrot.lane.b32.xlu1 %v675_v5, %s9188_s26  ;;  %v676_v17 = vmul.f32 %v9412_v10, %v9412_v10  ;;  %v648_v32 = vpop.f32.mrb[15].mxu1  ;;  %v9537_v2 = vadd.f32 %v7752_v31, %v9317_v24 }
 0x106   : > { %v679_v22 = vmul.f32 %v9416_v15, %v9416_v15  ;;  %v9525_v60 = vadd.f32 %v9317_v24, %v648_v32  ;;  %v692_v1 = vmul.f32 %v9517_v57, %v9517_v57  ;;  %v694_v4 = vmul.f32 %v9530_v62, %v9530_v62 }
 0x107   : > { %7779 = vmatprep.mubr.msk.f32.mxu1 %vm450_vm0, %v676_v17  ;;  %v677_v20 = vmul.f32 %v9419_v16, %v9419_v16  ;;  %1041 = vrot.lane.b32.xlu0 %v676_v17, %s9188_s26  ;;  %v695_v24 = vmul.f32 %v9537_v2, %v9537_v2 }
 0x108   : > { %v693_v3 = vmul.f32 %v9525_v60, %v9525_v60 }
 0x109   : > { %7780 = vmatmul.mubr.msk.f32.gmra.mrb[28].mxu1 %vm450_vm0, %v677_v20  ;;  %1043 = vrot.lane.b32.xlu1 %v677_v20, %s9188_s26 }
 0x10a   : > { %7782 = vmatprep.mubr.msk.f32.mxu1 %vm450_vm0, %v678_v19 }
 0x10b   : > { %1045 = vrot.lane.b32.xlu0 %v678_v19, %s9188_s26 }
 0x10d   : > { %7783 = vmatmul.mubr.msk.f32.gmra.mrb[30].mxu1 %vm450_vm0, %v679_v22  ;;  %1047 = vrot.lane.b32.xlu1 %v679_v22, %s9188_s26 }
 0x10e   : > { %7785 = vmatprep.mubr.msk.f32.mxu1 %vm450_vm0, %v680_v27 }
 0x10f   : > { %1049 = vrot.lane.b32.xlu0 %v680_v27, %s9188_s26 }
 0x111   : > { %7786 = vmatmul.mubr.msk.f32.gmra.mrb[32].mxu1 %vm450_vm0, %v681_v35  ;;  %1051 = vrot.lane.b32.xlu1 %v681_v35, %s9188_s26 }
 0x112   : > { %7788 = vmatprep.mubr.msk.f32.mxu1 %vm450_vm0, %v682_v37 }
 0x113   : > { %1053 = vrot.lane.b32.xlu0 %v682_v37, %s9188_s26 }
 0x115   : > { %7789 = vmatmul.mubr.msk.f32.gmra.mrb[34].mxu1 %vm450_vm0, %v683_v40  ;;  %1055 = vrot.lane.b32.xlu1 %v683_v40, %s9188_s26 }
 0x116   : > { %7791 = vmatprep.mubr.msk.f32.mxu1 %vm450_vm0, %v684_v43 }
 0x117   : > { %1057 = vrot.lane.b32.xlu0 %v684_v43, %s9188_s26 }
 0x119   : > { %7792 = vmatmul.mubr.msk.f32.gmra.mrb[36].mxu1 %vm450_vm0, %v685_v45  ;;  %1059 = vrot.lane.b32.xlu1 %v685_v45, %s9188_s26 }
 0x11a   : > { %7794 = vmatprep.mubr.msk.f32.mxu1 %vm450_vm0, %v686_v49 }
 0x11b   : > { %1061 = vrot.lane.b32.xlu0 %v686_v49, %s9188_s26 }
 0x11d   : > { %7795 = vmatmul.mubr.msk.f32.gmra.mrb[38].mxu1 %vm450_vm0, %v687_v51  ;;  %1063 = vrot.lane.b32.xlu1 %v687_v51, %s9188_s26 }
 0x11e   : > { %7797 = vmatprep.mubr.msk.f32.mxu1 %vm450_vm0, %v688_v53 }
 0x11f   : > { %1065 = vrot.lane.b32.xlu0 %v688_v53, %s9188_s26 }
 0x121   : > { %7798 = vmatmul.mubr.msk.f32.gmra.mrb[40].mxu1 %vm450_vm0, %v689_v56  ;;  %1067 = vrot.lane.b32.xlu1 %v689_v56, %s9188_s26 }
 0x122   : > { %7800 = vmatprep.mubr.msk.f32.mxu1 %vm450_vm0, %v690_v59 }
 0x123   : > { %1069 = vrot.lane.b32.xlu0 %v690_v59, %s9188_s26 }
 0x125   : > { %7801 = vmatmul.mubr.msk.f32.gmra.mrb[42].mxu1 %vm450_vm0, %v691_v61  ;;  %1071 = vrot.lane.b32.xlu1 %v691_v61, %s9188_s26 }
 0x126   : > { %7803 = vmatprep.mubr.msk.f32.mxu1 %vm450_vm0, %v692_v1 }
 0x127   : > { %1073 = vrot.lane.b32.xlu0 %v692_v1, %s9188_s26 }
 0x129   : > { %7804 = vmatmul.mubr.msk.f32.gmra.mrb[44].mxu1 %vm450_vm0, %v693_v3  ;;  %1075 = vrot.lane.b32.xlu1 %v693_v3, %s9188_s26 }
 0x12a   : > { %7806 = vmatprep.mubr.msk.f32.mxu1 %vm450_vm0, %v694_v4 }
 0x12b   : > { %1077 = vrot.lane.b32.xlu0 %v694_v4, %s9188_s26 }
 0x12d   : > { %7807 = vmatmul.mubr.msk.f32.gmra.mrb[46].mxu1 %vm450_vm0, %v695_v24  ;;  %1079 = vrot.lane.b32.xlu1 %v695_v24, %s9188_s26 }
 0x160   : > { %v1022_v5 = vpop.permute.xlu1 %1021 }
 0x161   : > { %v1018_v6 = vpop.permute.xlu0 %1017 }
 0x162   : > { %7817 = vmatprep.mubr.msk.f32.mxu0 %vm450_vm0, %v1018_v6 }
 0x164   : > { %v1024_v9 = vpop.permute.xlu1 %1023 }
 0x165   : > { %v1020_v8 = vpop.permute.xlu0 %1019 }
 0x166   : > { %7818 = vmatmul.mubr.msk.f32.vlgmr.msra.gmra.mrb[16].mxu0 %vm450_vm0, %v1020_v8 }
 0x167   : > { %7820 = vmatprep.mubr.msk.f32.mxu0 %vm450_vm0, %v1022_v5 }
 0x169   : > { %v1026_v11 = vpop.permute.xlu0 %1025 }
 0x16a   : > { %7821 = vmatmul.mubr.msk.f32.gmra.mrb[18].mxu0 %vm450_vm0, %v1024_v9 }
 0x16b   : > { %v1028_v12 = vpop.permute.xlu1 %1027  ;;  %7823 = vmatprep.mubr.msk.f32.mxu0 %vm450_vm0, %v1026_v11 }
 0x16d   : > { %v1030_v13 = vpop.permute.xlu0 %1029 }
 0x16e   : > { %7824 = vmatmul.mubr.msk.f32.gmra.mrb[20].mxu0 %vm450_vm0, %v1028_v12 }
 0x16f   : > { %v1032_v14 = vpop.permute.xlu1 %1031  ;;  %7826 = vmatprep.mubr.msk.f32.mxu0 %vm450_vm0, %v1030_v13 }
 0x171   : > { %v1034_v17 = vpop.permute.xlu0 %1033 }
 0x172   : > { %7827 = vmatmul.mubr.msk.f32.gmra.mrb[22].mxu0 %vm450_vm0, %v1032_v14 }
 0x173   : > { %v1036_v19 = vpop.permute.xlu1 %1035  ;;  %7829 = vmatprep.mubr.msk.f32.mxu0 %vm450_vm0, %v1034_v17 }
 0x175   : > { %v1038_v20 = vpop.permute.xlu0 %1037 }
 0x176   : > { %7830 = vmatmul.mubr.msk.f32.gmra.mrb[24].mxu0 %vm450_vm0, %v1036_v19 }
 0x177   : > { %v1040_v22 = vpop.permute.xlu1 %1039  ;;  %7832 = vmatprep.mubr.msk.f32.mxu0 %vm450_vm0, %v1038_v20 }
 0x179   : > { %v1042_v23 = vpop.permute.xlu0 %1041 }
 0x17a   : > { %7833 = vmatmul.mubr.msk.f32.gmra.mrb[26].mxu0 %vm450_vm0, %v1040_v22 }
 0x17b   : > { %v1044_v27 = vpop.permute.xlu1 %1043  ;;  %7835 = vmatprep.mubr.msk.f32.mxu0 %vm450_vm0, %v1042_v23 }
 0x17d   : > { %v1046_v29 = vpop.permute.xlu0 %1045 }
 0x17e   : > { %7836 = vmatmul.mubr.msk.f32.gmra.mrb[28].mxu0 %vm450_vm0, %v1044_v27 }
 0x17f   : > { %v1048_v31 = vpop.permute.xlu1 %1047  ;;  %7838 = vmatprep.mubr.msk.f32.mxu0 %vm450_vm0, %v1046_v29  ;;  %v9590_v29 = vld [vmem:[%s12816_s4] ss:$0 sm:$0xff] }
 0x181   : > { %v1050_v32 = vpop.permute.xlu0 %1049 }
 0x182   : > { %7839 = vmatmul.mubr.msk.f32.gmra.mrb[30].mxu0 %vm450_vm0, %v1048_v31 }
 0x183   : > { %v1052_v35 = vpop.permute.xlu1 %1051  ;;  %7841 = vmatprep.mubr.msk.f32.mxu0 %vm450_vm0, %v1050_v32 }
 0x185   : > { %v1054_v37 = vpop.permute.xlu0 %1053 }
 0x186   : > { %7842 = vmatmul.mubr.msk.f32.gmra.mrb[32].mxu0 %vm450_vm0, %v1052_v35 }
 0x187   : > { %v1056_v40 = vpop.permute.xlu1 %1055  ;;  %7844 = vmatprep.mubr.msk.f32.mxu0 %vm450_vm0, %v1054_v37 }
 0x189   : > { %v1058_v43 = vpop.permute.xlu0 %1057 }
 0x18a   : > { %7845 = vmatmul.mubr.msk.f32.gmra.mrb[34].mxu0 %vm450_vm0, %v1056_v40 }
 0x18b   : > { %v1060_v45 = vpop.permute.xlu1 %1059  ;;  %7847 = vmatprep.mubr.msk.f32.mxu0 %vm450_vm0, %v1058_v43 }
 0x18d   : > { %v1062_v49 = vpop.permute.xlu0 %1061 }
 0x18e   : > { %7848 = vmatmul.mubr.msk.f32.gmra.mrb[36].mxu0 %vm450_vm0, %v1060_v45 }
 0x18f   : > { %v1064_v51 = vpop.permute.xlu1 %1063  ;;  %7850 = vmatprep.mubr.msk.f32.mxu0 %vm450_vm0, %v1062_v49 }
 0x191   : > { %v1066_v53 = vpop.permute.xlu0 %1065 }
 0x192   : > { %7851 = vmatmul.mubr.msk.f32.gmra.mrb[38].mxu0 %vm450_vm0, %v1064_v51 }
 0x193   : > { %v1068_v56 = vpop.permute.xlu1 %1067  ;;  %7853 = vmatprep.mubr.msk.f32.mxu0 %vm450_vm0, %v1066_v53 }
 0x195   : > { %v1070_v59 = vpop.permute.xlu0 %1069 }
 0x196   : > { %7854 = vmatmul.mubr.msk.f32.gmra.mrb[40].mxu0 %vm450_vm0, %v1068_v56 }
 0x197   : > { %v1072_v61 = vpop.permute.xlu1 %1071  ;;  %7856 = vmatprep.mubr.msk.f32.mxu0 %vm450_vm0, %v1070_v59 }
 0x199   : > { %v1074_v1 = vpop.permute.xlu0 %1073 }
 0x19a   : > { %7857 = vmatmul.mubr.msk.f32.gmra.mrb[42].mxu0 %vm450_vm0, %v1072_v61 }
 0x19b   : > { %v1076_v3 = vpop.permute.xlu1 %1075  ;;  %7859 = vmatprep.mubr.msk.f32.mxu0 %vm450_vm0, %v1074_v1 }
 0x19d   : > { %v1078_v4 = vpop.permute.xlu0 %1077 }
 0x19e   : > { %7860 = vmatmul.mubr.msk.f32.gmra.mrb[44].mxu0 %vm450_vm0, %v1076_v3 }
 0x19f   : > { %v1080_v24 = vpop.permute.xlu1 %1079  ;;  %7862 = vmatprep.mubr.msk.f32.mxu0 %vm450_vm0, %v1078_v4 }
 0x1a2   : > { %7863 = vmatmul.mubr.msk.f32.gmra.mrb[46].mxu0 %vm450_vm0, %v1080_v24 }
 0x1c4   : > { %v7763_v5 = vpop.f32.mrb[16].mxu1 }
 0x1c5   : > { %v1371_v6 = vmax.f32 %v7763_v5, 1e-24  ;;  %v858_v8 = vpop.f32.mrb[17].mxu1 }
 0x1c6   : > { %v1370_v9 = vmax.f32 %v858_v8, 1e-24 }
 0x1c7   : > { %8540 = vrsqrt.f32 %v1371_v6 }
 0x1c8   : > { %8542 = vrsqrt.f32 %v1370_v9  ;;  %v7766_v11 = vpop.f32.mrb[18].mxu1 }
 0x1c9   : > { %v1373_v12 = vmax.f32 %v7766_v11, 1e-24  ;;  %v868_v13 = vpop.f32.mrb[19].mxu1 }
 0x1ca   : > { %v1372_v14 = vmax.f32 %v868_v13, 1e-24 }
 0x1cb   : > { %8544 = vrsqrt.f32 %v1373_v12 }
 0x1cc   : > { %8546 = vrsqrt.f32 %v1372_v14  ;;  %v7769_v17 = vpop.f32.mrb[20].mxu1 }
 0x1cd   : > { %v1375_v19 = vmax.f32 %v7769_v17, 1e-24  ;;  %v878_v20 = vpop.f32.mrb[21].mxu1 }
 0x1ce   : > { %v1374_v22 = vmax.f32 %v878_v20, 1e-24 }
 0x1cf   : > { %8548 = vrsqrt.f32 %v1375_v19 }
 0x1d0   : > { %8550 = vrsqrt.f32 %v1374_v22  ;;  %v7772_v23 = vpop.f32.mrb[22].mxu1 }
 0x1d1   : > { %v8541_v27 = vpop.eup %8540  ;;  %v1377_v31 = vmax.f32 %v7772_v23, 1e-24  ;;  %v888_v32 = vpop.f32.mrb[23].mxu1 }
 0x1d2   : > { %v8543_v35 = vpop.eup %8542  ;;  %v1376_v37 = vmax.f32 %v888_v32, 1e-24  ;;  %v1435_v40 = vmul.f32 %v8541_v27, %v9331_v33 }
 0x1d3   : > { %8552 = vrsqrt.f32 %v1377_v31  ;;  %v1434_v43 = vmul.f32 %v8543_v35, %v9323_v28 }
 0x1d4   : > { %8554 = vrsqrt.f32 %v1376_v37  ;;  %v7775_v45 = vpop.f32.mrb[24].mxu1  ;;  %v1474_v49 = vmul.f32 %v9590_v29, %v1435_v40 }
 0x1d5   : > { %v8545_v51 = vpop.eup %8544  ;;  %v1379_v53 = vmax.f32 %v7775_v45, 1e-24  ;;  %v898_v56 = vpop.f32.mrb[25].mxu1  ;;  %v1473_v59 = vmul.f32 %v9590_v29, %v1434_v43 }
 0x1d6   : > { %v8547_v61 = vpop.eup %8546  ;;  %v1437_v1 = vmul.f32 %v8545_v51, %v9326_v30  ;;  %v1378_v3 = vmax.f32 %v898_v56, 1e-24 }
 0x1d7   : > { %v1436_v4 = vmul.f32 %v8547_v61, %v9320_v26  ;;  %8556 = vrsqrt.f32 %v1379_v53  ;;  %v9598_v24 = vpack.c.bf16 %v1474_v49, %v1473_v59 }
 0x1d8   : > { %v1476_v5 = vmul.f32 %v9590_v29, %v1437_v1  ;;  %8558 = vrsqrt.f32 %v1378_v3  ;;  %v7778_v6 = vpop.f32.mrb[26].mxu1 }
 0x1d9   : > { %12983 = vst [vmem:[#allocation3_spill] sm:$0xff] %v9598_v24  ;;  %v8549_v8 = vpop.eup %8548  ;;  %v1475_v9 = vmul.f32 %v9590_v29, %v1436_v4  ;;  %v1381_v11 = vmax.f32 %v7778_v6, 1e-24  ;;  %v908_v12 = vpop.f32.mrb[27].mxu1  ;;  %7873 = vmatprep.mubr.msk.bf16.mxu1 %vm1797_vm1, %v9598_v24 }
 0x1da   : > { %v8551_v13 = vpop.eup %8550  ;;  %v1380_v14 = vmax.f32 %v908_v12, 1e-24  ;;  %v1439_v17 = vmul.f32 %v8549_v8, %v9360_v48 }
 0x1db   : > { %v9605_v19 = vpack.c.bf16 %v1476_v5, %v1475_v9  ;;  %8560 = vrsqrt.f32 %v1381_v11  ;;  %v1438_v20 = vmul.f32 %v8551_v13, %v9351_v42 }
 0x1dc   : > { %8562 = vrsqrt.f32 %v1380_v14  ;;  %v7781_v22 = vpop.f32.mrb[28].mxu1  ;;  %v1478_v23 = vmul.f32 %v9590_v29, %v1439_v17 }
 0x1dd   : > { %12984 = vst [vmem:[#allocation4_spill] sm:$0xff] %v9605_v19  ;;  %v8553_v27 = vpop.eup %8552  ;;  %v1383_v31 = vmax.f32 %v7781_v22, 1e-24  ;;  %v918_v32 = vpop.f32.mrb[29].mxu1  ;;  %v1477_v35 = vmul.f32 %v9590_v29, %v1438_v20 }
 0x1de   : > { %v8555_v37 = vpop.eup %8554  ;;  %v1382_v40 = vmax.f32 %v918_v32, 1e-24  ;;  %v1441_v43 = vmul.f32 %v8553_v27, %v9357_v47 }
 0x1df   : > { %8564 = vrsqrt.f32 %v1383_v31  ;;  %v9611_v45 = vpack.c.bf16 %v1478_v23, %v1477_v35  ;;  %v1440_v49 = vmul.f32 %v8555_v37, %v9346_v39 }
 0x1e0   : > { %8566 = vrsqrt.f32 %v1382_v40  ;;  %v7784_v51 = vpop.f32.mrb[30].mxu1  ;;  %v1480_v53 = vmul.f32 %v9590_v29, %v1441_v43 }
 0x1e1   : > { %v8557_v56 = vpop.eup %8556  ;;  %v1385_v59 = vmax.f32 %v7784_v51, 1e-24  ;;  %v928_v61 = vpop.f32.mrb[31].mxu1  ;;  %v1479_v1 = vmul.f32 %v9590_v29, %v1440_v49 }
 0x1e2   : > { %v8559_v3 = vpop.eup %8558  ;;  %v1384_v4 = vmax.f32 %v928_v61, 1e-24  ;;  %v1443_v5 = vmul.f32 %v8557_v56, %v9391_v0 }
 0x1e3   : > { %8568 = vrsqrt.f32 %v1385_v59  ;;  %v9617_v6 = vpack.c.bf16 %v1480_v53, %v1479_v1  ;;  %v1442_v8 = vmul.f32 %v8559_v3, %v9382_v58 }
 0x1e4   : > { %8570 = vrsqrt.f32 %v1384_v4  ;;  %v7787_v9 = vpop.f32.mrb[32].mxu1  ;;  %v1482_v11 = vmul.f32 %v9590_v29, %v1443_v5 }
 0x1e5   : > { %v8561_v12 = vpop.eup %8560  ;;  %v1387_v13 = vmax.f32 %v7787_v9, 1e-24  ;;  %v938_v14 = vpop.f32.mrb[33].mxu1  ;;  %v1481_v17 = vmul.f32 %v9590_v29, %v1442_v8 }
 0x1e6   : > { %v8563_v20 = vpop.eup %8562  ;;  %v1445_v22 = vmul.f32 %v8561_v12, %v9388_v63  ;;  %v1386_v23 = vmax.f32 %v938_v14, 1e-24 }
 0x1e7   : > { %v1444_v27 = vmul.f32 %v8563_v20, %v9378_v55  ;;  %8572 = vrsqrt.f32 %v1387_v13  ;;  %v9624_v31 = vpack.c.bf16 %v1482_v11, %v1481_v17 }
 0x1e8   : > { %v1484_v32 = vmul.f32 %v9590_v29, %v1445_v22  ;;  %8574 = vrsqrt.f32 %v1386_v23  ;;  %v7790_v35 = vpop.f32.mrb[34].mxu1 }
 0x1e9   : > { %v8565_v37 = vpop.eup %8564  ;;  %v1483_v40 = vmul.f32 %v9590_v29, %v1444_v27  ;;  %v1389_v43 = vmax.f32 %v7790_v35, 1e-24  ;;  %v948_v49 = vpop.f32.mrb[35].mxu1 }
 0x1ea   : > { %v8567_v51 = vpop.eup %8566  ;;  %v1388_v53 = vmax.f32 %v948_v49, 1e-24  ;;  %v1447_v56 = vmul.f32 %v8565_v37, %v9419_v16 }
 0x1eb   : > { %v9629_v59 = vpack.c.bf16 %v1484_v32, %v1483_v40  ;;  %8576 = vrsqrt.f32 %v1389_v43  ;;  %v1446_v61 = vmul.f32 %v8567_v51, %v9412_v10 }
 0x1ec   : > { %8578 = vrsqrt.f32 %v1388_v53  ;;  %v7793_v1 = vpop.f32.mrb[36].mxu1  ;;  %v1486_v3 = vmul.f32 %v9590_v29, %v1447_v56 }
 0x1ed   : > { %v8569_v4 = vpop.eup %8568  ;;  %v1391_v5 = vmax.f32 %v7793_v1, 1e-24  ;;  %v958_v8 = vpop.f32.mrb[37].mxu1  ;;  %v1485_v9 = vmul.f32 %v9590_v29, %v1446_v61 }
 0x1ee   : > { %v8571_v11 = vpop.eup %8570  ;;  %v1390_v12 = vmax.f32 %v958_v8, 1e-24  ;;  %v1449_v13 = vmul.f32 %v8569_v4, %v9416_v15 }
 0x1ef   : > { %8580 = vrsqrt.f32 %v1391_v5  ;;  %v9635_v14 = vpack.c.bf16 %v1486_v3, %v1485_v9  ;;  %v1448_v17 = vmul.f32 %v8571_v11, %v9408_v7 }
 0x1f0   : > { %8582 = vrsqrt.f32 %v1390_v12  ;;  %v7796_v20 = vpop.f32.mrb[38].mxu1  ;;  %v1488_v22 = vmul.f32 %v9590_v29, %v1449_v13 }
 0x1f1   : > { %12985 = vst [vmem:[#allocation5_spill] sm:$0xff] %v9635_v14  ;;  %v8573_v23 = vpop.eup %8572  ;;  %v1393_v27 = vmax.f32 %v7796_v20, 1e-24  ;;  %v968_v32 = vpop.f32.mrb[39].mxu1  ;;  %v1487_v35 = vmul.f32 %v9590_v29, %v1448_v17 }
 0x1f2   : > { %v8575_v37 = vpop.eup %8574  ;;  %v1392_v40 = vmax.f32 %v968_v32, 1e-24  ;;  %v1451_v43 = vmul.f32 %v8573_v23, %v9437_v21 }
 0x1f3   : > { %8584 = vrsqrt.f32 %v1393_v27  ;;  %v1450_v49 = vmul.f32 %v8575_v37, %v9426_v18  ;;  %v9642_v51 = vpack.c.bf16 %v1488_v22, %v1487_v35 }
 0x1f4   : > { %8586 = vrsqrt.f32 %v1392_v40  ;;  %v7799_v53 = vpop.f32.mrb[40].mxu1  ;;  %v1490_v56 = vmul.f32 %v9590_v29, %v1451_v43 }
 0x1f5   : > { %v8577_v61 = vpop.eup %8576  ;;  %v1395_v1 = vmax.f32 %v7799_v53, 1e-24  ;;  %v978_v3 = vpop.f32.mrb[41].mxu1  ;;  %v1489_v4 = vmul.f32 %v9590_v29, %v1450_v49 }
 0x1f6   : > { %v8579_v5 = vpop.eup %8578  ;;  %v1453_v8 = vmul.f32 %v8577_v61, %v9451_v34  ;;  %v1394_v9 = vmax.f32 %v978_v3, 1e-24 }
 0x1f7   : > { %v1452_v11 = vmul.f32 %v8579_v5, %v9443_v25  ;;  %8588 = vrsqrt.f32 %v1395_v1  ;;  %v9648_v12 = vpack.c.bf16 %v1490_v56, %v1489_v4 }
 0x1f8   : > { %v1492_v13 = vmul.f32 %v9590_v29, %v1453_v8  ;;  %8590 = vrsqrt.f32 %v1394_v9  ;;  %v7802_v17 = vpop.f32.mrb[42].mxu1 }
 0x1f9   : > { %12986 = vst [vmem:[#allocation6_spill] sm:$0xff] %v9648_v12  ;;  %v8581_v20 = vpop.eup %8580  ;;  %v1491_v22 = vmul.f32 %v9590_v29, %v1452_v11  ;;  %v1397_v23 = vmax.f32 %v7802_v17, 1e-24  ;;  %v988_v27 = vpop.f32.mrb[43].mxu1  ;;  %7905 = vmatprep.mubr.msk.bf16.mxu0 %vm1797_vm1, %v9648_v12 }
 0x1fa   : > { %v8583_v32 = vpop.eup %8582  ;;  %v1396_v35 = vmax.f32 %v988_v27, 1e-24  ;;  %v1455_v37 = vmul.f32 %v8581_v20, %v9467_v38 }
 0x1fb   : > { %v9655_v40 = vpack.c.bf16 %v1492_v13, %v1491_v22  ;;  %8592 = vrsqrt.f32 %v1397_v23  ;;  %v1454_v43 = vmul.f32 %v8583_v32, %v9459_v36 }
 0x1fc   : > { %8594 = vrsqrt.f32 %v1396_v35  ;;  %v7805_v49 = vpop.f32.mrb[44].mxu1  ;;  %v1494_v53 = vmul.f32 %v9590_v29, %v1455_v37 }
 0x1fd   : > { %12987 = vst [vmem:[#allocation7_spill] sm:$0xff] %v9655_v40  ;;  %v8585_v56 = vpop.eup %8584  ;;  %v1399_v61 = vmax.f32 %v7805_v49, 1e-24  ;;  %v998_v1 = vpop.f32.mrb[45].mxu1  ;;  %v1493_v3 = vmul.f32 %v9590_v29, %v1454_v43 }
 0x1fe   : > { %v8587_v4 = vpop.eup %8586  ;;  %v1398_v5 = vmax.f32 %v998_v1, 1e-24  ;;  %v1457_v8 = vmul.f32 %v8585_v56, %v9481_v44 }
 0x1ff   : > { %8596 = vrsqrt.f32 %v1399_v61  ;;  %v9661_v9 = vpack.c.bf16 %v1494_v53, %v1493_v3  ;;  %v1456_v11 = vmul.f32 %v8587_v4, %v9473_v41 }
 0x200   : > { %8598 = vrsqrt.f32 %v1398_v5  ;;  %v7808_v13 = vpop.f32.mrb[46].mxu1  ;;  %v1496_v17 = vmul.f32 %v9590_v29, %v1457_v8 }
 0x201   : > { %12988 = vst [vmem:[#allocation8_spill] sm:$0xff] %v9661_v9  ;;  %v8589_v20 = vpop.eup %8588  ;;  %v1401_v22 = vmax.f32 %v7808_v13, 1e-24  ;;  %v1008_v23 = vpop.f32.mrb[47].mxu1  ;;  %v1495_v27 = vmul.f32 %v9590_v29, %v1456_v11 }
 0x202   : > { %v8591_v32 = vpop.eup %8590  ;;  %v1400_v35 = vmax.f32 %v1008_v23, 1e-24  ;;  %v1459_v37 = vmul.f32 %v8589_v20, %v9497_v50 }
 0x203   : > { %8600 = vrsqrt.f32 %v1401_v22  ;;  %v1458_v43 = vmul.f32 %v8591_v32, %v9489_v46  ;;  %v9668_v49 = vpack.c.bf16 %v1496_v17, %v1495_v27 }
 0x204   : > { %8602 = vrsqrt.f32 %v1400_v35  ;;  %v1498_v53 = vmul.f32 %v9590_v29, %v1459_v37 }
 0x205   : > { %12989 = vst [vmem:[#allocation9_spill] sm:$0xff] %v9668_v49  ;;  %v8593_v56 = vpop.eup %8592  ;;  %v1497_v61 = vmul.f32 %v9590_v29, %v1458_v43 }
 0x206   : > { %v8595_v1 = vpop.eup %8594  ;;  %v1461_v3 = vmul.f32 %v8593_v56, %v9509_v54 }
 0x207   : > { %v1460_v4 = vmul.f32 %v8595_v1, %v9502_v52  ;;  %v9674_v5 = vpack.c.bf16 %v1498_v53, %v1497_v61 }
 0x208   : > { %v1500_v8 = vmul.f32 %v9590_v29, %v1461_v3 }
 0x209   : > { %12990 = vst [vmem:[#allocation10_spill] sm:$0xff] %v9674_v5  ;;  %v8597_v11 = vpop.eup %8596  ;;  %v1499_v13 = vmul.f32 %v9590_v29, %v1460_v4 }
 0x20a   : > { %v8599_v17 = vpop.eup %8598  ;;  %v1463_v20 = vmul.f32 %v8597_v11, %v9525_v60 }
 0x20b   : > { %v9679_v22 = vpack.c.bf16 %v1500_v8, %v1499_v13  ;;  %v1462_v23 = vmul.f32 %v8599_v17, %v9517_v57 }
 0x20c   : > { %v1502_v27 = vmul.f32 %v9590_v29, %v1463_v20 }
 0x20d   : > { %12991 = vst [vmem:[#allocation11_spill] sm:$0xff] %v9679_v22  ;;  %v8601_v32 = vpop.eup %8600  ;;  %v1501_v35 = vmul.f32 %v9590_v29, %v1462_v23 }
 0x20e   : > { %v8603_v37 = vpop.eup %8602  ;;  %v1465_v43 = vmul.f32 %v8601_v32, %v9537_v2 }
 0x20f   : > { %v9685_v53 = vpack.c.bf16 %v1502_v27, %v1501_v35  ;;  %v1464_v56 = vmul.f32 %v8603_v37, %v9530_v62 }
 0x210   : > { %v1504_v61 = vmul.f32 %v9590_v29, %v1465_v43 }
 0x211   : > { %12992 = vst [vmem:[#allocation12_spill] sm:$0xff] %v9685_v53  ;;  %v1503_v1 = vmul.f32 %v9590_v29, %v1464_v56 }
 0x213   : > { %v9690_v3 = vpack.c.bf16 %v1504_v61, %v1503_v1 }
 0x215   : > { %12993 = vst [vmem:[#allocation13_spill] sm:$0xff] %v9690_v3 }
 0x239   : > { %v7819_v4 = vpop.f32.mrb[16].mxu0 }
 0x23a   : > { %v1522_v8 = vmax.f32 %v7819_v4, 1e-24  ;;  %v1211_v11 = vpop.f32.mrb[17].mxu0 }
 0x23b   : > { %v1521_v13 = vmax.f32 %v1211_v11, 1e-24 }
 0x23c   : > { %8604 = vrsqrt.f32 %v1522_v8 }
 0x23d   : > { %8606 = vrsqrt.f32 %v1521_v13  ;;  %v7822_v17 = vpop.f32.mrb[18].mxu0 }
 0x23e   : > { %v1524_v20 = vmax.f32 %v7822_v17, 1e-24  ;;  %v1221_v23 = vpop.f32.mrb[19].mxu0 }
 0x23f   : > { %v1523_v32 = vmax.f32 %v1221_v23, 1e-24 }
 0x240   : > { %8608 = vrsqrt.f32 %v1524_v20 }
 0x241   : > { %8610 = vrsqrt.f32 %v1523_v32  ;;  %v7825_v27 = vpop.f32.mrb[20].mxu0 }
 0x242   : > { %v1526_v35 = vmax.f32 %v7825_v27, 1e-24  ;;  %v1231_v37 = vpop.f32.mrb[21].mxu0 }
 0x243   : > { %v1525_v43 = vmax.f32 %v1231_v37, 1e-24 }
 0x244   : > { %8612 = vrsqrt.f32 %v1526_v35 }
 0x245   : > { %8614 = vrsqrt.f32 %v1525_v43  ;;  %v7828_v29 = vpop.f32.mrb[22].mxu0 }
 0x246   : > { %v8605_v56 = vpop.eup %8604  ;;  %v1528_v61 = vmax.f32 %v7828_v29, 1e-24  ;;  %v1241_v1 = vpop.f32.mrb[23].mxu0 }
 0x247   : > { %v8607_v4 = vpop.eup %8606  ;;  %v1527_v11 = vmax.f32 %v1241_v1, 1e-24  ;;  %1619 = vrot.lane.b32.xlu1 %v8605_v56, %s9189_s30 }
 0x248   : > { %8616 = vrsqrt.f32 %v1528_v61  ;;  %1617 = vrot.lane.b32.xlu0 %v8607_v4, %s9189_s30 }
 0x249   : > { %8618 = vrsqrt.f32 %v1527_v11  ;;  %v7831_v8 = vpop.f32.mrb[24].mxu0 }
 0x24a   : > { %v8609_v13 = vpop.eup %8608  ;;  %v1530_v17 = vmax.f32 %v7831_v8, 1e-24  ;;  %v1251_v20 = vpop.f32.mrb[25].mxu0 }
 0x24b   : > { %v8611_v23 = vpop.eup %8610  ;;  %v1529_v32 = vmax.f32 %v1251_v20, 1e-24  ;;  %1623 = vrot.lane.b32.xlu1 %v8609_v13, %s9189_s30 }
 0x24c   : > { %8620 = vrsqrt.f32 %v1530_v17  ;;  %1621 = vrot.lane.b32.xlu0 %v8611_v23, %s9189_s30 }
 0x24d   : > { %8622 = vrsqrt.f32 %v1529_v32  ;;  %v7834_v27 = vpop.f32.mrb[26].mxu0 }
 0x24e   : > { %v8613_v35 = vpop.eup %8612  ;;  %v1532_v37 = vmax.f32 %v7834_v27, 1e-24  ;;  %v1261_v43 = vpop.f32.mrb[27].mxu0 }
 0x24f   : > { %v8615_v29 = vpop.eup %8614  ;;  %v1531_v56 = vmax.f32 %v1261_v43, 1e-24  ;;  %1627 = vrot.lane.b32.xlu1 %v8613_v35, %s9189_s30 }
 0x250   : > { %8624 = vrsqrt.f32 %v1532_v37  ;;  %1625 = vrot.lane.b32.xlu0 %v8615_v29, %s9189_s30 }
 0x251   : > { %8626 = vrsqrt.f32 %v1531_v56  ;;  %v7837_v61 = vpop.f32.mrb[28].mxu0 }
 0x252   : > { %v8617_v1 = vpop.eup %8616  ;;  %v1534_v4 = vmax.f32 %v7837_v61, 1e-24  ;;  %v1271_v11 = vpop.f32.mrb[29].mxu0 }
 0x253   : > { %v8619_v8 = vpop.eup %8618  ;;  %v1533_v13 = vmax.f32 %v1271_v11, 1e-24  ;;  %1631 = vrot.lane.b32.xlu1 %v8617_v1, %s9189_s30 }
 0x254   : > { %8628 = vrsqrt.f32 %v1534_v4  ;;  %1629 = vrot.lane.b32.xlu0 %v8619_v8, %s9189_s30 }
 0x255   : > { %8630 = vrsqrt.f32 %v1533_v13  ;;  %v7840_v17 = vpop.f32.mrb[30].mxu0 }
 0x256   : > { %v8621_v20 = vpop.eup %8620  ;;  %v1536_v23 = vmax.f32 %v7840_v17, 1e-24  ;;  %v1281_v32 = vpop.f32.mrb[31].mxu0 }
 0x257   : > { %v8623_v27 = vpop.eup %8622  ;;  %v1535_v35 = vmax.f32 %v1281_v32, 1e-24  ;;  %1635 = vrot.lane.b32.xlu1 %v8621_v20, %s9189_s30 }
 0x258   : > { %8632 = vrsqrt.f32 %v1536_v23  ;;  %1633 = vrot.lane.b32.xlu0 %v8623_v27, %s9189_s30 }
 0x259   : > { %8634 = vrsqrt.f32 %v1535_v35  ;;  %v7843_v37 = vpop.f32.mrb[32].mxu0 }
 0x25a   : > { %v8625_v43 = vpop.eup %8624  ;;  %v1538_v29 = vmax.f32 %v7843_v37, 1e-24  ;;  %v1291_v56 = vpop.f32.mrb[33].mxu0 }
 0x25b   : > { %v8627_v61 = vpop.eup %8626  ;;  %v1537_v1 = vmax.f32 %v1291_v56, 1e-24  ;;  %1639 = vrot.lane.b32.xlu1 %v8625_v43, %s9189_s30 }
 0x25c   : > { %8636 = vrsqrt.f32 %v1538_v29  ;;  %1637 = vrot.lane.b32.xlu0 %v8627_v61, %s9189_s30 }
 0x25d   : > { %8638 = vrsqrt.f32 %v1537_v1  ;;  %v7846_v4 = vpop.f32.mrb[34].mxu0 }
 0x25e   : > { %v8629_v11 = vpop.eup %8628  ;;  %v1540_v8 = vmax.f32 %v7846_v4, 1e-24  ;;  %v1301_v13 = vpop.f32.mrb[35].mxu0 }
 0x25f   : > { %v8631_v17 = vpop.eup %8630  ;;  %v1539_v20 = vmax.f32 %v1301_v13, 1e-24  ;;  %1643 = vrot.lane.b32.xlu1 %v8629_v11, %s9189_s30 }
 0x260   : > { %8640 = vrsqrt.f32 %v1540_v8  ;;  %1641 = vrot.lane.b32.xlu0 %v8631_v17, %s9189_s30 }
 0x261   : > { %8642 = vrsqrt.f32 %v1539_v20  ;;  %v7849_v23 = vpop.f32.mrb[36].mxu0 }
 0x262   : > { %v8633_v32 = vpop.eup %8632  ;;  %v1542_v27 = vmax.f32 %v7849_v23, 1e-24  ;;  %v1311_v35 = vpop.f32.mrb[37].mxu0 }
 0x263   : > { %v8635_v37 = vpop.eup %8634  ;;  %v1541_v43 = vmax.f32 %v1311_v35, 1e-24  ;;  %1647 = vrot.lane.b32.xlu1 %v8633_v32, %s9189_s30 }
 0x264   : > { %8644 = vrsqrt.f32 %v1542_v27  ;;  %1645 = vrot.lane.b32.xlu0 %v8635_v37, %s9189_s30 }
 0x265   : > { %8646 = vrsqrt.f32 %v1541_v43  ;;  %v7852_v29 = vpop.f32.mrb[38].mxu0 }
 0x266   : > { %v8637_v56 = vpop.eup %8636  ;;  %v1321_v61 = vpop.f32.mrb[39].mxu0  ;;  %v1544_v17 = vmax.f32 %v7852_v29, 1e-24 }
 0x267   : > { %v8639_v1 = vpop.eup %8638  ;;  %1651 = vrot.lane.b32.xlu1 %v8637_v56, %s9189_s30 }
 0x268   : > { %1649 = vrot.lane.b32.xlu0 %v8639_v1, %s9189_s30 }
 0x269   : > { %v7855_v4 = vpop.f32.mrb[40].mxu0 }
 0x26a   : > { %v8641_v11 = vpop.eup %8640  ;;  %v1331_v8 = vpop.f32.mrb[41].mxu0 }
 0x26b   : > { %v8643_v13 = vpop.eup %8642  ;;  %v1545_v20 = vmax.f32 %v1331_v8, 1e-24  ;;  %1655 = vrot.lane.b32.xlu1 %v8641_v11, %s9189_s30  ;;  %v1546_v8 = vmax.f32 %v7855_v4, 1e-24 }
 0x26c   : > { %1653 = vrot.lane.b32.xlu0 %v8643_v13, %s9189_s30  ;;  %v1543_v13 = vmax.f32 %v1321_v61, 1e-24 }
 0x26d   : > { %8648 = vrsqrt.f32 %v1545_v20  ;;  %v7858_v23 = vpop.f32.mrb[42].mxu0 }
 0x26e   : > { %v8645_v32 = vpop.eup %8644  ;;  %v1341_v27 = vpop.f32.mrb[43].mxu0  ;;  %8650 = vrsqrt.f32 %v1544_v17  ;;  %v1548_v20 = vmax.f32 %v7858_v23, 1e-24 }
 0x26f   : > { %v8647_v35 = vpop.eup %8646  ;;  %8652 = vrsqrt.f32 %v1546_v8  ;;  %v1547_v53 = vmax.f32 %v1341_v27, 1e-24 }
 0x270   : > { %1659 = vrot.lane.b32.xlu0 %v8645_v32, %s9189_s30  ;;  %1657 = vrot.lane.b32.xlu1 %v8647_v35, %s9189_s30  ;;  %8654 = vrsqrt.f32 %v1543_v13 }
 0x271   : > { %v7861_v37 = vpop.f32.mrb[44].mxu0  ;;  %8656 = vrsqrt.f32 %v1548_v20 }
 0x272   : > { %v1351_v43 = vpop.f32.mrb[45].mxu0 }
 0x273   : > { %v1549_v3 = vmax.f32 %v1351_v43, 1e-24 }
 0x275   : > { %v7864_v56 = vpop.f32.mrb[46].mxu0  ;;  %8658 = vrsqrt.f32 %v1549_v3 }
 0x276   : > { %v1361_v1 = vpop.f32.mrb[47].mxu0  ;;  %8660 = vrsqrt.f32 %v1547_v53  ;;  %v1552_v27 = vmax.f32 %v7864_v56, 1e-24 }
 0x277   : > { %v8649_v29 = vpop.eup %8648 }
 0x278   : > { %1665 = vrot.lane.b32.xlu1 %v8649_v29, %s9189_s30  ;;  %v8651_v11 = vpop.eup %8650 }
 0x27c   : > { %1663 = vrot.lane.b32.xlu1 %v8651_v11, %s9189_s30  ;;  %v8653_v11 = vpop.eup %8652 }
 0x27d   : > { %v8655_v3 = vpop.eup %8654 }
 0x27e   : > { %v8657_v20 = vpop.eup %8656 }
 0x2b9   : > { %v1620_v12 = vpop.permute.xlu1 %1619 }
 0x2ba   : > { %v1714_v17 = vmul.f32 %v1620_v12, %v9331_v33  ;;  %v1618_v32 = vpop.permute.xlu0 %1617  ;;  %v1550_v12 = vmax.f32 %v7861_v37, 1e-24 }
 0x2bb   : > { %v1713_v35 = vmul.f32 %v1618_v32, %v9323_v28  ;;  %v1551_v32 = vmax.f32 %v1361_v1, 1e-24 }
 0x2bc   : > { %8662 = vrsqrt.f32 %v1550_v12 }
 0x2bd   : > { %v9718_v22 = vpack.c.bf16 %v1714_v17, %v1713_v35  ;;  %v1624_v29 = vpop.permute.xlu1 %1623  ;;  %8664 = vrsqrt.f32 %v1552_v27 }
 0x2be   : > { %v1716_v49 = vmul.f32 %v1624_v29, %v9326_v30  ;;  %v1622_v4 = vpop.permute.xlu0 %1621  ;;  %8666 = vrsqrt.f32 %v1551_v32 }
 0x2bf   : > { %12994 = vst [vmem:[#allocation14_spill] sm:$0xff] %v9718_v22  ;;  %v1715_v61 = vmul.f32 %v1622_v4, %v9320_v26  ;;  %1789 = vrot.lane.b32.xlu0 %v9718_v22, %s9188_s26 }
 0x2c1   : > { %v9724_v23 = vpack.c.bf16 %v1716_v49, %v1715_v61  ;;  %v1628_v43 = vpop.permute.xlu1 %1627  ;;  %v8659_v49 = vpop.eup %8658 }
 0x2c2   : > { %v1626_v8 = vpop.permute.xlu0 %1625  ;;  %v1718_v53 = vmul.f32 %v1628_v43, %v9360_v48  ;;  %v8661_v4 = vpop.eup %8660 }
 0x2c3   : > { %12995 = vst [vmem:[#allocation15_spill] sm:$0xff] %v9724_v23  ;;  %1667 = vrot.lane.b32.xlu0 %v8653_v11, %s9189_s30  ;;  %1791 = vrot.lane.b32.xlu1 %v9724_v23, %s9188_s26  ;;  %v1717_v37 = vmul.f32 %v1626_v8, %v9351_v42 }
 0x2c5   : > { %v1632_v13 = vpop.permute.xlu1 %1631  ;;  %v9737_v1 = vpack.c.bf16 %v1718_v53, %v1717_v37 }
 0x2c6   : > { %v1630_v17 = vpop.permute.xlu0 %1629  ;;  %v1720_v56 = vmul.f32 %v1632_v13, %v9357_v47  ;;  %v8663_v27 = vpop.eup %8662 }
 0x2c7   : > { %1661 = vrot.lane.b32.xlu0 %v8655_v3, %s9189_s30  ;;  %1671 = vrot.lane.b32.xlu1 %v8657_v20, %s9189_s30  ;;  %v1719_v35 = vmul.f32 %v1630_v17, %v9346_v39  ;;  %12996 = vst [vmem:[#allocation16_spill] sm:$0xff] %v9737_v1  ;;  %v8665_v8 = vpop.eup %8664 }
 0x2c8   : > { %v8667_v32 = vpop.eup %8666 }
 0x2c9   : > { %v1636_v29 = vpop.permute.xlu1 %1635  ;;  %v9739_v12 = vpack.c.bf16 %v1720_v56, %v1719_v35 }
 0x2ca   : > { %v1634_v61 = vpop.permute.xlu0 %1633 }
 0x2cb   : > { %1669 = vrot.lane.b32.xlu0 %v8661_v4, %s9189_s30  ;;  %1673 = vrot.lane.b32.xlu1 %v8659_v49, %s9189_s30  ;;  %12997 = vst [vmem:[#allocation17_spill] sm:$0xff] %v9739_v12  ;;  %v1722_v49 = vmul.f32 %v1636_v29, %v9391_v0  ;;  %v1721_v53 = vmul.f32 %v1634_v61, %v9382_v58 }
 0x2cd   : > { %v1640_v11 = vpop.permute.xlu1 %1639  ;;  %v9756_v4 = vpack.c.bf16 %v1722_v49, %v1721_v53 }
 0x2ce   : > { %v1638_v43 = vpop.permute.xlu0 %1637  ;;  %v1724_v3 = vmul.f32 %v1640_v11, %v9388_v63 }
 0x2cf   : > { %1793 = vrot.lane.b32.xlu0 %v9737_v1, %s9188_s26  ;;  %1795 = vrot.lane.b32.xlu1 %v9739_v12, %s9188_s26  ;;  %v1723_v13 = vmul.f32 %v1638_v43, %v9378_v55  ;;  %12999 = vst [vmem:[#allocation19_spill] sm:$0xff] %v9756_v4 }
 0x2d1   : > { %v1644_v20 = vpop.permute.xlu1 %1643  ;;  %v9751_v37 = vpack.c.bf16 %v1724_v3, %v1723_v13 }
 0x2d2   : > { %v1642_v17 = vpop.permute.xlu0 %1641  ;;  %v1726_v11 = vmul.f32 %v1644_v20, %v9419_v16 }
 0x2d3   : > { %1675 = vrot.lane.b32.xlu0 %v8663_v27, %s9189_s30  ;;  %1679 = vrot.lane.b32.xlu1 %v8665_v8, %s9189_s30  ;;  %12998 = vst [vmem:[#allocation18_spill] sm:$0xff] %v9751_v37  ;;  %v1725_v43 = vmul.f32 %v1642_v17, %v9412_v10 }
 0x2d5   : > { %v1648_v56 = vpop.permute.xlu1 %1647  ;;  %v9764_v3 = vpack.c.bf16 %v1726_v11, %v1725_v43 }
 0x2d6   : > { %v1646_v35 = vpop.permute.xlu0 %1645  ;;  %v1728_v13 = vmul.f32 %v1648_v56, %v9416_v15 }
 0x2d7   : > { %1677 = vrot.lane.b32.xlu0 %v8667_v32, %s9189_s30  ;;  %1893 = vrot.lane.b32.xlu1 %v9751_v37, %s9188_s26  ;;  %13000 = vst [vmem:[#allocation20_spill] sm:$0xff] %v9764_v3  ;;  %v1727_v32 = vmul.f32 %v1646_v35, %v9408_v7  ;;  %s9193_s30 = smov 56  }
 0x2d9   : > { %v1652_v27 = vpop.permute.xlu1 %1651  ;;  %v9776_v11 = vpack.c.bf16 %v1728_v13, %v1727_v32 }
 0x2da   : > { %v1730_v29 = vmul.f32 %v1652_v27, %v9437_v21  ;;  %v1650_v8 = vpop.permute.xlu0 %1649 }
 0x2db   : > { %v1729_v61 = vmul.f32 %v1650_v8, %v9426_v18  ;;  %1891 = vrot.lane.b32.xlu0 %v9756_v4, %s9188_s26  ;;  %13002 = vst [vmem:[#allocation22_spill] sm:$0xff] %v9776_v11 }
 0x2dd   : > { %v9768_v49 = vpack.c.bf16 %v1730_v29, %v1729_v61  ;;  %v1656_v20 = vpop.permute.xlu1 %1655 }
 0x2de   : > { %v1732_v17 = vmul.f32 %v1656_v20, %v9451_v34  ;;  %v1654_v53 = vpop.permute.xlu0 %1653 }
 0x2df   : > { %13001 = vst [vmem:[#allocation21_spill] sm:$0xff] %v9768_v49  ;;  %v1731_v27 = vmul.f32 %v1654_v53, %v9443_v25  ;;  %1895 = vrot.lane.b32.xlu0 %v9764_v3, %s9188_s26  ;;  %1992 = vrot.lane.b32.xlu1 %v9768_v49, %s9188_s26 }
 0x2e1   : > { %v9778_v43 = vpack.c.bf16 %v1732_v17, %v1731_v27 }
 0x2e2   : > { %v1658_v56 = vpop.permute.xlu1 %1657  ;;  %v1660_v35 = vpop.permute.xlu0 %1659 }
 0x2e3   : > { %13003 = vst [vmem:[#allocation23_spill] sm:$0xff] %v9778_v43  ;;  %v1733_v29 = vmul.f32 %v1658_v56, %v9459_v36  ;;  %v1734_v8 = vmul.f32 %v1660_v35, %v9467_v38  ;;  %1897 = vrot.lane.b32.xlu0 %v9776_v11, %s9188_s26  ;;  %1994 = vrot.lane.b32.xlu1 %v9778_v43, %s9188_s26 }
 0x2e5   : > { %v9786_v61 = vpack.c.bf16 %v1734_v8, %v1733_v29 }
 0x2e7   : > { %13004 = vst [vmem:[#allocation24_spill] sm:$0xff] %v9786_v61  ;;  %1996 = vrot.lane.b32.xlu0 %v9786_v61, %s9188_s26 }
 0x2ea   : > { %v1666_v13 = vpop.permute.xlu1 %1665 }
 0x2eb   : > { %v1737_v56 = vmul.f32 %v1666_v13, %v9489_v46 }
 0x2ee   : > { %v1664_v32 = vpop.permute.xlu1 %1663 }
 0x2ef   : > { %v1736_v43 = vmul.f32 %v1664_v32, %v9481_v44 }
 0x331   : > { %v1790_v20 = vpop.permute.xlu0 %1789 }
 0x332   : > { %8433 = vmatprep.subr.msk.bf16.mxu1 %vm1797_vm1, %v1790_v20  ;;  %v1811_v17 = vsel %vm1797_vm1, %v1790_v20, 0 }
 0x333   : > { %7866 = vmatpush3.bf16.xpose.msra.mxu1 %v1811_v17 }
 0x335   : > { %v1792_v53 = vpop.permute.xlu1 %1791  ;;  %v1668_v27 = vpop.permute.xlu0 %1667 }
 0x336   : > { %v1738_v35 = vmul.f32 %v1668_v27, %v9497_v50  ;;  %8434 = vmatprep.subr.msk.bf16.mxu1 %vm1797_vm1, %v1792_v53  ;;  %v1814_v20 = vsel %vm1797_vm1, %v1792_v53, 0 }
 0x338   : > { %v9795_v29 = vpack.c.bf16 %v1738_v35, %v1737_v56 }
 0x339   : > { %v1672_v8 = vpop.permute.xlu1 %1671  ;;  %v1662_v61 = vpop.permute.xlu0 %1661 }
 0x33a   : > { %v1735_v11 = vmul.f32 %v1662_v61, %v9473_v41  ;;  %2093 = vrot.lane.b32.xlu1 %v9795_v29, %s9188_s26  ;;  %v1740_v9 = vmul.f32 %v1672_v8, %v9509_v54 }
 0x33b   : > { %7868 = vmatpush3.bf16.xpose.msra.mxu1 %v1814_v20 }
 0x33c   : > { %v9802_v17 = vpack.c.bf16 %v1736_v43, %v1735_v11 }
 0x33d   : > { %v1674_v13 = vpop.permute.xlu1 %1673  ;;  %v1670_v27 = vpop.permute.xlu0 %1669 }
 0x33e   : > { %v1739_v56 = vmul.f32 %v1670_v27, %v9502_v52  ;;  %1998 = vrot.lane.b32.xlu0 %v9802_v17, %s9188_s26  ;;  %v1741_v53 = vmul.f32 %v1674_v13, %v9517_v57  ;;  %v9828_v13 = vpack.c.bf16 %v9326_v30, %v9320_v26  ;;  %v9841_v26 = vpack.c.bf16 %v9331_v33, %v9323_v28 }
 0x33f   : > { %v9856_v28 = vpack.c.bf16 %v9388_v63, %v9378_v55  ;;  %v9870_v55 = vpack.c.bf16 %v9451_v34, %v9443_v25  ;;  %v9874_v63 = vpack.c.bf16 %v9391_v0, %v9382_v58  ;;  %v9888_v58 = vpack.c.bf16 %v9416_v15, %v9408_v7 }
 0x340   : > { %v9808_v32 = vpack.c.bf16 %v1740_v9, %v1739_v56  ;;  %13007 = vst [vmem:[#allocation27_spill] sm:$0xff] %v9828_v13  ;;  %13009 = vst [vmem:[#allocation29_spill] sm:$0xff] %v9841_v26  ;;  %v9893_v25 = vpack.c.bf16 %v9437_v21, %v9426_v18  ;;  %v9902_v7 = vpack.c.bf16 %v9481_v44, %v9473_v41 }
 0x341   : > { %v1796_v61 = vpop.permute.xlu1 %1795  ;;  %v1794_v35 = vpop.permute.xlu0 %1793  ;;  %13010 = vst [vmem:[#allocation30_spill] sm:$0xff] %v9856_v28  ;;  %13012 = vst [vmem:[#allocation32_spill] sm:$0xff] %v9870_v55  ;;  %v9906_v15 = vpack.c.bf16 %v9419_v16, %v9412_v10  ;;  %v9916_v34 = vpack.c.bf16 %v9509_v54, %v9502_v52  ;;  %v9921_v10 = vpack.c.bf16 %v9467_v38, %v9459_v36 }
 0x342   : > { %13005 = vst [vmem:[#allocation25_spill] sm:$0xff] %v9808_v32  ;;  %2095 = vrot.lane.b32.xlu1 %v9808_v32, %s9188_s26  ;;  %8435 = vmatprep.subr.msk.bf16.mxu1 %vm1797_vm1, %v1794_v35  ;;  %v1817_v11 = vsel %vm1797_vm1, %v1794_v35, 0  ;;  %v1820_v35 = vsel %vm1797_vm1, %v1796_v61, 0  ;;  %13013 = vst [vmem:[#allocation33_spill] sm:$0xff] %v9874_v63  ;;  %v9929_v16 = vpack.c.bf16 %v9497_v50, %v9489_v46 }
 0x343   : > { %7870 = vmatpush3.bf16.xpose.msra.mxu1 %v1817_v11  ;;  %13014 = vst [vmem:[#allocation34_spill] sm:$0xff] %v9888_v58  ;;  %13015 = vst [vmem:[#allocation35_spill] sm:$0xff] %v9893_v25  ;;  %v9938_v38 = vpack.c.bf16 %v9525_v60, %v9517_v57  ;;  %v9946_v41 = vpack.c.bf16 %v9537_v2, %v9530_v62 }
 0x344   : > { %8436 = vmatprep.subr.msk.bf16.mxu1 %vm1797_vm1, %v1796_v61  ;;  %v9837_v61 = vpack.c.bf16 %v9357_v47, %v9346_v39  ;;  %v9861_v47 = vpack.c.bf16 %v9360_v48, %v9351_v42  ;;  %13016 = vst [vmem:[#allocation36_spill] sm:$0xff] %v9902_v7  ;;  %13017 = vst [vmem:[#allocation37_spill] sm:$0xff] %v9906_v15 }
 0x345   : > { %v1676_v43 = vpop.permute.xlu0 %1675  ;;  %v1680_v20 = vpop.permute.xlu1 %1679  ;;  %13018 = vst [vmem:[#allocation38_spill] sm:$0xff] %v9916_v34  ;;  %13019 = vst [vmem:[#allocation39_spill] sm:$0xff] %v9921_v10 }
 0x346   : > { %v1742_v8 = vmul.f32 %v1676_v43, %v9525_v60  ;;  %v1744_v56 = vmul.f32 %v1680_v20, %v9537_v2  ;;  %13008 = vst [vmem:[#allocation28_spill] sm:$0xff] %v9837_v61  ;;  %13011 = vst [vmem:[#allocation31_spill] sm:$0xff] %v9861_v47  ;;  %v13023_v60 = vld [vmem:[#allocation8_spill] sm:$0xff] }
 0x347   : > { %13020 = vst [vmem:[#allocation40_spill] sm:$0xff] %v9929_v16  ;;  %13021 = vst [vmem:[#allocation41_spill] sm:$0xff] %v9938_v38 }
 0x348   : > { %v9817_v9 = vpack.c.bf16 %v1742_v8, %v1741_v53  ;;  %13022 = vst [vmem:[#allocation42_spill] sm:$0xff] %v9946_v41 }
 0x349   : > { %v1678_v27 = vpop.permute.xlu0 %1677  ;;  %v1894_v43 = vpop.permute.xlu1 %1893 }
 0x34a   : > { %v1743_v32 = vmul.f32 %v1678_v27, %v9530_v62  ;;  %2097 = vrot.lane.b32.xlu0 %v9817_v9, %s9188_s26  ;;  %v1915_v42 = vsel %vm1797_vm1, %v1894_v43, 0 }
 0x34b   : > { %7872 = vmatpush3.bf16.xpose.msra.mxu1 %v1820_v35  ;;  %v13024_v35 = vld [vmem:[#allocation9_spill] sm:$0xff] }
 0x34c   : > { %v9824_v11 = vpack.c.bf16 %v1744_v56, %v1743_v32 }
 0x34d   : > { %v1892_v53 = vpop.permute.xlu0 %1891 }
 0x34e   : > { %13006 = vst [vmem:[#allocation26_spill] sm:$0xff] %v9824_v11  ;;  %2565 = vrot.lane.b32.xlu0 %v9828_v13, %s9190_s10  ;;  %2099 = vrot.lane.b32.xlu1 %v9824_v11, %s9188_s26  ;;  %v1912_v39 = vsel %vm1797_vm1, %v1892_v53, 0 }
 0x34f   : > { %8437 = vmatprep.subr.msk.bf16.mxu1 %vm1797_vm1, %v1892_v53 }
 0x351   : > { %v1993_v32 = vpop.permute.xlu1 %1992  ;;  %v1896_v8 = vpop.permute.xlu0 %1895 }
 0x352   : > { %8441 = vmatprep.subr.msk.bf16.mxu0 %vm1797_vm1, %v1993_v32  ;;  %2569 = vrot.lane.b32.xlu0 %v9837_v61, %s9190_s10  ;;  %v2013_v30 = vsel %vm1797_vm1, %v1993_v32, 0  ;;  %v1918_v18 = vsel %vm1797_vm1, %v1896_v8, 0 }
 0x353   : > { %2563 = vrot.lane.b32.xlu1 %v9841_v26, %s9190_s10  ;;  %7874 = vmatmul.mubr.msk.bf16.vlgmr.msra.gmra.mrb[48].mxu1 %vm1797_vm1, %v9605_v19 }
 0x354   : > { %7877 = vmatprep.mubr.msk.bf16.mxu1 %vm1797_vm1, %v9611_v45  ;;  %7882 = vmatpush3.bf16.xpose.msra.mxu1 %v1912_v39 }
 0x355   : > { %7898 = vmatpush3.bf16.xpose.msra.mxu0 %v2013_v30  ;;  %8438 = vmatprep.subr.msk.bf16.mxu1 %vm1797_vm1, %v1894_v43  ;;  %v1995_v33 = vpop.permute.xlu1 %1994  ;;  %v1898_v20 = vpop.permute.xlu0 %1897 }
 0x356   : > { %8442 = vmatprep.subr.msk.bf16.mxu0 %vm1797_vm1, %v1995_v33  ;;  %2658 = vrot.lane.b32.xlu0 %v9856_v28, %s9190_s10  ;;  %v2016_v48 = vsel %vm1797_vm1, %v1995_v33, 0  ;;  %v1921_v36 = vsel %vm1797_vm1, %v1898_v20, 0  ;;  %v13025_v33 = vld [vmem:[#allocation11_spill] sm:$0xff] }
 0x357   : > { %2567 = vrot.lane.b32.xlu1 %v9861_v47, %s9190_s10 }
 0x359   : > { %v1997_v0 = vpop.permute.xlu0 %1996 }
 0x35a   : > { %2751 = vrot.lane.b32.xlu0 %v9870_v55, %s9190_s10  ;;  %v2019_v21 = vsel %vm1797_vm1, %v1997_v0, 0 }
 0x35b   : > { %2656 = vrot.lane.b32.xlu1 %v9874_v63, %s9190_s10  ;;  %7878 = vmatmul.mubr.msk.bf16.gmra.mrb[52].mxu1 %vm1797_vm1, %v9617_v6 }
 0x35c   : > { %7884 = vmatpush3.bf16.xpose.msra.mxu1 %v1915_v42  ;;  %7889 = vmatprep.mubr.msk.bf16.mxu1 %vm1797_vm1, %v9624_v31 }
 0x35d   : > { %7900 = vmatpush3.bf16.xpose.msra.mxu0 %v2016_v48  ;;  %8439 = vmatprep.subr.msk.bf16.mxu1 %vm1797_vm1, %v1896_v8 }
 0x35e   : > { %8443 = vmatprep.subr.msk.bf16.mxu0 %vm1797_vm1, %v1997_v0  ;;  %2662 = vrot.lane.b32.xlu0 %v9888_v58, %s9190_s10 }
 0x35f   : > { %2749 = vrot.lane.b32.xlu1 %v9893_v25, %s9190_s10 }
 0x362   : > { %2755 = vrot.lane.b32.xlu0 %v9902_v7, %s9190_s10 }
 0x363   : > { %2660 = vrot.lane.b32.xlu1 %v9906_v15, %s9190_s10 }
 0x364   : > { %7886 = vmatpush3.bf16.xpose.msra.mxu1 %v1918_v18  ;;  %v13027_v18 = vld [vmem:[#allocation13_spill] sm:$0xff] }
 0x365   : > { %7902 = vmatpush3.bf16.xpose.msra.mxu0 %v2019_v21  ;;  %8440 = vmatprep.subr.msk.bf16.mxu1 %vm1797_vm1, %v1898_v20  ;;  %v13026_v20 = vld [vmem:[#allocation12_spill] sm:$0xff] }
 0x366   : > { %2844 = vrot.lane.b32.xlu0 %v9916_v34, %s9190_s10 }
 0x367   : > { %2753 = vrot.lane.b32.xlu1 %v9921_v10, %s9190_s10 }
 0x36a   : > { %2984 = vrot.lane.b32.xlu0 %v9718_v22, %s9191_s11 }
 0x36b   : > { %2842 = vrot.lane.b32.xlu1 %v9929_v16, %s9190_s10 }
 0x36c   : > { %7888 = vmatpush3.bf16.xpose.msra.mxu1 %v1921_v36 }
 0x36e   : > { %2846 = vrot.lane.b32.xlu0 %v9938_v38, %s9190_s10 }
 0x36f   : > { %2986 = vrot.lane.b32.xlu1 %v9724_v23, %s9191_s11 }
 0x372   : > { %2848 = vrot.lane.b32.xlu0 %v9946_v41, %s9190_s10  ;;  %s9194_s10 = smov 80  }
 0x373   : > { %3093 = vrot.lane.b32.xlu1 %v9756_v4, %s9191_s11  ;;  %7890 = vmatmul.mubr.msk.bf16.vlgmr.msra.gmra.mrb[56].mxu1 %vm1797_vm1, %v9629_v59 }
 0x374   : > { %7893 = vmatprep.mubr.msk.bf16.mxu1 %vm1797_vm1, %v9635_v14 }
 0x376   : > { %2988 = vrot.lane.b32.xlu0 %v9737_v1, %s9191_s11 }
 0x377   : > { %2976 = vrot.lane.b32.xlu1 %v9598_v24, %s9192_s12 }
 0x37a   : > { %2990 = vrot.lane.b32.xlu0 %v9739_v12, %s9191_s11 }
 0x37b   : > { %3202 = vrot.lane.b32.xlu1 %v9768_v49, %s9191_s11  ;;  %7894 = vmatmul.mubr.msk.bf16.gmra.mrb[60].mxu1 %vm1797_vm1, %v9642_v51 }
 0x37c   : > { %7921 = vmatprep.mubr.msk.bf16.mxu1 %vm1797_vm1, %v9674_v5 }
 0x37e   : > { %3095 = vrot.lane.b32.xlu0 %v9751_v37, %s9191_s11 }
 0x382   : > { %3097 = vrot.lane.b32.xlu0 %v9764_v3, %s9191_s11 }
 0x3ac   : > { %v2094_v44 = vpop.permute.xlu1 %2093 }
 0x3ad   : > { %8445 = vmatprep.subr.msk.bf16.mxu1 %vm1797_vm1, %v2094_v44  ;;  %v2114_v46 = vsel %vm1797_vm1, %v2094_v44, 0 }
 0x3ae   : > { %7914 = vmatpush3.bf16.xpose.msra.mxu1 %v2114_v46  ;;  %v10007_v46 = vld [vmem:[%s12817_s5 + $0x10] sm:$0xff] }
 0x3b0   : > { %v1999_v50 = vpop.permute.xlu0 %1998 }
 0x3b1   : > { %8444 = vmatprep.subr.msk.bf16.mxu0 %vm1797_vm1, %v1999_v50  ;;  %v2022_v52 = vsel %vm1797_vm1, %v1999_v50, 0 }
 0x3b2   : > { %7904 = vmatpush3.bf16.xpose.msra.mxu0 %v2022_v52  ;;  %v10012_v52 = vld [vmem:[%s12817_s5] sm:$0xff] }
 0x3b4   : > { %v2096_v54 = vpop.permute.xlu1 %2095 }
 0x3b5   : > { %8446 = vmatprep.subr.msk.bf16.mxu1 %vm1797_vm1, %v2096_v54  ;;  %v2117_v57 = vsel %vm1797_vm1, %v2096_v54, 0 }
 0x3b6   : > { %7916 = vmatpush3.bf16.xpose.msra.mxu1 %v2117_v57 }
 0x3b9   : > { %7906 = vmatmul.mubr.msk.bf16.vlgmr.msra.gmra.mrb[48].mxu0 %vm1797_vm1, %v9655_v40 }
 0x3ba   : > { %7909 = vmatprep.mubr.msk.bf16.mxu0 %vm1797_vm1, %v13023_v60 }
 0x3bc   : > { %v2098_v62 = vpop.permute.xlu0 %2097 }
 0x3bd   : > { %8447 = vmatprep.subr.msk.bf16.mxu1 %vm1797_vm1, %v2098_v62  ;;  %v2120_v2 = vsel %vm1797_vm1, %v2098_v62, 0  ;;  %v10020_v62 = vld [vmem:[%s12817_s5 + $0x8] sm:$0xff] }
 0x3be   : > { %7918 = vmatpush3.bf16.xpose.msra.mxu1 %v2120_v2 }
 0x3c0   : > { %v2100_v27 = vpop.permute.xlu1 %2099  ;;  %v2566_v56 = vpop.permute.xlu0 %2565 }
 0x3c1   : > { %7910 = vmatmul.mubr.msk.bf16.gmra.mrb[52].mxu0 %vm1797_vm1, %v13024_v35  ;;  %8448 = vmatprep.subr.msk.bf16.mxu1 %vm1797_vm1, %v2100_v27  ;;  %v2123_v32 = vsel %vm1797_vm1, %v2100_v27, 0 }
 0x3c4   : > { %v2570_v53 = vpop.permute.xlu0 %2569 }
 0x3c5   : > { %v2564_v43 = vpop.permute.xlu1 %2563 }
 0x3c6   : > { %7929 = vmatprep.subr.bf16.mxu0 %v2564_v43  ;;  %7920 = vmatpush3.bf16.xpose.msra.mxu1 %v2123_v32 }
 0x3c7   : > { %7930 = vmatpush3.bf16.msra.mxu0 %v2564_v43 }
 0x3c8   : > { %7931 = vmatprep.subr.bf16.mxu0 %v2566_v56  ;;  %v2659_v30 = vpop.permute.xlu0 %2658 }
 0x3c9   : > { %v2568_v8 = vpop.permute.xlu1 %2567 }
 0x3cb   : > { %7932 = vmatpush3.bf16.msra.mxu0 %v2566_v56 }
 0x3cc   : > { %7933 = vmatprep.subr.bf16.mxu0 %v2568_v8  ;;  %v9992_v42 = vpop.permute.xlu0 %2751 }
 0x3cd   : > { %v2657_v39 = vpop.permute.xlu1 %2656  ;;  %7922 = vmatmul.mubr.msk.bf16.vlgmr.msra.gmra.mrb[64].mxu1 %vm1797_vm1, %v13025_v33 }
 0x3ce   : > { %7945 = vmatprep.subr.bf16.mxu1 %v2657_v39  ;;  %7925 = vmatprep.mubr.msk.bf16.mxu1 %vm1797_vm1, %v13026_v20 }
 0x3cf   : > { %7934 = vmatpush3.bf16.msra.mxu0 %v2568_v8  ;;  %7946 = vmatpush3.bf16.msra.mxu1 %v2657_v39 }
 0x3d0   : > { %7935 = vmatprep.subr.bf16.mxu0 %v2570_v53  ;;  %7947 = vmatprep.subr.bf16.mxu1 %v2659_v30  ;;  %v2663_v21 = vpop.permute.xlu0 %2662 }
 0x3d1   : > { %v9994_v48 = vpop.permute.xlu1 %2749 }
 0x3d3   : > { %7936 = vmatpush3.bf16.msra.mxu0 %v2570_v53  ;;  %7948 = vmatpush3.bf16.msra.mxu1 %v2659_v30  ;;  %v10030_v53 = vld [vmem:[%s12817_s5 + $0x18] sm:$0xff]  ;;  %v10040_v30 = vld [vmem:[%s12817_s5 + $0x30] sm:$0xff] }
 0x3d4   : > { %7961 = vmatprep.subr.bf16.mxu0 %v9994_v48 }
 0x3d5   : > { %v2661_v0 = vpop.permute.xlu1 %2660  ;;  %7926 = vmatmul.mubr.msk.bf16.gmra.mrb[68].mxu1 %vm1797_vm1, %v13027_v18 }
 0x3d6   : > { %7949 = vmatprep.subr.bf16.mxu1 %v2661_v0 }
 0x3d7   : > { %7950 = vmatpush3.bf16.msra.mxu1 %v2661_v0 }
 0x3d8   : > { %7951 = vmatprep.subr.bf16.mxu1 %v2663_v21 }
 0x3d9   : > { %v9999_v36 = vpop.permute.xlu1 %2753 }
 0x3db   : > { %7952 = vmatpush3.bf16.msra.mxu1 %v2663_v21 }
 0x3dd   : > { %v10001_v44 = vpop.permute.xlu1 %2842 }
 0x3de   : > { %13028 = vst [vmem:[#allocation43_spill] sm:$0xff] %v10001_v44  ;;  %7977 = vmatprep.subr.bf16.mxu1 %v10001_v44 }
 0x3e1   : > { %v10167_v25 = vpop.permute.xlu1 %2986 }
 0x3e2   : > { %13033 = vst [vmem:[#allocation48_spill] sm:$0xff] %v10167_v25 }
 0x3e5   : > { %v10186_v61 = vpop.permute.xlu1 %3093 }
 0x3e6   : > { %13035 = vst [vmem:[#allocation50_spill] sm:$0xff] %v10186_v61 }
 0x426   : > { %v7875_v50 = vpop.f32.mrb[48].mxu1 }
 0x427   : > { %v10015_v54 = vadd.f32 %v7875_v50, %v10007_v46  ;;  %v1856_v57 = vpop.f32.mrb[49].mxu1  ;;  %v10050_v50 = vld [vmem:[%s12817_s5 + $0x20] sm:$0xff] }
 0x428   : > { %v7876_v2 = vpop.f32.mrb[50].mxu1  ;;  %v10023_v27 = vadd.f32 %v1856_v57, %v10012_v52  ;;  %v10055_v57 = vld [vmem:[%s12817_s5 + $0x38] sm:$0xff] }
 0x429   : > { %v1859_v56 = vpop.f32.mrb[51].mxu1  ;;  %v2197_v43 = vsel %vm2190_vm2, %v10015_v54, -inf  ;;  %v10043_v39 = vadd.f32 %v7876_v2, %v10030_v53 }
 0x42a   : > { %v10033_v32 = vadd.f32 %v1859_v56, %v10020_v62  ;;  %2198 = vmax.xlane.f32.xlu0 %v2197_v43  ;;  %v2191_v0 = vsel %vm2190_vm2, %v10023_v27, -inf }
 0x42b   : > { %v2200_v24 = vsel %vm2190_vm2, %v10043_v39, -inf }
 0x42c   : > { %v2194_v8 = vsel %vm2190_vm2, %v10033_v32, -inf }
 0x42d   : > { %2195 = vmax.xlane.f32.xlu1 %v2194_v8 }
 0x42e   : > { %v7879_v21 = vpop.f32.mrb[52].mxu1  ;;  %2192 = vmax.xlane.f32.xlu0 %v2191_v0 }
 0x42f   : > { %v10058_v56 = vadd.f32 %v7879_v21, %v10040_v30  ;;  %v1872_v2 = vpop.f32.mrb[53].mxu1  ;;  %v10073_v21 = vld [vmem:[%s12817_s5 + $0x28] sm:$0xff] }
 0x430   : > { %v7880_v43 = vpop.f32.mrb[54].mxu1  ;;  %v10061_v8 = vadd.f32 %v1872_v2, %v10050_v50 }
 0x431   : > { %v10064_v0 = vadd.f32 %v7880_v43, %v10055_v57  ;;  %v1875_v49 = vpop.f32.mrb[55].mxu1  ;;  %v2209_v3 = vsel %vm2190_vm2, %v10058_v56, -inf }
 0x432   : > { %2210 = vmax.xlane.f32.xlu1 %v2209_v3  ;;  %2201 = vmax.xlane.f32.xlu0 %v2200_v24  ;;  %v10076_v2 = vadd.f32 %v1875_v49, %v10073_v21  ;;  %v2203_v43 = vsel %vm2190_vm2, %v10061_v8, -inf }
 0x433   : > { %v2212_v12 = vsel %vm2190_vm2, %v10064_v0, -inf }
 0x434   : > { %v2206_v4 = vsel %vm2190_vm2, %v10076_v2, -inf }
 0x436   : > { %2204 = vmax.xlane.f32.xlu1 %v2203_v43  ;;  %2213 = vmax.xlane.f32.xlu0 %v2212_v12 }
 0x43a   : > { %2207 = vmax.xlane.f32.xlu0 %v2206_v4 }
 0x446   : > { %v7891_v1 = vpop.f32.mrb[56].mxu1 }
 0x447   : > { %v10085_v16 = vadd.f32 %v7891_v1, %v10007_v46  ;;  %v1957_v24 = vpop.f32.mrb[57].mxu1  ;;  %v10094_v1 = vpop.permute.xlu0 %2755 }
 0x448   : > { %v7892_v3 = vpop.f32.mrb[58].mxu1 }
 0x449   : > { %v10088_v49 = vadd.f32 %v7892_v3, %v10030_v53  ;;  %v1960_v58 = vpop.f32.mrb[59].mxu1  ;;  %v2221_v37 = vsel %vm2190_vm2, %v10085_v16, -inf }
 0x44a   : > { %2222 = vmax.xlane.f32.xlu1 %v2221_v37  ;;  %v10104_v37 = vadd.f32 %v1957_v24, %v10012_v52 }
 0x44b   : > { %v2224_v12 = vsel %vm2190_vm2, %v10088_v49, -inf  ;;  %v10096_v28 = vpop.permute.xlu0 %2844 }
 0x44c   : > { %2225 = vmax.xlane.f32.xlu0 %v2224_v12  ;;  %13029 = vst [vmem:[#allocation44_spill] sm:$0xff] %v10096_v28  ;;  %v10112_v28 = vadd.f32 %v1960_v58, %v10020_v62  ;;  %v2215_v24 = vsel %vm2190_vm2, %v10104_v37, -inf }
 0x44e   : > { %v7895_v43 = vpop.f32.mrb[60].mxu1  ;;  %v2218_v58 = vsel %vm2190_vm2, %v10112_v28, -inf }
 0x44f   : > { %v1973_v4 = vpop.f32.mrb[61].mxu1  ;;  %v10101_v38 = vpop.permute.xlu0 %2984 }
 0x450   : > { %v7896_v15 = vpop.f32.mrb[62].mxu1 }
 0x451   : > { %v1976_v23 = vpop.f32.mrb[63].mxu1 }
 0x452   : > { %v10158_v33 = vadd.f32 %v1976_v23, %v10073_v21 }
 0x453   : > { %v10121_v34 = vpop.permute.xlu0 %2846 }
 0x454   : > { %13030 = vst [vmem:[#allocation45_spill] sm:$0xff] %v10121_v34  ;;  %v2230_v23 = vsel %vm2190_vm2, %v10158_v33, -inf }
 0x457   : > { %v10138_v34 = vpop.permute.xlu0 %2848 }
 0x458   : > { %13031 = vst [vmem:[#allocation46_spill] sm:$0xff] %v10138_v34 }
 0x48c   : > { %v7907_v41 = vpop.f32.mrb[48].mxu0 }
 0x48d   : > { %v10099_v3 = vadd.f32 %v7907_v41, %v10007_v46  ;;  %v2058_v63 = vpop.f32.mrb[49].mxu0 }
 0x48e   : > { %v7908_v44 = vpop.f32.mrb[50].mxu0  ;;  %v10117_v26 = vadd.f32 %v2058_v63, %v10012_v52 }
 0x48f   : > { %v10107_v12 = vadd.f32 %v7908_v44, %v10030_v53  ;;  %v2061_v47 = vpop.f32.mrb[51].mxu0  ;;  %v2245_v22 = vsel %vm2190_vm2, %v10099_v3, -inf }
 0x490   : > { %2246 = vmax.xlane.f32.xlu1 %v2245_v22  ;;  %v10124_v18 = vadd.f32 %v2061_v47, %v10020_v62  ;;  %v2239_v35 = vsel %vm2190_vm2, %v10117_v26, -inf }
 0x491   : > { %v2248_v41 = vsel %vm2190_vm2, %v10107_v12, -inf }
 0x492   : > { %2249 = vmax.xlane.f32.xlu0 %v2248_v41  ;;  %v10129_v41 = vadd.f32 %v7895_v43, %v10040_v30  ;;  %v2242_v47 = vsel %vm2190_vm2, %v10124_v18, -inf }
 0x494   : > { %v7911_v44 = vpop.f32.mrb[52].mxu0  ;;  %2216 = vmax.xlane.f32.xlu1 %v2215_v24  ;;  %v10134_v24 = vadd.f32 %v7896_v15, %v10055_v57  ;;  %v2233_v43 = vsel %vm2190_vm2, %v10129_v41, -inf }
 0x495   : > { %v2074_v22 = vpop.f32.mrb[53].mxu0  ;;  %v10141_v10 = vadd.f32 %v7911_v44, %v10040_v30  ;;  %v10155_v44 = vpop.permute.xlu0 %2988 }
 0x496   : > { %v7912_v7 = vpop.f32.mrb[54].mxu0  ;;  %2219 = vmax.xlane.f32.xlu0 %v2218_v58  ;;  %v2236_v15 = vsel %vm2190_vm2, %v10134_v24, -inf  ;;  %13032 = vst [vmem:[#allocation47_spill] sm:$0xff] %v10155_v44 }
 0x497   : > { %v2077_v63 = vpop.f32.mrb[55].mxu0  ;;  %v10146_v58 = vadd.f32 %v7912_v7, %v10055_v57 }
 0x498   : > { %2240 = vmax.xlane.f32.xlu1 %v2239_v35  ;;  %v10151_v35 = vadd.f32 %v1973_v4, %v10050_v50 }
 0x499   : > { %v2260_v7 = vsel %vm2190_vm2, %v10146_v58, -inf  ;;  %v10174_v44 = vpop.permute.xlu0 %2990 }
 0x49a   : > { %2243 = vmax.xlane.f32.xlu0 %v2242_v47  ;;  %v2257_v47 = vsel %vm2190_vm2, %v10141_v10, -inf  ;;  %v2227_v11 = vsel %vm2190_vm2, %v10151_v35, -inf  ;;  %13034 = vst [vmem:[#allocation49_spill] sm:$0xff] %v10174_v44 }
 0x49c   : > { %2234 = vmax.xlane.f32.xlu1 %v2233_v43 }
 0x49e   : > { %2237 = vmax.xlane.f32.xlu0 %v2236_v15  ;;  %v10163_v15 = vadd.f32 %v2074_v22, %v10050_v50 }
 0x4a0   : > { %v7923_v34 = vpop.f32.mrb[64].mxu1  ;;  %2258 = vmax.xlane.f32.xlu1 %v2257_v47  ;;  %v10170_v47 = vadd.f32 %v2077_v63, %v10073_v21  ;;  %v2251_v22 = vsel %vm2190_vm2, %v10163_v15, -inf }
 0x4a1   : > { %v2159_v43 = vpop.f32.mrb[65].mxu1 }
 0x4a2   : > { %v7924_v55 = vpop.f32.mrb[66].mxu1  ;;  %2261 = vmax.xlane.f32.xlu0 %v2260_v7  ;;  %v10177_v7 = vadd.f32 %v7923_v34, %v10007_v46  ;;  %v2254_v63 = vsel %vm2190_vm2, %v10170_v47, -inf  ;;  %v10189_v44 = vadd.f32 %v2159_v43, %v10012_v52  ;;  %v10205_v43 = vpop.permute.xlu1 %2976 }
 0x4a3   : > { %v2162_v4 = vpop.f32.mrb[67].mxu1  ;;  %v10182_v25 = vadd.f32 %v7924_v55, %v10030_v53  ;;  %13037 = vst [vmem:[#allocation52_spill] sm:$0xff] %v10205_v43 }
 0x4a4   : > { %2228 = vmax.xlane.f32.xlu1 %v2227_v11  ;;  %v2269_v46 = vsel %vm2190_vm2, %v10177_v7, -inf  ;;  %v10196_v55 = vadd.f32 %v2162_v4, %v10020_v62  ;;  %v2263_v52 = vsel %vm2190_vm2, %v10189_v44, -inf }
 0x4a5   : > { %v2272_v53 = vsel %vm2190_vm2, %v10182_v25, -inf }
 0x4a6   : > { %2231 = vmax.xlane.f32.xlu0 %v2230_v23  ;;  %v2266_v62 = vsel %vm2190_vm2, %v10196_v55, -inf }
 0x4a8   : > { %2252 = vmax.xlane.f32.xlu1 %v2251_v22  ;;  %v7927_v14 = vpop.f32.mrb[68].mxu1  ;;  %v10193_v22 = vpop.permute.xlu0 %3095 }
 0x4a9   : > { %v2175_v11 = vpop.f32.mrb[69].mxu1  ;;  %13036 = vst [vmem:[#allocation51_spill] sm:$0xff] %v10193_v22 }
 0x4aa   : > { %2255 = vmax.xlane.f32.xlu0 %v2254_v63  ;;  %v7928_v23 = vpop.f32.mrb[70].mxu1  ;;  %v10201_v63 = vadd.f32 %v7927_v14, %v10040_v30 }
 0x4ab   : > { %v2178_v34 = vpop.f32.mrb[71].mxu1 }
 0x4ac   : > { %2270 = vmax.xlane.f32.xlu1 %v2269_v46  ;;  %v10208_v46 = vadd.f32 %v7928_v23, %v10055_v57  ;;  %v10212_v4 = vpop.permute.xlu0 %3097  ;;  %v2281_v14 = vsel %vm2190_vm2, %v10201_v63, -inf  ;;  %v10220_v30 = vadd.f32 %v2178_v34, %v10073_v21  ;;  %v10224_v23 = vpop.permute.xlu1 %3202 }
 0x4ad   : > { %13038 = vst [vmem:[#allocation53_spill] sm:$0xff] %v10212_v4  ;;  %13039 = vst [vmem:[#allocation54_spill] sm:$0xff] %v10224_v23 }
 0x4ae   : > { %2273 = vmax.xlane.f32.xlu0 %v2272_v53  ;;  %v10215_v53 = vadd.f32 %v2175_v11, %v10050_v50  ;;  %v2284_v57 = vsel %vm2190_vm2, %v10208_v46, -inf  ;;  %v2278_v11 = vsel %vm2190_vm2, %v10220_v30, -inf }
 0x4b0   : > { %2264 = vmax.xlane.f32.xlu1 %v2263_v52 }
 0x4b2   : > { %2267 = vmax.xlane.f32.xlu0 %v2266_v62  ;;  %v2275_v62 = vsel %vm2190_vm2, %v10215_v53, -inf }
 0x4b4   : > { %2282 = vmax.xlane.f32.xlu1 %v2281_v14 }
 0x4b6   : > { %2285 = vmax.xlane.f32.xlu0 %v2284_v57 }
 0x4b7   : > { %v2199_v52 = vpop.xlane.xlu0 %2198 }
 0x4b8   : > { %v2289_v50 = vsub.f32 %v10015_v54, %v2199_v52  ;;  %2276 = vmax.xlane.f32.xlu1 %v2275_v62 }
 0x4ba   : > { %v2323_v14 = vmul.f32 1.442695, %v2289_v50  ;;  %v2196_v4 = vpop.xlane.xlu1 %2195  ;;  %2279 = vmax.xlane.f32.xlu0 %v2278_v11 }
 0x4bb   : > { %v2193_v21 = vpop.xlane.xlu0 %2192  ;;  %v2288_v57 = vsub.f32 %v10033_v32, %v2196_v4 }
 0x4bc   : > { %8668 = vpow2.f32 %v2323_v14  ;;  %v2287_v34 = vsub.f32 %v10023_v27, %v2193_v21 }
 0x4bd   : > { %v2321_v52 = vmul.f32 1.442695, %v2288_v57 }
 0x4be   : > { %v2319_v22 = vmul.f32 1.442695, %v2287_v34 }
 0x4bf   : > { %v2211_v23 = vpop.xlane.xlu1 %2210  ;;  %v2202_v43 = vpop.xlane.xlu0 %2201 }
 0x4c0   : > { %8670 = vpow2.f32 %v2319_v22  ;;  %v2290_v61 = vsub.f32 %v10043_v39, %v2202_v43  ;;  %v2293_v62 = vsub.f32 %v10058_v56, %v2211_v23 }
 0x4c2   : > { %v2325_v54 = vmul.f32 1.442695, %v2290_v61  ;;  %v2331_v21 = vmul.f32 1.442695, %v2293_v62 }
 0x4c3   : > { %v2205_v40 = vpop.xlane.xlu1 %2204  ;;  %v2214_v50 = vpop.xlane.xlu0 %2213 }
 0x4c4   : > { %v2291_v11 = vsub.f32 %v10061_v8, %v2205_v40  ;;  %8672 = vpow2.f32 %v2325_v54  ;;  %v2294_v32 = vsub.f32 %v10064_v0, %v2214_v50 }
 0x4c5   : > { %8674 = vpow2.f32 %v2321_v52 }
 0x4c6   : > { %v10236_v14 = vpop.eup %8668  ;;  %v2327_v27 = vmul.f32 1.442695, %v2291_v11  ;;  %v2333_v56 = vmul.f32 1.442695, %v2294_v32 }
 0x4c7   : > { %v2389_v22 = vsel %vm2190_vm2, %v10236_v14, 0.0  ;;  %v2208_v61 = vpop.xlane.xlu0 %2207 }
 0x4c8   : > { %8676 = vpow2.f32 %v2327_v27  ;;  %2390 = vadd.xlane.f32.xlu1 %v2389_v22  ;;  %v2292_v40 = vsub.f32 %v10076_v2, %v2208_v61 }
 0x4c9   : > { %8678 = vpow2.f32 %v2331_v21 }
 0x4ca   : > { %v10241_v39 = vpop.eup %8670  ;;  %8680 = vpow2.f32 %v2333_v56  ;;  %v2329_v0 = vmul.f32 1.442695, %v2292_v40 }
 0x4cb   : > { %v2383_v8 = vsel %vm2190_vm2, %v10241_v39, 0.0 }
 0x4cc   : > { %2384 = vadd.xlane.f32.xlu1 %v2383_v8  ;;  %8682 = vpow2.f32 %v2329_v0 }
 0x4ce   : > { %v10246_v43 = vpop.eup %8672 }
 0x4cf   : > { %v2392_v4 = vsel %vm2190_vm2, %v10246_v43, 0.0  ;;  %v10250_v23 = vpop.eup %8674 }
 0x4d0   : > { %2393 = vadd.xlane.f32.xlu0 %v2392_v4  ;;  %v2386_v57 = vsel %vm2190_vm2, %v10250_v23, 0.0 }
 0x4d2   : > { %v10252_v34 = vpop.eup %8676 }
 0x4d3   : > { %v2395_v2 = vsel %vm2190_vm2, %v10252_v34, 0.0  ;;  %v10258_v54 = vpop.eup %8678 }
 0x4d4   : > { %2396 = vadd.xlane.f32.xlu1 %v2395_v2  ;;  %2387 = vadd.xlane.f32.xlu0 %v2386_v57  ;;  %v2401_v50 = vsel %vm2190_vm2, %v10258_v54, 0.0  ;;  %v10263_v11 = vpop.eup %8680 }
 0x4d5   : > { %v2404_v21 = vsel %vm2190_vm2, %v10263_v11, 0.0 }
 0x4d6   : > { %v10267_v32 = vpop.eup %8682 }
 0x4d7   : > { %v2223_v52 = vpop.xlane.xlu1 %2222  ;;  %v2398_v22 = vsel %vm2190_vm2, %v10267_v32, 0.0 }
 0x4d8   : > { %v2297_v62 = vsub.f32 %v10085_v16, %v2223_v52  ;;  %2402 = vadd.xlane.f32.xlu0 %v2401_v50 }
 0x4d9   : > { %v2226_v56 = vpop.xlane.xlu0 %2225 }
 0x4da   : > { %v2339_v27 = vmul.f32 1.442695, %v2297_v62  ;;  %v2298_v52 = vsub.f32 %v10088_v49, %v2226_v56 }
 0x4dc   : > { %8684 = vpow2.f32 %v2339_v27  ;;  %2405 = vadd.xlane.f32.xlu0 %v2404_v21 }
 0x4e0   : > { %2399 = vadd.xlane.f32.xlu0 %v2398_v22  ;;  %v2341_v22 = vmul.f32 1.442695, %v2298_v52 }
 0x4e6   : > { %v10271_v61 = vpop.eup %8684 }
 0x4e7   : > { %13040 = vst [vmem:[#allocation55_spill] sm:$0xff] %v10271_v61  ;;  %v2413_v16 = vsel %vm2190_vm2, %v10271_v61, 0.0 }
 0x4e8   : > { %2414 = vadd.xlane.f32.xlu1 %v2413_v16 }
 0x51d   : > { %v2247_v40 = vpop.xlane.xlu1 %2246 }
 0x51e   : > { %v2305_v8 = vsub.f32 %v10099_v3, %v2247_v40 }
 0x51f   : > { %v2250_v0 = vpop.xlane.xlu0 %2249 }
 0x520   : > { %v2355_v4 = vmul.f32 1.442695, %v2305_v8  ;;  %v2306_v61 = vsub.f32 %v10107_v12, %v2250_v0 }
 0x521   : > { %v2217_v2 = vpop.xlane.xlu1 %2216 }
 0x522   : > { %8686 = vpow2.f32 %v2355_v4  ;;  %v2295_v57 = vsub.f32 %v10104_v37, %v2217_v2  ;;  %v2357_v4 = vmul.f32 1.442695, %v2306_v61 }
 0x523   : > { %v2220_v62 = vpop.xlane.xlu0 %2219 }
 0x524   : > { %v2335_v50 = vmul.f32 1.442695, %v2295_v57  ;;  %v2296_v37 = vsub.f32 %v10112_v28, %v2220_v62 }
 0x525   : > { %v2241_v27 = vpop.xlane.xlu1 %2240 }
 0x526   : > { %8688 = vpow2.f32 %v2335_v50  ;;  %v2303_v21 = vsub.f32 %v10117_v26, %v2241_v27 }
 0x527   : > { %v2244_v16 = vpop.xlane.xlu0 %2243 }
 0x528   : > { %v2351_v13 = vmul.f32 1.442695, %v2303_v21  ;;  %v2304_v3 = vsub.f32 %v10124_v18, %v2244_v16  ;;  %v2337_v18 = vmul.f32 1.442695, %v2296_v37 }
 0x529   : > { %v2235_v40 = vpop.xlane.xlu1 %2234 }
 0x52a   : > { %8690 = vpow2.f32 %v2351_v13  ;;  %v2353_v8 = vmul.f32 1.442695, %v2304_v3  ;;  %v2301_v13 = vsub.f32 %v10129_v41, %v2235_v40 }
 0x52b   : > { %8692 = vpow2.f32 %v2341_v22  ;;  %v2238_v49 = vpop.xlane.xlu0 %2237 }
 0x52c   : > { %v10282_v56 = vpop.eup %8686  ;;  %8694 = vpow2.f32 %v2353_v8  ;;  %v2302_v26 = vsub.f32 %v10134_v24, %v2238_v49  ;;  %v2347_v50 = vmul.f32 1.442695, %v2301_v13 }
 0x52d   : > { %v2259_v2 = vpop.xlane.xlu1 %2258  ;;  %v2437_v12 = vsel %vm2190_vm2, %v10282_v56, 0.0  ;;  %8696 = vpow2.f32 %v2357_v4 }
 0x52e   : > { %v2309_v0 = vsub.f32 %v10141_v10, %v2259_v2  ;;  %2438 = vadd.xlane.f32.xlu1 %v2437_v12  ;;  %v2349_v28 = vmul.f32 1.442695, %v2302_v26 }
 0x52f   : > { %v2262_v57 = vpop.xlane.xlu0 %2261 }
 0x530   : > { %v10289_v52 = vpop.eup %8688  ;;  %v2363_v62 = vmul.f32 1.442695, %v2309_v0  ;;  %v2310_v0 = vsub.f32 %v10146_v58, %v2262_v57 }
 0x531   : > { %v2229_v61 = vpop.xlane.xlu1 %2228  ;;  %v2407_v24 = vsel %vm2190_vm2, %v10289_v52, 0.0 }
 0x532   : > { %8698 = vpow2.f32 %v2363_v62  ;;  %2408 = vadd.xlane.f32.xlu0 %v2407_v24  ;;  %v2299_v10 = vsub.f32 %v10151_v35, %v2229_v61  ;;  %v2365_v57 = vmul.f32 1.442695, %v2310_v0 }
 0x533   : > { %8700 = vpow2.f32 %v2337_v18  ;;  %v2232_v27 = vpop.xlane.xlu0 %2231 }
 0x534   : > { %v10294_v21 = vpop.eup %8690  ;;  %8702 = vpow2.f32 %v2349_v28  ;;  %v2300_v41 = vsub.f32 %v10158_v33, %v2232_v27  ;;  %v2343_v37 = vmul.f32 1.442695, %v2299_v10 }
 0x535   : > { %v10297_v22 = vpop.eup %8692  ;;  %v2253_v16 = vpop.xlane.xlu1 %2252  ;;  %v2431_v3 = vsel %vm2190_vm2, %v10294_v21, 0.0  ;;  %8704 = vpow2.f32 %v2347_v50 }
 0x536   : > { %v10301_v40 = vpop.eup %8694  ;;  %v2345_v8 = vmul.f32 1.442695, %v2300_v41  ;;  %2432 = vadd.xlane.f32.xlu0 %v2431_v3  ;;  %v2307_v35 = vsub.f32 %v10163_v15, %v2253_v16  ;;  %v2416_v26 = vsel %vm2190_vm2, %v10297_v22, 0.0 }
 0x537   : > { %v2256_v49 = vpop.xlane.xlu0 %2255  ;;  %v2434_v4 = vsel %vm2190_vm2, %v10301_v40, 0.0  ;;  %v10309_v2 = vpop.eup %8696 }
 0x538   : > { %8706 = vpow2.f32 %v2345_v8  ;;  %v2308_v33 = vsub.f32 %v10170_v47, %v2256_v49  ;;  %2435 = vadd.xlane.f32.xlu1 %v2434_v4  ;;  %v2359_v18 = vmul.f32 1.442695, %v2307_v35  ;;  %v2440_v61 = vsel %vm2190_vm2, %v10309_v2, 0.0 }
 0x539   : > { %8708 = vpow2.f32 %v2343_v37  ;;  %v2271_v15 = vpop.xlane.xlu1 %2270 }
 0x53a   : > { %v2361_v12 = vmul.f32 1.442695, %v2308_v33  ;;  %2417 = vadd.xlane.f32.xlu0 %v2416_v26  ;;  %v2313_v27 = vsub.f32 %v10177_v7, %v2271_v15 }
 0x53b   : > { %v2274_v13 = vpop.xlane.xlu0 %2273 }
 0x53c   : > { %v10312_v28 = vpop.eup %8698  ;;  %8710 = vpow2.f32 %v2361_v12  ;;  %v2314_v62 = vsub.f32 %v10182_v25, %v2274_v13  ;;  %v2371_v49 = vmul.f32 1.442695, %v2313_v27 }
 0x53d   : > { %v10315_v47 = vpop.eup %8700  ;;  %v2449_v24 = vsel %vm2190_vm2, %v10312_v28, 0.0  ;;  %8712 = vpow2.f32 %v2359_v18  ;;  %v2265_v16 = vpop.xlane.xlu1 %2264 }
 0x53e   : > { %v10321_v50 = vpop.eup %8702  ;;  %v2373_v58 = vmul.f32 1.442695, %v2314_v62  ;;  %2441 = vadd.xlane.f32.xlu0 %v2440_v61  ;;  %2450 = vadd.xlane.f32.xlu1 %v2449_v24  ;;  %v2410_v3 = vsel %vm2190_vm2, %v10315_v47, 0.0  ;;  %v2311_v7 = vsub.f32 %v10189_v44, %v2265_v16 }
 0x53f   : > { %v2268_v10 = vpop.xlane.xlu0 %2267  ;;  %v10325_v41 = vpop.eup %8704  ;;  %v2428_v8 = vsel %vm2190_vm2, %v10321_v50, 0.0 }
 0x540   : > { %8714 = vpow2.f32 %v2373_v58  ;;  %v2312_v25 = vsub.f32 %v10196_v55, %v2268_v10  ;;  %v2425_v4 = vsel %vm2190_vm2, %v10325_v41, 0.0  ;;  %v2367_v12 = vmul.f32 1.442695, %v2311_v7 }
 0x541   : > { %8716 = vpow2.f32 %v2365_v57  ;;  %v10358_v58 = vpop.xlane.xlu1 %2282 }
 0x542   : > { %v10331_v37 = vpop.eup %8706  ;;  %v2369_v35 = vmul.f32 1.442695, %v2312_v25  ;;  %2411 = vadd.xlane.f32.xlu0 %v2410_v3  ;;  %2429 = vadd.xlane.f32.xlu1 %v2428_v8 }
 0x543   : > { %v10334_v55 = vpop.eup %8708  ;;  %v2422_v33 = vsel %vm2190_vm2, %v10331_v37, 0.0  ;;  %v10366_v25 = vpop.xlane.xlu0 %2285 }
 0x544   : > { %8718 = vpow2.f32 %v2369_v35  ;;  %v2419_v44 = vsel %vm2190_vm2, %v10334_v55, 0.0 }
 0x545   : > { %8720 = vpow2.f32 %v2371_v49  ;;  %v10368_v16 = vpop.xlane.xlu1 %2276 }
 0x546   : > { %v10340_v26 = vpop.eup %8710  ;;  %2426 = vadd.xlane.f32.xlu0 %v2425_v4  ;;  %2423 = vadd.xlane.f32.xlu1 %v2422_v33  ;;  %8722 = vpow2.f32 %v2367_v12 }
 0x547   : > { %v10342_v0 = vpop.eup %8712  ;;  %v2446_v18 = vsel %vm2190_vm2, %v10340_v26, 0.0  ;;  %v2280_v7 = vpop.xlane.xlu0 %2279 }
 0x548   : > { %v2443_v62 = vsel %vm2190_vm2, %v10342_v0, 0.0 }
 0x54a   : > { %v10348_v15 = vpop.eup %8714  ;;  %2420 = vadd.xlane.f32.xlu0 %v2419_v44  ;;  %2447 = vadd.xlane.f32.xlu1 %v2446_v18  ;;  %v13043_v44 = vld [vmem:[#allocation22_spill] sm:$0xff] }
 0x54b   : > { %13041 = vst [vmem:[#allocation56_spill] sm:$0xff] %v10348_v15  ;;  %v10350_v13 = vpop.eup %8716  ;;  %v2464_v61 = vsel %vm2190_vm2, %v10348_v15, 0.0 }
 0x54c   : > { %v2452_v57 = vsel %vm2190_vm2, %v10350_v13, 0.0 }
 0x54e   : > { %v10356_v24 = vpop.eup %8718  ;;  %2444 = vadd.xlane.f32.xlu0 %v2443_v62  ;;  %2465 = vadd.xlane.f32.xlu1 %v2464_v61 }
 0x54f   : > { %13042 = vst [vmem:[#allocation57_spill] sm:$0xff] %v10356_v24  ;;  %v2458_v10 = vsel %vm2190_vm2, %v10356_v24, 0.0  ;;  %v10364_v27 = vpop.eup %8720  ;;  %v2316_v24 = vsub.f32 %v10220_v30, %v2280_v7 }
 0x550   : > { %v2461_v3 = vsel %vm2190_vm2, %v10364_v27, 0.0  ;;  %v10372_v8 = vpop.eup %8722 }
 0x551   : > { %v2455_v49 = vsel %vm2190_vm2, %v10372_v8, 0.0 }
 0x552   : > { %2453 = vadd.xlane.f32.xlu0 %v2452_v57  ;;  %2459 = vadd.xlane.f32.xlu1 %v2458_v10 }
 0x555   : > { %v2391_v35 = vpop.xlane.xlu1 %2390 }
 0x556   : > { %2462 = vadd.xlane.f32.xlu0 %v2461_v3 }
 0x559   : > { %v2385_v4 = vpop.xlane.xlu1 %2384 }
 0x55a   : > { %2456 = vadd.xlane.f32.xlu0 %v2455_v49 }
 0x55d   : > { %v2394_v33 = vpop.xlane.xlu0 %2393 }
 0x55e   : > { %8724 = vrcp.f32 %v2394_v33 }
 0x55f   : > { %8726 = vrcp.f32 %v2385_v4 }
 0x560   : > { %8728 = vrcp.f32 %v2391_v35 }
 0x561   : > { %v2388_v12 = vpop.xlane.xlu0 %2387  ;;  %v2397_v61 = vpop.xlane.xlu1 %2396 }
 0x562   : > { %8730 = vrcp.f32 %v2388_v12 }
 0x563   : > { %3099 = vrot.lane.b32.xlu1 %v13043_v44, %s9191_s11 }
 0x565   : > { %v2403_v18 = vpop.xlane.xlu0 %2402 }
 0x568   : > { %v8725_v62 = vpop.eup %8724 }
 0x569   : > { %v2406_v57 = vpop.xlane.xlu0 %2405  ;;  %v8727_v10 = vpop.eup %8726  ;;  %v2514_v49 = vmul.f32 %v8725_v62, %v10246_v43  ;;  %v2377_v43 = vmul.f32 1.442695, %v2316_v24 }
 0x56a   : > { %v8729_v3 = vpop.eup %8728  ;;  %8732 = vrcp.f32 %v2406_v57  ;;  %v2511_v35 = vmul.f32 %v8727_v10, %v10241_v39  ;;  %v13045_v10 = vld [vmem:[#allocation23_spill] sm:$0xff] }
 0x56b   : > { %8734 = vrcp.f32 %v2397_v61  ;;  %v2513_v12 = vmul.f32 %v8729_v3, %v10236_v14  ;;  %v13044_v61 = vld [vmem:[#allocation6_spill] sm:$0xff]  ;;  %v13046_v3 = vld [vmem:[#allocation24_spill] sm:$0xff] }
 0x56c   : > { %v8731_v15 = vpop.eup %8730  ;;  %8736 = vrcp.f32 %v2403_v18  ;;  %v2317_v18 = vsub.f32 %v10201_v63, %v10358_v58 }
 0x56d   : > { %v2400_v33 = vpop.xlane.xlu0 %2399  ;;  %v2512_v4 = vmul.f32 %v8731_v15, %v10250_v23  ;;  %v2544_v57 = vpack.c.bf16 %v2514_v49, %v2513_v12 }
 0x56e   : > { %8738 = vrcp.f32 %v2400_v33  ;;  %v2379_v62 = vmul.f32 1.442695, %v2317_v18  ;;  %v13047_v33 = vld [vmem:[#allocation25_spill] sm:$0xff]  ;;  %v13052_v18 = vld [vmem:[#allocation35_spill] sm:$0xff] }
 0x56f   : > { %v2543_v44 = vpack.c.bf16 %v2512_v4, %v2511_v35  ;;  %8740 = vpow2.f32 %v2377_v43  ;;  %v13048_v4 = vld [vmem:[#allocation27_spill] sm:$0xff] }
 0x570   : > { %2978 = vrot.lane.b32.xlu0 %v9605_v19, %s9192_s12  ;;  %8742 = vpow2.f32 %v2379_v62 }
 0x571   : > { %7937 = vmatprep.mubr.msk.bf16.mxu0 %vm2190_vm2, %v2543_v44 }
 0x572   : > { %7938 = vmatmul.mubr.msk.bf16.vlgmr.msra.gmra.mrb[56].mxu0 %vm2190_vm2, %v2544_v57  ;;  %v13049_v57 = vld [vmem:[#allocation7_spill] sm:$0xff] }
 0x573   : > { %7962 = vmatpush3.bf16.msra.mxu0 %v9994_v48 }
 0x574   : > { %7963 = vmatprep.subr.bf16.mxu0 %v9992_v42  ;;  %v8733_v39 = vpop.eup %8732 }
 0x575   : > { %v8735_v23 = vpop.eup %8734  ;;  %v2518_v30 = vmul.f32 %v8733_v39, %v10263_v11  ;;  %v2415_v49 = vpop.xlane.xlu1 %2414  ;;  %v13050_v39 = vld [vmem:[#allocation28_spill] sm:$0xff] }
 0x576   : > { %v8737_v14 = vpop.eup %8736  ;;  %v2515_v7 = vmul.f32 %v8735_v23, %v10252_v34  ;;  %v2318_v34 = vsub.f32 %v10208_v46, %v10366_v25  ;;  %v13051_v23 = vld [vmem:[#allocation5_spill] sm:$0xff] }
 0x577   : > { %7964 = vmatpush3.bf16.msra.mxu0 %v9992_v42  ;;  %v2517_v24 = vmul.f32 %v8737_v14, %v10258_v54  ;;  %v2315_v42 = vsub.f32 %v10215_v53, %v10368_v16 }
 0x578   : > { %v8739_v15 = vpop.eup %8738  ;;  %7965 = vmatprep.subr.bf16.mxu0 %v9999_v36  ;;  %v2381_v53 = vmul.f32 1.442695, %v2318_v34 }
 0x579   : > { %v2516_v48 = vmul.f32 %v8739_v15, %v10267_v32  ;;  %v2546_v63 = vpack.c.bf16 %v2518_v30, %v2517_v24  ;;  %v2375_v54 = vmul.f32 1.442695, %v2315_v42  ;;  %v13053_v30 = vld [vmem:[#allocation26_spill] sm:$0xff]  ;;  %v13054_v24 = vld [vmem:[#allocation32_spill] sm:$0xff] }
 0x57b   : > { %7966 = vmatpush3.bf16.msra.mxu0 %v9999_v36  ;;  %v2545_v44 = vpack.c.bf16 %v2516_v48, %v2515_v7  ;;  %v10408_v36 = vpop.eup %8740  ;;  %8744 = vpow2.f32 %v2375_v54  ;;  %v13056_v54 = vld [vmem:[#allocation39_spill] sm:$0xff] }
 0x57c   : > { %7967 = vmatprep.subr.bf16.mxu0 %v10094_v1  ;;  %v2470_v11 = vsel %vm2190_vm2, %v10408_v36, 0.0  ;;  %8746 = vpow2.f32 %v2381_v53  ;;  %v10412_v32 = vpop.eup %8742  ;;  %v13057_v53 = vld [vmem:[#allocation9_spill] sm:$0xff] }
 0x57d   : > { %7941 = vmatprep.mubr.msk.bf16.mxu0 %vm2190_vm2, %v2545_v44  ;;  %v13055_v44 = vld [vmem:[#allocation11_spill] sm:$0xff] }
 0x57e   : > { %7942 = vmatmul.mubr.msk.bf16.gmra.mrb[60].mxu0 %vm2190_vm2, %v2546_v63 }
 0x57f   : > { %7968 = vmatpush3.bf16.msra.mxu0 %v10094_v1  ;;  %v2473_v1 = vsel %vm2190_vm2, %v10412_v32, 0.0 }
 0x580   : > { %8449 = vmatprep.subr.msk.bf16.mxu0 %vm1797_vm1, %v10101_v38 }
 0x585   : > { %v10416_v58 = vpop.eup %8744 }
 0x586   : > { %v2467_v46 = vsel %vm2190_vm2, %v10416_v58, 0.0  ;;  %v10420_v25 = vpop.eup %8746 }
 0x587   : > { %2471 = vadd.xlane.f32.xlu1 %v2470_v11  ;;  %v2476_v16 = vsel %vm2190_vm2, %v10420_v25, 0.0 }
 0x58f   : > { %2474 = vadd.xlane.f32.xlu0 %v2473_v1 }
 0x593   : > { %2468 = vadd.xlane.f32.xlu0 %v2467_v46 }
 0x597   : > { %2477 = vadd.xlane.f32.xlu0 %v2476_v16 }
 0x598   : > { %3085 = vrot.lane.b32.xlu1 %v9624_v31, %s9192_s12 }
 0x59c   : > { %3311 = vrot.lane.b32.xlu1 %v9795_v29, %s9191_s11 }
 0x5a0   : > { %2980 = vrot.lane.b32.xlu1 %v9611_v45, %s9192_s12 }
 0x5a4   : > { %3208 = vrot.lane.b32.xlu1 %v9802_v17, %s9191_s11 }
 0x5a8   : > { %3194 = vrot.lane.b32.xlu1 %v13044_v61, %s9192_s12 }
 0x5ac   : > { %3315 = vrot.lane.b32.xlu1 %v9817_v9, %s9191_s11 }
 0x5ad   : > { %3204 = vrot.lane.b32.xlu0 %v13045_v10, %s9191_s11 }
 0x5b0   : > { %3091 = vrot.lane.b32.xlu1 %v9642_v51, %s9192_s12 }
 0x5b1   : > { %3206 = vrot.lane.b32.xlu0 %v13046_v3, %s9191_s11 }
 0x5b4   : > { %3303 = vrot.lane.b32.xlu1 %v9674_v5, %s9192_s12 }
 0x5b5   : > { %3087 = vrot.lane.b32.xlu0 %v9629_v59, %s9192_s12 }
 0x5b8   : > { %3198 = vrot.lane.b32.xlu1 %v13023_v60, %s9192_s12 }
 0x5b9   : > { %2982 = vrot.lane.b32.xlu0 %v9617_v6, %s9192_s12 }
 0x5bb   : > { %v2439_v12 = vpop.xlane.xlu1 %2438 }
 0x5bc   : > { %3307 = vrot.lane.b32.xlu1 %v13026_v20, %s9192_s12 }
 0x5bd   : > { %3313 = vrot.lane.b32.xlu0 %v13047_v33, %s9191_s11 }
 0x5bf   : > { %v2409_v35 = vpop.xlane.xlu0 %2408 }
 0x5c0   : > { %3778 = vrot.lane.b32.xlu1 %v13048_v4, %s9193_s30 }
 0x5c1   : > { %3196 = vrot.lane.b32.xlu0 %v13049_v57, %s9192_s12 }
 0x5c3   : > { %v2433_v43 = vpop.xlane.xlu0 %2432 }
 0x5c4   : > { %8748 = vrcp.f32 %v2433_v43  ;;  %3782 = vrot.lane.b32.xlu1 %v13050_v39, %s9193_s30 }
 0x5c5   : > { %3089 = vrot.lane.b32.xlu0 %v13051_v23, %s9192_s12  ;;  %v2436_v14 = vpop.xlane.xlu1 %2435 }
 0x5c6   : > { %8750 = vrcp.f32 %v2436_v14 }
 0x5c7   : > { %v2418_v15 = vpop.xlane.xlu0 %2417  ;;  %8752 = vrcp.f32 %v2439_v12 }
 0x5c8   : > { %3954 = vrot.lane.b32.xlu1 %v13052_v18, %s9193_s30 }
 0x5c9   : > { %3317 = vrot.lane.b32.xlu0 %v13053_v30, %s9191_s11  ;;  %s9195_s11 = smov 112  }
 0x5cb   : > { %v2442_v7 = vpop.xlane.xlu0 %2441  ;;  %v2451_v48 = vpop.xlane.xlu1 %2450 }
 0x5cc   : > { %8754 = vrcp.f32 %v2442_v7  ;;  %3956 = vrot.lane.b32.xlu1 %v13054_v24, %s9193_s30 }
 0x5cd   : > { %8756 = vrcp.f32 %v2418_v15  ;;  %3305 = vrot.lane.b32.xlu0 %v13055_v44, %s9192_s12 }
 0x5ce   : > { %v8749_v62 = vpop.eup %8748  ;;  %8758 = vrcp.f32 %v2409_v35  ;;  %v13059_v35 = vld [vmem:[#allocation13_spill] sm:$0xff] }
 0x5cf   : > { %8760 = vrcp.f32 %v2415_v49  ;;  %v2412_v42 = vpop.xlane.xlu0 %2411  ;;  %v2430_v63 = vpop.xlane.xlu1 %2429  ;;  %v2527_v11 = vmul.f32 %v8749_v62, %v10294_v21  ;;  %v13058_v49 = vld [vmem:[#allocation36_spill] sm:$0xff] }
 0x5d0   : > { %v8751_v34 = vpop.eup %8750  ;;  %8762 = vrcp.f32 %v2412_v42  ;;  %3958 = vrot.lane.b32.xlu1 %v13056_v54, %s9193_s30 }
 0x5d1   : > { %3200 = vrot.lane.b32.xlu0 %v13057_v53, %s9192_s12  ;;  %v2528_v1 = vmul.f32 %v8751_v34, %v10301_v40  ;;  %v8753_v43 = vpop.eup %8752  ;;  %v13060_v34 = vld [vmem:[#allocation38_spill] sm:$0xff] }
 0x5d2   : > { %v2529_v21 = vmul.f32 %v8753_v43, %v10282_v56 }
 0x5d3   : > { %v2427_v46 = vpop.xlane.xlu0 %2426  ;;  %v2424_v16 = vpop.xlane.xlu1 %2423  ;;  %v2551_v12 = vpack.c.bf16 %v2528_v1, %v2527_v11 }
 0x5d4   : > { %3960 = vrot.lane.b32.xlu1 %v13058_v49, %s9193_s30  ;;  %8764 = vrcp.f32 %v2427_v46  ;;  %v13061_v46 = vld [vmem:[#allocation29_spill] sm:$0xff] }
 0x5d5   : > { %3309 = vrot.lane.b32.xlu0 %v13059_v35, %s9192_s12  ;;  %7969 = vmatprep.mubr.msk.bf16.mxu0 %vm2190_vm2, %v2551_v12  ;;  %8766 = vrcp.f32 %v2424_v16 }
 0x5d6   : > { %v8755_v14 = vpop.eup %8754  ;;  %8768 = vrcp.f32 %v2430_v63 }
 0x5d7   : > { %v8757_v15 = vpop.eup %8756  ;;  %v2530_v40 = vmul.f32 %v8755_v14, %v10309_v2  ;;  %v2421_v7 = vpop.xlane.xlu0 %2420  ;;  %v3005_v2 = vsel %vm1797_vm1, %v10101_v38, 0  ;;  %v13062_v14 = vld [vmem:[#allocation55_spill] sm:$0xff] }
 0x5d8   : > { %v2448_v62 = vpop.xlane.xlu1 %2447  ;;  %v8759_v42 = vpop.eup %8758  ;;  %8770 = vrcp.f32 %v2421_v7  ;;  %4045 = vrot.lane.b32.xlu1 %v13060_v34, %s9193_s30  ;;  %v2522_v16 = vmul.f32 %v8757_v15, %v10297_v22  ;;  %v13064_v15 = vld [vmem:[#allocation48_spill] sm:$0xff] }
 0x5d9   : > { %v8761_v11 = vpop.eup %8760  ;;  %v2552_v1 = vpack.c.bf16 %v2530_v40, %v2529_v21  ;;  %3776 = vrot.lane.b32.xlu0 %v13061_v46, %s9193_s30  ;;  %8772 = vrcp.f32 %v2448_v62  ;;  %v2519_v63 = vmul.f32 %v8759_v42, %v10289_v52  ;;  %v13063_v21 = vld [vmem:[#allocation14_spill] sm:$0xff]  ;;  %v13065_v40 = vld [vmem:[#allocation31_spill] sm:$0xff] }
 0x5da   : > { %v8763_v12 = vpop.eup %8762  ;;  %v2521_v7 = vmul.f32 %v8761_v11, %v13062_v14  ;;  %v13066_v11 = vld [vmem:[#allocation41_spill] sm:$0xff]  ;;  %v3008_v14 = vsel %vm1797_vm1, %v13064_v15, 0 }
 0x5db   : > { %v2445_v56 = vpop.xlane.xlu0 %2444  ;;  %7970 = vmatmul.mubr.msk.bf16.vlgmr.msra.gmra.mrb[64].mxu0 %vm2190_vm2, %v2552_v1  ;;  %v2520_v43 = vmul.f32 %v8763_v12, %v10315_v47  ;;  %v13067_v12 = vld [vmem:[#allocation43_spill] sm:$0xff] }
 0x5dc   : > { %8774 = vrcp.f32 %v2445_v56  ;;  %7994 = vmatpush3.bf16.xpose.msra.mxu0 %v3005_v2  ;;  %4246 = vrot.lane.b32.xlu1 %v13063_v21, %s9194_s10  ;;  %v2466_v22 = vpop.xlane.xlu1 %2465  ;;  %v2548_v62 = vpack.c.bf16 %v2522_v16, %v2521_v7  ;;  %v13068_v56 = vld [vmem:[#allocation33_spill] sm:$0xff]  ;;  %v13069_v16 = vld [vmem:[#allocation44_spill] sm:$0xff] }
 0x5dd   : > { %8450 = vmatprep.subr.msk.bf16.mxu0 %vm1797_vm1, %v13064_v15  ;;  %3780 = vrot.lane.b32.xlu0 %v13065_v40, %s9193_s30  ;;  %v2547_v38 = vpack.c.bf16 %v2520_v43, %v2519_v63  ;;  %8776 = vrcp.f32 %v2451_v48  ;;  %v10703_v21 = vld [vmem:[%s12817_s5 + $0x68] sm:$0xff] }
 0x5de   : > { %v8765_v52 = vpop.eup %8764 }
 0x5df   : > { %7953 = vmatprep.mubr.msk.bf16.mxu1 %vm2190_vm2, %v2547_v38  ;;  %v2454_v47 = vpop.xlane.xlu0 %2453  ;;  %v8767_v42 = vpop.eup %8766  ;;  %v2525_v48 = vmul.f32 %v8765_v52, %v10325_v41  ;;  %v13071_v41 = vld [vmem:[#allocation47_spill] sm:$0xff] }
 0x5e0   : > { %8778 = vrcp.f32 %v2454_v47  ;;  %4047 = vrot.lane.b32.xlu1 %v13066_v11, %s9193_s30  ;;  %7954 = vmatmul.mubr.msk.bf16.vlgmr.msra.gmra.mrb[72].mxu1 %vm2190_vm2, %v2548_v62  ;;  %v8769_v1 = vpop.eup %8768  ;;  %v2460_v63 = vpop.xlane.xlu1 %2459  ;;  %v2524_v38 = vmul.f32 %v8767_v42, %v10331_v37  ;;  %v13070_v47 = vld [vmem:[#allocation42_spill] sm:$0xff]  ;;  %v13073_v37 = vld [vmem:[#allocation45_spill] sm:$0xff] }
 0x5e1   : > { %7978 = vmatpush3.bf16.msra.mxu1 %v13067_v12  ;;  %3865 = vrot.lane.b32.xlu0 %v13068_v56, %s9193_s30  ;;  %v2526_v12 = vmul.f32 %v8769_v1, %v10321_v50 }
 0x5e2   : > { %v8771_v2 = vpop.eup %8770  ;;  %7979 = vmatprep.subr.bf16.mxu1 %v13069_v16 }
 0x5e3   : > { %v2463_v43 = vpop.xlane.xlu0 %2462  ;;  %v2523_v7 = vmul.f32 %v8771_v2, %v10334_v55  ;;  %v8773_v62 = vpop.eup %8772  ;;  %v13072_v55 = vld [vmem:[#allocation30_spill] sm:$0xff]  ;;  %v2550_v15 = vpack.c.bf16 %v2526_v12, %v2525_v48 }
 0x5e4   : > { %7996 = vmatpush3.bf16.xpose.msra.mxu0 %v3008_v14  ;;  %4049 = vrot.lane.b32.xlu1 %v13070_v47, %s9193_s30  ;;  %8780 = vrcp.f32 %v2463_v43  ;;  %v2532_v1 = vmul.f32 %v8773_v62, %v10340_v26  ;;  %v13076_v48 = vld [vmem:[#allocation46_spill] sm:$0xff]  ;;  %v3011_v26 = vsel %vm1797_vm1, %v13071_v41, 0 }
 0x5e5   : > { %7980 = vmatpush3.bf16.msra.mxu1 %v13069_v16  ;;  %8451 = vmatprep.subr.msk.bf16.mxu0 %vm1797_vm1, %v13071_v41  ;;  %v2549_v52 = vpack.c.bf16 %v2524_v38, %v2523_v7  ;;  %8782 = vrcp.f32 %v2460_v63  ;;  %v13074_v16 = vld [vmem:[#allocation15_spill] sm:$0xff]  ;;  %v13077_v14 = vld [vmem:[#allocation18_spill] sm:$0xff]  ;;  %v13078_v7 = vld [vmem:[#allocation49_spill] sm:$0xff] }
 0x5e6   : > { %v8775_v11 = vpop.eup %8774  ;;  %3867 = vrot.lane.b32.xlu0 %v13072_v55, %s9193_s30  ;;  %7981 = vmatprep.subr.bf16.mxu1 %v13073_v37  ;;  %8784 = vrcp.f32 %v2466_v22  ;;  %v13075_v22 = vld [vmem:[#allocation37_spill] sm:$0xff]  ;;  %v13079_v62 = vld [vmem:[#allocation34_spill] sm:$0xff] }
 0x5e7   : > { %v2457_v42 = vpop.xlane.xlu0 %2456  ;;  %7957 = vmatprep.mubr.msk.bf16.mxu1 %vm2190_vm2, %v2549_v52  ;;  %v2531_v50 = vmul.f32 %v8775_v11, %v10342_v0  ;;  %v8777_v2 = vpop.eup %8776  ;;  %v13080_v12 = vld [vmem:[#allocation50_spill] sm:$0xff] }
 0x5e8   : > { %8786 = vrcp.f32 %v2457_v42  ;;  %4248 = vrot.lane.b32.xlu1 %v13074_v16, %s9194_s10  ;;  %7958 = vmatmul.mubr.msk.bf16.gmra.mrb[76].mxu1 %vm2190_vm2, %v2550_v15  ;;  %v2533_v0 = vmul.f32 %v8777_v2, %v10312_v28  ;;  %v13082_v42 = vld [vmem:[#allocation40_spill] sm:$0xff]  ;;  %v13083_v2 = vld [vmem:[#allocation57_spill] sm:$0xff] }
 0x5e9   : > { %7982 = vmatpush3.bf16.msra.mxu1 %v13073_v37  ;;  %v2553_v63 = vpack.c.bf16 %v2532_v1, %v2531_v50  ;;  %v3014_v50 = vsel %vm1797_vm1, %v13078_v7, 0 }
 0x5ea   : > { %v8779_v43 = vpop.eup %8778  ;;  %3869 = vrot.lane.b32.xlu0 %v13075_v22, %s9193_s30  ;;  %7983 = vmatprep.subr.bf16.mxu1 %v13076_v48 }
 0x5eb   : > { %7973 = vmatprep.mubr.msk.bf16.mxu0 %vm2190_vm2, %v2553_v63  ;;  %v2534_v11 = vmul.f32 %v8779_v43, %v10350_v13  ;;  %v13081_v13 = vld [vmem:[#allocation52_spill] sm:$0xff] }
 0x5ec   : > { %7998 = vmatpush3.bf16.xpose.msra.mxu0 %v3011_v26  ;;  %4353 = vrot.lane.b32.xlu1 %v13077_v14, %s9194_s10  ;;  %v13084_v43 = vld [vmem:[#allocation56_spill] sm:$0xff]  ;;  %v13085_v26 = vld [vmem:[#allocation54_spill] sm:$0xff] }
 0x5ed   : > { %7984 = vmatpush3.bf16.msra.mxu1 %v13076_v48  ;;  %8452 = vmatprep.subr.msk.bf16.mxu0 %vm1797_vm1, %v13078_v7  ;;  %v2554_v38 = vpack.c.bf16 %v2534_v11, %v2533_v0  ;;  %v2979_v7 = vpop.permute.xlu0 %2978 }
 0x5ee   : > { %3871 = vrot.lane.b32.xlu0 %v13079_v62, %s9193_s30  ;;  %8453 = vmatprep.subr.msk.bf16.mxu1 %vm1797_vm1, %v13080_v12  ;;  %v8781_v41 = vpop.eup %8780 }
 0x5ef   : > { %7974 = vmatmul.mubr.msk.bf16.gmra.mrb[68].mxu0 %vm2190_vm2, %v2554_v38  ;;  %v8783_v28 = vpop.eup %8782  ;;  %v2537_v15 = vmul.f32 %v8781_v41, %v10364_v27  ;;  %v13086_v27 = vld [vmem:[#allocation16_spill] sm:$0xff]  ;;  %v13087_v38 = vld [vmem:[#allocation19_spill] sm:$0xff] }
 0x5f0   : > { %8001 = vmatprep.mubr.msk.bf16.mxu0 %vm1797_vm1, %v13081_v13  ;;  %v8785_v52 = vpop.eup %8784  ;;  %v2536_v63 = vmul.f32 %v8783_v28, %v13083_v2  ;;  %v13088_v41 = vld [vmem:[#allocation51_spill] sm:$0xff]  ;;  %v3223_v28 = vsel %vm1797_vm1, %v13085_v26, 0  ;;  %v13089_v13 = vld [vmem:[#allocation17_spill] sm:$0xff] }
 0x5f1   : > { %v2538_v48 = vmul.f32 %v8785_v52, %v13084_v43  ;;  %v13090_v52 = vld [vmem:[#allocation3_spill] sm:$0xff]  ;;  %v13093_v2 = vld [vmem:[#allocation21_spill] sm:$0xff] }
 0x5f2   : > { %v8787_v37 = vpop.eup %8786  ;;  %4043 = vrot.lane.b32.xlu0 %v13082_v42, %s9193_s30  ;;  %s9197_s30 = smov 72  }
 0x5f3   : > { %v2535_v1 = vmul.f32 %v8787_v37, %v10372_v8  ;;  %v2556_v11 = vpack.c.bf16 %v2538_v48, %v2537_v15  ;;  %v3114_v8 = vsel %vm1797_vm1, %v13080_v12, 0  ;;  %v3117_v12 = vsel %vm1797_vm1, %v13088_v41, 0  ;;  %v13091_v37 = vld [vmem:[#allocation53_spill] sm:$0xff]  ;;  %v13092_v15 = vld [vmem:[#allocation20_spill] sm:$0xff] }
 0x5f4   : > { %8000 = vmatpush3.bf16.xpose.msra.mxu0 %v3014_v50  ;;  %v3120_v50 = vsel %vm1797_vm1, %v13091_v37, 0 }
 0x5f5   : > { %8457 = vmatprep.subr.msk.bf16.mxu0 %vm1797_vm1, %v13085_v26  ;;  %v2555_v0 = vpack.c.bf16 %v2536_v63, %v2535_v1  ;;  %v3100_v1 = vpop.permute.xlu1 %3099 }
 0x5f6   : > { %4250 = vrot.lane.b32.xlu0 %v13086_v27, %s9194_s10  ;;  %v3123_v63 = vsel %vm1797_vm1, %v3100_v1, 0 }
 0x5f7   : > { %7985 = vmatprep.mubr.msk.bf16.mxu1 %vm2190_vm2, %v2555_v0 }
 0x5f8   : > { %7986 = vmatmul.mubr.msk.bf16.vlgmr.msra.gmra.mrb[80].mxu1 %vm2190_vm2, %v2556_v11 }
 0x5f9   : > { %8010 = vmatpush3.bf16.xpose.msra.mxu1 %v3114_v8 }
 0x5fa   : > { %4351 = vrot.lane.b32.xlu0 %v13087_v38, %s9194_s10  ;;  %8454 = vmatprep.subr.msk.bf16.mxu1 %vm1797_vm1, %v13088_v41 }
 0x5fb   : > { %8002 = vmatmul.mubr.msk.bf16.vlgmr.msra.gmra.mrb[72].mxu0 %vm1797_vm1, %v2979_v7 }
 0x5fc   : > { %8026 = vmatpush3.bf16.xpose.msra.mxu0 %v3223_v28 }
 0x5fe   : > { %4252 = vrot.lane.b32.xlu0 %v13089_v13, %s9194_s10 }
 0x601   : > { %8012 = vmatpush3.bf16.xpose.msra.mxu1 %v3117_v12 }
 0x602   : > { %4238 = vrot.lane.b32.xlu0 %v13090_v52, %s9195_s11  ;;  %8455 = vmatprep.subr.msk.bf16.mxu1 %vm1797_vm1, %v13091_v37 }
 0x606   : > { %4355 = vrot.lane.b32.xlu0 %v13092_v15, %s9194_s10 }
 0x609   : > { %8014 = vmatpush3.bf16.xpose.msra.mxu1 %v3120_v50 }
 0x60a   : > { %4456 = vrot.lane.b32.xlu0 %v13093_v2, %s9194_s10  ;;  %8456 = vmatprep.subr.msk.bf16.mxu1 %vm1797_vm1, %v3100_v1 }
 0x611   : > { %8016 = vmatpush3.bf16.xpose.msra.mxu1 %v3123_v63 }
 0x614   : > { %v2472_v43 = vpop.xlane.xlu1 %2471 }
 0x615   : > { %8788 = vrcp.f32 %v2472_v43 }
 0x618   : > { %v3086_v48 = vpop.permute.xlu1 %3085 }
 0x61c   : > { %v2475_v26 = vpop.xlane.xlu0 %2474  ;;  %v3312_v0 = vpop.permute.xlu1 %3311 }
 0x61d   : > { %8461 = vmatprep.subr.msk.bf16.mxu1 %vm1797_vm1, %v3312_v0 }
 0x61f   : > { %v8789_v12 = vpop.eup %8788 }
 0x620   : > { %v2469_v11 = vpop.xlane.xlu0 %2468  ;;  %v2981_v8 = vpop.permute.xlu1 %2980 }
 0x621   : > { %8790 = vrcp.f32 %v2469_v11  ;;  %8005 = vmatprep.mubr.msk.bf16.mxu0 %vm1797_vm1, %v2981_v8  ;;  %v2540_v11 = vmul.f32 %v8789_v12, %v10408_v36 }
 0x622   : > { %8792 = vrcp.f32 %v2475_v26 }
 0x624   : > { %v2478_v7 = vpop.xlane.xlu0 %2477  ;;  %v3209_v41 = vpop.permute.xlu1 %3208 }
 0x625   : > { %8794 = vrcp.f32 %v2478_v7 }
 0x628   : > { %v3205_v28 = vpop.permute.xlu0 %3204  ;;  %v3195_v37 = vpop.permute.xlu1 %3194 }
 0x629   : > { %8458 = vmatprep.subr.msk.bf16.mxu0 %vm1797_vm1, %v3205_v28  ;;  %v3226_v50 = vsel %vm1797_vm1, %v3205_v28, 0 }
 0x62a   : > { %8028 = vmatpush3.bf16.xpose.msra.mxu0 %v3226_v50 }
 0x62b   : > { %v8791_v1 = vpop.eup %8790 }
 0x62c   : > { %v3207_v63 = vpop.permute.xlu0 %3206  ;;  %v2539_v43 = vmul.f32 %v8791_v1, %v10416_v58  ;;  %v8793_v2 = vpop.eup %8792 }
 0x62d   : > { %8459 = vmatprep.subr.msk.bf16.mxu0 %vm1797_vm1, %v3207_v63  ;;  %v3316_v7 = vpop.permute.xlu1 %3315  ;;  %v2541_v27 = vmul.f32 %v8793_v2, %v10412_v32  ;;  %v3229_v50 = vsel %vm1797_vm1, %v3207_v63, 0  ;;  %v3232_v32 = vsel %vm1797_vm1, %v3209_v41, 0 }
 0x62e   : > { %v2557_v26 = vpack.c.bf16 %v2540_v11, %v2539_v43 }
 0x62f   : > { %v8795_v8 = vpop.eup %8794 }
 0x630   : > { %v3088_v14 = vpop.permute.xlu0 %3087  ;;  %7989 = vmatprep.mubr.msk.bf16.mxu1 %vm2190_vm2, %v2557_v26  ;;  %v2542_v28 = vmul.f32 %v8795_v8, %v10420_v25 }
 0x631   : > { %v3092_v58 = vpop.permute.xlu1 %3091 }
 0x632   : > { %8030 = vmatpush3.bf16.xpose.msra.mxu0 %v3229_v50  ;;  %v2558_v16 = vpack.c.bf16 %v2542_v28, %v2541_v27  ;;  %v3332_v27 = vsel %vm1797_vm1, %v3312_v0, 0  ;;  %v3338_v28 = vsel %vm1797_vm1, %v3316_v7, 0 }
 0x633   : > { %8460 = vmatprep.subr.msk.bf16.mxu0 %vm1797_vm1, %v3209_v41 }
 0x634   : > { %v2983_v36 = vpop.permute.xlu0 %2982  ;;  %7990 = vmatmul.mubr.msk.bf16.gmra.mrb[84].mxu1 %vm2190_vm2, %v2558_v16 }
 0x635   : > { %8006 = vmatmul.mubr.msk.bf16.gmra.mrb[76].mxu0 %vm1797_vm1, %v2983_v36  ;;  %8017 = vmatprep.mubr.msk.bf16.mxu1 %vm1797_vm1, %v3086_v48  ;;  %v3304_v25 = vpop.permute.xlu1 %3303 }
 0x636   : > { %8033 = vmatprep.mubr.msk.bf16.mxu0 %vm1797_vm1, %v3195_v37 }
 0x638   : > { %v3314_v12 = vpop.permute.xlu0 %3313 }
 0x639   : > { %v3199_v1 = vpop.permute.xlu1 %3198  ;;  %v3335_v41 = vsel %vm1797_vm1, %v3314_v12, 0 }
 0x63a   : > { %8032 = vmatpush3.bf16.xpose.msra.mxu0 %v3232_v32 }
 0x63c   : > { %v3197_v2 = vpop.permute.xlu0 %3196  ;;  %8018 = vmatmul.mubr.msk.bf16.vlgmr.msra.gmra.mrb[88].mxu1 %vm1797_vm1, %v3088_v14 }
 0x63d   : > { %8042 = vmatpush3.bf16.xpose.msra.mxu1 %v3332_v27  ;;  %v3308_v50 = vpop.permute.xlu1 %3307 }
 0x63e   : > { %8462 = vmatprep.subr.msk.bf16.mxu1 %vm1797_vm1, %v3314_v12 }
 0x640   : > { %v3090_v16 = vpop.permute.xlu0 %3089 }
 0x641   : > { %8021 = vmatprep.mubr.msk.bf16.mxu1 %vm1797_vm1, %v3090_v16  ;;  %8034 = vmatmul.mubr.msk.bf16.vlgmr.msra.gmra.mrb[80].mxu0 %vm1797_vm1, %v3197_v2 }
 0x642   : > { %8037 = vmatprep.mubr.msk.bf16.mxu0 %vm1797_vm1, %v3199_v1  ;;  %v3779_v1 = vpop.permute.xlu1 %3778 }
 0x644   : > { %v3318_v48 = vpop.permute.xlu0 %3317  ;;  %8022 = vmatmul.mubr.msk.bf16.gmra.mrb[92].mxu1 %vm1797_vm1, %v3092_v58 }
 0x645   : > { %8044 = vmatpush3.bf16.xpose.msra.mxu1 %v3335_v41  ;;  %8049 = vmatprep.mubr.msk.bf16.mxu1 %vm1797_vm1, %v3304_v25  ;;  %v7939_v14 = vpop.f32.mrb[56].mxu0  ;;  %v3341_v2 = vsel %vm1797_vm1, %v3318_v48, 0 }
 0x646   : > { %8463 = vmatprep.subr.msk.bf16.mxu1 %vm1797_vm1, %v3316_v7  ;;  %v2621_v0 = vpop.f32.mrb[57].mxu0 }
 0x647   : > { %v7940_v37 = vpop.f32.mrb[58].mxu0 }
 0x648   : > { %v3306_v63 = vpop.permute.xlu0 %3305  ;;  %v2932_v43 = vpack.c.bf16 %v7940_v37, %v7939_v14  ;;  %v2624_v11 = vpop.f32.mrb[59].mxu0 }
 0x649   : > { %v2931_v26 = vpack.c.bf16 %v2624_v11, %v2621_v0  ;;  %v3783_v14 = vpop.permute.xlu1 %3782 }
 0x64a   : > { %2948 = vst.msk [vmem:[#allocation2 + $0x8] sm:$0xff] %vm1797_vm1, %v2932_v43 }
 0x64b   : > { %2947 = vst.msk [vmem:[#allocation2] sm:$0xff] %vm1797_vm1, %v2931_v26 }
 0x64c   : > { %v3201_v8 = vpop.permute.xlu0 %3200 }
 0x64d   : > { %8046 = vmatpush3.bf16.xpose.msra.mxu1 %v3338_v28  ;;  %8038 = vmatmul.mubr.msk.bf16.gmra.mrb[84].mxu0 %vm1797_vm1, %v3201_v8  ;;  %v10625_v37 = vpop.permute.xlu1 %3954 }
 0x64e   : > { %8464 = vmatprep.subr.msk.bf16.mxu1 %vm1797_vm1, %v3318_v48 }
 0x650   : > { %v3310_v36 = vpop.permute.xlu0 %3309 }
 0x651   : > { %v7943_v58 = vpop.f32.mrb[60].mxu0  ;;  %v10795_v24 = vpop.permute.xlu1 %3956 }
 0x652   : > { %v2637_v12 = vpop.f32.mrb[61].mxu0 }
 0x653   : > { %v7944_v32 = vpop.f32.mrb[62].mxu0 }
 0x654   : > { %v3777_v25 = vpop.permute.xlu0 %3776  ;;  %v2934_v27 = vpack.c.bf16 %v7944_v32, %v7943_v58  ;;  %v2640_v16 = vpop.f32.mrb[63].mxu0 }
 0x655   : > { %8048 = vmatpush3.bf16.xpose.msra.mxu1 %v3341_v2  ;;  %8057 = vmatprep.subr.bf16.mxu0 %v3777_v25  ;;  %v2933_v41 = vpack.c.bf16 %v2640_v16, %v2637_v12  ;;  %v10809_v44 = vpop.permute.xlu1 %3958 }
 0x656   : > { %8058 = vmatpush3.bf16.msra.mxu0 %v3777_v25  ;;  %2950 = vst.msk [vmem:[#allocation2 + $0x18] sm:$0xff] %vm1797_vm1, %v2934_v27 }
 0x657   : > { %8059 = vmatprep.subr.bf16.mxu0 %v3779_v1  ;;  %2949 = vst.msk [vmem:[#allocation2 + $0x10] sm:$0xff] %vm1797_vm1, %v2933_v41 }
 0x658   : > { %v3781_v7 = vpop.permute.xlu0 %3780 }
 0x65a   : > { %8060 = vmatpush3.bf16.msra.mxu0 %v3779_v1 }
 0x65b   : > { %8061 = vmatprep.subr.bf16.mxu0 %v3781_v7 }
 0x65c   : > { %8050 = vmatmul.mubr.msk.bf16.vlgmr.msra.gmra.mrb[96].mxu1 %vm1797_vm1, %v3306_v63  ;;  %v3866_v0 = vpop.permute.xlu0 %3865 }
 0x65d   : > { %8053 = vmatprep.mubr.msk.bf16.mxu1 %vm1797_vm1, %v3308_v50  ;;  %8073 = vmatprep.subr.bf16.mxu1 %v3866_v0 }
 0x65e   : > { %8062 = vmatpush3.bf16.msra.mxu0 %v3781_v7  ;;  %8074 = vmatpush3.bf16.msra.mxu1 %v3866_v0 }
 0x65f   : > { %8063 = vmatprep.subr.bf16.mxu0 %v3783_v14 }
 0x660   : > { %v3868_v48 = vpop.permute.xlu0 %3867 }
 0x661   : > { %8075 = vmatprep.subr.bf16.mxu1 %v3868_v48 }
 0x662   : > { %8064 = vmatpush3.bf16.msra.mxu0 %v3783_v14  ;;  %8076 = vmatpush3.bf16.msra.mxu1 %v3868_v48 }
 0x663   : > { %8089 = vmatprep.subr.bf16.mxu0 %v10625_v37 }
 0x664   : > { %8054 = vmatmul.mubr.msk.bf16.gmra.mrb[100].mxu1 %vm1797_vm1, %v3310_v36  ;;  %v3870_v43 = vpop.permute.xlu0 %3869 }
 0x665   : > { %8077 = vmatprep.subr.bf16.mxu1 %v3870_v43 }
 0x666   : > { %8078 = vmatpush3.bf16.msra.mxu1 %v3870_v43 }
 0x668   : > { %v3872_v63 = vpop.permute.xlu0 %3871 }
 0x669   : > { %8079 = vmatprep.subr.bf16.mxu1 %v3872_v63 }
 0x66a   : > { %8080 = vmatpush3.bf16.msra.mxu1 %v3872_v63 }
 0x66c   : > { %v10629_v11 = vpop.permute.xlu0 %4043 }
 0x66d   : > { %13094 = vst [vmem:[#allocation6_spill] sm:$0xff] %v10629_v11  ;;  %8105 = vmatprep.subr.bf16.mxu1 %v10629_v11 }
 0x6ae   : > { %v7971_v26 = vpop.f32.mrb[64].mxu0 }
 0x6af   : > { %v2807_v8 = vpop.f32.mrb[65].mxu0 }
 0x6b0   : > { %v7972_v28 = vpop.f32.mrb[66].mxu0 }
 0x6b1   : > { %v2940_v50 = vpack.c.bf16 %v7972_v28, %v7971_v26  ;;  %v2810_v58 = vpop.f32.mrb[67].mxu0 }
 0x6b2   : > { %v2939_v12 = vpack.c.bf16 %v2810_v58, %v2807_v8 }
 0x6b3   : > { %2956 = vst.msk [vmem:[#allocation2 + $0x48] sm:$0xff] %vm1797_vm1, %v2940_v50  ;;  %v7955_v32 = vpop.f32.mrb[72].mxu1 }
 0x6b4   : > { %2955 = vst.msk [vmem:[#allocation2 + $0x40] sm:$0xff] %vm1797_vm1, %v2939_v12  ;;  %v2714_v36 = vpop.f32.mrb[73].mxu1 }
 0x6b5   : > { %v7956_v25 = vpop.f32.mrb[74].mxu1 }
 0x6b6   : > { %v2936_v2 = vpack.c.bf16 %v7956_v25, %v7955_v32  ;;  %v2717_v27 = vpop.f32.mrb[75].mxu1  ;;  %v10643_v32 = vld [vmem:[%s12817_s5 + $0x50] sm:$0xff]  ;;  %v10648_v25 = vld [vmem:[%s12817_s5 + $0x40] sm:$0xff] }
 0x6b7   : > { %v2935_v16 = vpack.c.bf16 %v2717_v27, %v2714_v36 }
 0x6b8   : > { %2952 = vst.msk [vmem:[#allocation2 + $0x28] sm:$0xff] %vm1797_vm1, %v2936_v2 }
 0x6b9   : > { %2951 = vst.msk [vmem:[#allocation2 + $0x20] sm:$0xff] %vm1797_vm1, %v2935_v16 }
 0x6bb   : > { %v7959_v1 = vpop.f32.mrb[76].mxu1 }
 0x6bc   : > { %v2730_v41 = vpop.f32.mrb[77].mxu1 }
 0x6bd   : > { %v7960_v7 = vpop.f32.mrb[78].mxu1 }
 0x6be   : > { %v2938_v14 = vpack.c.bf16 %v7960_v7, %v7959_v1  ;;  %v2733_v0 = vpop.f32.mrb[79].mxu1 }
 0x6bf   : > { %v2937_v48 = vpack.c.bf16 %v2733_v0, %v2730_v41  ;;  %v10661_v0 = vld [vmem:[%s12817_s5 + $0x48] sm:$0xff] }
 0x6c0   : > { %2954 = vst.msk [vmem:[#allocation2 + $0x38] sm:$0xff] %vm1797_vm1, %v2938_v14  ;;  %v10656_v14 = vld [vmem:[%s12817_s5 + $0x58] sm:$0xff] }
 0x6c1   : > { %2953 = vst.msk [vmem:[#allocation2 + $0x30] sm:$0xff] %vm1797_vm1, %v2937_v48 }
 0x6c2   : > { %v7975_v43 = vpop.f32.mrb[68].mxu0 }
 0x6c3   : > { %v2823_v63 = vpop.f32.mrb[69].mxu0 }
 0x6c4   : > { %v7976_v26 = vpop.f32.mrb[70].mxu0 }
 0x6c5   : > { %v2942_v8 = vpack.c.bf16 %v7976_v26, %v7975_v43  ;;  %v2826_v28 = vpop.f32.mrb[71].mxu0 }
 0x6c6   : > { %v2941_v50 = vpack.c.bf16 %v2826_v28, %v2823_v63 }
 0x6c7   : > { %2958 = vst.msk [vmem:[#allocation2 + $0x58] sm:$0xff] %vm1797_vm1, %v2942_v8 }
 0x6c8   : > { %2957 = vst.msk [vmem:[#allocation2 + $0x50] sm:$0xff] %vm1797_vm1, %v2941_v50 }
 0x6cb   : > { %v7987_v58 = vpop.f32.mrb[80].mxu1 }
 0x6cc   : > { %v2900_v12 = vpop.f32.mrb[81].mxu1 }
 0x6cd   : > { %v7988_v36 = vpop.f32.mrb[82].mxu1 }
 0x6ce   : > { %v2944_v2 = vpack.c.bf16 %v7988_v36, %v7987_v58  ;;  %v8003_v27 = vpop.f32.mrb[72].mxu0  ;;  %v2903_v16 = vpop.f32.mrb[83].mxu1  ;;  %v10685_v36 = vld [vmem:[%s12817_s5 + $0x70] sm:$0xff] }
 0x6cf   : > { %v10651_v1 = vadd.f32 %v8003_v27, %v10643_v32  ;;  %v2943_v41 = vpack.c.bf16 %v2903_v16, %v2900_v12  ;;  %v3050_v7 = vpop.f32.mrb[73].mxu0 }
 0x6d0   : > { %2960 = vst.msk [vmem:[#allocation2 + $0x68] sm:$0xff] %vm1797_vm1, %v2944_v2  ;;  %v10665_v48 = vadd.f32 %v10648_v25, %v3050_v7  ;;  %v8004_v43 = vpop.f32.mrb[74].mxu0  ;;  %v10695_v7 = vld [vmem:[%s12817_s5 + $0x78] sm:$0xff] }
 0x6d1   : > { %2959 = vst.msk [vmem:[#allocation2 + $0x60] sm:$0xff] %vm1797_vm1, %v2943_v41  ;;  %v3053_v63 = vpop.f32.mrb[75].mxu0  ;;  %v3414_v26 = vsel %vm2190_vm2, %v10651_v1, -inf  ;;  %v10671_v8 = vadd.f32 %v8004_v43, %v10656_v14  ;;  %v10690_v41 = vld [vmem:[%s12817_s5 + $0x60] sm:$0xff] }
 0x6d2   : > { %v10674_v28 = vadd.f32 %v10661_v0, %v3053_v63  ;;  %3415 = vmax.xlane.f32.xlu0 %v3414_v26  ;;  %v3408_v50 = vsel %vm2190_vm2, %v10665_v48, -inf }
 0x6d3   : > { %3409 = vmax.xlane.f32.xlu1 %v3408_v50  ;;  %v3417_v12 = vsel %vm2190_vm2, %v10671_v8, -inf }
 0x6d4   : > { %v3411_v58 = vsel %vm2190_vm2, %v10674_v28, -inf }
 0x6d6   : > { %3412 = vmax.xlane.f32.xlu0 %v3411_v58 }
 0x6d7   : > { %3418 = vmax.xlane.f32.xlu1 %v3417_v12 }
 0x707   : > { %v7991_v2 = vpop.f32.mrb[84].mxu1 }
 0x708   : > { %v2916_v27 = vpop.f32.mrb[85].mxu1  ;;  %v8007_v16 = vpop.f32.mrb[76].mxu0 }
 0x709   : > { %v10698_v43 = vadd.f32 %v8007_v16, %v10685_v36  ;;  %v7992_v63 = vpop.f32.mrb[86].mxu1  ;;  %v3066_v26 = vpop.f32.mrb[77].mxu0 }
 0x70a   : > { %v2946_v50 = vpack.c.bf16 %v7992_v63, %v7991_v2  ;;  %v2919_v58 = vpop.f32.mrb[87].mxu1  ;;  %v8008_v12 = vpop.f32.mrb[78].mxu0  ;;  %v10706_v15 = vadd.f32 %v10690_v41, %v3066_v26 }
 0x70b   : > { %v2945_v42 = vpack.c.bf16 %v2919_v58, %v2916_v27  ;;  %v10709_v52 = vadd.f32 %v8008_v12, %v10695_v7  ;;  %v3069_v62 = vpop.f32.mrb[79].mxu0  ;;  %v3426_v16 = vsel %vm2190_vm2, %v10698_v43, -inf }
 0x70c   : > { %2962 = vst.msk [vmem:[#allocation2 + $0x78] sm:$0xff] %vm1797_vm1, %v2946_v50  ;;  %3427 = vmax.xlane.f32.xlu0 %v3426_v16  ;;  %v10716_v2 = vadd.f32 %v10703_v21, %v3069_v62  ;;  %v3420_v26 = vsel %vm2190_vm2, %v10706_v15, -inf }
 0x70d   : > { %2961 = vst.msk [vmem:[#allocation2 + $0x70] sm:$0xff] %vm1797_vm1, %v2945_v42  ;;  %v3429_v63 = vsel %vm2190_vm2, %v10709_v52, -inf }
 0x70e   : > { %3430 = vmax.xlane.f32.xlu1 %v3429_v63  ;;  %v3423_v42 = vsel %vm2190_vm2, %v10716_v2, -inf }
 0x70f   : > { %v8019_v27 = vpop.f32.mrb[88].mxu1 }
 0x710   : > { %v10723_v58 = vadd.f32 %v8019_v27, %v10643_v32  ;;  %v3159_v12 = vpop.f32.mrb[89].mxu1  ;;  %3421 = vmax.xlane.f32.xlu0 %v3420_v26 }
 0x711   : > { %v8020_v50 = vpop.f32.mrb[90].mxu1  ;;  %v10738_v55 = vadd.f32 %v10648_v25, %v3159_v12 }
 0x712   : > { %v10728_v62 = vadd.f32 %v8020_v50, %v10656_v14  ;;  %v3162_v16 = vpop.f32.mrb[91].mxu1  ;;  %3424 = vmax.xlane.f32.xlu1 %v3423_v42  ;;  %v3438_v63 = vsel %vm2190_vm2, %v10723_v58, -inf }
 0x713   : > { %v10746_v11 = vadd.f32 %v10661_v0, %v3162_v16 }
 0x714   : > { %3439 = vmax.xlane.f32.xlu0 %v3438_v63  ;;  %v8035_v13 = vpop.f32.mrb[80].mxu0  ;;  %v3441_v27 = vsel %vm2190_vm2, %v10728_v62, -inf }
 0x715   : > { %v10735_v22 = vadd.f32 %v8035_v13, %v10643_v32  ;;  %v3268_v26 = vpop.f32.mrb[81].mxu0  ;;  %v3435_v16 = vsel %vm2190_vm2, %v10746_v11, -inf }
 0x716   : > { %3442 = vmax.xlane.f32.xlu1 %v3441_v27  ;;  %v8036_v38 = vpop.f32.mrb[82].mxu0  ;;  %v10751_v34 = vadd.f32 %v10648_v25, %v3268_v26 }
 0x717   : > { %v10741_v50 = vadd.f32 %v8036_v38, %v10656_v14  ;;  %v8023_v42 = vpop.f32.mrb[92].mxu1  ;;  %v3271_v47 = vpop.f32.mrb[83].mxu0  ;;  %v3462_v63 = vsel %vm2190_vm2, %v10735_v22, -inf  ;;  %v3432_v38 = vsel %vm2190_vm2, %v10738_v55, -inf }
 0x718   : > { %3463 = vmax.xlane.f32.xlu0 %v3462_v63  ;;  %v3175_v56 = vpop.f32.mrb[93].mxu1  ;;  %v10756_v40 = vadd.f32 %v10661_v0, %v3271_v47  ;;  %v10761_v63 = vadd.f32 %v8023_v42, %v10685_v36 }
 0x719   : > { %v8024_v13 = vpop.f32.mrb[94].mxu1  ;;  %v3465_v27 = vsel %vm2190_vm2, %v10741_v50, -inf  ;;  %v10781_v35 = vadd.f32 %v10690_v41, %v3175_v56 }
 0x71a   : > { %3466 = vmax.xlane.f32.xlu1 %v3465_v27  ;;  %v3178_v12 = vpop.f32.mrb[95].mxu1  ;;  %v3456_v27 = vsel %vm2190_vm2, %v10751_v34, -inf  ;;  %v10766_v49 = vadd.f32 %v8024_v13, %v10695_v7  ;;  %v3459_v47 = vsel %vm2190_vm2, %v10756_v40, -inf  ;;  %v3450_v42 = vsel %vm2190_vm2, %v10761_v63, -inf }
 0x71c   : > { %3433 = vmax.xlane.f32.xlu0 %v3432_v38  ;;  %v3453_v13 = vsel %vm2190_vm2, %v10766_v49, -inf }
 0x71e   : > { %3436 = vmax.xlane.f32.xlu1 %v3435_v16 }
 0x720   : > { %3457 = vmax.xlane.f32.xlu0 %v3456_v27  ;;  %v8039_v26 = vpop.f32.mrb[84].mxu0 }
 0x721   : > { %v3284_v46 = vpop.f32.mrb[85].mxu0  ;;  %v10771_v54 = vadd.f32 %v8039_v26, %v10685_v36  ;;  %v10786_v26 = vadd.f32 %v10703_v21, %v3178_v12 }
 0x722   : > { %3460 = vmax.xlane.f32.xlu1 %v3459_v47  ;;  %v8040_v38 = vpop.f32.mrb[86].mxu0 }
 0x723   : > { %v3287_v16 = vpop.f32.mrb[87].mxu0  ;;  %v10776_v27 = vadd.f32 %v8040_v38, %v10695_v7  ;;  %v3474_v47 = vsel %vm2190_vm2, %v10771_v54, -inf  ;;  %v10791_v38 = vadd.f32 %v10690_v41, %v3284_v46  ;;  %v3447_v12 = vsel %vm2190_vm2, %v10786_v26, -inf }
 0x724   : > { %3451 = vmax.xlane.f32.xlu0 %v3450_v42  ;;  %v10798_v56 = vadd.f32 %v10703_v21, %v3287_v16 }
 0x725   : > { %v3477_v42 = vsel %vm2190_vm2, %v10776_v27, -inf }
 0x726   : > { %3454 = vmax.xlane.f32.xlu1 %v3453_v13  ;;  %v3444_v13 = vsel %vm2190_vm2, %v10781_v35, -inf }
 0x728   : > { %3475 = vmax.xlane.f32.xlu0 %v3474_v47 }
 0x72a   : > { %3478 = vmax.xlane.f32.xlu1 %v3477_v42  ;;  %v3468_v42 = vsel %vm2190_vm2, %v10791_v38, -inf }
 0x72c   : > { %3445 = vmax.xlane.f32.xlu0 %v3444_v13  ;;  %v3471_v13 = vsel %vm2190_vm2, %v10798_v56, -inf }
 0x72e   : > { %3448 = vmax.xlane.f32.xlu1 %v3447_v12 }
 0x72f   : > { %v8051_v47 = vpop.f32.mrb[96].mxu1 }
 0x730   : > { %v10805_v46 = vadd.f32 %v8051_v47, %v10643_v32  ;;  %v3377_v53 = vpop.f32.mrb[97].mxu1  ;;  %3469 = vmax.xlane.f32.xlu0 %v3468_v42 }
 0x731   : > { %v8052_v18 = vpop.f32.mrb[98].mxu1  ;;  %v10815_v12 = vadd.f32 %v10648_v25, %v3377_v53 }
 0x732   : > { %v10812_v16 = vadd.f32 %v8052_v18, %v10656_v14  ;;  %v3380_v39 = vpop.f32.mrb[99].mxu1  ;;  %3472 = vmax.xlane.f32.xlu1 %v3471_v13  ;;  %v3486_v32 = vsel %vm2190_vm2, %v10805_v46, -inf  ;;  %v10826_v14 = vpop.permute.xlu1 %3960 }
 0x733   : > { %v10820_v47 = vadd.f32 %v10661_v0, %v3380_v39  ;;  %v3480_v18 = vsel %vm2190_vm2, %v10815_v12, -inf }
 0x734   : > { %3487 = vmax.xlane.f32.xlu0 %v3486_v32  ;;  %v3489_v42 = vsel %vm2190_vm2, %v10812_v16, -inf }
 0x735   : > { %v3483_v39 = vsel %vm2190_vm2, %v10820_v47, -inf }
 0x736   : > { %3490 = vmax.xlane.f32.xlu1 %v3489_v42  ;;  %v10848_v23 = vpop.permute.xlu1 %4045 }
 0x737   : > { %v8055_v30 = vpop.f32.mrb[100].mxu1  ;;  %13096 = vst [vmem:[#allocation24_spill] sm:$0xff] %v10848_v23 }
 0x738   : > { %v10829_v53 = vadd.f32 %v8055_v30, %v10685_v36  ;;  %v3393_v25 = vpop.f32.mrb[101].mxu1  ;;  %3481 = vmax.xlane.f32.xlu0 %v3480_v18  ;;  %v10841_v30 = vpop.permute.xlu0 %4250 }
 0x739   : > { %v8056_v13 = vpop.f32.mrb[102].mxu1  ;;  %v10837_v42 = vadd.f32 %v10690_v41, %v3393_v25  ;;  %13095 = vst [vmem:[#allocation23_spill] sm:$0xff] %v10841_v30 }
 0x73a   : > { %v10834_v0 = vadd.f32 %v8056_v13, %v10695_v7  ;;  %v3396_v32 = vpop.f32.mrb[103].mxu1  ;;  %3484 = vmax.xlane.f32.xlu1 %v3483_v39  ;;  %v3498_v4 = vsel %vm2190_vm2, %v10829_v53, -inf  ;;  %v10856_v25 = vpop.permute.xlu1 %4246 }
 0x73b   : > { %v10844_v36 = vadd.f32 %v10703_v21, %v3396_v32  ;;  %v3492_v7 = vsel %vm2190_vm2, %v10837_v42, -inf }
 0x73c   : > { %3499 = vmax.xlane.f32.xlu0 %v3498_v4  ;;  %v3501_v18 = vsel %vm2190_vm2, %v10834_v0, -inf  ;;  %v10854_v4 = vpop.permute.xlu0 %4351 }
 0x73d   : > { %v3495_v41 = vsel %vm2190_vm2, %v10844_v36, -inf  ;;  %13097 = vst [vmem:[#allocation55_spill] sm:$0xff] %v10854_v4 }
 0x73e   : > { %3502 = vmax.xlane.f32.xlu1 %v3501_v18  ;;  %v10860_v13 = vpop.permute.xlu1 %4047 }
 0x73f   : > { %13099 = vst [vmem:[#allocation43_spill] sm:$0xff] %v10860_v13 }
 0x740   : > { %3493 = vmax.xlane.f32.xlu0 %v3492_v7  ;;  %v10858_v21 = vpop.permute.xlu0 %4252 }
 0x741   : > { %13098 = vst [vmem:[#allocation48_spill] sm:$0xff] %v10858_v21 }
 0x742   : > { %3496 = vmax.xlane.f32.xlu1 %v3495_v41  ;;  %v10864_v32 = vpop.permute.xlu1 %4049 }
 0x743   : > { %13101 = vst [vmem:[#allocation47_spill] sm:$0xff] %v10864_v32 }
 0x744   : > { %v10862_v39 = vpop.permute.xlu0 %4238 }
 0x745   : > { %13100 = vst [vmem:[#allocation44_spill] sm:$0xff] %v10862_v39 }
 0x746   : > { %v10868_v30 = vpop.permute.xlu1 %4248 }
 0x747   : > { %13103 = vst [vmem:[#allocation46_spill] sm:$0xff] %v10868_v30 }
 0x748   : > { %v10866_v18 = vpop.permute.xlu0 %4355 }
 0x749   : > { %13102 = vst [vmem:[#allocation45_spill] sm:$0xff] %v10866_v18 }
 0x74a   : > { %v10872_v23 = vpop.permute.xlu1 %4353 }
 0x74b   : > { %13105 = vst [vmem:[#allocation50_spill] sm:$0xff] %v10872_v23 }
 0x74c   : > { %v10870_v7 = vpop.permute.xlu0 %4456 }
 0x74d   : > { %13104 = vst [vmem:[#allocation49_spill] sm:$0xff] %v10870_v7 }
 0x75f   : > { %v3416_v41 = vpop.xlane.xlu0 %3415 }
 0x760   : > { %v3506_v4 = vsub.f32 %v10651_v1, %v3416_v41  ;;  %v3410_v20 = vpop.xlane.xlu1 %3409 }
 0x761   : > { %v3504_v21 = vsub.f32 %v10665_v48, %v3410_v20 }
 0x762   : > { %v3540_v57 = vmul.f32 1.442695, %v3506_v4 }
 0x763   : > { %v3536_v13 = vmul.f32 1.442695, %v3504_v21  ;;  %v3413_v60 = vpop.xlane.xlu0 %3412 }
 0x764   : > { %8796 = vpow2.f32 %v3540_v57  ;;  %v3505_v39 = vsub.f32 %v10674_v28, %v3413_v60  ;;  %v3419_v32 = vpop.xlane.xlu1 %3418 }
 0x765   : > { %v3507_v18 = vsub.f32 %v10671_v8, %v3419_v32  ;;  %8798 = vpow2.f32 %v3536_v13 }
 0x766   : > { %v3538_v30 = vmul.f32 1.442695, %v3505_v39 }
 0x767   : > { %v3542_v7 = vmul.f32 1.442695, %v3507_v18 }
 0x769   : > { %8800 = vpow2.f32 %v3542_v7 }
 0x76a   : > { %8802 = vpow2.f32 %v3538_v30 }
 0x76e   : > { %v10878_v23 = vpop.eup %8796 }
 0x76f   : > { %v3606_v1 = vsel %vm2190_vm2, %v10878_v23, 0.0  ;;  %v10882_v20 = vpop.eup %8798 }
 0x770   : > { %3607 = vadd.xlane.f32.xlu0 %v3606_v1  ;;  %v3600_v60 = vsel %vm2190_vm2, %v10882_v20, 0.0 }
 0x773   : > { %v10884_v48 = vpop.eup %8800 }
 0x774   : > { %3601 = vadd.xlane.f32.xlu0 %v3600_v60  ;;  %v3609_v57 = vsel %vm2190_vm2, %v10884_v48, 0.0  ;;  %v10890_v8 = vpop.eup %8802 }
 0x775   : > { %3610 = vadd.xlane.f32.xlu1 %v3609_v57  ;;  %v3603_v28 = vsel %vm2190_vm2, %v10890_v8, 0.0 }
 0x779   : > { %3604 = vadd.xlane.f32.xlu1 %v3603_v28 }
 0x799   : > { %v3428_v30 = vpop.xlane.xlu0 %3427 }
 0x79a   : > { %v3510_v4 = vsub.f32 %v10698_v43, %v3428_v30 }
 0x79b   : > { %v3431_v21 = vpop.xlane.xlu1 %3430 }
 0x79c   : > { %v3548_v13 = vmul.f32 1.442695, %v3510_v4  ;;  %v3511_v39 = vsub.f32 %v10709_v52, %v3431_v21 }
 0x79d   : > { %v3422_v32 = vpop.xlane.xlu0 %3421 }
 0x79e   : > { %8804 = vpow2.f32 %v3548_v13  ;;  %v3550_v18 = vmul.f32 1.442695, %v3511_v39  ;;  %v3508_v7 = vsub.f32 %v10706_v15, %v3422_v32 }
 0x79f   : > { %v3425_v41 = vpop.xlane.xlu1 %3424 }
 0x7a0   : > { %8806 = vpow2.f32 %v3550_v18  ;;  %v3544_v1 = vmul.f32 1.442695, %v3508_v7  ;;  %v3509_v60 = vsub.f32 %v10716_v2, %v3425_v41 }
 0x7a1   : > { %v3440_v57 = vpop.xlane.xlu0 %3439 }
 0x7a2   : > { %8808 = vpow2.f32 %v3544_v1  ;;  %v3546_v28 = vmul.f32 1.442695, %v3509_v60  ;;  %v3514_v33 = vsub.f32 %v10723_v58, %v3440_v57 }
 0x7a3   : > { %v3443_v43 = vpop.xlane.xlu1 %3442 }
 0x7a4   : > { %8810 = vpow2.f32 %v3546_v28  ;;  %v3556_v30 = vmul.f32 1.442695, %v3514_v33  ;;  %v3515_v52 = vsub.f32 %v10728_v62, %v3443_v43 }
 0x7a5   : > { %v3464_v4 = vpop.xlane.xlu0 %3463 }
 0x7a6   : > { %v3558_v21 = vmul.f32 1.442695, %v3515_v52  ;;  %v3522_v13 = vsub.f32 %v10735_v22, %v3464_v4  ;;  %8812 = vpow2.f32 %v3556_v30 }
 0x7a7   : > { %v3467_v15 = vpop.xlane.xlu1 %3466 }
 0x7a8   : > { %v10901_v39 = vpop.eup %8804  ;;  %8814 = vpow2.f32 %v3558_v21  ;;  %v3572_v2 = vmul.f32 1.442695, %v3522_v13  ;;  %v3523_v32 = vsub.f32 %v10741_v50, %v3467_v15 }
 0x7a9   : > { %v3434_v18 = vpop.xlane.xlu0 %3433  ;;  %v3618_v58 = vsel %vm2190_vm2, %v10901_v39, 0.0 }
 0x7aa   : > { %v10906_v7 = vpop.eup %8806  ;;  %v3574_v33 = vmul.f32 1.442695, %v3523_v32  ;;  %v3512_v62 = vsub.f32 %v10738_v55, %v3434_v18  ;;  %3619 = vadd.xlane.f32.xlu1 %v3618_v58  ;;  %8816 = vpow2.f32 %v3572_v2 }
 0x7ab   : > { %v3437_v22 = vpop.xlane.xlu1 %3436  ;;  %v3621_v57 = vsel %vm2190_vm2, %v10906_v7, 0.0 }
 0x7ac   : > { %v10909_v41 = vpop.eup %8808  ;;  %8818 = vpow2.f32 %v3574_v33  ;;  %v3552_v1 = vmul.f32 1.442695, %v3512_v62  ;;  %v3513_v30 = vsub.f32 %v10746_v11, %v3437_v22 }
 0x7ad   : > { %v3458_v60 = vpop.xlane.xlu0 %3457  ;;  %v3612_v50 = vsel %vm2190_vm2, %v10909_v41, 0.0 }
 0x7ae   : > { %v10915_v28 = vpop.eup %8810  ;;  %v3520_v43 = vsub.f32 %v10751_v34, %v3458_v60  ;;  %3613 = vadd.xlane.f32.xlu0 %v3612_v50  ;;  %3622 = vadd.xlane.f32.xlu1 %v3621_v57  ;;  %8820 = vpow2.f32 %v3552_v1  ;;  %v3554_v58 = vmul.f32 1.442695, %v3513_v30 }
 0x7af   : > { %v3461_v55 = vpop.xlane.xlu1 %3460  ;;  %v3615_v15 = vsel %vm2190_vm2, %v10915_v28, 0.0 }
 0x7b0   : > { %v3568_v52 = vmul.f32 1.442695, %v3520_v43  ;;  %v3521_v4 = vsub.f32 %v10756_v40, %v3461_v55  ;;  %v10920_v21 = vpop.eup %8812 }
 0x7b1   : > { %v3452_v13 = vpop.xlane.xlu0 %3451  ;;  %v3630_v22 = vsel %vm2190_vm2, %v10920_v21, 0.0 }
 0x7b2   : > { %v10924_v2 = vpop.eup %8814  ;;  %v3570_v32 = vmul.f32 1.442695, %v3521_v4  ;;  %v3518_v34 = vsub.f32 %v10761_v63, %v3452_v13  ;;  %3616 = vadd.xlane.f32.xlu1 %v3615_v15  ;;  %8822 = vpow2.f32 %v3568_v52 }
 0x7b3   : > { %v3455_v18 = vpop.xlane.xlu1 %3454  ;;  %v3633_v11 = vsel %vm2190_vm2, %v10924_v2, 0.0 }
 0x7b4   : > { %8824 = vpow2.f32 %v3570_v32  ;;  %v3564_v40 = vmul.f32 1.442695, %v3518_v34  ;;  %3634 = vadd.xlane.f32.xlu0 %v3633_v11  ;;  %v10929_v33 = vpop.eup %8816  ;;  %v3519_v4 = vsub.f32 %v10766_v49, %v3455_v18 }
 0x7b5   : > { %v3476_v62 = vpop.xlane.xlu0 %3475  ;;  %v3654_v55 = vsel %vm2190_vm2, %v10929_v33, 0.0 }
 0x7b6   : > { %v10933_v1 = vpop.eup %8818  ;;  %8826 = vpow2.f32 %v3564_v40  ;;  %v3526_v63 = vsub.f32 %v10771_v54, %v3476_v62  ;;  %3631 = vadd.xlane.f32.xlu1 %v3630_v22 }
 0x7b7   : > { %v3479_v60 = vpop.xlane.xlu1 %3478  ;;  %v3657_v50 = vsel %vm2190_vm2, %v10933_v1, 0.0  ;;  %8828 = vpow2.f32 %v3554_v58 }
 0x7b8   : > { %v3580_v57 = vmul.f32 1.442695, %v3526_v63  ;;  %3658 = vadd.xlane.f32.xlu0 %v3657_v50  ;;  %v10940_v30 = vpop.eup %8820  ;;  %v3527_v13 = vsub.f32 %v10776_v27, %v3479_v60 }
 0x7b9   : > { %v3446_v43 = vpop.xlane.xlu0 %3445  ;;  %v3624_v11 = vsel %vm2190_vm2, %v10940_v30, 0.0 }
 0x7ba   : > { %v3516_v52 = vsub.f32 %v10781_v35, %v3446_v43  ;;  %3655 = vadd.xlane.f32.xlu1 %v3654_v55  ;;  %8830 = vpow2.f32 %v3580_v57  ;;  %v3566_v35 = vmul.f32 1.442695, %v3519_v4  ;;  %v3582_v22 = vmul.f32 1.442695, %v3527_v13 }
 0x7bb   : > { %v3449_v54 = vpop.xlane.xlu1 %3448 }
 0x7bc   : > { %v3560_v15 = vmul.f32 1.442695, %v3516_v52  ;;  %v10945_v32 = vpop.eup %8822  ;;  %v3517_v62 = vsub.f32 %v10786_v26, %v3449_v54 }
 0x7bd   : > { %v3470_v34 = vpop.xlane.xlu0 %3469 }
 0x7be   : > { %v10949_v58 = vpop.eup %8824  ;;  %v3524_v40 = vsub.f32 %v10791_v38, %v3470_v34  ;;  %3625 = vadd.xlane.f32.xlu1 %v3624_v11  ;;  %8832 = vpow2.f32 %v3560_v15  ;;  %v3648_v38 = vsel %vm2190_vm2, %v10945_v32, 0.0  ;;  %v3562_v26 = vmul.f32 1.442695, %v3517_v62 }
 0x7bf   : > { %v3473_v49 = vpop.xlane.xlu1 %3472  ;;  %v3651_v18 = vsel %vm2190_vm2, %v10949_v58, 0.0 }
 0x7c0   : > { %v10955_v27 = vpop.eup %8826  ;;  %v3576_v63 = vmul.f32 1.442695, %v3524_v40  ;;  %v3525_v60 = vsub.f32 %v10798_v56, %v3473_v49  ;;  %3652 = vadd.xlane.f32.xlu0 %v3651_v18 }
 0x7c1   : > { %v3488_v50 = vpop.xlane.xlu0 %3487  ;;  %v10960_v57 = vpop.eup %8828  ;;  %v3642_v52 = vsel %vm2190_vm2, %v10955_v27, 0.0 }
 0x7c2   : > { %8834 = vpow2.f32 %v3576_v63  ;;  %3649 = vadd.xlane.f32.xlu1 %v3648_v38  ;;  %v3530_v43 = vsub.f32 %v10805_v46, %v3488_v50  ;;  %v3578_v4 = vmul.f32 1.442695, %v3525_v60  ;;  %v3627_v13 = vsel %vm2190_vm2, %v10960_v57, 0.0 }
 0x7c3   : > { %8836 = vpow2.f32 %v3566_v35  ;;  %v3491_v55 = vpop.xlane.xlu1 %3490 }
 0x7c4   : > { %8838 = vpow2.f32 %v3582_v22  ;;  %v3531_v56 = vsub.f32 %v10812_v16, %v3491_v55  ;;  %3643 = vadd.xlane.f32.xlu0 %v3642_v52  ;;  %v10968_v15 = vpop.eup %8830  ;;  %v3588_v34 = vmul.f32 1.442695, %v3530_v43 }
 0x7c5   : > { %v3482_v54 = vpop.xlane.xlu0 %3481  ;;  %8840 = vpow2.f32 %v3562_v26  ;;  %v3666_v16 = vsel %vm2190_vm2, %v10968_v15, 0.0 }
 0x7c6   : > { %3628 = vadd.xlane.f32.xlu1 %v3627_v13  ;;  %v3528_v46 = vsub.f32 %v10815_v12, %v3482_v54  ;;  %8842 = vpow2.f32 %v3578_v4  ;;  %v3590_v40 = vmul.f32 1.442695, %v3531_v56 }
 0x7c7   : > { %v3485_v11 = vpop.xlane.xlu1 %3484  ;;  %8844 = vpow2.f32 %v3588_v34 }
 0x7c8   : > { %v3529_v35 = vsub.f32 %v10820_v47, %v3485_v11  ;;  %v10974_v62 = vpop.eup %8832  ;;  %v3584_v49 = vmul.f32 1.442695, %v3528_v46  ;;  %8846 = vpow2.f32 %v3590_v40 }
 0x7c9   : > { %v3636_v12 = vsel %vm2190_vm2, %v10974_v62, 0.0 }
 0x7ca   : > { %3667 = vadd.xlane.f32.xlu1 %v3666_v16  ;;  %v3586_v22 = vmul.f32 1.442695, %v3529_v35  ;;  %8848 = vpow2.f32 %v3584_v49  ;;  %v13106_v35 = vld [vmem:[#allocation22_spill] sm:$0xff]  ;;  %v3500_v49 = vpop.xlane.xlu0 %3499 }
 0x7cb   : > { %v3503_v16 = vpop.xlane.xlu1 %3502 }
 0x7cc   : > { %v10976_v18 = vpop.eup %8834  ;;  %8850 = vpow2.f32 %v3586_v22 }
 0x7cd   : > { %v10978_v63 = vpop.eup %8836  ;;  %v3660_v47 = vsel %vm2190_vm2, %v10976_v18, 0.0 }
 0x7ce   : > { %v10984_v60 = vpop.eup %8838  ;;  %3637 = vadd.xlane.f32.xlu1 %v3636_v12  ;;  %3661 = vadd.xlane.f32.xlu0 %v3660_v47  ;;  %v3645_v38 = vsel %vm2190_vm2, %v10978_v63, 0.0  ;;  %v3494_v12 = vpop.xlane.xlu0 %3493  ;;  %v3534_v47 = vsub.f32 %v10829_v53, %v3500_v49 }
 0x7cf   : > { %v10986_v50 = vpop.eup %8840  ;;  %v3669_v26 = vsel %vm2190_vm2, %v10984_v60, 0.0  ;;  %v3497_v22 = vpop.xlane.xlu1 %3496 }
 0x7d0   : > { %v10992_v43 = vpop.eup %8842  ;;  %v3639_v52 = vsel %vm2190_vm2, %v10986_v50, 0.0 }
 0x7d1   : > { %v10994_v55 = vpop.eup %8844  ;;  %v3663_v4 = vsel %vm2190_vm2, %v10992_v43, 0.0 }
 0x7d2   : > { %3646 = vadd.xlane.f32.xlu1 %v3645_v38  ;;  %3670 = vadd.xlane.f32.xlu0 %v3669_v26  ;;  %v11000_v56 = vpop.eup %8846  ;;  %v3678_v13 = vsel %vm2190_vm2, %v10994_v55, 0.0  ;;  %v3533_v38 = vsub.f32 %v10844_v36, %v3497_v22 }
 0x7d3   : > { %v3681_v34 = vsel %vm2190_vm2, %v11000_v56, 0.0 }
 0x7d4   : > { %v11002_v54 = vpop.eup %8848 }
 0x7d5   : > { %v3672_v11 = vsel %vm2190_vm2, %v11002_v54, 0.0 }
 0x7d6   : > { %3640 = vadd.xlane.f32.xlu0 %v3639_v52  ;;  %3664 = vadd.xlane.f32.xlu1 %v3663_v4  ;;  %v11008_v46 = vpop.eup %8850  ;;  %v3596_v52 = vmul.f32 1.442695, %v3534_v47  ;;  %v3594_v4 = vmul.f32 1.442695, %v3533_v38 }
 0x7d7   : > { %v3675_v40 = vsel %vm2190_vm2, %v11008_v46, 0.0 }
 0x7d8   : > { %8852 = vpow2.f32 %v3596_v52 }
 0x7d9   : > { %8854 = vpow2.f32 %v3594_v4 }
 0x7da   : > { %3679 = vadd.xlane.f32.xlu0 %v3678_v13  ;;  %3682 = vadd.xlane.f32.xlu1 %v3681_v34  ;;  %v3532_v13 = vsub.f32 %v10837_v42, %v3494_v12 }
 0x7de   : > { %3673 = vadd.xlane.f32.xlu0 %v3672_v11  ;;  %3676 = vadd.xlane.f32.xlu1 %v3675_v40  ;;  %v3535_v40 = vsub.f32 %v10834_v0, %v3503_v16 }
 0x7e0   : > { %v3598_v53 = vmul.f32 1.442695, %v3535_v40  ;;  %v13108_v40 = vld [vmem:[#allocation8_spill] sm:$0xff] }
 0x7e2   : > { %v11022_v36 = vpop.eup %8852 }
 0x7e3   : > { %v11024_v49 = vpop.eup %8854  ;;  %v3690_v0 = vsel %vm2190_vm2, %v11022_v36, 0.0 }
 0x7e4   : > { %v3687_v16 = vsel %vm2190_vm2, %v11024_v49, 0.0 }
 0x7ef   : > { %4357 = vrot.lane.b32.xlu1 %v13106_v35, %s9194_s10  ;;  %v3592_v35 = vmul.f32 1.442695, %v3532_v13 }
 0x7f4   : > { %4240 = vrot.lane.b32.xlu0 %v9605_v19, %s9195_s11 }
 0x7fd   : > { %v3608_v26 = vpop.xlane.xlu0 %3607 }
 0x801   : > { %v3602_v34 = vpop.xlane.xlu0 %3601 }
 0x802   : > { %v3611_v11 = vpop.xlane.xlu1 %3610 }
 0x803   : > { %8856 = vrcp.f32 %v3611_v11 }
 0x804   : > { %8858 = vrcp.f32 %v3602_v34 }
 0x805   : > { %8860 = vrcp.f32 %v3608_v26 }
 0x806   : > { %v3605_v19 = vpop.xlane.xlu1 %3604 }
 0x807   : > { %8862 = vrcp.f32 %v3605_v19 }
 0x808   : > { %8864 = vpow2.f32 %v3592_v35 }
 0x809   : > { %8866 = vpow2.f32 %v3598_v53  ;;  %v13109_v53 = vld [vmem:[#allocation7_spill] sm:$0xff] }
 0x80d   : > { %v8857_v42 = vpop.eup %8856 }
 0x80e   : > { %v8859_v22 = vpop.eup %8858  ;;  %v3731_v38 = vmul.f32 %v8857_v42, %v10884_v48 }
 0x80f   : > { %v8861_v12 = vpop.eup %8860  ;;  %v3728_v19 = vmul.f32 %v8859_v22, %v10882_v20  ;;  %v13107_v20 = vld [vmem:[#allocation25_spill] sm:$0xff] }
 0x810   : > { %v3730_v52 = vmul.f32 %v8861_v12, %v10878_v23 }
 0x811   : > { %v8863_v47 = vpop.eup %8862 }
 0x812   : > { %v3729_v35 = vmul.f32 %v8863_v47, %v10890_v8  ;;  %v11033_v26 = vpop.eup %8864  ;;  %v3761_v13 = vpack.c.bf16 %v3731_v38, %v3730_v52  ;;  %v13110_v47 = vld [vmem:[#allocation12_spill] sm:$0xff] }
 0x813   : > { %3691 = vadd.xlane.f32.xlu0 %v3690_v0  ;;  %3688 = vadd.xlane.f32.xlu1 %v3687_v16  ;;  %v3684_v48 = vsel %vm2190_vm2, %v11033_v26, 0.0  ;;  %v11039_v34 = vpop.eup %8866  ;;  %v13111_v16 = vld [vmem:[#allocation5_spill] sm:$0xff] }
 0x814   : > { %v3760_v4 = vpack.c.bf16 %v3729_v35, %v3728_v19  ;;  %v3693_v23 = vsel %vm2190_vm2, %v11039_v34, 0.0 }
 0x816   : > { %8065 = vmatprep.mubr.msk.bf16.mxu0 %vm2190_vm2, %v3760_v4 }
 0x817   : > { %8066 = vmatmul.mubr.msk.bf16.vlgmr.msra.gmra.mrb[88].mxu0 %vm2190_vm2, %v3761_v13  ;;  %3685 = vadd.xlane.f32.xlu0 %v3684_v48  ;;  %v13112_v48 = vld [vmem:[#allocation27_spill] sm:$0xff] }
 0x818   : > { %8090 = vmatpush3.bf16.msra.mxu0 %v10625_v37 }
 0x819   : > { %8091 = vmatprep.subr.bf16.mxu0 %v10795_v24 }
 0x81b   : > { %3694 = vadd.xlane.f32.xlu0 %v3693_v23 }
 0x81c   : > { %8092 = vmatpush3.bf16.msra.mxu0 %v10795_v24 }
 0x81d   : > { %8093 = vmatprep.subr.bf16.mxu0 %v10809_v44 }
 0x820   : > { %8094 = vmatpush3.bf16.msra.mxu0 %v10809_v44 }
 0x821   : > { %8095 = vmatprep.subr.bf16.mxu0 %v10826_v14 }
 0x824   : > { %8096 = vmatpush3.bf16.msra.mxu0 %v10826_v14  ;;  %4343 = vrot.lane.b32.xlu1 %v9624_v31, %s9195_s11 }
 0x825   : > { %8465 = vmatprep.subr.msk.bf16.mxu0 %vm1797_vm1, %v10856_v25 }
 0x828   : > { %4561 = vrot.lane.b32.xlu1 %v9795_v29, %s9194_s10 }
 0x82c   : > { %4242 = vrot.lane.b32.xlu1 %v9611_v45, %s9195_s11 }
 0x830   : > { %4462 = vrot.lane.b32.xlu1 %v9802_v17, %s9194_s10 }
 0x831   : > { %4458 = vrot.lane.b32.xlu0 %v13045_v10, %s9194_s10 }
 0x834   : > { %4448 = vrot.lane.b32.xlu1 %v13044_v61, %s9195_s11 }
 0x835   : > { %4460 = vrot.lane.b32.xlu0 %v13046_v3, %s9194_s10 }
 0x837   : > { %v3620_v24 = vpop.xlane.xlu1 %3619 }
 0x838   : > { %4565 = vrot.lane.b32.xlu1 %v9817_v9, %s9194_s10 }
 0x839   : > { %4345 = vrot.lane.b32.xlu0 %v9629_v59, %s9195_s11 }
 0x83b   : > { %v3614_v44 = vpop.xlane.xlu0 %3613  ;;  %v3623_v37 = vpop.xlane.xlu1 %3622 }
 0x83c   : > { %4349 = vrot.lane.b32.xlu1 %v9642_v51, %s9195_s11  ;;  %8868 = vrcp.f32 %v3623_v37 }
 0x83d   : > { %4244 = vrot.lane.b32.xlu0 %v9617_v6, %s9195_s11  ;;  %8870 = vrcp.f32 %v3614_v44  ;;  %v13113_v44 = vld [vmem:[#allocation26_spill] sm:$0xff] }
 0x83e   : > { %8872 = vrcp.f32 %v3620_v24 }
 0x83f   : > { %v3617_v14 = vpop.xlane.xlu1 %3616 }
 0x840   : > { %8874 = vrcp.f32 %v3617_v14  ;;  %4553 = vrot.lane.b32.xlu1 %v9674_v5, %s9195_s11 }
 0x841   : > { %4563 = vrot.lane.b32.xlu0 %v13107_v20, %s9194_s10  ;;  %v3635_v8 = vpop.xlane.xlu0 %3634 }
 0x843   : > { %v3632_v11 = vpop.xlane.xlu1 %3631 }
 0x844   : > { %4452 = vrot.lane.b32.xlu1 %v13108_v40, %s9195_s11 }
 0x845   : > { %4450 = vrot.lane.b32.xlu0 %v13109_v53, %s9195_s11  ;;  %v3659_v0 = vpop.xlane.xlu0 %3658 }
 0x846   : > { %v8869_v42 = vpop.eup %8868 }
 0x847   : > { %v3656_v22 = vpop.xlane.xlu1 %3655  ;;  %v8871_v12 = vpop.eup %8870  ;;  %v3735_v35 = vmul.f32 %v8869_v42, %v10906_v7  ;;  %v13116_v42 = vld [vmem:[#allocation35_spill] sm:$0xff] }
 0x848   : > { %4557 = vrot.lane.b32.xlu1 %v13110_v47, %s9195_s11  ;;  %v8873_v38 = vpop.eup %8872  ;;  %v3732_v4 = vmul.f32 %v8871_v12, %v10909_v41  ;;  %8876 = vrcp.f32 %v3656_v22  ;;  %v13114_v41 = vld [vmem:[#allocation28_spill] sm:$0xff]  ;;  %v13117_v22 = vld [vmem:[#allocation9_spill] sm:$0xff] }
 0x849   : > { %4347 = vrot.lane.b32.xlu0 %v13111_v16, %s9195_s11  ;;  %v3734_v23 = vmul.f32 %v8873_v38, %v10901_v39  ;;  %v13115_v39 = vld [vmem:[#allocation11_spill] sm:$0xff] }
 0x84a   : > { %v8875_v19 = vpop.eup %8874 }
 0x84b   : > { %v3626_v52 = vpop.xlane.xlu1 %3625  ;;  %v3733_v13 = vmul.f32 %v8875_v19, %v10915_v28  ;;  %v3763_v14 = vpack.c.bf16 %v3735_v35, %v3734_v23  ;;  %v13118_v35 = vld [vmem:[#allocation32_spill] sm:$0xff] }
 0x84c   : > { %5028 = vrot.lane.b32.xlu1 %v13112_v48, %s9196_s29 }
 0x84d   : > { %v3653_v24 = vpop.xlane.xlu0 %3652  ;;  %4567 = vrot.lane.b32.xlu0 %v13113_v44, %s9194_s10  ;;  %v3762_v37 = vpack.c.bf16 %v3733_v13, %v3732_v4  ;;  %v13119_v4 = vld [vmem:[#allocation13_spill] sm:$0xff]  ;;  %s9198_s10 = smov 104  }
 0x84e   : > { %8878 = vrcp.f32 %v3653_v24 }
 0x84f   : > { %8880 = vrcp.f32 %v3659_v0  ;;  %8069 = vmatprep.mubr.msk.bf16.mxu0 %vm2190_vm2, %v3762_v37  ;;  %v3650_v7 = vpop.xlane.xlu1 %3649 }
 0x850   : > { %8882 = vrcp.f32 %v3650_v7  ;;  %5032 = vrot.lane.b32.xlu1 %v13114_v41, %s9196_s29  ;;  %8070 = vmatmul.mubr.msk.bf16.gmra.mrb[92].mxu0 %vm2190_vm2, %v3763_v14 }
 0x851   : > { %8884 = vrcp.f32 %v3632_v11  ;;  %4555 = vrot.lane.b32.xlu0 %v13115_v39, %s9195_s11  ;;  %v3644_v38 = vpop.xlane.xlu0 %3643 }
 0x852   : > { %8886 = vrcp.f32 %v3626_v52  ;;  %v8877_v12 = vpop.eup %8876 }
 0x853   : > { %8888 = vrcp.f32 %v3635_v8  ;;  %v3629_v28 = vpop.xlane.xlu1 %3628  ;;  %v3746_v52 = vmul.f32 %v8877_v12, %v10929_v33 }
 0x854   : > { %8890 = vrcp.f32 %v3629_v28  ;;  %5204 = vrot.lane.b32.xlu1 %v13116_v42, %s9196_s29  ;;  %v13120_v42 = vld [vmem:[#allocation39_spill] sm:$0xff] }
 0x855   : > { %4454 = vrot.lane.b32.xlu0 %v13117_v22, %s9195_s11  ;;  %8892 = vrcp.f32 %v3644_v38  ;;  %v13123_v38 = vld [vmem:[#allocation31_spill] sm:$0xff] }
 0x857   : > { %v3668_v0 = vpop.xlane.xlu1 %3667 }
 0x858   : > { %v8879_v19 = vpop.eup %8878  ;;  %5206 = vrot.lane.b32.xlu1 %v13118_v35, %s9196_s29  ;;  %v13121_v35 = vld [vmem:[#allocation29_spill] sm:$0xff]  ;;  %8894 = vrcp.f32 %v3668_v0 }
 0x859   : > { %v8881_v11 = vpop.eup %8880  ;;  %4559 = vrot.lane.b32.xlu0 %v13119_v4, %s9195_s11  ;;  %v3745_v14 = vmul.f32 %v8879_v19, %v10949_v58  ;;  %s7352_s11 = sshll.u32 %s13341_s9, 6 }
 0x85a   : > { %v8883_v8 = vpop.eup %8882  ;;  %v3747_v28 = vmul.f32 %v8881_v11, %v10933_v1  ;;  %s12711_s16 = scalar_lea.vmem %s12820_s8, %s7352_s11 }
 0x85b   : > { %v8885_v13 = vpop.eup %8884  ;;  %v3662_v23 = vpop.xlane.xlu0 %3661  ;;  %v3744_v37 = vmul.f32 %v8883_v8, %v10945_v32  ;;  %v13122_v8 = vld [vmem:[#allocation36_spill] sm:$0xff] }
 0x85c   : > { %v3638_v24 = vpop.xlane.xlu1 %3637  ;;  %v8887_v7 = vpop.eup %8886  ;;  %5208 = vrot.lane.b32.xlu1 %v13120_v42, %s9196_s29  ;;  %v3738_v33 = vmul.f32 %v8885_v13, %v10920_v21  ;;  %v3769_v12 = vpack.c.bf16 %v3747_v28, %v3746_v52  ;;  %v4267_v21 = vsel %vm1797_vm1, %v10856_v25, 0  ;;  %v13126_v25 = vld [vmem:[#allocation6_spill] sm:$0xff]  ;;  %v13128_v52 = vld [vmem:[#allocation24_spill] sm:$0xff] }
 0x85d   : > { %v8889_v41 = vpop.eup %8888  ;;  %5026 = vrot.lane.b32.xlu0 %v13121_v35, %s9196_s29  ;;  %v3768_v4 = vpack.c.bf16 %v3745_v14, %v3744_v37  ;;  %v3736_v1 = vmul.f32 %v8887_v7, %v10940_v30  ;;  %8896 = vrcp.f32 %v3638_v24  ;;  %v13129_v37 = vld [vmem:[#allocation42_spill] sm:$0xff] }
 0x85e   : > { %v8891_v39 = vpop.eup %8890  ;;  %v3739_v11 = vmul.f32 %v8889_v41, %v10924_v2 }
 0x85f   : > { %v3671_v32 = vpop.xlane.xlu0 %3670  ;;  %8097 = vmatprep.mubr.msk.bf16.mxu0 %vm2190_vm2, %v3768_v4  ;;  %v3737_v19 = vmul.f32 %v8891_v39, %v10960_v57  ;;  %v13124_v57 = vld [vmem:[#allocation46_spill] sm:$0xff]  ;;  %v13127_v4 = vld [vmem:[#allocation33_spill] sm:$0xff]  ;;  %v8893_v24 = vpop.eup %8892 }
 0x860   : > { %v3647_v58 = vpop.xlane.xlu1 %3646  ;;  %5210 = vrot.lane.b32.xlu1 %v13122_v8, %s9196_s29  ;;  %8098 = vmatmul.mubr.msk.bf16.vlgmr.msra.gmra.mrb[96].mxu0 %vm2190_vm2, %v3769_v12  ;;  %8898 = vrcp.f32 %v3671_v32  ;;  %v3765_v30 = vpack.c.bf16 %v3739_v11, %v3738_v33  ;;  %v13125_v39 = vld [vmem:[#allocation38_spill] sm:$0xff]  ;;  %v4270_v14 = vsel %vm1797_vm1, %v13124_v57, 0  ;;  %v13131_v12 = vld [vmem:[#allocation43_spill] sm:$0xff] }
 0x861   : > { %8122 = vmatpush3.bf16.xpose.msra.mxu0 %v4267_v21  ;;  %5030 = vrot.lane.b32.xlu0 %v13123_v38, %s9196_s29  ;;  %v3764_v0 = vpack.c.bf16 %v3737_v19, %v3736_v1  ;;  %8900 = vrcp.f32 %v3647_v58  ;;  %v13130_v33 = vld [vmem:[#allocation30_spill] sm:$0xff]  ;;  %v13132_v58 = vld [vmem:[#allocation23_spill] sm:$0xff] }
 0x862   : > { %8466 = vmatprep.subr.msk.bf16.mxu0 %vm1797_vm1, %v13124_v57  ;;  %8902 = vrcp.f32 %v3662_v23  ;;  %v8895_v7 = vpop.eup %8894  ;;  %v13133_v21 = vld [vmem:[#allocation19_spill] sm:$0xff]  ;;  %v13134_v57 = vld [vmem:[#allocation37_spill] sm:$0xff] }
 0x863   : > { %v3641_v2 = vpop.xlane.xlu0 %3640  ;;  %8081 = vmatprep.mubr.msk.bf16.mxu1 %vm2190_vm2, %v3764_v0 }
 0x864   : > { %v3665_v41 = vpop.xlane.xlu1 %3664  ;;  %8904 = vrcp.f32 %v3641_v2  ;;  %5295 = vrot.lane.b32.xlu1 %v13125_v39, %s9196_s29  ;;  %8082 = vmatmul.mubr.msk.bf16.vlgmr.msra.gmra.mrb[104].mxu1 %vm2190_vm2, %v3765_v30  ;;  %v13135_v2 = vld [vmem:[#allocation47_spill] sm:$0xff] }
 0x865   : > { %8906 = vrcp.f32 %v3665_v41  ;;  %8106 = vmatpush3.bf16.msra.mxu1 %v13126_v25  ;;  %5115 = vrot.lane.b32.xlu0 %v13127_v4, %s9196_s29 }
 0x866   : > { %8107 = vmatprep.subr.bf16.mxu1 %v13128_v52 }
 0x867   : > { %v3680_v13 = vpop.xlane.xlu0 %3679  ;;  %v8897_v28 = vpop.eup %8896 }
 0x868   : > { %v3683_v23 = vpop.xlane.xlu1 %3682  ;;  %5299 = vrot.lane.b32.xlu1 %v13129_v37, %s9196_s29  ;;  %8908 = vrcp.f32 %v3680_v13  ;;  %v3740_v25 = vmul.f32 %v8897_v28, %v10974_v62  ;;  %v13138_v28 = vld [vmem:[#allocation48_spill] sm:$0xff] }
 0x869   : > { %8108 = vmatpush3.bf16.msra.mxu1 %v13128_v52  ;;  %8124 = vmatpush3.bf16.xpose.msra.mxu0 %v4270_v14  ;;  %8910 = vrcp.f32 %v3683_v23  ;;  %v13136_v14 = vld [vmem:[#allocation17_spill] sm:$0xff] }
 0x86a   : > { %5117 = vrot.lane.b32.xlu0 %v13130_v33, %s9196_s29  ;;  %8109 = vmatprep.subr.bf16.mxu1 %v13131_v12  ;;  %v8899_v32 = vpop.eup %8898 }
 0x86b   : > { %8467 = vmatprep.subr.msk.bf16.mxu0 %vm1797_vm1, %v13132_v58  ;;  %v3674_v1 = vpop.xlane.xlu0 %3673  ;;  %v8901_v11 = vpop.eup %8900  ;;  %v3751_v23 = vmul.f32 %v8899_v32, %v10984_v60  ;;  %v13137_v60 = vld [vmem:[#allocation34_spill] sm:$0xff] }
 0x86c   : > { %v3677_v19 = vpop.xlane.xlu1 %3676  ;;  %8912 = vrcp.f32 %v3674_v1  ;;  %5601 = vrot.lane.b32.xlu1 %v13133_v21, %s9197_s30  ;;  %v8903_v0 = vpop.eup %8902  ;;  %v3743_v13 = vmul.f32 %v8901_v11, %v10978_v63  ;;  %v3750_v63 = vmul.f32 %v8895_v7, %v10968_v15  ;;  %v13139_v11 = vld [vmem:[#allocation55_spill] sm:$0xff]  ;;  %v13142_v7 = vld [vmem:[#allocation44_spill] sm:$0xff] }
 0x86d   : > { %8914 = vrcp.f32 %v3677_v19  ;;  %8110 = vmatpush3.bf16.msra.mxu1 %v13131_v12  ;;  %v4273_v12 = vsel %vm1797_vm1, %v13132_v58, 0  ;;  %v3748_v1 = vmul.f32 %v8903_v0, %v10976_v18 }
 0x86e   : > { %v8905_v30 = vpop.eup %8904  ;;  %5119 = vrot.lane.b32.xlu0 %v13134_v57, %s9196_s29  ;;  %8111 = vmatprep.subr.bf16.mxu1 %v13135_v2 }
 0x86f   : > { %v8907_v41 = vpop.eup %8906  ;;  %v3741_v52 = vmul.f32 %v8905_v30, %v10986_v50  ;;  %v3742_v50 = vmul.f32 %v8893_v24, %v10955_v27  ;;  %v13140_v27 = vld [vmem:[#allocation3_spill] sm:$0xff]  ;;  %v13141_v24 = vld [vmem:[#allocation40_spill] sm:$0xff] }
 0x870   : > { %5502 = vrot.lane.b32.xlu1 %v13136_v14, %s9197_s30  ;;  %v3749_v19 = vmul.f32 %v8907_v41, %v10992_v43  ;;  %v3771_v43 = vpack.c.bf16 %v3751_v23, %v3750_v63  ;;  %v13144_v23 = vld [vmem:[#allocation14_spill] sm:$0xff]  ;;  %v13145_v14 = vld [vmem:[#allocation49_spill] sm:$0xff] }
 0x871   : > { %8112 = vmatpush3.bf16.msra.mxu1 %v13135_v2  ;;  %8126 = vmatpush3.bf16.xpose.msra.mxu0 %v4273_v12  ;;  %v3766_v62 = vpack.c.bf16 %v3741_v52, %v3740_v25  ;;  %v3767_v18 = vpack.c.bf16 %v3743_v13, %v3742_v50  ;;  %v13143_v25 = vld [vmem:[#allocation20_spill] sm:$0xff]  ;;  %v4276_v52 = vsel %vm1797_vm1, %v13138_v28, 0  ;;  %v13150_v63 = vld [vmem:[#allocation45_spill] sm:$0xff] }
 0x872   : > { %5121 = vrot.lane.b32.xlu0 %v13137_v60, %s9196_s29  ;;  %8468 = vmatprep.subr.msk.bf16.mxu0 %vm1797_vm1, %v13138_v28  ;;  %v3770_v32 = vpack.c.bf16 %v3749_v19, %v3748_v1  ;;  %v8909_v58 = vpop.eup %8908  ;;  %v13147_v1 = vld [vmem:[#allocation50_spill] sm:$0xff]  ;;  %v4477_v19 = vsel %vm1797_vm1, %v13145_v14, 0  ;;  %v13149_v50 = vld [vmem:[#allocation16_spill] sm:$0xff] }
 0x873   : > { %8469 = vmatprep.subr.msk.bf16.mxu1 %vm1797_vm1, %v13139_v11  ;;  %8085 = vmatprep.mubr.msk.bf16.mxu1 %vm2190_vm2, %v3766_v62  ;;  %v8911_v21 = vpop.eup %8910  ;;  %v3754_v30 = vmul.f32 %v8909_v58, %v10994_v55  ;;  %v4375_v62 = vsel %vm1797_vm1, %v13147_v1, 0  ;;  %v13151_v28 = vld [vmem:[#allocation18_spill] sm:$0xff]  ;;  %v4358_v58 = vpop.permute.xlu1 %4357 }
 0x874   : > { %8101 = vmatprep.mubr.msk.bf16.mxu0 %vm2190_vm2, %v3770_v32  ;;  %5488 = vrot.lane.b32.xlu1 %v13140_v27, %s9198_s10  ;;  %v3755_v2 = vmul.f32 %v8911_v21, %v11000_v56  ;;  %v4372_v56 = vsel %vm1797_vm1, %v13139_v11, 0  ;;  %v4378_v32 = vsel %vm1797_vm1, %v13150_v63, 0  ;;  %v13152_v11 = vld [vmem:[#allocation4_spill] sm:$0xff] }
 0x875   : > { %8086 = vmatmul.mubr.msk.bf16.gmra.mrb[108].mxu1 %vm2190_vm2, %v3767_v18  ;;  %8102 = vmatmul.mubr.msk.bf16.gmra.mrb[100].mxu0 %vm2190_vm2, %v3771_v43  ;;  %v13153_v18 = vld [vmem:[#allocation21_spill] sm:$0xff]  ;;  %v4381_v43 = vsel %vm1797_vm1, %v4358_v58, 0 }
 0x876   : > { %v8913_v15 = vpop.eup %8912  ;;  %5293 = vrot.lane.b32.xlu0 %v13141_v24, %s9196_s29  ;;  %8129 = vmatprep.mubr.msk.bf16.mxu0 %vm1797_vm1, %v13142_v7  ;;  %v3773_v12 = vpack.c.bf16 %v3755_v2, %v3754_v30 }
 0x877   : > { %v8915_v0 = vpop.eup %8914  ;;  %v3752_v41 = vmul.f32 %v8913_v15, %v11002_v54  ;;  %v13146_v54 = vld [vmem:[#allocation41_spill] sm:$0xff] }
 0x878   : > { %5605 = vrot.lane.b32.xlu1 %v13143_v25, %s9197_s30  ;;  %v3753_v13 = vmul.f32 %v8915_v0, %v11008_v46  ;;  %v4241_v46 = vpop.permute.xlu0 %4240 }
 0x879   : > { %8128 = vmatpush3.bf16.xpose.msra.mxu0 %v4276_v52 }
 0x87a   : > { %5496 = vrot.lane.b32.xlu0 %v13144_v23, %s9197_s30  ;;  %8473 = vmatprep.subr.msk.bf16.mxu0 %vm1797_vm1, %v13145_v14  ;;  %v3772_v55 = vpack.c.bf16 %v3753_v13, %v3752_v41 }
 0x87c   : > { %8113 = vmatprep.mubr.msk.bf16.mxu1 %vm2190_vm2, %v3772_v55  ;;  %5492 = vrot.lane.b32.xlu1 %v9611_v45, %s9198_s10  ;;  %v13148_v45 = vld [vmem:[#allocation15_spill] sm:$0xff] }
 0x87d   : > { %8114 = vmatmul.mubr.msk.bf16.vlgmr.msra.gmra.mrb[112].mxu1 %vm2190_vm2, %v3773_v12 }
 0x87e   : > { %8138 = vmatpush3.bf16.xpose.msra.mxu1 %v4372_v56  ;;  %5297 = vrot.lane.b32.xlu0 %v13146_v54, %s9196_s29 }
 0x87f   : > { %8470 = vmatprep.subr.msk.bf16.mxu1 %vm1797_vm1, %v13147_v1 }
 0x880   : > { %8130 = vmatmul.mubr.msk.bf16.vlgmr.msra.gmra.mrb[104].mxu0 %vm1797_vm1, %v4241_v46 }
 0x881   : > { %8154 = vmatpush3.bf16.xpose.msra.mxu0 %v4477_v19 }
 0x882   : > { %5498 = vrot.lane.b32.xlu0 %v13148_v45, %s9197_s30 }
 0x886   : > { %8140 = vmatpush3.bf16.xpose.msra.mxu1 %v4375_v62  ;;  %5500 = vrot.lane.b32.xlu0 %v13149_v50, %s9197_s30 }
 0x887   : > { %8471 = vmatprep.subr.msk.bf16.mxu1 %vm1797_vm1, %v13150_v63 }
 0x88a   : > { %5603 = vrot.lane.b32.xlu0 %v13151_v28, %s9197_s30 }
 0x88e   : > { %8142 = vmatpush3.bf16.xpose.msra.mxu1 %v4378_v32  ;;  %5490 = vrot.lane.b32.xlu0 %v13152_v11, %s9198_s10 }
 0x88f   : > { %8472 = vmatprep.subr.msk.bf16.mxu1 %vm1797_vm1, %v4358_v58 }
 0x892   : > { %5706 = vrot.lane.b32.xlu0 %v13153_v18, %s9197_s30 }
 0x896   : > { %8144 = vmatpush3.bf16.xpose.msra.mxu1 %v4381_v43 }
 0x8a0   : > { %v3692_v21 = vpop.xlane.xlu0 %3691  ;;  %v3689_v27 = vpop.xlane.xlu1 %3688 }
 0x8a1   : > { %8916 = vrcp.f32 %v3689_v27 }
 0x8a4   : > { %v3686_v15 = vpop.xlane.xlu0 %3685  ;;  %v4344_v7 = vpop.permute.xlu1 %4343 }
 0x8a5   : > { %8918 = vrcp.f32 %v3686_v15 }
 0x8a6   : > { %8920 = vrcp.f32 %v3692_v21 }
 0x8a8   : > { %v3695_v0 = vpop.xlane.xlu0 %3694  ;;  %v4562_v30 = vpop.permute.xlu1 %4561 }
 0x8a9   : > { %8922 = vrcp.f32 %v3695_v0  ;;  %8477 = vmatprep.subr.msk.bf16.mxu1 %vm1797_vm1, %v4562_v30  ;;  %v4582_v11 = vsel %vm1797_vm1, %v4562_v30, 0 }
 0x8ab   : > { %v8917_v25 = vpop.eup %8916 }
 0x8ac   : > { %v4459_v2 = vpop.permute.xlu0 %4458  ;;  %v4243_v41 = vpop.permute.xlu1 %4242  ;;  %v3757_v12 = vmul.f32 %v8917_v25, %v11024_v49 }
 0x8ad   : > { %8133 = vmatprep.mubr.msk.bf16.mxu0 %vm1797_vm1, %v4243_v41  ;;  %8474 = vmatprep.subr.msk.bf16.mxu0 %vm1797_vm1, %v4459_v2  ;;  %v4480_v52 = vsel %vm1797_vm1, %v4459_v2, 0 }
 0x8ae   : > { %8156 = vmatpush3.bf16.xpose.msra.mxu0 %v4480_v52 }
 0x8af   : > { %v8919_v13 = vpop.eup %8918 }
 0x8b0   : > { %v4461_v23 = vpop.permute.xlu0 %4460  ;;  %v4463_v14 = vpop.permute.xlu1 %4462  ;;  %v3756_v55 = vmul.f32 %v8919_v13, %v11033_v26 }
 0x8b1   : > { %v8921_v56 = vpop.eup %8920  ;;  %8475 = vmatprep.subr.msk.bf16.mxu0 %vm1797_vm1, %v4461_v23  ;;  %v4483_v63 = vsel %vm1797_vm1, %v4461_v23, 0 }
 0x8b2   : > { %v3774_v46 = vpack.c.bf16 %v3757_v12, %v3756_v55  ;;  %v3758_v62 = vmul.f32 %v8921_v56, %v11022_v36 }
 0x8b3   : > { %v8923_v1 = vpop.eup %8922 }
 0x8b4   : > { %v4346_v19 = vpop.permute.xlu0 %4345  ;;  %8117 = vmatprep.mubr.msk.bf16.mxu1 %vm2190_vm2, %v3774_v46  ;;  %v4449_v45 = vpop.permute.xlu1 %4448  ;;  %v3759_v50 = vmul.f32 %v8923_v1, %v11039_v34  ;;  %v4486_v34 = vsel %vm1797_vm1, %v4463_v14, 0 }
 0x8b6   : > { %8158 = vmatpush3.bf16.xpose.msra.mxu0 %v4483_v63  ;;  %v3775_v28 = vpack.c.bf16 %v3759_v50, %v3758_v62 }
 0x8b7   : > { %8476 = vmatprep.subr.msk.bf16.mxu0 %vm1797_vm1, %v4463_v14 }
 0x8b8   : > { %v4245_v49 = vpop.permute.xlu0 %4244  ;;  %8118 = vmatmul.mubr.msk.bf16.gmra.mrb[116].mxu1 %vm2190_vm2, %v3775_v28  ;;  %v4566_v26 = vpop.permute.xlu1 %4565  ;;  %v11353_v28 = vld [vmem:[%s12817_s5 + $0x80] sm:$0xff] }
 0x8b9   : > { %8134 = vmatmul.mubr.msk.bf16.gmra.mrb[108].mxu0 %vm1797_vm1, %v4245_v49  ;;  %8145 = vmatprep.mubr.msk.bf16.mxu1 %vm1797_vm1, %v4344_v7  ;;  %v4588_v30 = vsel %vm1797_vm1, %v4566_v26, 0 }
 0x8ba   : > { %8161 = vmatprep.mubr.msk.bf16.mxu0 %vm1797_vm1, %v4449_v45 }
 0x8bc   : > { %v4564_v32 = vpop.permute.xlu0 %4563  ;;  %v4350_v36 = vpop.permute.xlu1 %4349 }
 0x8bd   : > { %v4585_v15 = vsel %vm1797_vm1, %v4564_v32, 0 }
 0x8be   : > { %8160 = vmatpush3.bf16.xpose.msra.mxu0 %v4486_v34 }
 0x8c0   : > { %v4451_v58 = vpop.permute.xlu0 %4450  ;;  %8146 = vmatmul.mubr.msk.bf16.vlgmr.msra.gmra.mrb[120].mxu1 %vm1797_vm1, %v4346_v19  ;;  %v4554_v18 = vpop.permute.xlu1 %4553 }
 0x8c1   : > { %8170 = vmatpush3.bf16.xpose.msra.mxu1 %v4582_v11 }
 0x8c2   : > { %8478 = vmatprep.subr.msk.bf16.mxu1 %vm1797_vm1, %v4564_v32 }
 0x8c4   : > { %v4348_v43 = vpop.permute.xlu0 %4347  ;;  %v4453_v21 = vpop.permute.xlu1 %4452 }
 0x8c5   : > { %8149 = vmatprep.mubr.msk.bf16.mxu1 %vm1797_vm1, %v4348_v43  ;;  %8162 = vmatmul.mubr.msk.bf16.vlgmr.msra.gmra.mrb[112].mxu0 %vm1797_vm1, %v4451_v58 }
 0x8c6   : > { %8165 = vmatprep.mubr.msk.bf16.mxu0 %vm1797_vm1, %v4453_v21 }
 0x8c8   : > { %v4568_v27 = vpop.permute.xlu0 %4567  ;;  %8150 = vmatmul.mubr.msk.bf16.gmra.mrb[124].mxu1 %vm1797_vm1, %v4350_v36  ;;  %v4558_v2 = vpop.permute.xlu1 %4557 }
 0x8c9   : > { %8172 = vmatpush3.bf16.xpose.msra.mxu1 %v4585_v15  ;;  %8177 = vmatprep.mubr.msk.bf16.mxu1 %vm1797_vm1, %v4554_v18  ;;  %v4591_v52 = vsel %vm1797_vm1, %v4568_v27, 0 }
 0x8ca   : > { %8479 = vmatprep.subr.msk.bf16.mxu1 %vm1797_vm1, %v4566_v26 }
 0x8cc   : > { %v4556_v7 = vpop.permute.xlu0 %4555  ;;  %v5029_v13 = vpop.permute.xlu1 %5028 }
 0x8d0   : > { %v4455_v0 = vpop.permute.xlu0 %4454  ;;  %v5033_v14 = vpop.permute.xlu1 %5032 }
 0x8d1   : > { %8174 = vmatpush3.bf16.xpose.msra.mxu1 %v4588_v30  ;;  %8166 = vmatmul.mubr.msk.bf16.gmra.mrb[116].mxu0 %vm1797_vm1, %v4455_v0 }
 0x8d2   : > { %8480 = vmatprep.subr.msk.bf16.mxu1 %vm1797_vm1, %v4568_v27 }
 0x8d4   : > { %v4560_v41 = vpop.permute.xlu0 %4559  ;;  %v11260_v56 = vpop.permute.xlu1 %5204 }
 0x8d8   : > { %v5027_v25 = vpop.permute.xlu0 %5026  ;;  %v11499_v57 = vpop.permute.xlu1 %5206 }
 0x8d9   : > { %8176 = vmatpush3.bf16.xpose.msra.mxu1 %v4591_v52  ;;  %8185 = vmatprep.subr.bf16.mxu0 %v5027_v25 }
 0x8da   : > { %8186 = vmatpush3.bf16.msra.mxu0 %v5027_v25 }
 0x8db   : > { %8187 = vmatprep.subr.bf16.mxu0 %v5029_v13 }
 0x8dc   : > { %v5031_v23 = vpop.permute.xlu0 %5030 }
 0x8de   : > { %8188 = vmatpush3.bf16.msra.mxu0 %v5029_v13 }
 0x8df   : > { %8189 = vmatprep.subr.bf16.mxu0 %v5031_v23 }
 0x8e0   : > { %8178 = vmatmul.mubr.msk.bf16.vlgmr.msra.gmra.mrb[128].mxu1 %vm1797_vm1, %v4556_v7  ;;  %v5116_v55 = vpop.permute.xlu0 %5115 }
 0x8e1   : > { %8181 = vmatprep.mubr.msk.bf16.mxu1 %vm1797_vm1, %v4558_v2  ;;  %8201 = vmatprep.subr.bf16.mxu1 %v5116_v55 }
 0x8e2   : > { %8190 = vmatpush3.bf16.msra.mxu0 %v5031_v23  ;;  %8202 = vmatpush3.bf16.msra.mxu1 %v5116_v55 }
 0x8e3   : > { %8191 = vmatprep.subr.bf16.mxu0 %v5033_v14 }
 0x8e4   : > { %v5118_v12 = vpop.permute.xlu0 %5117 }
 0x8e5   : > { %8203 = vmatprep.subr.bf16.mxu1 %v5118_v12 }
 0x8e6   : > { %8192 = vmatpush3.bf16.msra.mxu0 %v5033_v14  ;;  %8204 = vmatpush3.bf16.msra.mxu1 %v5118_v12 }
 0x8e7   : > { %8217 = vmatprep.subr.bf16.mxu0 %v11260_v56 }
 0x8e8   : > { %8182 = vmatmul.mubr.msk.bf16.gmra.mrb[132].mxu1 %vm1797_vm1, %v4560_v41  ;;  %v5120_v46 = vpop.permute.xlu0 %5119 }
 0x8e9   : > { %8205 = vmatprep.subr.bf16.mxu1 %v5120_v46 }
 0x8ea   : > { %v11264_v1 = vpop.f32.mrb[88].mxu0  ;;  %8206 = vmatpush3.bf16.msra.mxu1 %v5120_v46 }
 0x8eb   : > { %13154 = vst [vmem:[#allocation52_spill] sm:$0xff] %v11264_v1  ;;  %v11266_v19 = vpop.f32.mrb[89].mxu0 }
 0x8ec   : > { %13155 = vst [vmem:[#allocation57_spill] sm:$0xff] %v11266_v19  ;;  %v11268_v45 = vpop.f32.mrb[90].mxu0  ;;  %v5122_v62 = vpop.permute.xlu0 %5121 }
 0x8ed   : > { %13156 = vst [vmem:[#allocation56_spill] sm:$0xff] %v11268_v45  ;;  %v11272_v63 = vpop.f32.mrb[91].mxu0  ;;  %8207 = vmatprep.subr.bf16.mxu1 %v5122_v62 }
 0x8ee   : > { %13157 = vst [vmem:[#allocation54_spill] sm:$0xff] %v11272_v63  ;;  %8208 = vmatpush3.bf16.msra.mxu1 %v5122_v62  ;;  %v11346_v62 = vld [vmem:[%s12817_s5 + $0x90] sm:$0xff] }
 0x8f0   : > { %v11276_v49 = vpop.permute.xlu0 %5293 }
 0x8f1   : > { %13158 = vst [vmem:[#allocation51_spill] sm:$0xff] %v11276_v49  ;;  %8233 = vmatprep.subr.bf16.mxu1 %v11276_v49 }
 0x923   : > { %v11279_v26 = vpop.f32.mrb[92].mxu0 }
 0x924   : > { %13159 = vst [vmem:[#allocation53_spill] sm:$0xff] %v11279_v26  ;;  %v11281_v32 = vpop.f32.mrb[93].mxu0 }
 0x925   : > { %13160 = vst [vmem:[#allocation25_spill] sm:$0xff] %v11281_v32  ;;  %v11283_v36 = vpop.f32.mrb[94].mxu0 }
 0x926   : > { %13161 = vst [vmem:[#allocation5_spill] sm:$0xff] %v11283_v36  ;;  %v11287_v58 = vpop.f32.mrb[95].mxu0 }
 0x927   : > { %13162 = vst [vmem:[#allocation9_spill] sm:$0xff] %v11287_v58 }
 0x933   : > { %v11291_v18 = vpop.f32.mrb[96].mxu0 }
 0x934   : > { %13163 = vst [vmem:[#allocation46_spill] sm:$0xff] %v11291_v18  ;;  %v11293_v43 = vpop.f32.mrb[97].mxu0  ;;  %v11367_v18 = vld [vmem:[%s12817_s5 + $0x98] sm:$0xff] }
 0x935   : > { %13164 = vst [vmem:[#allocation6_spill] sm:$0xff] %v11293_v43  ;;  %v11295_v21 = vpop.f32.mrb[98].mxu0 }
 0x936   : > { %13165 = vst [vmem:[#allocation24_spill] sm:$0xff] %v11295_v21  ;;  %v11299_v15 = vpop.f32.mrb[99].mxu0  ;;  %v11372_v21 = vld [vmem:[%s12817_s5 + $0x88] sm:$0xff] }
 0x937   : > { %13166 = vst [vmem:[#allocation43_spill] sm:$0xff] %v11299_v15  ;;  %v11303_v0 = vpop.f32.mrb[104].mxu1 }
 0x938   : > { %13167 = vst [vmem:[#allocation23_spill] sm:$0xff] %v11303_v0  ;;  %v11305_v30 = vpop.f32.mrb[105].mxu1 }
 0x939   : > { %13168 = vst [vmem:[#allocation19_spill] sm:$0xff] %v11305_v30  ;;  %v11307_v2 = vpop.f32.mrb[106].mxu1 }
 0x93a   : > { %13169 = vst [vmem:[#allocation47_spill] sm:$0xff] %v11307_v2  ;;  %v11311_v25 = vpop.f32.mrb[107].mxu1 }
 0x93b   : > { %13170 = vst [vmem:[#allocation17_spill] sm:$0xff] %v11311_v25 }
 0x948   : > { %v11315_v13 = vpop.f32.mrb[108].mxu1  ;;  %v11317_v23 = vpop.f32.mrb[100].mxu0 }
 0x949   : > { %13171 = vst [vmem:[#allocation48_spill] sm:$0xff] %v11315_v13  ;;  %13172 = vst [vmem:[#allocation55_spill] sm:$0xff] %v11317_v23  ;;  %v11319_v14 = vpop.f32.mrb[109].mxu1  ;;  %v11321_v55 = vpop.f32.mrb[101].mxu0 }
 0x94a   : > { %13173 = vst [vmem:[#allocation3_spill] sm:$0xff] %v11319_v14  ;;  %13174 = vst [vmem:[#allocation44_spill] sm:$0xff] %v11321_v55  ;;  %v11323_v12 = vpop.f32.mrb[110].mxu1  ;;  %v11325_v46 = vpop.f32.mrb[102].mxu0 }
 0x94b   : > { %13175 = vst [vmem:[#allocation20_spill] sm:$0xff] %v11323_v12  ;;  %13176 = vst [vmem:[#allocation14_spill] sm:$0xff] %v11325_v46  ;;  %v11331_v7 = vpop.f32.mrb[111].mxu1  ;;  %v11333_v41 = vpop.f32.mrb[103].mxu0 }
 0x94c   : > { %13177 = vst [vmem:[#allocation49_spill] sm:$0xff] %v11331_v7  ;;  %13178 = vst [vmem:[#allocation50_spill] sm:$0xff] %v11333_v41  ;;  %v11422_v7 = vld [vmem:[%s12817_s5 + $0xa8] sm:$0xff] }
 0x950   : > { %v11339_v50 = vpop.f32.mrb[112].mxu1 }
 0x951   : > { %13179 = vst [vmem:[#allocation15_spill] sm:$0xff] %v11339_v50  ;;  %v11341_v11 = vpop.f32.mrb[113].mxu1 }
 0x952   : > { %13180 = vst [vmem:[#allocation16_spill] sm:$0xff] %v11341_v11  ;;  %v11348_v27 = vpop.f32.mrb[114].mxu1 }
 0x953   : > { %13181 = vst [vmem:[#allocation45_spill] sm:$0xff] %v11348_v27  ;;  %v11357_v52 = vpop.f32.mrb[115].mxu1  ;;  %v8131_v55 = vpop.f32.mrb[104].mxu0 }
 0x954   : > { %13182 = vst [vmem:[#allocation18_spill] sm:$0xff] %v11357_v52  ;;  %v11362_v23 = vadd.f32 %v8131_v55, %v11346_v62  ;;  %v4312_v46 = vpop.f32.mrb[105].mxu0 }
 0x955   : > { %v11375_v34 = vadd.f32 %v11353_v28, %v4312_v46  ;;  %v8132_v50 = vpop.f32.mrb[106].mxu0 }
 0x956   : > { %v4315_v27 = vpop.f32.mrb[107].mxu0  ;;  %v4664_v55 = vsel %vm2190_vm2, %v11362_v23, -inf  ;;  %v11380_v41 = vadd.f32 %v8132_v50, %v11367_v18  ;;  %v11394_v50 = vld [vmem:[%s12817_s5 + $0xb0] sm:$0xff] }
 0x957   : > { %v11383_v11 = vadd.f32 %v11372_v21, %v4315_v27  ;;  %4665 = vmax.xlane.f32.xlu0 %v4664_v55  ;;  %v4658_v52 = vsel %vm2190_vm2, %v11375_v34, -inf }
 0x958   : > { %4659 = vmax.xlane.f32.xlu1 %v4658_v52  ;;  %v4667_v13 = vsel %vm2190_vm2, %v11380_v41, -inf  ;;  %v11403_v52 = vld [vmem:[%s12817_s5 + $0xa0] sm:$0xff] }
 0x959   : > { %v4661_v46 = vsel %vm2190_vm2, %v11383_v11, -inf }
 0x95b   : > { %4662 = vmax.xlane.f32.xlu0 %v4661_v46  ;;  %v11408_v46 = vld [vmem:[%s12817_s5 + $0xb8] sm:$0xff] }
 0x95c   : > { %4668 = vmax.xlane.f32.xlu1 %v4667_v13 }
 0x98b   : > { %v11396_v27 = vpop.f32.mrb[116].mxu1 }
 0x98c   : > { %13183 = vst [vmem:[#allocation4_spill] sm:$0xff] %v11396_v27  ;;  %v11398_v55 = vpop.f32.mrb[117].mxu1  ;;  %v8135_v12 = vpop.f32.mrb[108].mxu0 }
 0x98d   : > { %13184 = vst [vmem:[#allocation21_spill] sm:$0xff] %v11398_v55  ;;  %v11411_v13 = vadd.f32 %v8135_v12, %v11394_v50  ;;  %v11413_v43 = vpop.f32.mrb[118].mxu1  ;;  %v4328_v15 = vpop.f32.mrb[109].mxu0 }
 0x98e   : > { %13185 = vst [vmem:[#allocation58_spill] sm:$0xff] %v11413_v43  ;;  %v11417_v2 = vpop.f32.mrb[119].mxu1  ;;  %v8136_v14 = vpop.f32.mrb[110].mxu0  ;;  %v11425_v26 = vadd.f32 %v11403_v52, %v4328_v15 }
 0x98f   : > { %13186 = vst [vmem:[#allocation59_spill] sm:$0xff] %v11417_v2  ;;  %v11430_v36 = vadd.f32 %v8136_v14, %v11408_v46  ;;  %v4331_v30 = vpop.f32.mrb[111].mxu0  ;;  %v4676_v0 = vsel %vm2190_vm2, %v11411_v13, -inf }
 0x990   : > { %4677 = vmax.xlane.f32.xlu0 %v4676_v0  ;;  %v11435_v27 = vadd.f32 %v11422_v7, %v4331_v30  ;;  %v4670_v25 = vsel %vm2190_vm2, %v11425_v26, -inf }
 0x991   : > { %v4679_v43 = vsel %vm2190_vm2, %v11430_v36, -inf }
 0x992   : > { %4680 = vmax.xlane.f32.xlu1 %v4679_v43  ;;  %v4673_v0 = vsel %vm2190_vm2, %v11435_v27, -inf }
 0x993   : > { %v8147_v15 = vpop.f32.mrb[120].mxu1 }
 0x994   : > { %v11442_v12 = vadd.f32 %v8147_v15, %v11346_v62  ;;  %v4417_v14 = vpop.f32.mrb[121].mxu1  ;;  %4671 = vmax.xlane.f32.xlu0 %v4670_v25 }
 0x995   : > { %v8148_v55 = vpop.f32.mrb[122].mxu1  ;;  %v11457_v58 = vadd.f32 %v11353_v28, %v4417_v14 }
 0x996   : > { %v11447_v30 = vadd.f32 %v8148_v55, %v11367_v18  ;;  %v4420_v2 = vpop.f32.mrb[123].mxu1  ;;  %4674 = vmax.xlane.f32.xlu1 %v4673_v0  ;;  %v4688_v43 = vsel %vm2190_vm2, %v11442_v12, -inf }
 0x997   : > { %v11465_v63 = vadd.f32 %v11372_v21, %v4420_v2 }
 0x998   : > { %4689 = vmax.xlane.f32.xlu0 %v4688_v43  ;;  %v8163_v1 = vpop.f32.mrb[112].mxu0  ;;  %v4691_v15 = vsel %vm2190_vm2, %v11447_v30, -inf }
 0x999   : > { %v11454_v45 = vadd.f32 %v8163_v1, %v11346_v62  ;;  %v4522_v25 = vpop.f32.mrb[113].mxu0  ;;  %v4685_v2 = vsel %vm2190_vm2, %v11465_v63, -inf }
 0x99a   : > { %4692 = vmax.xlane.f32.xlu1 %v4691_v15  ;;  %v8164_v32 = vpop.f32.mrb[114].mxu0  ;;  %v11470_v54 = vadd.f32 %v11353_v28, %v4522_v25 }
 0x99b   : > { %v11460_v55 = vadd.f32 %v8164_v32, %v11367_v18  ;;  %v8151_v0 = vpop.f32.mrb[124].mxu1  ;;  %v4525_v37 = vpop.f32.mrb[115].mxu0  ;;  %v4712_v43 = vsel %vm2190_vm2, %v11454_v45, -inf  ;;  %v4682_v32 = vsel %vm2190_vm2, %v11457_v58, -inf }
 0x99c   : > { %4713 = vmax.xlane.f32.xlu0 %v4712_v43  ;;  %v4433_v19 = vpop.f32.mrb[125].mxu1  ;;  %v11475_v24 = vadd.f32 %v11372_v21, %v4525_v37  ;;  %v11480_v43 = vadd.f32 %v8151_v0, %v11394_v50 }
 0x99d   : > { %v8152_v1 = vpop.f32.mrb[126].mxu1  ;;  %v4715_v15 = vsel %vm2190_vm2, %v11460_v55, -inf }
 0x99e   : > { %4716 = vmax.xlane.f32.xlu1 %v4715_v15  ;;  %v4436_v14 = vpop.f32.mrb[127].mxu1  ;;  %v4706_v15 = vsel %vm2190_vm2, %v11470_v54, -inf  ;;  %v11485_v39 = vadd.f32 %v8152_v1, %v11408_v46  ;;  %v4709_v37 = vsel %vm2190_vm2, %v11475_v24, -inf  ;;  %v4700_v0 = vsel %vm2190_vm2, %v11480_v43, -inf }
 0x99f   : > { %v11507_v8 = vadd.f32 %v11422_v7, %v4436_v14 }
 0x9a0   : > { %4683 = vmax.xlane.f32.xlu0 %v4682_v32  ;;  %v4703_v1 = vsel %vm2190_vm2, %v11485_v39, -inf }
 0x9a1   : > { %v4697_v14 = vsel %vm2190_vm2, %v11507_v8, -inf }
 0x9a2   : > { %4686 = vmax.xlane.f32.xlu1 %v4685_v2 }
 0x9a4   : > { %4707 = vmax.xlane.f32.xlu0 %v4706_v15  ;;  %v8167_v25 = vpop.f32.mrb[116].mxu0 }
 0x9a5   : > { %v4538_v42 = vpop.f32.mrb[117].mxu0  ;;  %v11490_v49 = vadd.f32 %v8167_v25, %v11394_v50 }
 0x9a6   : > { %4710 = vmax.xlane.f32.xlu1 %v4709_v37  ;;  %v8168_v32 = vpop.f32.mrb[118].mxu0  ;;  %v11502_v37 = vadd.f32 %v11403_v52, %v4433_v19  ;;  %v11516_v19 = vpop.permute.xlu1 %5208 }
 0x9a7   : > { %v4541_v2 = vpop.f32.mrb[119].mxu0  ;;  %v11495_v15 = vadd.f32 %v8168_v32, %v11408_v46  ;;  %v4724_v25 = vsel %vm2190_vm2, %v11490_v49, -inf }
 0x9a8   : > { %4701 = vmax.xlane.f32.xlu0 %v4700_v0  ;;  %v11512_v0 = vadd.f32 %v11403_v52, %v4538_v42  ;;  %v11519_v38 = vadd.f32 %v11422_v7, %v4541_v2 }
 0x9a9   : > { %v4727_v32 = vsel %vm2190_vm2, %v11495_v15, -inf }
 0x9aa   : > { %4704 = vmax.xlane.f32.xlu1 %v4703_v1  ;;  %v4694_v1 = vsel %vm2190_vm2, %v11502_v37, -inf  ;;  %v11533_v4 = vpop.permute.xlu1 %5210 }
 0x9ac   : > { %4725 = vmax.xlane.f32.xlu0 %v4724_v25 }
 0x9ae   : > { %4728 = vmax.xlane.f32.xlu1 %v4727_v32  ;;  %v4718_v32 = vsel %vm2190_vm2, %v11512_v0, -inf  ;;  %v11552_v44 = vpop.permute.xlu1 %5295 }
 0x9af   : > { %13187 = vst [vmem:[#allocation60_spill] sm:$0xff] %v11552_v44 }
 0x9b0   : > { %4695 = vmax.xlane.f32.xlu0 %v4694_v1  ;;  %v4721_v1 = vsel %vm2190_vm2, %v11519_v38, -inf }
 0x9b2   : > { %4698 = vmax.xlane.f32.xlu1 %v4697_v14 }
 0x9b3   : > { %v8179_v25 = vpop.f32.mrb[128].mxu1 }
 0x9b4   : > { %v11526_v42 = vadd.f32 %v8179_v25, %v11346_v62  ;;  %v4627_v35 = vpop.f32.mrb[129].mxu1  ;;  %4719 = vmax.xlane.f32.xlu0 %v4718_v32 }
 0x9b5   : > { %v8180_v60 = vpop.f32.mrb[130].mxu1  ;;  %v11536_v14 = vadd.f32 %v11353_v28, %v4627_v35 }
 0x9b6   : > { %v11531_v2 = vadd.f32 %v8180_v60, %v11367_v18  ;;  %v4630_v33 = vpop.f32.mrb[131].mxu1  ;;  %4722 = vmax.xlane.f32.xlu1 %v4721_v1  ;;  %v4736_v62 = vsel %vm2190_vm2, %v11526_v42, -inf  ;;  %v11547_v1 = vpop.permute.xlu0 %5496 }
 0x9b7   : > { %v11541_v25 = vadd.f32 %v11372_v21, %v4630_v33  ;;  %v4730_v18 = vsel %vm2190_vm2, %v11536_v14, -inf }
 0x9b8   : > { %4737 = vmax.xlane.f32.xlu0 %v4736_v62  ;;  %v4739_v32 = vsel %vm2190_vm2, %v11531_v2, -inf }
 0x9b9   : > { %v4733_v33 = vsel %vm2190_vm2, %v11541_v25, -inf }
 0x9ba   : > { %4740 = vmax.xlane.f32.xlu1 %v4739_v32  ;;  %v11569_v44 = vpop.permute.xlu0 %5297 }
 0x9bb   : > { %v8183_v60 = vpop.f32.mrb[132].mxu1  ;;  %13188 = vst [vmem:[#allocation61_spill] sm:$0xff] %v11569_v44 }
 0x9bc   : > { %v11550_v35 = vadd.f32 %v8183_v60, %v11394_v50  ;;  %v4643_v28 = vpop.f32.mrb[133].mxu1  ;;  %4731 = vmax.xlane.f32.xlu0 %v4730_v18 }
 0x9bd   : > { %v8184_v62 = vpop.f32.mrb[134].mxu1  ;;  %v11560_v48 = vadd.f32 %v11403_v52, %v4643_v28 }
 0x9be   : > { %v11557_v21 = vadd.f32 %v8184_v62, %v11408_v46  ;;  %v4646_v32 = vpop.f32.mrb[135].mxu1  ;;  %4734 = vmax.xlane.f32.xlu1 %v4733_v33  ;;  %v4748_v50 = vsel %vm2190_vm2, %v11550_v35, -inf  ;;  %v11571_v46 = vpop.permute.xlu1 %5299 }
 0x9bf   : > { %v11565_v60 = vadd.f32 %v11422_v7, %v4646_v32  ;;  %13189 = vst [vmem:[#allocation62_spill] sm:$0xff] %v11571_v46  ;;  %v4742_v62 = vsel %vm2190_vm2, %v11560_v48, -inf  ;;  %v11577_v28 = vpop.permute.xlu0 %5498 }
 0x9c0   : > { %4749 = vmax.xlane.f32.xlu0 %v4748_v50  ;;  %v4751_v18 = vsel %vm2190_vm2, %v11557_v21, -inf  ;;  %13190 = vst [vmem:[#allocation63_spill] sm:$0xff] %v11577_v28 }
 0x9c1   : > { %v4745_v52 = vsel %vm2190_vm2, %v11565_v60, -inf }
 0x9c2   : > { %4752 = vmax.xlane.f32.xlu1 %v4751_v18  ;;  %v11579_v7 = vpop.permute.xlu1 %5601 }
 0x9c3   : > { %13191 = vst [vmem:[#allocation64_spill] sm:$0xff] %v11579_v7  ;;  %v11581_v33 = vpop.permute.xlu0 %5500 }
 0x9c4   : > { %4743 = vmax.xlane.f32.xlu0 %v4742_v62  ;;  %13192 = vst [vmem:[#allocation65_spill] sm:$0xff] %v11581_v33 }
 0x9c6   : > { %4746 = vmax.xlane.f32.xlu1 %v4745_v52  ;;  %v11583_v32 = vpop.permute.xlu1 %5502 }
 0x9c7   : > { %13193 = vst [vmem:[#allocation66_spill] sm:$0xff] %v11583_v32  ;;  %v11585_v50 = vpop.permute.xlu0 %5603 }
 0x9c8   : > { %13194 = vst [vmem:[#allocation67_spill] sm:$0xff] %v11585_v50 }
 0x9ca   : > { %v11587_v18 = vpop.permute.xlu1 %5488 }
 0x9cb   : > { %13195 = vst [vmem:[#allocation68_spill] sm:$0xff] %v11587_v18  ;;  %v11589_v46 = vpop.permute.xlu0 %5490 }
 0x9cc   : > { %13196 = vst [vmem:[#allocation69_spill] sm:$0xff] %v11589_v46 }
 0x9ce   : > { %v11591_v44 = vpop.permute.xlu1 %5605 }
 0x9cf   : > { %13197 = vst [vmem:[#allocation70_spill] sm:$0xff] %v11591_v44  ;;  %v11593_v62 = vpop.permute.xlu0 %5706 }
 0x9d0   : > { %13198 = vst [vmem:[#allocation71_spill] sm:$0xff] %v11593_v62 }
 0x9d2   : > { %v11595_v40 = vpop.permute.xlu1 %5492 }
 0x9d3   : > { %13199 = vst [vmem:[#allocation72_spill] sm:$0xff] %v11595_v40 }
 0x9e4   : > { %v4666_v52 = vpop.xlane.xlu0 %4665 }
 0x9e5   : > { %v4756_v28 = vsub.f32 %v11362_v23, %v4666_v52  ;;  %v4660_v7 = vpop.xlane.xlu1 %4659 }
 0x9e6   : > { %v4754_v33 = vsub.f32 %v11375_v34, %v4660_v7 }
 0x9e7   : > { %v4790_v47 = vmul.f32 1.442695, %v4756_v28 }
 0x9e8   : > { %v4786_v32 = vmul.f32 1.442695, %v4754_v33  ;;  %v4663_v53 = vpop.xlane.xlu0 %4662 }
 0x9e9   : > { %8924 = vpow2.f32 %v4790_v47  ;;  %v4755_v50 = vsub.f32 %v11383_v11, %v4663_v53  ;;  %v4669_v18 = vpop.xlane.xlu1 %4668 }
 0x9ea   : > { %v4757_v46 = vsub.f32 %v11380_v41, %v4669_v18  ;;  %8926 = vpow2.f32 %v4786_v32 }
 0x9eb   : > { %v4788_v44 = vmul.f32 1.442695, %v4755_v50 }
 0x9ec   : > { %v4792_v62 = vmul.f32 1.442695, %v4757_v46 }
 0x9ee   : > { %8928 = vpow2.f32 %v4792_v62 }
 0x9ef   : > { %8930 = vpow2.f32 %v4788_v44 }
 0x9f3   : > { %v11601_v40 = vpop.eup %8924 }
 0x9f4   : > { %v4856_v23 = vsel %vm2190_vm2, %v11601_v40, 0.0  ;;  %v11605_v34 = vpop.eup %8926 }
 0x9f5   : > { %4857 = vadd.xlane.f32.xlu0 %v4856_v23  ;;  %v4850_v53 = vsel %vm2190_vm2, %v11605_v34, 0.0 }
 0x9f8   : > { %v11607_v28 = vpop.eup %8928 }
 0x9f9   : > { %4851 = vadd.xlane.f32.xlu0 %v4850_v53  ;;  %v4859_v47 = vsel %vm2190_vm2, %v11607_v28, 0.0  ;;  %v11613_v11 = vpop.eup %8930 }
 0x9fa   : > { %4860 = vadd.xlane.f32.xlu1 %v4859_v47  ;;  %v4853_v44 = vsel %vm2190_vm2, %v11613_v11, 0.0 }
 0x9fe   : > { %4854 = vadd.xlane.f32.xlu1 %v4853_v44 }
 0xa1d   : > { %v4678_v41 = vpop.xlane.xlu0 %4677 }
 0xa1e   : > { %v4760_v46 = vsub.f32 %v11411_v13, %v4678_v41 }
 0xa1f   : > { %v4681_v7 = vpop.xlane.xlu1 %4680 }
 0xa20   : > { %v4798_v33 = vmul.f32 1.442695, %v4760_v46  ;;  %v4761_v32 = vsub.f32 %v11430_v36, %v4681_v7 }
 0xa21   : > { %v4672_v50 = vpop.xlane.xlu0 %4671 }
 0xa22   : > { %8932 = vpow2.f32 %v4798_v33  ;;  %v4800_v18 = vmul.f32 1.442695, %v4761_v32  ;;  %v4758_v62 = vsub.f32 %v11425_v26, %v4672_v50 }
 0xa23   : > { %v4675_v52 = vpop.xlane.xlu1 %4674 }
 0xa24   : > { %8934 = vpow2.f32 %v4800_v18  ;;  %v4794_v23 = vmul.f32 1.442695, %v4758_v62  ;;  %v4759_v53 = vsub.f32 %v11435_v27, %v4675_v52 }
 0xa25   : > { %v4690_v47 = vpop.xlane.xlu0 %4689 }
 0xa26   : > { %8936 = vpow2.f32 %v4794_v23  ;;  %v4796_v44 = vmul.f32 1.442695, %v4759_v53  ;;  %v4764_v5 = vsub.f32 %v11442_v12, %v4690_v47 }
 0xa27   : > { %v4693_v13 = vpop.xlane.xlu1 %4692 }
 0xa28   : > { %8938 = vpow2.f32 %v4796_v44  ;;  %v4806_v41 = vmul.f32 1.442695, %v4764_v5  ;;  %v4765_v36 = vsub.f32 %v11447_v30, %v4693_v13 }
 0xa29   : > { %v4714_v46 = vpop.xlane.xlu0 %4713 }
 0xa2a   : > { %v4808_v7 = vmul.f32 1.442695, %v4765_v36  ;;  %v4772_v33 = vsub.f32 %v11454_v45, %v4714_v46  ;;  %8940 = vpow2.f32 %v4806_v41 }
 0xa2b   : > { %v4717_v26 = vpop.xlane.xlu1 %4716 }
 0xa2c   : > { %v11624_v32 = vpop.eup %8932  ;;  %8942 = vpow2.f32 %v4808_v7  ;;  %v4822_v27 = vmul.f32 1.442695, %v4772_v33  ;;  %v4773_v50 = vsub.f32 %v11460_v55, %v4717_v26 }
 0xa2d   : > { %v4684_v18 = vpop.xlane.xlu0 %4683  ;;  %v4868_v12 = vsel %vm2190_vm2, %v11624_v32, 0.0 }
 0xa2e   : > { %v11629_v62 = vpop.eup %8934  ;;  %v4824_v5 = vmul.f32 1.442695, %v4773_v50  ;;  %v4762_v30 = vsub.f32 %v11457_v58, %v4684_v18  ;;  %4869 = vadd.xlane.f32.xlu1 %v4868_v12  ;;  %8944 = vpow2.f32 %v4822_v27 }
 0xa2f   : > { %v4687_v45 = vpop.xlane.xlu1 %4686  ;;  %v4871_v47 = vsel %vm2190_vm2, %v11629_v62, 0.0 }
 0xa30   : > { %v11632_v52 = vpop.eup %8936  ;;  %8946 = vpow2.f32 %v4824_v5  ;;  %v4802_v23 = vmul.f32 1.442695, %v4762_v30  ;;  %v4763_v41 = vsub.f32 %v11465_v63, %v4687_v45 }
 0xa31   : > { %v4708_v53 = vpop.xlane.xlu0 %4707  ;;  %v4862_v55 = vsel %vm2190_vm2, %v11632_v52, 0.0 }
 0xa32   : > { %v11638_v44 = vpop.eup %8938  ;;  %v4770_v13 = vsub.f32 %v11470_v54, %v4708_v53  ;;  %4863 = vadd.xlane.f32.xlu0 %v4862_v55  ;;  %4872 = vadd.xlane.f32.xlu1 %v4871_v47  ;;  %8948 = vpow2.f32 %v4802_v23  ;;  %v4804_v12 = vmul.f32 1.442695, %v4763_v41 }
 0xa33   : > { %v4711_v58 = vpop.xlane.xlu1 %4710  ;;  %v4865_v26 = vsel %vm2190_vm2, %v11638_v44, 0.0 }
 0xa34   : > { %v4818_v36 = vmul.f32 1.442695, %v4770_v13  ;;  %v4771_v46 = vsub.f32 %v11475_v24, %v4711_v58  ;;  %v11643_v7 = vpop.eup %8940 }
 0xa35   : > { %v4702_v33 = vpop.xlane.xlu0 %4701  ;;  %v4880_v45 = vsel %vm2190_vm2, %v11643_v7, 0.0 }
 0xa36   : > { %v11647_v27 = vpop.eup %8942  ;;  %v4820_v50 = vmul.f32 1.442695, %v4771_v46  ;;  %v4768_v54 = vsub.f32 %v11480_v43, %v4702_v33  ;;  %4866 = vadd.xlane.f32.xlu1 %v4865_v26  ;;  %8950 = vpow2.f32 %v4818_v36 }
 0xa37   : > { %v4705_v18 = vpop.xlane.xlu1 %4704  ;;  %v4883_v63 = vsel %vm2190_vm2, %v11647_v27, 0.0 }
 0xa38   : > { %8952 = vpow2.f32 %v4820_v50  ;;  %v4814_v24 = vmul.f32 1.442695, %v4768_v54  ;;  %4884 = vadd.xlane.f32.xlu0 %v4883_v63  ;;  %v11652_v5 = vpop.eup %8944  ;;  %v4769_v47 = vsub.f32 %v11485_v39, %v4705_v18 }
 0xa39   : > { %v4726_v30 = vpop.xlane.xlu0 %4725  ;;  %v4904_v41 = vsel %vm2190_vm2, %v11652_v5, 0.0 }
 0xa3a   : > { %v11656_v23 = vpop.eup %8946  ;;  %8954 = vpow2.f32 %v4814_v24  ;;  %v4776_v43 = vsub.f32 %v11490_v49, %v4726_v30  ;;  %4881 = vadd.xlane.f32.xlu1 %v4880_v45  ;;  %v4816_v26 = vmul.f32 1.442695, %v4769_v47 }
 0xa3b   : > { %v4729_v53 = vpop.xlane.xlu1 %4728  ;;  %v4907_v55 = vsel %vm2190_vm2, %v11656_v23, 0.0  ;;  %8956 = vpow2.f32 %v4804_v12 }
 0xa3c   : > { %v4830_v13 = vmul.f32 1.442695, %v4776_v43  ;;  %4908 = vadd.xlane.f32.xlu0 %v4907_v55  ;;  %v11664_v36 = vpop.eup %8948  ;;  %v4777_v49 = vsub.f32 %v11495_v15, %v4729_v53 }
 0xa3d   : > { %v4696_v58 = vpop.xlane.xlu0 %4695  ;;  %v4874_v18 = vsel %vm2190_vm2, %v11664_v36, 0.0 }
 0xa3e   : > { %8958 = vpow2.f32 %v4830_v13  ;;  %v4766_v46 = vsub.f32 %v11502_v37, %v4696_v58  ;;  %4905 = vadd.xlane.f32.xlu1 %v4904_v41  ;;  %v4832_v24 = vmul.f32 1.442695, %v4777_v49 }
 0xa3f   : > { %v4699_v33 = vpop.xlane.xlu1 %4698 }
 0xa40   : > { %v4810_v50 = vmul.f32 1.442695, %v4766_v46  ;;  %v11668_v54 = vpop.eup %8950  ;;  %v4767_v37 = vsub.f32 %v11507_v8, %v4699_v33 }
 0xa41   : > { %v4720_v39 = vpop.xlane.xlu0 %4719  ;;  %v4898_v47 = vsel %vm2190_vm2, %v11668_v54, 0.0 }
 0xa42   : > { %v11672_v63 = vpop.eup %8952  ;;  %8960 = vpow2.f32 %v4810_v50  ;;  %v4774_v12 = vsub.f32 %v11512_v0, %v4720_v39  ;;  %4875 = vadd.xlane.f32.xlu1 %v4874_v18  ;;  %v4812_v8 = vmul.f32 1.442695, %v4767_v37 }
 0xa43   : > { %v4723_v30 = vpop.xlane.xlu1 %4722  ;;  %v4901_v15 = vsel %vm2190_vm2, %v11672_v63, 0.0  ;;  %8962 = vpow2.f32 %v4816_v26 }
 0xa44   : > { %v11678_v45 = vpop.eup %8954  ;;  %v4826_v43 = vmul.f32 1.442695, %v4774_v12  ;;  %v4775_v53 = vsub.f32 %v11519_v38, %v4723_v30  ;;  %4902 = vadd.xlane.f32.xlu0 %v4901_v15 }
 0xa45   : > { %v4738_v55 = vpop.xlane.xlu0 %4737  ;;  %v11683_v0 = vpop.eup %8956  ;;  %v4892_v46 = vsel %vm2190_vm2, %v11678_v45, 0.0 }
 0xa46   : > { %8964 = vpow2.f32 %v4826_v43  ;;  %v4828_v13 = vmul.f32 1.442695, %v4775_v53  ;;  %4899 = vadd.xlane.f32.xlu1 %v4898_v47  ;;  %v4780_v58 = vsub.f32 %v11526_v42, %v4738_v55  ;;  %v4877_v26 = vsel %vm2190_vm2, %v11683_v0, 0.0 }
 0xa47   : > { %8966 = vpow2.f32 %v4832_v24  ;;  %v4741_v41 = vpop.xlane.xlu1 %4740 }
 0xa48   : > { %v11688_v49 = vpop.eup %8958  ;;  %8968 = vpow2.f32 %v4828_v13  ;;  %v4781_v38 = vsub.f32 %v11531_v2, %v4741_v41  ;;  %4893 = vadd.xlane.f32.xlu0 %v4892_v46  ;;  %v4838_v39 = vmul.f32 1.442695, %v4780_v58 }
 0xa49   : > { %v4732_v33 = vpop.xlane.xlu0 %4731  ;;  %8970 = vpow2.f32 %v4812_v8  ;;  %v4916_v42 = vsel %vm2190_vm2, %v11688_v49, 0.0 }
 0xa4a   : > { %v4840_v50 = vmul.f32 1.442695, %v4781_v38  ;;  %4878 = vadd.xlane.f32.xlu1 %v4877_v26  ;;  %v4778_v24 = vsub.f32 %v11536_v14, %v4732_v33 }
 0xa4b   : > { %v4735_v18 = vpop.xlane.xlu1 %4734 }
 0xa4c   : > { %v11695_v12 = vpop.eup %8960  ;;  %8972 = vpow2.f32 %v4840_v50  ;;  %v4779_v2 = vsub.f32 %v11541_v25, %v4735_v18  ;;  %4917 = vadd.xlane.f32.xlu0 %v4916_v42  ;;  %v4834_v53 = vmul.f32 1.442695, %v4778_v24  ;;  %v13200_v24 = vld [vmem:[#allocation22_spill] sm:$0xff] }
 0xa4d   : > { %v4886_v37 = vsel %vm2190_vm2, %v11695_v12, 0.0  ;;  %v11701_v30 = vpop.eup %8962  ;;  %8974 = vpow2.f32 %v4838_v39 }
 0xa4e   : > { %v4836_v15 = vmul.f32 1.442695, %v4779_v2  ;;  %4887 = vadd.xlane.f32.xlu1 %v4886_v37  ;;  %v4895_v25 = vsel %vm2190_vm2, %v11701_v30, 0.0  ;;  %v4750_v2 = vpop.xlane.xlu0 %4749 }
 0xa50   : > { %v11703_v43 = vpop.eup %8964  ;;  %8976 = vpow2.f32 %v4836_v15  ;;  %v4753_v15 = vpop.xlane.xlu1 %4752 }
 0xa51   : > { %v11705_v55 = vpop.eup %8966  ;;  %v4910_v14 = vsel %vm2190_vm2, %v11703_v43, 0.0  ;;  %8978 = vpow2.f32 %v4834_v53 }
 0xa52   : > { %v11711_v47 = vpop.eup %8968  ;;  %4911 = vadd.xlane.f32.xlu0 %v4910_v14  ;;  %4896 = vadd.xlane.f32.xlu1 %v4895_v25  ;;  %v4919_v8 = vsel %vm2190_vm2, %v11705_v55, 0.0  ;;  %v4744_v37 = vpop.xlane.xlu0 %4743  ;;  %v4784_v14 = vsub.f32 %v11550_v35, %v4750_v2  ;;  %v4785_v25 = vsub.f32 %v11557_v21, %v4753_v15 }
 0xa53   : > { %v11713_v13 = vpop.eup %8970  ;;  %v4913_v58 = vsel %vm2190_vm2, %v11711_v47, 0.0  ;;  %v4782_v53 = vsub.f32 %v11560_v48, %v4744_v37 }
 0xa54   : > { %v4889_v38 = vsel %vm2190_vm2, %v11713_v13, 0.0 }
 0xa56   : > { %v11719_v41 = vpop.eup %8972  ;;  %4920 = vadd.xlane.f32.xlu0 %v4919_v8  ;;  %4914 = vadd.xlane.f32.xlu1 %v4913_v58  ;;  %v4842_v8 = vmul.f32 1.442695, %v4782_v53  ;;  %v4747_v58 = vpop.xlane.xlu1 %4746 }
 0xa57   : > { %v11721_v46 = vpop.eup %8974  ;;  %v4931_v33 = vsel %vm2190_vm2, %v11719_v41, 0.0 }
 0xa58   : > { %v4928_v50 = vsel %vm2190_vm2, %v11721_v46, 0.0  ;;  %8980 = vpow2.f32 %v4842_v8 }
 0xa5a   : > { %v11727_v26 = vpop.eup %8976  ;;  %4890 = vadd.xlane.f32.xlu0 %v4889_v38  ;;  %4932 = vadd.xlane.f32.xlu1 %v4931_v33  ;;  %v4846_v33 = vmul.f32 1.442695, %v4784_v14 }
 0xa5b   : > { %v4925_v39 = vsel %vm2190_vm2, %v11727_v26, 0.0  ;;  %v11733_v18 = vpop.eup %8978 }
 0xa5c   : > { %v4922_v42 = vsel %vm2190_vm2, %v11733_v18, 0.0  ;;  %8982 = vpow2.f32 %v4846_v33 }
 0xa5e   : > { %4929 = vadd.xlane.f32.xlu0 %v4928_v50  ;;  %4926 = vadd.xlane.f32.xlu1 %v4925_v39  ;;  %v4848_v50 = vmul.f32 1.442695, %v4785_v25  ;;  %v4783_v39 = vsub.f32 %v11565_v60, %v4747_v58 }
 0xa60   : > { %8984 = vpow2.f32 %v4848_v50 }
 0xa62   : > { %4923 = vadd.xlane.f32.xlu0 %v4922_v42  ;;  %v11745_v35 = vpop.eup %8980 }
 0xa63   : > { %v4934_v60 = vsel %vm2190_vm2, %v11745_v35, 0.0 }
 0xa66   : > { %v11747_v21 = vpop.eup %8982 }
 0xa67   : > { %v4940_v8 = vsel %vm2190_vm2, %v11747_v21, 0.0 }
 0xa6a   : > { %v11749_v2 = vpop.eup %8984 }
 0xa6b   : > { %v4943_v58 = vsel %vm2190_vm2, %v11749_v2, 0.0 }
 0xa6f   : > { %5607 = vrot.lane.b32.xlu1 %v13200_v24, %s9197_s30 }
 0xa78   : > { %5494 = vrot.lane.b32.xlu0 %v9617_v6, %s9198_s10  ;;  %v4844_v6 = vmul.f32 1.442695, %v4783_v39 }
 0xa82   : > { %v4858_v38 = vpop.xlane.xlu0 %4857 }
 0xa86   : > { %v4852_v42 = vpop.xlane.xlu0 %4851 }
 0xa87   : > { %v4861_v24 = vpop.xlane.xlu1 %4860 }
 0xa88   : > { %8986 = vrcp.f32 %v4861_v24 }
 0xa89   : > { %8988 = vrcp.f32 %v4852_v42 }
 0xa8a   : > { %8990 = vrcp.f32 %v4858_v38 }
 0xa8b   : > { %v4855_v48 = vpop.xlane.xlu1 %4854 }
 0xa8c   : > { %8992 = vrcp.f32 %v4855_v48 }
 0xa8d   : > { %8994 = vpow2.f32 %v4844_v6 }
 0xa92   : > { %v8987_v37 = vpop.eup %8986 }
 0xa93   : > { %4935 = vadd.xlane.f32.xlu1 %v4934_v60  ;;  %v8989_v15 = vpop.eup %8988  ;;  %v4981_v25 = vmul.f32 %v8987_v37, %v11607_v28  ;;  %v13207_v37 = vld [vmem:[#allocation33_spill] sm:$0xff] }
 0xa94   : > { %v8991_v53 = vpop.eup %8990  ;;  %v4978_v33 = vmul.f32 %v8989_v15, %v11605_v34 }
 0xa95   : > { %v4980_v39 = vmul.f32 %v8991_v53, %v11601_v40  ;;  %v13204_v40 = vld [vmem:[#allocation8_spill] sm:$0xff] }
 0xa96   : > { %v8993_v14 = vpop.eup %8992 }
 0xa97   : > { %v11758_v38 = vpop.eup %8994  ;;  %4941 = vadd.xlane.f32.xlu0 %v4940_v8  ;;  %4944 = vadd.xlane.f32.xlu1 %v4943_v58  ;;  %v4979_v50 = vmul.f32 %v8993_v14, %v11613_v11  ;;  %v5011_v24 = vpack.c.bf16 %v4981_v25, %v4980_v39  ;;  %v13208_v14 = vld [vmem:[#allocation11_spill] sm:$0xff] }
 0xa98   : > { %v4937_v28 = vsel %vm2190_vm2, %v11758_v38, 0.0 }
 0xa99   : > { %v5010_v42 = vpack.c.bf16 %v4979_v50, %v4978_v33  ;;  %v13211_v33 = vld [vmem:[#allocation34_spill] sm:$0xff]  ;;  %v13212_v50 = vld [vmem:[#allocation29_spill] sm:$0xff] }
 0xa9b   : > { %8193 = vmatprep.mubr.msk.bf16.mxu0 %vm2190_vm2, %v5010_v42  ;;  %4938 = vadd.xlane.f32.xlu0 %v4937_v28 }
 0xa9c   : > { %8194 = vmatmul.mubr.msk.bf16.vlgmr.msra.gmra.mrb[120].mxu0 %vm2190_vm2, %v5011_v24 }
 0xa9d   : > { %8218 = vmatpush3.bf16.msra.mxu0 %v11260_v56 }
 0xa9e   : > { %8219 = vmatprep.subr.bf16.mxu0 %v11499_v57 }
 0xaa1   : > { %8220 = vmatpush3.bf16.msra.mxu0 %v11499_v57 }
 0xaa2   : > { %8221 = vmatprep.subr.bf16.mxu0 %v11516_v19 }
 0xaa5   : > { %8222 = vmatpush3.bf16.msra.mxu0 %v11516_v19  ;;  %v13206_v19 = vld [vmem:[#allocation26_spill] sm:$0xff] }
 0xaa6   : > { %8223 = vmatprep.subr.bf16.mxu0 %v11533_v4 }
 0xaa8   : > { %5593 = vrot.lane.b32.xlu1 %v9624_v31, %s9198_s10 }
 0xaa9   : > { %8224 = vmatpush3.bf16.msra.mxu0 %v11533_v4  ;;  %v13205_v4 = vld [vmem:[#allocation27_spill] sm:$0xff] }
 0xaaa   : > { %8481 = vmatprep.subr.msk.bf16.mxu0 %vm1797_vm1, %v11547_v1 }
 0xaac   : > { %5710 = vrot.lane.b32.xlu1 %v13046_v3, %s9197_s30 }
 0xab0   : > { %5597 = vrot.lane.b32.xlu1 %v13111_v16, %s9198_s10 }
 0xab1   : > { %5708 = vrot.lane.b32.xlu0 %v13045_v10, %s9197_s30 }
 0xab4   : > { %5712 = vrot.lane.b32.xlu1 %v9802_v17, %s9197_s30  ;;  %v13202_v17 = vld [vmem:[#allocation7_spill] sm:$0xff] }
 0xab5   : > { %5595 = vrot.lane.b32.xlu0 %v9629_v59, %s9198_s10 }
 0xab8   : > { %5698 = vrot.lane.b32.xlu1 %v13044_v61, %s9198_s10  ;;  %v13203_v61 = vld [vmem:[#allocation12_spill] sm:$0xff] }
 0xab9   : > { %5811 = vrot.lane.b32.xlu0 %v9795_v29, %s9197_s30  ;;  %v13201_v29 = vld [vmem:[#allocation10_spill] sm:$0xff] }
 0xabb   : > { %v4870_v31 = vpop.xlane.xlu1 %4869 }
 0xabc   : > { %5815 = vrot.lane.b32.xlu1 %v9817_v9, %s9197_s30 }
 0xabd   : > { %5599 = vrot.lane.b32.xlu0 %v9642_v51, %s9198_s10 }
 0xabf   : > { %v4864_v10 = vpop.xlane.xlu0 %4863  ;;  %v4873_v3 = vpop.xlane.xlu1 %4872 }
 0xac0   : > { %5704 = vrot.lane.b32.xlu1 %v13117_v22, %s9198_s10  ;;  %8996 = vrcp.f32 %v4873_v3  ;;  %v13214_v3 = vld [vmem:[#allocation31_spill] sm:$0xff] }
 0xac1   : > { %5813 = vrot.lane.b32.xlu0 %v13107_v20, %s9197_s30  ;;  %8998 = vrcp.f32 %v4864_v10 }
 0xac2   : > { %9000 = vrcp.f32 %v4870_v31  ;;  %v13213_v31 = vld [vmem:[#allocation32_spill] sm:$0xff] }
 0xac3   : > { %v4867_v59 = vpop.xlane.xlu1 %4866 }
 0xac4   : > { %9002 = vrcp.f32 %v4867_v59  ;;  %5803 = vrot.lane.b32.xlu1 %v13201_v29, %s9198_s10 }
 0xac5   : > { %5700 = vrot.lane.b32.xlu0 %v13202_v17, %s9198_s10  ;;  %v4885_v51 = vpop.xlane.xlu0 %4884 }
 0xac7   : > { %v4882_v9 = vpop.xlane.xlu1 %4881 }
 0xac8   : > { %5807 = vrot.lane.b32.xlu1 %v13203_v61, %s9198_s10 }
 0xac9   : > { %5702 = vrot.lane.b32.xlu0 %v13204_v40, %s9198_s10  ;;  %v4909_v56 = vpop.xlane.xlu0 %4908 }
 0xaca   : > { %v8997_v16 = vpop.eup %8996 }
 0xacb   : > { %v4906_v20 = vpop.xlane.xlu1 %4905  ;;  %v8999_v22 = vpop.eup %8998  ;;  %v4985_v11 = vmul.f32 %v8997_v16, %v11629_v62 }
 0xacc   : > { %6278 = vrot.lane.b32.xlu1 %v13205_v4, %s9199_s28  ;;  %v9001_v57 = vpop.eup %9000  ;;  %v4982_v48 = vmul.f32 %v8999_v22, %v11632_v52  ;;  %9004 = vrcp.f32 %v4906_v20  ;;  %v13209_v52 = vld [vmem:[#allocation30_spill] sm:$0xff]  ;;  %v13215_v22 = vld [vmem:[#allocation36_spill] sm:$0xff] }
 0xacd   : > { %5817 = vrot.lane.b32.xlu0 %v13206_v19, %s9197_s30  ;;  %v4984_v15 = vmul.f32 %v9001_v57, %v11624_v32  ;;  %v13216_v57 = vld [vmem:[#allocation28_spill] sm:$0xff] }
 0xace   : > { %v9003_v34 = vpop.eup %9002 }
 0xacf   : > { %v4876_v6 = vpop.xlane.xlu1 %4875  ;;  %v4983_v60 = vmul.f32 %v9003_v34, %v11638_v44  ;;  %v5013_v8 = vpack.c.bf16 %v4985_v11, %v4984_v15  ;;  %v13210_v44 = vld [vmem:[#allocation13_spill] sm:$0xff]  ;;  %v13218_v15 = vld [vmem:[#allocation63_spill] sm:$0xff] }
 0xad0   : > { %6365 = vrot.lane.b32.xlu1 %v13207_v37, %s9199_s28 }
 0xad1   : > { %v4903_v53 = vpop.xlane.xlu0 %4902  ;;  %5805 = vrot.lane.b32.xlu0 %v13208_v14, %s9198_s10  ;;  %v5012_v25 = vpack.c.bf16 %v4983_v60, %v4982_v48  ;;  %v5517_v48 = vsel %vm1797_vm1, %v11547_v1, 0  ;;  %v13219_v1 = vld [vmem:[#allocation51_spill] sm:$0xff] }
 0xad2   : > { %9006 = vrcp.f32 %v4903_v53  ;;  %v13221_v53 = vld [vmem:[#allocation60_spill] sm:$0xff] }
 0xad3   : > { %9008 = vrcp.f32 %v4909_v56  ;;  %8197 = vmatprep.mubr.msk.bf16.mxu0 %vm2190_vm2, %v5012_v25  ;;  %v4900_v62 = vpop.xlane.xlu1 %4899 }
 0xad4   : > { %9010 = vrcp.f32 %v4900_v62  ;;  %6367 = vrot.lane.b32.xlu1 %v13209_v52, %s9199_s28  ;;  %8198 = vmatmul.mubr.msk.bf16.gmra.mrb[124].mxu0 %vm2190_vm2, %v5013_v8  ;;  %v5520_v52 = vsel %vm1797_vm1, %v13218_v15, 0 }
 0xad5   : > { %9012 = vrcp.f32 %v4882_v9  ;;  %v4894_v32 = vpop.xlane.xlu0 %4893  ;;  %5809 = vrot.lane.b32.xlu0 %v13210_v44, %s9198_s10  ;;  %s9202_s10 = smov 24  }
 0xad6   : > { %9014 = vrcp.f32 %v4876_v6  ;;  %v9005_v39 = vpop.eup %9004 }
 0xad7   : > { %9016 = vrcp.f32 %v4885_v51  ;;  %v4879_v58 = vpop.xlane.xlu1 %4878  ;;  %v4996_v29 = vmul.f32 %v9005_v39, %v11652_v5  ;;  %v13224_v39 = vld [vmem:[#allocation65_spill] sm:$0xff] }
 0xad8   : > { %9018 = vrcp.f32 %v4879_v58  ;;  %6371 = vrot.lane.b32.xlu1 %v13211_v33, %s9199_s28  ;;  %v13222_v58 = vld [vmem:[#allocation39_spill] sm:$0xff]  ;;  %v13223_v33 = vld [vmem:[#allocation61_spill] sm:$0xff] }
 0xad9   : > { %6276 = vrot.lane.b32.xlu0 %v13212_v50, %s9199_s28  ;;  %v4918_v42 = vpop.xlane.xlu0 %4917 }
 0xada   : > { %9020 = vrcp.f32 %v4918_v42 }
 0xadb   : > { %v4888_v24 = vpop.xlane.xlu1 %4887 }
 0xadc   : > { %v9007_v28 = vpop.eup %9006  ;;  %6456 = vrot.lane.b32.xlu1 %v13213_v31, %s9199_s28  ;;  %9022 = vrcp.f32 %v4888_v24 }
 0xadd   : > { %v9009_v10 = vpop.eup %9008  ;;  %6280 = vrot.lane.b32.xlu0 %v13214_v3, %s9199_s28  ;;  %v4995_v40 = vmul.f32 %v9007_v28, %v11672_v63 }
 0xade   : > { %v9011_v59 = vpop.eup %9010  ;;  %v4997_v20 = vmul.f32 %v9009_v10, %v11656_v23 }
 0xadf   : > { %v9013_v17 = vpop.eup %9012  ;;  %v4912_v51 = vpop.xlane.xlu0 %4911  ;;  %v4994_v61 = vmul.f32 %v9011_v59, %v11668_v54 }
 0xae0   : > { %v4897_v9 = vpop.xlane.xlu1 %4896  ;;  %v9015_v16 = vpop.eup %9014  ;;  %6460 = vrot.lane.b32.xlu1 %v13215_v22, %s9199_s28  ;;  %v4988_v19 = vmul.f32 %v9013_v17, %v11643_v7  ;;  %v5019_v34 = vpack.c.bf16 %v4997_v20, %v4996_v29  ;;  %9024 = vrcp.f32 %v4912_v51  ;;  %v13217_v7 = vld [vmem:[#allocation37_spill] sm:$0xff]  ;;  %v13225_v51 = vld [vmem:[#allocation62_spill] sm:$0xff] }
 0xae1   : > { %v9017_v4 = vpop.eup %9016  ;;  %6282 = vrot.lane.b32.xlu0 %v13216_v57, %s9199_s28  ;;  %v5018_v56 = vpack.c.bf16 %v4995_v40, %v4994_v61  ;;  %v4986_v23 = vmul.f32 %v9015_v16, %v11664_v36  ;;  %v13226_v16 = vld [vmem:[#allocation68_spill] sm:$0xff] }
 0xae2   : > { %v9019_v5 = vpop.eup %9018  ;;  %v4989_v6 = vmul.f32 %v9017_v4, %v11647_v27 }
 0xae3   : > { %v4921_v54 = vpop.xlane.xlu0 %4920  ;;  %8225 = vmatprep.mubr.msk.bf16.mxu0 %vm2190_vm2, %v5018_v56  ;;  %v4987_v11 = vmul.f32 %v9019_v5, %v11683_v0  ;;  %v13220_v0 = vld [vmem:[#allocation35_spill] sm:$0xff] }
 0xae4   : > { %v4915_v63 = vpop.xlane.xlu1 %4914  ;;  %9026 = vrcp.f32 %v4921_v54  ;;  %8226 = vmatmul.mubr.msk.bf16.vlgmr.msra.gmra.mrb[128].mxu0 %vm2190_vm2, %v5019_v34  ;;  %v5015_v37 = vpack.c.bf16 %v4989_v6, %v4988_v19  ;;  %v9021_v14 = vpop.eup %9020 }
 0xae5   : > { %9028 = vrcp.f32 %v4915_v63  ;;  %8250 = vmatpush3.bf16.xpose.msra.mxu0 %v5517_v48  ;;  %6369 = vrot.lane.b32.xlu0 %v13217_v7, %s9199_s28  ;;  %v5014_v60 = vpack.c.bf16 %v4987_v11, %v4986_v23  ;;  %v5000_v24 = vmul.f32 %v9021_v14, %v11688_v49  ;;  %v13229_v23 = vld [vmem:[#allocation71_spill] sm:$0xff]  ;;  %v13232_v11 = vld [vmem:[#allocation72_spill] sm:$0xff]  ;;  %v13233_v48 = vld [vmem:[#allocation70_spill] sm:$0xff] }
 0xae6   : > { %9030 = vrcp.f32 %v4897_v9  ;;  %8482 = vmatprep.subr.msk.bf16.mxu0 %vm1797_vm1, %v13218_v15  ;;  %v9023_v62 = vpop.eup %9022 }
 0xae7   : > { %9032 = vrcp.f32 %v4894_v32  ;;  %v4891_v36 = vpop.xlane.xlu0 %4890  ;;  %8209 = vmatprep.mubr.msk.bf16.mxu1 %vm2190_vm2, %v5014_v60  ;;  %v4990_v61 = vmul.f32 %v9023_v62, %v11695_v12  ;;  %v5628_v60 = vsel %vm1797_vm1, %v13233_v48, 0 }
 0xae8   : > { %v4933_v27 = vpop.xlane.xlu1 %4932  ;;  %9034 = vrcp.f32 %v4891_v36  ;;  %8210 = vmatmul.mubr.msk.bf16.vlgmr.msra.gmra.mrb[136].mxu1 %vm2190_vm2, %v5015_v37 }
 0xae9   : > { %8234 = vmatpush3.bf16.msra.mxu1 %v13219_v1  ;;  %6454 = vrot.lane.b32.xlu0 %v13220_v0, %s9199_s28 }
 0xaea   : > { %8235 = vmatprep.subr.bf16.mxu1 %v13221_v53  ;;  %v9025_v32 = vpop.eup %9024 }
 0xaeb   : > { %v4930_v25 = vpop.xlane.xlu0 %4929  ;;  %v4998_v10 = vmul.f32 %v9025_v32, %v11703_v43  ;;  %v5523_v43 = vsel %vm1797_vm1, %v13224_v39, 0 }
 0xaec   : > { %v4927_v8 = vpop.xlane.xlu1 %4926  ;;  %9036 = vrcp.f32 %v4930_v25 }
 0xaed   : > { %8236 = vmatpush3.bf16.msra.mxu1 %v13221_v53  ;;  %8252 = vmatpush3.bf16.xpose.msra.mxu0 %v5520_v52  ;;  %9038 = vrcp.f32 %v4927_v8 }
 0xaee   : > { %v9027_v44 = vpop.eup %9026  ;;  %6458 = vrot.lane.b32.xlu0 %v13222_v58, %s9199_s28  ;;  %8237 = vmatprep.subr.bf16.mxu1 %v13223_v33  ;;  %9040 = vrcp.f32 %v4933_v27 }
 0xaef   : > { %v9029_v50 = vpop.eup %9028  ;;  %8483 = vmatprep.subr.msk.bf16.mxu0 %vm1797_vm1, %v13224_v39  ;;  %v4924_v42 = vpop.xlane.xlu0 %4923  ;;  %v5001_v28 = vmul.f32 %v9027_v44, %v11705_v55 }
 0xaf0   : > { %v9031_v31 = vpop.eup %9030  ;;  %9042 = vrcp.f32 %v4924_v42  ;;  %v4999_v3 = vmul.f32 %v9029_v50, %v11711_v47  ;;  %v5608_v37 = vpop.permute.xlu1 %5607 }
 0xaf1   : > { %v9033_v59 = vpop.eup %9032  ;;  %8238 = vmatpush3.bf16.msra.mxu1 %v13223_v33  ;;  %v5021_v29 = vpack.c.bf16 %v5001_v28, %v5000_v24  ;;  %v4993_v55 = vmul.f32 %v9031_v31, %v11701_v30  ;;  %v13228_v30 = vld [vmem:[#allocation64_spill] sm:$0xff]  ;;  %v5631_v15 = vsel %vm1797_vm1, %v5608_v37, 0 }
 0xaf2   : > { %v9035_v17 = vpop.eup %9034  ;;  %8239 = vmatprep.subr.bf16.mxu1 %v13225_v51  ;;  %v5020_v9 = vpack.c.bf16 %v4999_v3, %v4998_v10  ;;  %v4992_v40 = vmul.f32 %v9033_v59, %v11678_v45 }
 0xaf3   : > { %v4991_v49 = vmul.f32 %v9035_v17, %v11713_v13  ;;  %v13227_v13 = vld [vmem:[#allocation66_spill] sm:$0xff]  ;;  %v5495_v7 = vpop.permute.xlu0 %5494 }
 0xaf4   : > { %8229 = vmatprep.mubr.msk.bf16.mxu0 %vm2190_vm2, %v5020_v9  ;;  %v5017_v20 = vpack.c.bf16 %v4993_v55, %v4992_v40  ;;  %v5526_v34 = vsel %vm1797_vm1, %v13227_v13, 0 }
 0xaf5   : > { %8230 = vmatmul.mubr.msk.bf16.gmra.mrb[132].mxu0 %vm2190_vm2, %v5021_v29  ;;  %8240 = vmatpush3.bf16.msra.mxu1 %v13225_v51  ;;  %v5016_v47 = vpack.c.bf16 %v4991_v49, %v4990_v61 }
 0xaf6   : > { %8254 = vmatpush3.bf16.xpose.msra.mxu0 %v5523_v43  ;;  %8257 = vmatprep.mubr.msk.bf16.mxu0 %vm1797_vm1, %v13226_v16  ;;  %v9037_v12 = vpop.eup %9036 }
 0xaf7   : > { %8484 = vmatprep.subr.msk.bf16.mxu0 %vm1797_vm1, %v13227_v13  ;;  %8485 = vmatprep.subr.msk.bf16.mxu1 %vm1797_vm1, %v13228_v30  ;;  %v9039_v22 = vpop.eup %9038  ;;  %v5004_v45 = vmul.f32 %v9037_v12, %v11721_v46  ;;  %v5622_v46 = vsel %vm1797_vm1, %v13228_v30, 0 }
 0xaf8   : > { %8213 = vmatprep.mubr.msk.bf16.mxu1 %vm2190_vm2, %v5016_v47  ;;  %v9041_v4 = vpop.eup %9040  ;;  %v5003_v5 = vmul.f32 %v9039_v22, %v11727_v26  ;;  %v13230_v26 = vld [vmem:[#allocation67_spill] sm:$0xff] }
 0xaf9   : > { %8214 = vmatmul.mubr.msk.bf16.gmra.mrb[140].mxu1 %vm2190_vm2, %v5017_v20  ;;  %v5005_v19 = vmul.f32 %v9041_v4, %v11719_v41  ;;  %v13231_v41 = vld [vmem:[#allocation69_spill] sm:$0xff]  ;;  %v5625_v6 = vsel %vm1797_vm1, %v13230_v26, 0 }
 0xafa   : > { %v9043_v57 = vpop.eup %9042 }
 0xafb   : > { %v5002_v56 = vmul.f32 %v9043_v57, %v11733_v18  ;;  %v5023_v63 = vpack.c.bf16 %v5005_v19, %v5004_v45  ;;  %v5727_v18 = vsel %vm1797_vm1, %v13229_v23, 0 }
 0xafd   : > { %v5022_v54 = vpack.c.bf16 %v5003_v5, %v5002_v56 }
 0xafe   : > { %8256 = vmatpush3.bf16.xpose.msra.mxu0 %v5526_v34 }
 0xaff   : > { %8489 = vmatprep.subr.msk.bf16.mxu0 %vm1797_vm1, %v13229_v23  ;;  %8241 = vmatprep.mubr.msk.bf16.mxu1 %vm2190_vm2, %v5022_v54 }
 0xb01   : > { %8242 = vmatmul.mubr.msk.bf16.vlgmr.msra.gmra.mrb[144].mxu1 %vm2190_vm2, %v5023_v63 }
 0xb02   : > { %8266 = vmatpush3.bf16.xpose.msra.mxu1 %v5622_v46 }
 0xb03   : > { %8486 = vmatprep.subr.msk.bf16.mxu1 %vm1797_vm1, %v13230_v26 }
 0xb05   : > { %8258 = vmatmul.mubr.msk.bf16.vlgmr.msra.gmra.mrb[136].mxu0 %vm1797_vm1, %v13231_v41 }
 0xb06   : > { %8261 = vmatprep.mubr.msk.bf16.mxu0 %vm1797_vm1, %v13232_v11  ;;  %8282 = vmatpush3.bf16.xpose.msra.mxu0 %v5727_v18 }
 0xb0a   : > { %8268 = vmatpush3.bf16.xpose.msra.mxu1 %v5625_v6 }
 0xb0b   : > { %8487 = vmatprep.subr.msk.bf16.mxu1 %vm1797_vm1, %v13233_v48 }
 0xb0d   : > { %8262 = vmatmul.mubr.msk.bf16.gmra.mrb[140].mxu0 %vm1797_vm1, %v5495_v7 }
 0xb12   : > { %8270 = vmatpush3.bf16.xpose.msra.mxu1 %v5628_v60 }
 0xb13   : > { %8488 = vmatprep.subr.msk.bf16.mxu1 %vm1797_vm1, %v5608_v37 }
 0xb1a   : > { %8272 = vmatpush3.bf16.xpose.msra.mxu1 %v5631_v15 }
 0xb20   : > { %v4936_v36 = vpop.xlane.xlu1 %4935 }
 0xb24   : > { %v4942_v27 = vpop.xlane.xlu0 %4941  ;;  %v4945_v1 = vpop.xlane.xlu1 %4944 }
 0xb25   : > { %9044 = vrcp.f32 %v4942_v27 }
 0xb26   : > { %9046 = vrcp.f32 %v4945_v1 }
 0xb27   : > { %9048 = vrcp.f32 %v4936_v36 }
 0xb28   : > { %v4939_v0 = vpop.xlane.xlu0 %4938  ;;  %v5594_v53 = vpop.permute.xlu1 %5593 }
 0xb29   : > { %9050 = vrcp.f32 %v4939_v0 }
 0xb2c   : > { %v5709_v14 = vpop.permute.xlu0 %5708  ;;  %v5711_v25 = vpop.permute.xlu1 %5710 }
 0xb2d   : > { %8490 = vmatprep.subr.msk.bf16.mxu0 %vm1797_vm1, %v5709_v14  ;;  %v5730_v8 = vsel %vm1797_vm1, %v5709_v14, 0  ;;  %v5733_v10 = vsel %vm1797_vm1, %v5711_v25, 0 }
 0xb2e   : > { %8284 = vmatpush3.bf16.xpose.msra.mxu0 %v5730_v8 }
 0xb2f   : > { %v9045_v62 = vpop.eup %9044  ;;  %8491 = vmatprep.subr.msk.bf16.mxu0 %vm1797_vm1, %v5711_v25 }
 0xb30   : > { %v9047_v52 = vpop.eup %9046  ;;  %v5596_v32 = vpop.permute.xlu0 %5595  ;;  %v5008_v50 = vmul.f32 %v9045_v62, %v11747_v21 }
 0xb31   : > { %v5598_v44 = vpop.permute.xlu1 %5597  ;;  %v9049_v58 = vpop.eup %9048  ;;  %v5009_v39 = vmul.f32 %v9047_v52, %v11749_v2 }
 0xb32   : > { %v5006_v28 = vmul.f32 %v9049_v58, %v11745_v35 }
 0xb33   : > { %v9051_v33 = vpop.eup %9050  ;;  %v5025_v59 = vpack.c.bf16 %v5009_v39, %v5008_v50 }
 0xb34   : > { %v5812_v42 = vpop.permute.xlu0 %5811  ;;  %v5007_v31 = vmul.f32 %v9051_v33, %v11758_v38 }
 0xb35   : > { %v5713_v24 = vpop.permute.xlu1 %5712  ;;  %8493 = vmatprep.subr.msk.bf16.mxu1 %vm1797_vm1, %v5812_v42  ;;  %v5832_v51 = vsel %vm1797_vm1, %v5812_v42, 0 }
 0xb36   : > { %8286 = vmatpush3.bf16.xpose.msra.mxu0 %v5733_v10  ;;  %v5024_v3 = vpack.c.bf16 %v5007_v31, %v5006_v28  ;;  %v5736_v38 = vsel %vm1797_vm1, %v5713_v24, 0 }
 0xb37   : > { %8492 = vmatprep.subr.msk.bf16.mxu0 %vm1797_vm1, %v5713_v24 }
 0xb38   : > { %v5600_v29 = vpop.permute.xlu0 %5599  ;;  %8245 = vmatprep.mubr.msk.bf16.mxu1 %vm2190_vm2, %v5024_v3 }
 0xb39   : > { %v5699_v21 = vpop.permute.xlu1 %5698  ;;  %8246 = vmatmul.mubr.msk.bf16.gmra.mrb[148].mxu1 %vm2190_vm2, %v5025_v59 }
 0xb3a   : > { %8289 = vmatprep.mubr.msk.bf16.mxu0 %vm1797_vm1, %v5699_v21  ;;  %8273 = vmatprep.mubr.msk.bf16.mxu1 %vm1797_vm1, %v5594_v53  ;;  %v12036_v21 = vld [vmem:[%s12817_s5 + $0xd0] sm:$0xff] }
 0xb3c   : > { %v5814_v35 = vpop.permute.xlu0 %5813 }
 0xb3d   : > { %v5816_v2 = vpop.permute.xlu1 %5815  ;;  %v5835_v43 = vsel %vm1797_vm1, %v5814_v35, 0 }
 0xb3e   : > { %8288 = vmatpush3.bf16.xpose.msra.mxu0 %v5736_v38  ;;  %v5838_v12 = vsel %vm1797_vm1, %v5816_v2, 0  ;;  %v12045_v38 = vld [vmem:[%s12817_s5 + $0xc0] sm:$0xff] }
 0xb40   : > { %v5701_v17 = vpop.permute.xlu0 %5700 }
 0xb41   : > { %8274 = vmatmul.mubr.msk.bf16.vlgmr.msra.gmra.mrb[152].mxu1 %vm1797_vm1, %v5596_v32  ;;  %v5705_v9 = vpop.permute.xlu1 %5704 }
 0xb42   : > { %8298 = vmatpush3.bf16.xpose.msra.mxu1 %v5832_v51  ;;  %8277 = vmatprep.mubr.msk.bf16.mxu1 %vm1797_vm1, %v5598_v44 }
 0xb43   : > { %8494 = vmatprep.subr.msk.bf16.mxu1 %vm1797_vm1, %v5814_v35 }
 0xb44   : > { %v5703_v61 = vpop.permute.xlu0 %5702 }
 0xb45   : > { %8290 = vmatmul.mubr.msk.bf16.vlgmr.msra.gmra.mrb[144].mxu0 %vm1797_vm1, %v5701_v17  ;;  %v5804_v49 = vpop.permute.xlu1 %5803 }
 0xb46   : > { %8293 = vmatprep.mubr.msk.bf16.mxu0 %vm1797_vm1, %v5703_v61 }
 0xb48   : > { %v5818_v55 = vpop.permute.xlu0 %5817 }
 0xb49   : > { %8278 = vmatmul.mubr.msk.bf16.gmra.mrb[156].mxu1 %vm1797_vm1, %v5600_v29  ;;  %v5808_v40 = vpop.permute.xlu1 %5807  ;;  %v5841_v22 = vsel %vm1797_vm1, %v5818_v55, 0 }
 0xb4a   : > { %8300 = vmatpush3.bf16.xpose.msra.mxu1 %v5835_v43  ;;  %8305 = vmatprep.mubr.msk.bf16.mxu1 %vm1797_vm1, %v5804_v49  ;;  %v12055_v49 = vld [vmem:[%s12817_s5 + $0xd8] sm:$0xff] }
 0xb4b   : > { %8495 = vmatprep.subr.msk.bf16.mxu1 %vm1797_vm1, %v5816_v2 }
 0xb4c   : > { %v5806_v47 = vpop.permute.xlu0 %5805 }
 0xb4d   : > { %8294 = vmatmul.mubr.msk.bf16.gmra.mrb[148].mxu0 %vm1797_vm1, %v5705_v9  ;;  %v6279_v13 = vpop.permute.xlu1 %6278 }
 0xb50   : > { %v5810_v16 = vpop.permute.xlu0 %5809 }
 0xb51   : > { %v6366_v4 = vpop.permute.xlu1 %6365 }
 0xb52   : > { %8302 = vmatpush3.bf16.xpose.msra.mxu1 %v5838_v12 }
 0xb53   : > { %8496 = vmatprep.subr.msk.bf16.mxu1 %vm1797_vm1, %v5818_v55  ;;  %v12060_v55 = vld [vmem:[%s12817_s5 + $0xc8] sm:$0xff] }
 0xb54   : > { %v6277_v30 = vpop.permute.xlu0 %6276 }
 0xb55   : > { %8313 = vmatprep.subr.bf16.mxu0 %v6277_v30  ;;  %v6368_v56 = vpop.permute.xlu1 %6367 }
 0xb56   : > { %8314 = vmatpush3.bf16.msra.mxu0 %v6277_v30 }
 0xb57   : > { %8315 = vmatprep.subr.bf16.mxu0 %v6279_v13 }
 0xb58   : > { %v6281_v20 = vpop.permute.xlu0 %6280 }
 0xb59   : > { %v6372_v19 = vpop.permute.xlu1 %6371 }
 0xb5a   : > { %8304 = vmatpush3.bf16.xpose.msra.mxu1 %v5841_v22  ;;  %8316 = vmatpush3.bf16.msra.mxu0 %v6279_v13 }
 0xb5b   : > { %8329 = vmatprep.subr.bf16.mxu1 %v6366_v4  ;;  %8317 = vmatprep.subr.bf16.mxu0 %v6281_v20 }
 0xb5c   : > { %v6283_v57 = vpop.permute.xlu0 %6282 }
 0xb5e   : > { %8318 = vmatpush3.bf16.msra.mxu0 %v6281_v20  ;;  %v12078_v20 = vld [vmem:[%s12817_s5 + $0xf0] sm:$0xff] }
 0xb5f   : > { %8319 = vmatprep.subr.bf16.mxu0 %v6283_v57 }
 0xb60   : > { %v6370_v45 = vpop.permute.xlu0 %6369 }
 0xb61   : > { %8306 = vmatmul.mubr.msk.bf16.vlgmr.msra.gmra.mrb[160].mxu1 %vm1797_vm1, %v5806_v47 }
 0xb62   : > { %8309 = vmatprep.mubr.msk.bf16.mxu1 %vm1797_vm1, %v5808_v40  ;;  %8330 = vmatpush3.bf16.msra.mxu1 %v6366_v4 }
 0xb63   : > { %8320 = vmatpush3.bf16.msra.mxu0 %v6283_v57  ;;  %8331 = vmatprep.subr.bf16.mxu1 %v6368_v56  ;;  %v12085_v57 = vld [vmem:[%s12817_s5 + $0xe0] sm:$0xff] }
 0xb64   : > { %v11951_v5 = vpop.permute.xlu0 %6454 }
 0xb65   : > { %8345 = vmatprep.subr.bf16.mxu0 %v11951_v5 }
 0xb66   : > { %8332 = vmatpush3.bf16.msra.mxu1 %v6368_v56  ;;  %v12092_v56 = vld [vmem:[%s12817_s5 + $0xf8] sm:$0xff] }
 0xb67   : > { %8333 = vmatprep.subr.bf16.mxu1 %v6370_v45 }
 0xb69   : > { %8310 = vmatmul.mubr.msk.bf16.gmra.mrb[164].mxu1 %vm1797_vm1, %v5810_v16 }
 0xb6a   : > { %8334 = vmatpush3.bf16.msra.mxu1 %v6370_v45 }
 0xb6b   : > { %8335 = vmatprep.subr.bf16.mxu1 %v6372_v19 }
 0xb6e   : > { %8336 = vmatpush3.bf16.msra.mxu1 %v6372_v19 }
 0xb6f   : > { %v11955_v34 = vpop.f32.mrb[120].mxu0 }
 0xb70   : > { %v11957_v54 = vpop.f32.mrb[121].mxu0 }
 0xb71   : > { %v11959_v63 = vpop.f32.mrb[122].mxu0 }
 0xb72   : > { %v11963_v46 = vpop.f32.mrb[123].mxu0 }
 0xba7   : > { %v11967_v41 = vpop.f32.mrb[124].mxu0 }
 0xba8   : > { %v11969_v18 = vpop.f32.mrb[125].mxu0 }
 0xba9   : > { %v11971_v11 = vpop.f32.mrb[126].mxu0 }
 0xbaa   : > { %v11975_v48 = vpop.f32.mrb[127].mxu0 }
 0xbb7   : > { %v11979_v60 = vpop.f32.mrb[128].mxu0 }
 0xbb8   : > { %13234 = vst [vmem:[#allocation22_spill] sm:$0xff] %v11979_v60  ;;  %v11981_v37 = vpop.f32.mrb[129].mxu0 }
 0xbb9   : > { %13235 = vst [vmem:[#allocation10_spill] sm:$0xff] %v11981_v37  ;;  %v11983_v15 = vpop.f32.mrb[130].mxu0 }
 0xbba   : > { %13236 = vst [vmem:[#allocation7_spill] sm:$0xff] %v11983_v15  ;;  %v11987_v27 = vpop.f32.mrb[131].mxu0 }
 0xbbb   : > { %13237 = vst [vmem:[#allocation12_spill] sm:$0xff] %v11987_v27  ;;  %v11991_v0 = vpop.f32.mrb[136].mxu1 }
 0xbbc   : > { %v11993_v53 = vpop.f32.mrb[137].mxu1 }
 0xbbd   : > { %v11995_v14 = vpop.f32.mrb[138].mxu1 }
 0xbbe   : > { %v11999_v8 = vpop.f32.mrb[139].mxu1 }
 0xbc8   : > { %v12003_v52 = vpop.f32.mrb[132].mxu0 }
 0xbc9   : > { %13238 = vst [vmem:[#allocation8_spill] sm:$0xff] %v12003_v52  ;;  %v12005_v32 = vpop.f32.mrb[133].mxu0 }
 0xbca   : > { %13239 = vst [vmem:[#allocation27_spill] sm:$0xff] %v12005_v32  ;;  %v12007_v44 = vpop.f32.mrb[134].mxu0 }
 0xbcb   : > { %13240 = vst [vmem:[#allocation26_spill] sm:$0xff] %v12007_v44  ;;  %v12011_v33 = vpop.f32.mrb[135].mxu0 }
 0xbcc   : > { %13241 = vst [vmem:[#allocation33_spill] sm:$0xff] %v12011_v33  ;;  %v12015_v39 = vpop.f32.mrb[140].mxu1 }
 0xbcd   : > { %v12017_v42 = vpop.f32.mrb[141].mxu1 }
 0xbce   : > { %v12019_v24 = vpop.f32.mrb[142].mxu1 }
 0xbcf   : > { %v12023_v31 = vpop.f32.mrb[143].mxu1 }
 0xbd4   : > { %v12027_v3 = vpop.f32.mrb[144].mxu1 }
 0xbd5   : > { %13242 = vst [vmem:[#allocation11_spill] sm:$0xff] %v12027_v3  ;;  %v12029_v59 = vpop.f32.mrb[145].mxu1 }
 0xbd6   : > { %13243 = vst [vmem:[#allocation30_spill] sm:$0xff] %v12029_v59  ;;  %v12031_v29 = vpop.f32.mrb[146].mxu1 }
 0xbd7   : > { %13244 = vst [vmem:[#allocation13_spill] sm:$0xff] %v12031_v29  ;;  %v12040_v2 = vpop.f32.mrb[147].mxu1 }
 0xbd8   : > { %13245 = vst [vmem:[#allocation34_spill] sm:$0xff] %v12040_v2  ;;  %v8259_v51 = vpop.f32.mrb[136].mxu0 }
 0xbd9   : > { %v12050_v9 = vadd.f32 %v8259_v51, %v12036_v21  ;;  %v5562_v61 = vpop.f32.mrb[137].mxu0 }
 0xbda   : > { %v12063_v43 = vadd.f32 %v12045_v38, %v5562_v61  ;;  %v8260_v47 = vpop.f32.mrb[138].mxu0 }
 0xbdb   : > { %v5565_v40 = vpop.f32.mrb[139].mxu0  ;;  %v5914_v16 = vsel %vm2190_vm2, %v12050_v9, -inf  ;;  %v12068_v12 = vadd.f32 %v8260_v47, %v12055_v49  ;;  %v12100_v47 = vld [vmem:[%s12817_s5 + $0xe8] sm:$0xff] }
 0xbdc   : > { %v12071_v13 = vadd.f32 %v12060_v55, %v5565_v40  ;;  %5915 = vmax.xlane.f32.xlu0 %v5914_v16  ;;  %v5908_v30 = vsel %vm2190_vm2, %v12063_v43, -inf }
 0xbdd   : > { %5909 = vmax.xlane.f32.xlu1 %v5908_v30  ;;  %v5917_v45 = vsel %vm2190_vm2, %v12068_v12, -inf }
 0xbde   : > { %v5911_v22 = vsel %vm2190_vm2, %v12071_v13, -inf }
 0xbe0   : > { %v8263_v4 = vpop.f32.mrb[140].mxu0  ;;  %5912 = vmax.xlane.f32.xlu0 %v5911_v22 }
 0xbe1   : > { %v12095_v19 = vadd.f32 %v8263_v4, %v12078_v20  ;;  %v5578_v51 = vpop.f32.mrb[141].mxu0  ;;  %5918 = vmax.xlane.f32.xlu1 %v5917_v45 }
 0xbe2   : > { %v8264_v61 = vpop.f32.mrb[142].mxu0  ;;  %v12103_v40 = vadd.f32 %v12085_v57, %v5578_v51 }
 0xbe3   : > { %v12106_v16 = vadd.f32 %v8264_v61, %v12092_v56  ;;  %v5581_v30 = vpop.f32.mrb[143].mxu0  ;;  %v5926_v22 = vsel %vm2190_vm2, %v12095_v19, -inf }
 0xbe4   : > { %5927 = vmax.xlane.f32.xlu0 %v5926_v22  ;;  %v12111_v4 = vadd.f32 %v12100_v47, %v5581_v30  ;;  %v5920_v35 = vsel %vm2190_vm2, %v12103_v40, -inf }
 0xbe5   : > { %v5929_v45 = vsel %vm2190_vm2, %v12106_v16, -inf }
 0xbe6   : > { %5930 = vmax.xlane.f32.xlu1 %v5929_v45  ;;  %v5923_v51 = vsel %vm2190_vm2, %v12111_v4, -inf }
 0xbe8   : > { %5921 = vmax.xlane.f32.xlu0 %v5920_v35 }
 0xbea   : > { %5924 = vmax.xlane.f32.xlu1 %v5923_v51 }
 0xc0c   : > { %v12119_v61 = vpop.f32.mrb[148].mxu1 }
 0xc0d   : > { %13246 = vst [vmem:[#allocation29_spill] sm:$0xff] %v12119_v61  ;;  %v12121_v17 = vpop.f32.mrb[149].mxu1 }
 0xc0e   : > { %13247 = vst [vmem:[#allocation32_spill] sm:$0xff] %v12121_v17  ;;  %v12123_v22 = vpop.f32.mrb[150].mxu1 }
 0xc0f   : > { %13248 = vst [vmem:[#allocation31_spill] sm:$0xff] %v12123_v22  ;;  %v12127_v50 = vpop.f32.mrb[151].mxu1 }
 0xc10   : > { %13249 = vst [vmem:[#allocation36_spill] sm:$0xff] %v12127_v50 }
 0xc14   : > { %v8275_v58 = vpop.f32.mrb[152].mxu1 }
 0xc15   : > { %v12132_v35 = vadd.f32 %v8275_v58, %v12036_v21  ;;  %v5667_v1 = vpop.f32.mrb[153].mxu1 }
 0xc16   : > { %v8276_v51 = vpop.f32.mrb[154].mxu1  ;;  %v12145_v62 = vadd.f32 %v12045_v38, %v5667_v1 }
 0xc17   : > { %v12135_v36 = vadd.f32 %v8276_v51, %v12055_v49  ;;  %v5670_v28 = vpop.f32.mrb[155].mxu1  ;;  %v5938_v25 = vsel %vm2190_vm2, %v12132_v35, -inf }
 0xc18   : > { %5939 = vmax.xlane.f32.xlu0 %v5938_v25  ;;  %v8291_v30 = vpop.f32.mrb[144].mxu0  ;;  %v5932_v50 = vsel %vm2190_vm2, %v12145_v62, -inf }
 0xc19   : > { %v12140_v10 = vadd.f32 %v8291_v30, %v12036_v21  ;;  %v5772_v6 = vpop.f32.mrb[145].mxu0  ;;  %v5941_v45 = vsel %vm2190_vm2, %v12135_v36, -inf  ;;  %v12153_v30 = vadd.f32 %v12060_v55, %v5670_v28 }
 0xc1a   : > { %5942 = vmax.xlane.f32.xlu1 %v5941_v45  ;;  %v8292_v58 = vpop.f32.mrb[146].mxu0  ;;  %v12158_v1 = vadd.f32 %v12045_v38, %v5772_v6 }
 0xc1b   : > { %v12148_v51 = vadd.f32 %v8292_v58, %v12055_v49  ;;  %v5775_v23 = vpop.f32.mrb[147].mxu0  ;;  %v5962_v25 = vsel %vm2190_vm2, %v12140_v10, -inf  ;;  %v5935_v22 = vsel %vm2190_vm2, %v12153_v30, -inf }
 0xc1c   : > { %v8279_v7 = vpop.f32.mrb[156].mxu1  ;;  %5963 = vmax.xlane.f32.xlu0 %v5962_v25  ;;  %v12163_v25 = vadd.f32 %v12060_v55, %v5775_v23  ;;  %v5956_v29 = vsel %vm2190_vm2, %v12158_v1, -inf }
 0xc1d   : > { %v5683_v26 = vpop.f32.mrb[157].mxu1  ;;  %v5965_v45 = vsel %vm2190_vm2, %v12148_v51, -inf }
 0xc1e   : > { %v8280_v17 = vpop.f32.mrb[158].mxu1  ;;  %5966 = vmax.xlane.f32.xlu1 %v5965_v45  ;;  %v12168_v45 = vadd.f32 %v8279_v7, %v12078_v20  ;;  %v5959_v23 = vsel %vm2190_vm2, %v12163_v25, -inf }
 0xc1f   : > { %v5686_v58 = vpop.f32.mrb[159].mxu1 }
 0xc20   : > { %5933 = vmax.xlane.f32.xlu0 %v5932_v50  ;;  %v8295_v61 = vpop.f32.mrb[148].mxu0  ;;  %v12173_v50 = vadd.f32 %v8280_v17, %v12092_v56  ;;  %v12188_v17 = vadd.f32 %v12085_v57, %v5683_v26 }
 0xc21   : > { %v5788_v28 = vpop.f32.mrb[149].mxu0  ;;  %v12178_v59 = vadd.f32 %v8295_v61, %v12078_v20  ;;  %v12193_v61 = vadd.f32 %v12100_v47, %v5686_v58 }
 0xc22   : > { %5936 = vmax.xlane.f32.xlu1 %v5935_v22  ;;  %v8296_v3 = vpop.f32.mrb[150].mxu0  ;;  %v5950_v22 = vsel %vm2190_vm2, %v12168_v45, -inf }
 0xc23   : > { %v5791_v6 = vpop.f32.mrb[151].mxu0  ;;  %v12183_v7 = vadd.f32 %v8296_v3, %v12092_v56  ;;  %v12198_v3 = vadd.f32 %v12085_v57, %v5788_v28 }
 0xc24   : > { %5957 = vmax.xlane.f32.xlu0 %v5956_v29  ;;  %v5953_v29 = vsel %vm2190_vm2, %v12173_v50, -inf  ;;  %v12203_v26 = vadd.f32 %v12100_v47, %v5791_v6 }
 0xc25   : > { %v5968_v58 = vsel %vm2190_vm2, %v12198_v3, -inf }
 0xc26   : > { %5960 = vmax.xlane.f32.xlu1 %v5959_v23  ;;  %v5974_v23 = vsel %vm2190_vm2, %v12178_v59, -inf  ;;  %v5971_v32 = vsel %vm2190_vm2, %v12203_v26, -inf }
 0xc28   : > { %5951 = vmax.xlane.f32.xlu0 %v5950_v22  ;;  %v5977_v22 = vsel %vm2190_vm2, %v12183_v7, -inf }
 0xc2a   : > { %5954 = vmax.xlane.f32.xlu1 %v5953_v29  ;;  %v5944_v29 = vsel %vm2190_vm2, %v12188_v17, -inf }
 0xc2c   : > { %5975 = vmax.xlane.f32.xlu0 %v5974_v23  ;;  %v5947_v23 = vsel %vm2190_vm2, %v12193_v61, -inf }
 0xc2e   : > { %5978 = vmax.xlane.f32.xlu1 %v5977_v22 }
 0xc30   : > { %5945 = vmax.xlane.f32.xlu0 %v5944_v29 }
 0xc32   : > { %5948 = vmax.xlane.f32.xlu1 %v5947_v23 }
 0xc34   : > { %v8307_v2 = vpop.f32.mrb[160].mxu1  ;;  %5969 = vmax.xlane.f32.xlu0 %v5968_v58 }
 0xc35   : > { %v12210_v22 = vadd.f32 %v8307_v2, %v12036_v21  ;;  %v5877_v28 = vpop.f32.mrb[161].mxu1 }
 0xc36   : > { %v8308_v29 = vpop.f32.mrb[162].mxu1  ;;  %5972 = vmax.xlane.f32.xlu1 %v5971_v32  ;;  %v12215_v6 = vadd.f32 %v12045_v38, %v5877_v28 }
 0xc37   : > { %v12218_v33 = vadd.f32 %v8308_v29, %v12055_v49  ;;  %v5880_v23 = vpop.f32.mrb[163].mxu1  ;;  %v5986_v52 = vsel %vm2190_vm2, %v12210_v22, -inf }
 0xc38   : > { %5987 = vmax.xlane.f32.xlu0 %v5986_v52  ;;  %v12223_v21 = vadd.f32 %v12060_v55, %v5880_v23  ;;  %v5980_v32 = vsel %vm2190_vm2, %v12215_v6, -inf }
 0xc39   : > { %v5989_v2 = vsel %vm2190_vm2, %v12218_v33, -inf }
 0xc3a   : > { %5990 = vmax.xlane.f32.xlu1 %v5989_v2  ;;  %v5983_v28 = vsel %vm2190_vm2, %v12223_v21, -inf }
 0xc3c   : > { %v8311_v38 = vpop.f32.mrb[164].mxu1  ;;  %5981 = vmax.xlane.f32.xlu0 %v5980_v32 }
 0xc3d   : > { %v12230_v49 = vadd.f32 %v8311_v38, %v12078_v20  ;;  %v5893_v58 = vpop.f32.mrb[165].mxu1 }
 0xc3e   : > { %v8312_v52 = vpop.f32.mrb[166].mxu1  ;;  %5984 = vmax.xlane.f32.xlu1 %v5983_v28  ;;  %v12235_v55 = vadd.f32 %v12085_v57, %v5893_v58  ;;  %v13251_v58 = vld [vmem:[#allocation40_spill] sm:$0xff]  ;;  %v12257_v28 = vpop.permute.xlu0 %6458 }
 0xc3f   : > { %v12238_v29 = vadd.f32 %v8312_v52, %v12092_v56  ;;  %v5896_v23 = vpop.f32.mrb[167].mxu1  ;;  %v5998_v2 = vsel %vm2190_vm2, %v12230_v49, -inf  ;;  %v13250_v56 = vld [vmem:[#allocation38_spill] sm:$0xff]  ;;  %13252 = vst [vmem:[#allocation28_spill] sm:$0xff] %v12257_v28 }
 0xc40   : > { %5999 = vmax.xlane.f32.xlu0 %v5998_v2  ;;  %v12243_v20 = vadd.f32 %v12100_v47, %v5896_v23  ;;  %v5992_v38 = vsel %vm2190_vm2, %v12235_v55, -inf  ;;  %v12255_v47 = vpop.permute.xlu1 %6456 }
 0xc41   : > { %v6001_v32 = vsel %vm2190_vm2, %v12238_v29, -inf }
 0xc42   : > { %6002 = vmax.xlane.f32.xlu1 %v6001_v32  ;;  %v5995_v57 = vsel %vm2190_vm2, %v12243_v20, -inf }
 0xc44   : > { %5993 = vmax.xlane.f32.xlu0 %v5992_v38  ;;  %v12259_v52 = vpop.permute.xlu1 %6460 }
 0xc45   : > { %13253 = vst [vmem:[#allocation37_spill] sm:$0xff] %v12259_v52 }
 0xc46   : > { %5996 = vmax.xlane.f32.xlu1 %v5995_v57 }
 0xc57   : > { %6545 = vrot.lane.b32.xlu1 %v13250_v56, %s9199_s28 }
 0xc5a   : > { %6543 = vrot.lane.b32.xlu0 %v13251_v58, %s9199_s28 }
 0xc69   : > { %v5916_v23 = vpop.xlane.xlu0 %5915 }
 0xc6a   : > { %v6006_v2 = vsub.f32 %v12050_v9, %v5916_v23  ;;  %v5910_v32 = vpop.xlane.xlu1 %5909 }
 0xc6b   : > { %v6004_v38 = vsub.f32 %v12063_v43, %v5910_v32 }
 0xc6c   : > { %v6040_v44 = vmul.f32 1.442695, %v6006_v2 }
 0xc6d   : > { %v6036_v57 = vmul.f32 1.442695, %v6004_v38  ;;  %v5913_v37 = vpop.xlane.xlu0 %5912 }
 0xc6e   : > { %9052 = vpow2.f32 %v6040_v44  ;;  %v6005_v56 = vsub.f32 %v12071_v13, %v5913_v37  ;;  %v5919_v27 = vpop.xlane.xlu1 %5918 }
 0xc6f   : > { %v6007_v58 = vsub.f32 %v12068_v12, %v5919_v27  ;;  %9054 = vpow2.f32 %v6036_v57 }
 0xc70   : > { %v6038_v60 = vmul.f32 1.442695, %v6005_v56 }
 0xc71   : > { %v6042_v15 = vmul.f32 1.442695, %v6007_v58  ;;  %v5928_v28 = vpop.xlane.xlu0 %5927 }
 0xc72   : > { %v6010_v52 = vsub.f32 %v12095_v19, %v5928_v28 }
 0xc73   : > { %9056 = vpow2.f32 %v6042_v15  ;;  %v5931_v9 = vpop.xlane.xlu1 %5930 }
 0xc74   : > { %v6048_v23 = vmul.f32 1.442695, %v6010_v52  ;;  %v6011_v43 = vsub.f32 %v12106_v16, %v5931_v9  ;;  %9058 = vpow2.f32 %v6038_v60 }
 0xc75   : > { %v5922_v2 = vpop.xlane.xlu0 %5921 }
 0xc76   : > { %9060 = vpow2.f32 %v6048_v23  ;;  %v6050_v44 = vmul.f32 1.442695, %v6011_v43  ;;  %v6008_v37 = vsub.f32 %v12103_v40, %v5922_v2 }
 0xc77   : > { %v5925_v13 = vpop.xlane.xlu1 %5924 }
 0xc78   : > { %v12268_v32 = vpop.eup %9052  ;;  %v6044_v27 = vmul.f32 1.442695, %v6008_v37  ;;  %v6009_v12 = vsub.f32 %v12111_v4, %v5925_v13  ;;  %9062 = vpow2.f32 %v6050_v44 }
 0xc79   : > { %v6106_v15 = vsel %vm2190_vm2, %v12268_v32, 0.0  ;;  %v12273_v19 = vpop.eup %9054 }
 0xc7a   : > { %9064 = vpow2.f32 %v6044_v27  ;;  %v6046_v16 = vmul.f32 1.442695, %v6009_v12  ;;  %6107 = vadd.xlane.f32.xlu0 %v6106_v15  ;;  %v6100_v40 = vsel %vm2190_vm2, %v12273_v19, 0.0 }
 0xc7c   : > { %9066 = vpow2.f32 %v6046_v16 }
 0xc7d   : > { %v12275_v60 = vpop.eup %9056 }
 0xc7e   : > { %6101 = vadd.xlane.f32.xlu0 %v6100_v40  ;;  %v6109_v28 = vsel %vm2190_vm2, %v12275_v60, 0.0  ;;  %v12281_v4 = vpop.eup %9058 }
 0xc7f   : > { %6110 = vadd.xlane.f32.xlu1 %v6109_v28  ;;  %v6103_v57 = vsel %vm2190_vm2, %v12281_v4, 0.0 }
 0xc80   : > { %v12283_v52 = vpop.eup %9060 }
 0xc81   : > { %13254 = vst [vmem:[#allocation63_spill] sm:$0xff] %v12283_v52  ;;  %v6118_v38 = vsel %vm2190_vm2, %v12283_v52, 0.0 }
 0xc82   : > { %6119 = vadd.xlane.f32.xlu0 %v6118_v38  ;;  %v12289_v56 = vpop.eup %9062 }
 0xc83   : > { %6104 = vadd.xlane.f32.xlu1 %v6103_v57  ;;  %v6121_v23 = vsel %vm2190_vm2, %v12289_v56, 0.0 }
 0xc84   : > { %v12291_v58 = vpop.eup %9064 }
 0xc85   : > { %v6112_v9 = vsel %vm2190_vm2, %v12291_v58, 0.0 }
 0xc86   : > { %6113 = vadd.xlane.f32.xlu0 %v6112_v9  ;;  %v12297_v43 = vpop.eup %9066 }
 0xc87   : > { %6122 = vadd.xlane.f32.xlu1 %v6121_v23  ;;  %v6115_v2 = vsel %vm2190_vm2, %v12297_v43, 0.0 }
 0xc8b   : > { %6116 = vadd.xlane.f32.xlu1 %v6115_v2 }
 0xca5   : > { %v5940_v44 = vpop.xlane.xlu0 %5939 }
 0xca6   : > { %v6014_v37 = vsub.f32 %v12132_v35, %v5940_v44 }
 0xca7   : > { %v5943_v13 = vpop.xlane.xlu1 %5942 }
 0xca8   : > { %v6056_v27 = vmul.f32 1.442695, %v6014_v37  ;;  %v6015_v40 = vsub.f32 %v12135_v36, %v5943_v13 }
 0xca9   : > { %v5964_v12 = vpop.xlane.xlu0 %5963 }
 0xcaa   : > { %9068 = vpow2.f32 %v6056_v27  ;;  %v6022_v15 = vsub.f32 %v12140_v10, %v5964_v12  ;;  %v6058_v2 = vmul.f32 1.442695, %v6015_v40 }
 0xcab   : > { %v5967_v16 = vpop.xlane.xlu1 %5966 }
 0xcac   : > { %v6072_v28 = vmul.f32 1.442695, %v6022_v15  ;;  %v6023_v9 = vsub.f32 %v12148_v51, %v5967_v16 }
 0xcad   : > { %v5934_v38 = vpop.xlane.xlu0 %5933 }
 0xcae   : > { %9070 = vpow2.f32 %v6072_v28  ;;  %v6012_v57 = vsub.f32 %v12145_v62, %v5934_v38  ;;  %v6074_v10 = vmul.f32 1.442695, %v6023_v9 }
 0xcaf   : > { %v5937_v23 = vpop.xlane.xlu1 %5936 }
 0xcb0   : > { %v6052_v52 = vmul.f32 1.442695, %v6012_v57  ;;  %v6013_v35 = vsub.f32 %v12153_v30, %v5937_v23 }
 0xcb1   : > { %v5958_v44 = vpop.xlane.xlu0 %5957 }
 0xcb2   : > { %9072 = vpow2.f32 %v6052_v52  ;;  %v6020_v37 = vsub.f32 %v12158_v1, %v5958_v44  ;;  %v6054_v36 = vmul.f32 1.442695, %v6013_v35 }
 0xcb3   : > { %v5961_v27 = vpop.xlane.xlu1 %5960  ;;  %9074 = vpow2.f32 %v6058_v2 }
 0xcb4   : > { %v12308_v12 = vpop.eup %9068  ;;  %v6068_v13 = vmul.f32 1.442695, %v6020_v37  ;;  %v6021_v62 = vsub.f32 %v12163_v25, %v5961_v27 }
 0xcb5   : > { %v5952_v15 = vpop.xlane.xlu0 %5951  ;;  %v6130_v51 = vsel %vm2190_vm2, %v12308_v12, 0.0 }
 0xcb6   : > { %9076 = vpow2.f32 %v6068_v13  ;;  %v6018_v30 = vsub.f32 %v12168_v45, %v5952_v15  ;;  %6131 = vadd.xlane.f32.xlu1 %v6130_v51  ;;  %v6070_v52 = vmul.f32 1.442695, %v6021_v62 }
 0xcb7   : > { %9078 = vpow2.f32 %v6074_v10  ;;  %v5955_v1 = vpop.xlane.xlu1 %5954 }
 0xcb8   : > { %v12314_v16 = vpop.eup %9070  ;;  %9080 = vpow2.f32 %v6054_v36  ;;  %v6064_v40 = vmul.f32 1.442695, %v6018_v30  ;;  %v6019_v45 = vsub.f32 %v12173_v50, %v5955_v1 }
 0xcb9   : > { %v5976_v28 = vpop.xlane.xlu0 %5975  ;;  %v6154_v38 = vsel %vm2190_vm2, %v12314_v16, 0.0  ;;  %9082 = vpow2.f32 %v6070_v52 }
 0xcba   : > { %v6026_v25 = vsub.f32 %v12178_v59, %v5976_v28  ;;  %6155 = vadd.xlane.f32.xlu0 %v6154_v38  ;;  %9084 = vpow2.f32 %v6064_v40  ;;  %v6066_v27 = vmul.f32 1.442695, %v6019_v45 }
 0xcbb   : > { %v5979_v57 = vpop.xlane.xlu1 %5978 }
 0xcbc   : > { %v12319_v9 = vpop.eup %9072  ;;  %v6080_v23 = vmul.f32 1.442695, %v6026_v25  ;;  %v6027_v36 = vsub.f32 %v12183_v7, %v5979_v57 }
 0xcbd   : > { %v5946_v2 = vpop.xlane.xlu0 %5945  ;;  %v6124_v35 = vsel %vm2190_vm2, %v12319_v9, 0.0  ;;  %v12324_v44 = vpop.eup %9074 }
 0xcbe   : > { %v6016_v37 = vsub.f32 %v12188_v17, %v5946_v2  ;;  %6125 = vadd.xlane.f32.xlu1 %v6124_v35  ;;  %9086 = vpow2.f32 %v6080_v23  ;;  %v6133_v17 = vsel %vm2190_vm2, %v12324_v44, 0.0  ;;  %v6082_v1 = vmul.f32 1.442695, %v6027_v36 }
 0xcbf   : > { %v5949_v10 = vpop.xlane.xlu1 %5948 }
 0xcc0   : > { %v12327_v59 = vpop.eup %9076  ;;  %v6060_v13 = vmul.f32 1.442695, %v6016_v37  ;;  %v6017_v50 = vsub.f32 %v12193_v61, %v5949_v10 }
 0xcc1   : > { %v12330_v62 = vpop.eup %9078  ;;  %v5970_v15 = vpop.xlane.xlu0 %5969  ;;  %v6148_v51 = vsel %vm2190_vm2, %v12327_v59, 0.0 }
 0xcc2   : > { %v12337_v30 = vpop.eup %9080  ;;  %9088 = vpow2.f32 %v6060_v13  ;;  %v6024_v52 = vsub.f32 %v12198_v3, %v5970_v15  ;;  %6149 = vadd.xlane.f32.xlu0 %v6148_v51  ;;  %6134 = vadd.xlane.f32.xlu1 %v6133_v17  ;;  %v6062_v38 = vmul.f32 1.442695, %v6017_v50  ;;  %v6157_v57 = vsel %vm2190_vm2, %v12330_v62, 0.0 }
 0xcc3   : > { %v5973_v7 = vpop.xlane.xlu1 %5972  ;;  %9090 = vpow2.f32 %v6066_v27  ;;  %v12341_v28 = vpop.eup %9082  ;;  %v6127_v45 = vsel %vm2190_vm2, %v12337_v30, 0.0 }
 0xcc4   : > { %v6076_v40 = vmul.f32 1.442695, %v6024_v52  ;;  %v6025_v61 = vsub.f32 %v12203_v26, %v5973_v7  ;;  %v12347_v23 = vpop.eup %9084  ;;  %v6151_v36 = vsel %vm2190_vm2, %v12341_v28, 0.0 }
 0xcc5   : > { %v5988_v25 = vpop.xlane.xlu0 %5987  ;;  %v6142_v27 = vsel %vm2190_vm2, %v12347_v23, 0.0 }
 0xcc6   : > { %9092 = vpow2.f32 %v6076_v40  ;;  %v6030_v3 = vsub.f32 %v12210_v22, %v5988_v25  ;;  %6158 = vadd.xlane.f32.xlu0 %v6157_v57  ;;  %6128 = vadd.xlane.f32.xlu1 %v6127_v45  ;;  %v6078_v26 = vmul.f32 1.442695, %v6025_v61 }
 0xcc7   : > { %v5991_v2 = vpop.xlane.xlu1 %5990  ;;  %9094 = vpow2.f32 %v6082_v1 }
 0xcc8   : > { %v6031_v35 = vsub.f32 %v12218_v33, %v5991_v2  ;;  %9096 = vpow2.f32 %v6062_v38  ;;  %v6088_v37 = vmul.f32 1.442695, %v6030_v3  ;;  %v12355_v13 = vpop.eup %9086 }
 0xcc9   : > { %v5982_v10 = vpop.xlane.xlu0 %5981  ;;  %9098 = vpow2.f32 %v6078_v26  ;;  %v6166_v1 = vsel %vm2190_vm2, %v12355_v13, 0.0 }
 0xcca   : > { %v6028_v22 = vsub.f32 %v12215_v6, %v5982_v10  ;;  %6143 = vadd.xlane.f32.xlu0 %v6142_v27  ;;  %6152 = vadd.xlane.f32.xlu1 %v6151_v36  ;;  %v6090_v33 = vmul.f32 1.442695, %v6031_v35  ;;  %9100 = vpow2.f32 %v6088_v37 }
 0xccb   : > { %v5985_v50 = vpop.xlane.xlu1 %5984 }
 0xccc   : > { %v12358_v15 = vpop.eup %9088  ;;  %v6029_v51 = vsub.f32 %v12223_v21, %v5985_v50  ;;  %v6084_v17 = vmul.f32 1.442695, %v6028_v22  ;;  %9102 = vpow2.f32 %v6090_v33 }
 0xccd   : > { %v6000_v52 = vpop.xlane.xlu0 %5999  ;;  %v6136_v7 = vsel %vm2190_vm2, %v12358_v15, 0.0  ;;  %v12365_v40 = vpop.eup %9090 }
 0xcce   : > { %v6034_v6 = vsub.f32 %v12230_v49, %v6000_v52  ;;  %6137 = vadd.xlane.f32.xlu0 %v6136_v7  ;;  %6167 = vadd.xlane.f32.xlu1 %v6166_v1  ;;  %v6086_v21 = vmul.f32 1.442695, %v6029_v51  ;;  %9104 = vpow2.f32 %v6084_v17  ;;  %v6145_v2 = vsel %vm2190_vm2, %v12365_v40, 0.0 }
 0xccf   : > { %v6003_v61 = vpop.xlane.xlu1 %6002 }
 0xcd0   : > { %v12368_v38 = vpop.eup %9092  ;;  %v6035_v25 = vsub.f32 %v12238_v29, %v6003_v61  ;;  %v6096_v57 = vmul.f32 1.442695, %v6034_v6  ;;  %9106 = vpow2.f32 %v6086_v21 }
 0xcd1   : > { %v5994_v45 = vpop.xlane.xlu0 %5993  ;;  %v6160_v3 = vsel %vm2190_vm2, %v12368_v38, 0.0  ;;  %v12375_v26 = vpop.eup %9094 }
 0xcd2   : > { %v6032_v49 = vsub.f32 %v12235_v55, %v5994_v45  ;;  %6161 = vadd.xlane.f32.xlu1 %v6160_v3  ;;  %6146 = vadd.xlane.f32.xlu0 %v6145_v2  ;;  %v12378_v35 = vpop.eup %9096  ;;  %v6098_v29 = vmul.f32 1.442695, %v6035_v25  ;;  %9108 = vpow2.f32 %v6096_v57  ;;  %v6169_v22 = vsel %vm2190_vm2, %v12375_v26, 0.0 }
 0xcd3   : > { %v5997_v37 = vpop.xlane.xlu1 %5996  ;;  %v12385_v50 = vpop.eup %9098  ;;  %v6139_v55 = vsel %vm2190_vm2, %v12378_v35, 0.0 }
 0xcd4   : > { %v6033_v10 = vsub.f32 %v12243_v20, %v5997_v37  ;;  %v6092_v27 = vmul.f32 1.442695, %v6032_v49  ;;  %v12390_v33 = vpop.eup %9100  ;;  %9110 = vpow2.f32 %v6098_v29  ;;  %v6163_v51 = vsel %vm2190_vm2, %v12385_v50, 0.0 }
 0xcd5   : > { %v12381_v36 = vpop.permute.xlu0 %6543  ;;  %v6178_v52 = vsel %vm2190_vm2, %v12390_v33, 0.0 }
 0xcd6   : > { %8361 = vmatprep.subr.bf16.mxu1 %v12381_v36  ;;  %6170 = vadd.xlane.f32.xlu0 %v6169_v22  ;;  %v6094_v20 = vmul.f32 1.442695, %v6033_v10  ;;  %9112 = vpow2.f32 %v6092_v27  ;;  %v12394_v17 = vpop.eup %9102  ;;  %v13255_v10 = vld [vmem:[#allocation41_spill] sm:$0xff]  ;;  %v13256_v27 = vld [vmem:[#allocation54_spill] sm:$0xff] }
 0xcd7   : > { %6140 = vadd.xlane.f32.xlu1 %v6139_v55  ;;  %v6181_v1 = vsel %vm2190_vm2, %v12394_v17, 0.0  ;;  %v13257_v22 = vld [vmem:[#allocation57_spill] sm:$0xff] }
 0xcd8   : > { %v12398_v7 = vpop.eup %9104  ;;  %9114 = vpow2.f32 %v6094_v20  ;;  %v13258_v55 = vpack.c.bf16 %v13256_v27, %v13257_v22  ;;  %v13259_v20 = vpack.c.bf16 %v11963_v46, %v11957_v54  ;;  %v13267_v54 = vpack.c.bf16 %v11975_v48, %v11969_v18  ;;  %v13269_v22 = vld [vmem:[#allocation17_spill] sm:$0xff] }
 0xcd9   : > { %v6172_v61 = vsel %vm2190_vm2, %v12398_v7, 0.0  ;;  %v13268_v46 = vpack.c.bf16 %v11959_v63, %v11955_v34  ;;  %v13275_v34 = vpack.c.bf16 %v11999_v8, %v11993_v53  ;;  %v13276_v63 = vpack.c.bf16 %v11971_v11, %v11967_v41 }
 0xcda   : > { %6164 = vadd.xlane.f32.xlu0 %v6163_v51  ;;  %v12402_v6 = vpop.eup %9106  ;;  %v13260_v51 = vld [vmem:[#allocation42_spill] sm:$0xff]  ;;  %v13283_v41 = vpack.c.bf16 %v12023_v31, %v12017_v42  ;;  %v13284_v11 = vpack.c.bf16 %v11995_v14, %v11991_v0  ;;  %v13289_v42 = vld [vmem:[#allocation48_spill] sm:$0xff] }
 0xcdb   : > { %6179 = vadd.xlane.f32.xlu1 %v6178_v52  ;;  %v6175_v25 = vsel %vm2190_vm2, %v12402_v6, 0.0  ;;  %v13261_v52 = vld [vmem:[#allocation9_spill] sm:$0xff] }
 0xcdc   : > { %v12406_v21 = vpop.eup %9108 }
 0xcdd   : > { %v6190_v45 = vsel %vm2190_vm2, %v12406_v21, 0.0 }
 0xcde   : > { %6182 = vadd.xlane.f32.xlu0 %v6181_v1  ;;  %v12410_v57 = vpop.eup %9110  ;;  %v13262_v1 = vld [vmem:[#allocation25_spill] sm:$0xff] }
 0xcdf   : > { %6173 = vadd.xlane.f32.xlu1 %v6172_v61  ;;  %v6193_v2 = vsel %vm2190_vm2, %v12410_v57, 0.0  ;;  %v13263_v61 = vpack.c.bf16 %v13261_v52, %v13262_v1  ;;  %v13273_v52 = vld [vmem:[#allocation53_spill] sm:$0xff] }
 0xce0   : > { %v12414_v3 = vpop.eup %9112 }
 0xce1   : > { %v6184_v37 = vsel %vm2190_vm2, %v12414_v3, 0.0 }
 0xce2   : > { %6176 = vadd.xlane.f32.xlu0 %v6175_v25  ;;  %v12418_v49 = vpop.eup %9114  ;;  %v13264_v25 = vld [vmem:[#allocation56_spill] sm:$0xff] }
 0xce3   : > { %6191 = vadd.xlane.f32.xlu1 %v6190_v45  ;;  %v6187_v29 = vsel %vm2190_vm2, %v12418_v49, 0.0  ;;  %v13265_v45 = vld [vmem:[#allocation52_spill] sm:$0xff] }
 0xce6   : > { %6194 = vadd.xlane.f32.xlu0 %v6193_v2  ;;  %v13266_v2 = vpack.c.bf16 %v13264_v25, %v13265_v45  ;;  %v13277_v45 = vld [vmem:[#allocation49_spill] sm:$0xff] }
 0xce7   : > { %6185 = vadd.xlane.f32.xlu1 %v6184_v37 }
 0xcea   : > { %6188 = vadd.xlane.f32.xlu0 %v6187_v29  ;;  %v12444_v29 = vpop.permute.xlu1 %6545 }
 0xcf8   : > { %6547 = vrot.lane.b32.xlu1 %v13255_v10, %s9199_s28 }
 0xcfc   : > { %4164 = vrot.lane.b32.xlu1 %v13258_v55, %s9200_s24  ;;  %v13270_v55 = vld [vmem:[#allocation19_spill] sm:$0xff] }
 0xd00   : > { %5414 = vrot.lane.b32.xlu1 %v13259_v20, %s9201_s25  ;;  %6549 = vrot.lane.b32.xlu0 %v13260_v51, %s9199_s28  ;;  %v13271_v20 = vpack.c.bf16 %v13269_v22, %v13270_v55  ;;  %v13272_v51 = vld [vmem:[#allocation5_spill] sm:$0xff] }
 0xd01   : > { %v13274_v1 = vpack.c.bf16 %v13272_v51, %v13273_v52  ;;  %v13285_v51 = vld [vmem:[#allocation43_spill] sm:$0xff]  ;;  %v13286_v52 = vld [vmem:[#allocation6_spill] sm:$0xff] }
 0xd04   : > { %4168 = vrot.lane.b32.xlu1 %v13263_v61, %s9200_s24  ;;  %4166 = vrot.lane.b32.xlu0 %v13266_v2, %s9200_s24  ;;  %v13278_v2 = vld [vmem:[#allocation3_spill] sm:$0xff] }
 0xd07   : > { %v6108_v37 = vpop.xlane.xlu0 %6107 }
 0xd08   : > { %5418 = vrot.lane.b32.xlu1 %v13267_v54, %s9201_s25  ;;  %5416 = vrot.lane.b32.xlu0 %v13268_v46, %s9201_s25  ;;  %v13279_v54 = vpack.c.bf16 %v13277_v45, %v13278_v2  ;;  %v13281_v46 = vld [vmem:[#allocation23_spill] sm:$0xff]  ;;  %v13293_v2 = vld [vmem:[#allocation46_spill] sm:$0xff] }
 0xd0b   : > { %v6102_v10 = vpop.xlane.xlu0 %6101 }
 0xd0c   : > { %v6111_v27 = vpop.xlane.xlu1 %6110  ;;  %4172 = vrot.lane.b32.xlu1 %v13271_v20, %s9200_s24  ;;  %4170 = vrot.lane.b32.xlu0 %v13274_v1, %s9200_s24  ;;  %v13287_v1 = vpack.c.bf16 %v13285_v51, %v13286_v52 }
 0xd0d   : > { %9116 = vrcp.f32 %v6111_v27 }
 0xd0e   : > { %9118 = vrcp.f32 %v6102_v10 }
 0xd0f   : > { %v6120_v18 = vpop.xlane.xlu0 %6119  ;;  %9120 = vrcp.f32 %v6108_v37  ;;  %v13280_v37 = vld [vmem:[#allocation47_spill] sm:$0xff] }
 0xd10   : > { %v6105_v48 = vpop.xlane.xlu1 %6104  ;;  %5422 = vrot.lane.b32.xlu1 %v13275_v34, %s9201_s25  ;;  %5420 = vrot.lane.b32.xlu0 %v13276_v63, %s9201_s25  ;;  %v13282_v10 = vpack.c.bf16 %v13280_v37, %v13281_v46 }
 0xd11   : > { %9122 = vrcp.f32 %v6105_v48 }
 0xd13   : > { %v6114_v61 = vpop.xlane.xlu0 %6113 }
 0xd14   : > { %v6123_v25 = vpop.xlane.xlu1 %6122  ;;  %4176 = vrot.lane.b32.xlu1 %v13279_v54, %s9200_s24  ;;  %4174 = vrot.lane.b32.xlu0 %v13282_v10, %s9200_s24 }
 0xd15   : > { %9124 = vrcp.f32 %v6123_v25 }
 0xd16   : > { %9126 = vrcp.f32 %v6114_v61 }
 0xd17   : > { %v9117_v53 = vpop.eup %9116  ;;  %9128 = vrcp.f32 %v6120_v18  ;;  %v13288_v18 = vld [vmem:[#allocation20_spill] sm:$0xff] }
 0xd18   : > { %v6117_v8 = vpop.xlane.xlu1 %6116  ;;  %5426 = vrot.lane.b32.xlu1 %v13283_v41, %s9201_s25  ;;  %5424 = vrot.lane.b32.xlu0 %v13284_v11, %s9201_s25  ;;  %v9119_v27 = vpop.eup %9118  ;;  %v6231_v20 = vmul.f32 %v9117_v53, %v12275_v60  ;;  %v13290_v31 = vpack.c.bf16 %v13288_v18, %v13289_v42  ;;  %v13291_v60 = vpack.c.bf16 %v12019_v24, %v12015_v39  ;;  %v13295_v24 = vld [vmem:[#allocation63_spill] sm:$0xff] }
 0xd19   : > { %9130 = vrcp.f32 %v6117_v8  ;;  %v9121_v22 = vpop.eup %9120  ;;  %v6228_v48 = vmul.f32 %v9119_v27, %v12273_v19 }
 0xd1a   : > { %v6230_v14 = vmul.f32 %v9121_v22, %v12268_v32 }
 0xd1b   : > { %v9123_v55 = vpop.eup %9122 }
 0xd1c   : > { %4180 = vrot.lane.b32.xlu1 %v13287_v1, %s9200_s24  ;;  %4178 = vrot.lane.b32.xlu0 %v13290_v31, %s9200_s24  ;;  %v6229_v0 = vmul.f32 %v9123_v55, %v12281_v4  ;;  %v6261_v63 = vpack.c.bf16 %v6231_v20, %v6230_v14  ;;  %v13292_v4 = vld [vmem:[#allocation24_spill] sm:$0xff] }
 0xd1d   : > { %v13294_v54 = vpack.c.bf16 %v13292_v4, %v13293_v2 }
 0xd1e   : > { %v6260_v34 = vpack.c.bf16 %v6229_v0, %v6228_v48 }
 0xd1f   : > { %v9125_v61 = vpop.eup %9124 }
 0xd20   : > { %8321 = vmatprep.mubr.msk.bf16.mxu0 %vm2190_vm2, %v6260_v34  ;;  %5428 = vrot.lane.b32.xlu0 %v13291_v60, %s9201_s25  ;;  %v9127_v25 = vpop.eup %9126  ;;  %v6235_v32 = vmul.f32 %v9125_v61, %v12289_v56  ;;  %v13297_v56 = vld [vmem:[#allocation37_spill] sm:$0xff] }
 0xd21   : > { %8322 = vmatmul.mubr.msk.bf16.vlgmr.msra.gmra.mrb[152].mxu0 %vm2190_vm2, %v6261_v63  ;;  %v9129_v45 = vpop.eup %9128  ;;  %v6232_v37 = vmul.f32 %v9127_v25, %v12291_v58 }
 0xd22   : > { %8346 = vmatpush3.bf16.msra.mxu0 %v11951_v5  ;;  %v6234_v46 = vmul.f32 %v9129_v45, %v13295_v24  ;;  %v13296_v5 = vld [vmem:[#allocation28_spill] sm:$0xff] }
 0xd23   : > { %v9131_v19 = vpop.eup %9130  ;;  %8347 = vmatprep.subr.bf16.mxu0 %v12255_v47 }
 0xd24   : > { %4182 = vrot.lane.b32.xlu0 %v13294_v54, %s9200_s24  ;;  %v6233_v39 = vmul.f32 %v9131_v19, %v12297_v43  ;;  %v6263_v53 = vpack.c.bf16 %v6235_v32, %v6234_v46 }
 0xd26   : > { %8348 = vmatpush3.bf16.msra.mxu0 %v12255_v47  ;;  %v6262_v10 = vpack.c.bf16 %v6233_v39, %v6232_v37 }
 0xd27   : > { %8349 = vmatprep.subr.bf16.mxu0 %v13296_v5 }
 0xd28   : > { %8325 = vmatprep.mubr.msk.bf16.mxu0 %vm2190_vm2, %v6262_v10 }
 0xd29   : > { %8326 = vmatmul.mubr.msk.bf16.gmra.mrb[156].mxu0 %vm2190_vm2, %v6263_v53 }
 0xd2a   : > { %8350 = vmatpush3.bf16.msra.mxu0 %v13296_v5 }
 0xd2b   : > { %8351 = vmatprep.subr.bf16.mxu0 %v13297_v56 }
 0xd2e   : > { %8352 = vmatpush3.bf16.msra.mxu0 %v13297_v56 }
 0xd43   : > { %v6132_v58 = vpop.xlane.xlu1 %6131 }
 0xd47   : > { %v6156_v43 = vpop.xlane.xlu0 %6155 }
 0xd4b   : > { %v6126_v8 = vpop.xlane.xlu1 %6125 }
 0xd4f   : > { %v6150_v41 = vpop.xlane.xlu0 %6149  ;;  %v6135_v11 = vpop.xlane.xlu1 %6134 }
 0xd50   : > { %9132 = vrcp.f32 %v6135_v11 }
 0xd51   : > { %9134 = vrcp.f32 %v6126_v8 }
 0xd52   : > { %9136 = vrcp.f32 %v6132_v58 }
 0xd53   : > { %v6159_v47 = vpop.xlane.xlu0 %6158  ;;  %v6129_v27 = vpop.xlane.xlu1 %6128 }
 0xd54   : > { %9138 = vrcp.f32 %v6129_v27 }
 0xd55   : > { %9140 = vrcp.f32 %v6159_v47 }
 0xd56   : > { %9142 = vrcp.f32 %v6150_v41 }
 0xd57   : > { %v6144_v22 = vpop.xlane.xlu0 %6143  ;;  %v6153_v55 = vpop.xlane.xlu1 %6152  ;;  %9144 = vrcp.f32 %v6156_v43 }
 0xd58   : > { %9146 = vrcp.f32 %v6153_v55 }
 0xd59   : > { %9148 = vrcp.f32 %v6144_v22 }
 0xd5a   : > { %v9133_v52 = vpop.eup %9132 }
 0xd5b   : > { %v6138_v20 = vpop.xlane.xlu0 %6137  ;;  %v6168_v51 = vpop.xlane.xlu1 %6167  ;;  %v6239_v31 = vmul.f32 %v9133_v52, %v12324_v44 }
 0xd5c   : > { %v9135_v1 = vpop.eup %9134 }
 0xd5d   : > { %v9137_v18 = vpop.eup %9136  ;;  %v6236_v34 = vmul.f32 %v9135_v1, %v12319_v9 }
 0xd5e   : > { %v9139_v42 = vpop.eup %9138  ;;  %v6238_v60 = vmul.f32 %v9137_v18, %v12308_v12 }
 0xd5f   : > { %v6147_v48 = vpop.xlane.xlu0 %6146  ;;  %v6162_v0 = vpop.xlane.xlu1 %6161  ;;  %v6237_v63 = vmul.f32 %v9139_v42, %v12337_v30 }
 0xd60   : > { %v9141_v14 = vpop.eup %9140  ;;  %9150 = vrcp.f32 %v6147_v48  ;;  %v6265_v32 = vpack.c.bf16 %v6239_v31, %v6238_v60 }
 0xd61   : > { %v9143_v61 = vpop.eup %9142  ;;  %v6264_v45 = vpack.c.bf16 %v6237_v63, %v6236_v34  ;;  %v6247_v4 = vmul.f32 %v9141_v14, %v12330_v62  ;;  %9152 = vrcp.f32 %v6138_v20 }
 0xd62   : > { %v9145_v25 = vpop.eup %9144  ;;  %v6244_v9 = vmul.f32 %v9143_v61, %v12327_v59 }
 0xd63   : > { %v9147_v19 = vpop.eup %9146  ;;  %v6171_v44 = vpop.xlane.xlu0 %6170  ;;  %8337 = vmatprep.mubr.msk.bf16.mxu1 %vm2190_vm2, %v6264_v45  ;;  %v6246_v12 = vmul.f32 %v9145_v25, %v12314_v16 }
 0xd64   : > { %9154 = vrcp.f32 %v6171_v44  ;;  %v6141_v2 = vpop.xlane.xlu1 %6140  ;;  %v6245_v30 = vmul.f32 %v9147_v19, %v12341_v28  ;;  %8338 = vmatmul.mubr.msk.bf16.vlgmr.msra.gmra.mrb[168].mxu1 %vm2190_vm2, %v6265_v32  ;;  %v9149_v16 = vpop.eup %9148 }
 0xd65   : > { %9156 = vrcp.f32 %v6141_v2  ;;  %8362 = vmatpush3.bf16.msra.mxu1 %v12381_v36  ;;  %v6269_v62 = vpack.c.bf16 %v6247_v4, %v6246_v12  ;;  %v6242_v41 = vmul.f32 %v9149_v16, %v12347_v23 }
 0xd66   : > { %9158 = vrcp.f32 %v6162_v0  ;;  %v6268_v54 = vpack.c.bf16 %v6245_v30, %v6244_v9  ;;  %8363 = vmatprep.subr.bf16.mxu1 %v12444_v29 }
 0xd67   : > { %9160 = vrcp.f32 %v6168_v51  ;;  %v6165_v37 = vpop.xlane.xlu0 %6164 }
 0xd68   : > { %9162 = vrcp.f32 %v6165_v37  ;;  %8353 = vmatprep.mubr.msk.bf16.mxu0 %vm2190_vm2, %v6268_v54  ;;  %v6180_v59 = vpop.xlane.xlu1 %6179 }
 0xd69   : > { %8354 = vmatmul.mubr.msk.bf16.vlgmr.msra.gmra.mrb[160].mxu0 %vm2190_vm2, %v6269_v62  ;;  %8364 = vmatpush3.bf16.msra.mxu1 %v12444_v29 }
 0xd6a   : > { %v9151_v39 = vpop.eup %9150 }
 0xd6b   : > { %v6183_v28 = vpop.xlane.xlu0 %6182  ;;  %v9153_v46 = vpop.eup %9152  ;;  %v6243_v53 = vmul.f32 %v9151_v39, %v12365_v40 }
 0xd6c   : > { %v6174_v24 = vpop.xlane.xlu1 %6173  ;;  %9164 = vrcp.f32 %v6183_v28  ;;  %v6240_v43 = vmul.f32 %v9153_v46, %v12358_v15  ;;  %v8539_v46 = vld [vmem:[%s12818_s6 + $0x8] sm:$0xff]  }
 0xd6d   : > { %9166 = vrcp.f32 %v6174_v24  ;;  %v6267_v55 = vpack.c.bf16 %v6243_v53, %v6242_v41  ;;  %v8538_v24 = vld [vmem:[%s12818_s6] sm:$0xff]  }
 0xd6e   : > { %v9155_v36 = vpop.eup %9154  ;;  %9168 = vrcp.f32 %v6180_v59  ;;  %8377 = vmatprep.subr.bf16.mxu0 %v8538_v24 }
 0xd6f   : > { %v9157_v10 = vpop.eup %9156  ;;  %v6177_v5 = vpop.xlane.xlu0 %6176  ;;  %v6251_v27 = vmul.f32 %v9155_v36, %v12375_v26  ;;  %8378 = vmatpush3.bf16.msra.mxu0 %v8538_v24 }
 0xd70   : > { %v9159_v56 = vpop.eup %9158  ;;  %9170 = vrcp.f32 %v6177_v5  ;;  %v6192_v58 = vpop.xlane.xlu1 %6191  ;;  %v6241_v29 = vmul.f32 %v9157_v10, %v12378_v35  ;;  %8379 = vmatprep.subr.bf16.mxu0 %v8539_v46 }
 0xd71   : > { %v9161_v8 = vpop.eup %9160  ;;  %v6248_v20 = vmul.f32 %v9159_v56, %v12368_v38 }
 0xd72   : > { %v9163_v11 = vpop.eup %9162  ;;  %v6266_v47 = vpack.c.bf16 %v6241_v29, %v6240_v43  ;;  %v6250_v15 = vmul.f32 %v9161_v8, %v12355_v13  ;;  %v13298_v29 = vld [vmem:[#allocation7_spill] sm:$0xff]  ;;  %v13299_v8 = vld [vmem:[#allocation22_spill] sm:$0xff] }
 0xd73   : > { %v6195_v22 = vpop.xlane.xlu0 %6194  ;;  %v6249_v40 = vmul.f32 %v9163_v11, %v12385_v50  ;;  %8380 = vmatpush3.bf16.msra.mxu0 %v8539_v46  ;;  %v13300_v41 = vpack.c.bf16 %v13298_v29, %v13299_v8  ;;  %v13319_v46 = vld [vmem:[#allocation45_spill] sm:$0xff]  ;;  %v13326_v29 = vld [vmem:[#allocation11_spill] sm:$0xff] }
 0xd74   : > { %8341 = vmatprep.mubr.msk.bf16.mxu1 %vm2190_vm2, %v6266_v47  ;;  %v6186_v51 = vpop.xlane.xlu1 %6185  ;;  %9172 = vrcp.f32 %v6195_v22  ;;  %v6271_v23 = vpack.c.bf16 %v6251_v27, %v6250_v15  ;;  %v13301_v47 = vld [vmem:[#allocation12_spill] sm:$0xff]  ;;  %v13302_v27 = vld [vmem:[#allocation10_spill] sm:$0xff] }
 0xd75   : > { %8342 = vmatmul.mubr.msk.bf16.gmra.mrb[172].mxu1 %vm2190_vm2, %v6267_v55  ;;  %v6270_v35 = vpack.c.bf16 %v6249_v40, %v6248_v20  ;;  %9174 = vrcp.f32 %v6186_v51  ;;  %v13303_v22 = vpack.c.bf16 %v13301_v47, %v13302_v27  ;;  %v13304_v15 = vld [vmem:[#allocation14_spill] sm:$0xff] }
 0xd76   : > { %v9165_v52 = vpop.eup %9164  ;;  %9176 = vrcp.f32 %v6192_v58 }
 0xd77   : > { %v6189_v26 = vpop.xlane.xlu0 %6188  ;;  %8357 = vmatprep.mubr.msk.bf16.mxu0 %vm2190_vm2, %v6270_v35  ;;  %v9167_v1 = vpop.eup %9166  ;;  %v6255_v13 = vmul.f32 %v9165_v52, %v12394_v17  ;;  %v13305_v35 = vld [vmem:[#allocation55_spill] sm:$0xff]  ;;  %v13307_v52 = vld [vmem:[#allocation50_spill] sm:$0xff] }
 0xd78   : > { %9178 = vrcp.f32 %v6189_v26  ;;  %v6548_v38 = vpop.permute.xlu1 %6547  ;;  %8358 = vmatmul.mubr.msk.bf16.gmra.mrb[164].mxu0 %vm2190_vm2, %v6271_v23  ;;  %v9169_v50 = vpop.eup %9168  ;;  %v6252_v31 = vmul.f32 %v9167_v1, %v12398_v7  ;;  %v13306_v23 = vpack.c.bf16 %v13304_v15, %v13305_v35  ;;  %v13308_v26 = vld [vmem:[#allocation44_spill] sm:$0xff]  ;;  %v13332_v15 = vld [vmem:[#allocation21_spill] sm:$0xff] }
 0xd79   : > { %8365 = vmatprep.subr.bf16.mxu1 %v6548_v38  ;;  %v6254_v14 = vmul.f32 %v9169_v50, %v12390_v33  ;;  %v13309_v1 = vpack.c.bf16 %v13307_v52, %v13308_v26  ;;  %v13335_v52 = vld [vmem:[#allocation29_spill] sm:$0xff] }
 0xd7a   : > { %v9171_v18 = vpop.eup %9170  ;;  %8366 = vmatpush3.bf16.msra.mxu1 %v6548_v38 }
 0xd7b   : > { %v6550_v42 = vpop.permute.xlu0 %6549  ;;  %v6253_v48 = vmul.f32 %v9171_v18, %v12402_v6  ;;  %v6273_v61 = vpack.c.bf16 %v6255_v13, %v6254_v14 }
 0xd7c   : > { %v4165_v0 = vpop.permute.xlu1 %4164  ;;  %8367 = vmatprep.subr.bf16.mxu1 %v6550_v42 }
 0xd7d   : > { %4213 = vst.msk [vmem:[#allocation2] sm:$0xff] %vm4212_vm3, %v4165_v0  ;;  %v6272_v34 = vpack.c.bf16 %v6253_v48, %v6252_v31 }
 0xd7e   : > { %8368 = vmatpush3.bf16.msra.mxu1 %v6550_v42  ;;  %v9173_v63 = vpop.eup %9172 }
 0xd7f   : > { %v4167_v60 = vpop.permute.xlu0 %4166  ;;  %8369 = vmatprep.mubr.msk.bf16.mxu1 %vm2190_vm2, %v6272_v34  ;;  %v9175_v17 = vpop.eup %9174  ;;  %v6259_v32 = vmul.f32 %v9173_v63, %v12410_v57 }
 0xd80   : > { %4214 = vst.msk [vmem:[#allocation2 + $0x8] sm:$0xff] %vm4212_vm3, %v4167_v60  ;;  %v5415_v7 = vpop.permute.xlu1 %5414  ;;  %v9177_v25 = vpop.eup %9176  ;;  %v6256_v45 = vmul.f32 %v9175_v17, %v12414_v3 }
 0xd81   : > { %5463 = vst.msk [vmem:[#allocation2] sm:$0xff] %vm5462_vm4, %v5415_v7  ;;  %8370 = vmatmul.mubr.msk.bf16.vlgmr.msra.gmra.mrb[176].mxu1 %vm2190_vm2, %v6273_v61  ;;  %v6258_v2 = vmul.f32 %v9177_v25, %v12406_v21 }
 0xd82   : > { %v9179_v33 = vpop.eup %9178 }
 0xd83   : > { %v5417_v6 = vpop.permute.xlu0 %5416  ;;  %v6257_v19 = vmul.f32 %v9179_v33, %v12418_v49  ;;  %v6275_v30 = vpack.c.bf16 %v6259_v32, %v6258_v2 }
 0xd84   : > { %5464 = vst.msk [vmem:[#allocation2 + $0x8] sm:$0xff] %vm5462_vm4, %v5417_v6  ;;  %v4169_v4 = vpop.permute.xlu1 %4168 }
 0xd85   : > { %4215 = vst.msk [vmem:[#allocation2 + $0x10] sm:$0xff] %vm4212_vm3, %v4169_v4  ;;  %v6274_v44 = vpack.c.bf16 %v6257_v19, %v6256_v45 }
 0xd87   : > { %v4171_v9 = vpop.permute.xlu0 %4170  ;;  %8373 = vmatprep.mubr.msk.bf16.mxu1 %vm2190_vm2, %v6274_v44 }
 0xd88   : > { %4216 = vst.msk [vmem:[#allocation2 + $0x18] sm:$0xff] %vm4212_vm3, %v4171_v9  ;;  %v5419_v12 = vpop.permute.xlu1 %5418  ;;  %v13310_v9 = vld [vmem:[#allocation26_spill] sm:$0xff] }
 0xd89   : > { %5465 = vst.msk [vmem:[#allocation2 + $0x10] sm:$0xff] %vm5462_vm4, %v5419_v12  ;;  %8374 = vmatmul.mubr.msk.bf16.gmra.mrb[180].mxu1 %vm2190_vm2, %v6275_v30  ;;  %v13311_v30 = vld [vmem:[#allocation8_spill] sm:$0xff] }
 0xd8a   : > { %v13312_v12 = vpack.c.bf16 %v13310_v9, %v13311_v30 }
 0xd8b   : > { %v5421_v57 = vpop.permute.xlu0 %5420 }
 0xd8c   : > { %5466 = vst.msk [vmem:[#allocation2 + $0x18] sm:$0xff] %vm5462_vm4, %v5421_v57  ;;  %v4173_v3 = vpop.permute.xlu1 %4172  ;;  %v13313_v57 = vld [vmem:[#allocation33_spill] sm:$0xff] }
 0xd8d   : > { %4217 = vst.msk [vmem:[#allocation2 + $0x20] sm:$0xff] %vm4212_vm3, %v4173_v3  ;;  %v13314_v3 = vld [vmem:[#allocation27_spill] sm:$0xff] }
 0xd8f   : > { %v4175_v49 = vpop.permute.xlu0 %4174 }
 0xd90   : > { %4218 = vst.msk [vmem:[#allocation2 + $0x28] sm:$0xff] %vm4212_vm3, %v4175_v49  ;;  %v5423_v21 = vpop.permute.xlu1 %5422  ;;  %v13315_v49 = vpack.c.bf16 %v13313_v57, %v13314_v3 }
 0xd91   : > { %5467 = vst.msk [vmem:[#allocation2 + $0x20] sm:$0xff] %vm5462_vm4, %v5423_v21 }
 0xd93   : > { %v5425_v54 = vpop.permute.xlu0 %5424 }
 0xd94   : > { %5468 = vst.msk [vmem:[#allocation2 + $0x28] sm:$0xff] %vm5462_vm4, %v5425_v54  ;;  %v4177_v62 = vpop.permute.xlu1 %4176 }
 0xd95   : > { %4219 = vst.msk [vmem:[#allocation2 + $0x30] sm:$0xff] %vm4212_vm3, %v4177_v62  ;;  %v13316_v62 = vld [vmem:[#allocation18_spill] sm:$0xff] }
 0xd97   : > { %v4179_v37 = vpop.permute.xlu0 %4178 }
 0xd98   : > { %4220 = vst.msk [vmem:[#allocation2 + $0x38] sm:$0xff] %vm4212_vm3, %v4179_v37  ;;  %v5427_v59 = vpop.permute.xlu1 %5426  ;;  %v13317_v37 = vld [vmem:[#allocation16_spill] sm:$0xff] }
 0xd99   : > { %5469 = vst.msk [vmem:[#allocation2 + $0x30] sm:$0xff] %vm5462_vm4, %v5427_v59  ;;  %v13318_v59 = vpack.c.bf16 %v13316_v62, %v13317_v37 }
 0xd9b   : > { %v5429_v16 = vpop.permute.xlu0 %5428 }
 0xd9c   : > { %5470 = vst.msk [vmem:[#allocation2 + $0x38] sm:$0xff] %vm5462_vm4, %v5429_v16  ;;  %v4181_v28 = vpop.permute.xlu1 %4180 }
 0xd9d   : > { %4221 = vst.msk [vmem:[#allocation2 + $0x40] sm:$0xff] %vm4212_vm3, %v4181_v28 }
 0xd9f   : > { %v4183_v39 = vpop.permute.xlu0 %4182 }
 0xda0   : > { %4222 = vst.msk [vmem:[#allocation2 + $0x48] sm:$0xff] %vm4212_vm3, %v4183_v39 }
 0xdf4   : > { %v8323_v36 = vpop.f32.mrb[152].mxu0 }
 0xdf5   : > { %v6334_v10 = vpop.f32.mrb[153].mxu0 }
 0xdf6   : > { %v8324_v5 = vpop.f32.mrb[154].mxu0 }
 0xdf7   : > { %v6633_v53 = vpack.c.bf16 %v8324_v5, %v8323_v36  ;;  %v6337_v56 = vpop.f32.mrb[155].mxu0  ;;  %v13320_v36 = vld [vmem:[#allocation15_spill] sm:$0xff]  ;;  %v13322_v5 = vld [vmem:[#allocation34_spill] sm:$0xff] }
 0xdf8   : > { %v6632_v58 = vpack.c.bf16 %v6337_v56, %v6334_v10  ;;  %v13321_v10 = vpack.c.bf16 %v13319_v46, %v13320_v36 }
 0xdf9   : > { %6666 = vrot.lane.b32.xlu0 %v6633_v53, %s9202_s10  ;;  %v13323_v53 = vld [vmem:[#allocation30_spill] sm:$0xff] }
 0xdfa   : > { %6664 = vrot.lane.b32.xlu1 %v6632_v58, %s9202_s10  ;;  %v13324_v56 = vpack.c.bf16 %v13322_v5, %v13323_v53 }
 0xdfc   : > { %v8327_v43 = vpop.f32.mrb[156].mxu0 }
 0xdfd   : > { %5432 = vrot.lane.b32.xlu0 %v13300_v41, %s9201_s25  ;;  %v6350_v11 = vpop.f32.mrb[157].mxu0 }
 0xdfe   : > { %5430 = vrot.lane.b32.xlu1 %v13303_v22, %s9201_s25  ;;  %v8328_v55 = vpop.f32.mrb[158].mxu0 }
 0xdff   : > { %v6635_v20 = vpack.c.bf16 %v8328_v55, %v8327_v43  ;;  %v6353_v40 = vpop.f32.mrb[159].mxu0  ;;  %v13325_v43 = vld [vmem:[#allocation13_spill] sm:$0xff]  ;;  %v13328_v55 = vld [vmem:[#allocation58_spill] sm:$0xff] }
 0xe00   : > { %v6634_v51 = vpack.c.bf16 %v6353_v40, %v6350_v11  ;;  %v13327_v8 = vpack.c.bf16 %v13325_v43, %v13326_v29 }
 0xe01   : > { %6670 = vrot.lane.b32.xlu0 %v6635_v20, %s9202_s10  ;;  %v13329_v20 = vld [vmem:[#allocation4_spill] sm:$0xff] }
 0xe02   : > { %6668 = vrot.lane.b32.xlu1 %v6634_v51, %s9202_s10  ;;  %v13330_v40 = vpack.c.bf16 %v13328_v55, %v13329_v20  ;;  %v13331_v51 = vld [vmem:[#allocation59_spill] sm:$0xff] }
 0xe03   : > { %v13333_v35 = vpack.c.bf16 %v13331_v51, %v13332_v15 }
 0xe05   : > { %4186 = vrot.lane.b32.xlu0 %v13306_v23, %s9200_s24  ;;  %v13334_v23 = vld [vmem:[#allocation31_spill] sm:$0xff] }
 0xe06   : > { %4184 = vrot.lane.b32.xlu1 %v13309_v1, %s9200_s24  ;;  %v13336_v26 = vpack.c.bf16 %v13334_v23, %v13335_v52  ;;  %v13337_v1 = vld [vmem:[#allocation36_spill] sm:$0xff] }
 0xe37   : > { %v8339_v38 = vpop.f32.mrb[168].mxu1 }
 0xe38   : > { %v6423_v50 = vpop.f32.mrb[169].mxu1 }
 0xe39   : > { %v8340_v18 = vpop.f32.mrb[170].mxu1 }
 0xe3a   : > { %v6637_v13 = vpack.c.bf16 %v8340_v18, %v8339_v38  ;;  %v6426_v42 = vpop.f32.mrb[171].mxu1  ;;  %v13338_v38 = vld [vmem:[#allocation32_spill] sm:$0xff] }
 0xe3b   : > { %v6636_v31 = vpack.c.bf16 %v6426_v42, %v6423_v50  ;;  %v13339_v50 = vpack.c.bf16 %v13337_v1, %v13338_v38 }
 0xe3c   : > { %v8355_v48 = vpop.f32.mrb[160].mxu0  ;;  %6674 = vrot.lane.b32.xlu0 %v6637_v13, %s9202_s10 }
 0xe3d   : > { %v6512_v0 = vpop.f32.mrb[161].mxu0  ;;  %6672 = vrot.lane.b32.xlu1 %v6636_v31, %s9202_s10 }
 0xe3e   : > { %v8356_v14 = vpop.f32.mrb[162].mxu0 }
 0xe3f   : > { %v6641_v34 = vpack.c.bf16 %v8356_v14, %v8355_v48  ;;  %v6515_v63 = vpop.f32.mrb[163].mxu0 }
 0xe40   : > { %v6640_v61 = vpack.c.bf16 %v6515_v63, %v6512_v0 }
 0xe41   : > { %6682 = vrot.lane.b32.xlu0 %v6641_v34, %s9202_s10 }
 0xe42   : > { %6680 = vrot.lane.b32.xlu1 %v6640_v61, %s9202_s10 }
 0xe48   : > { %v8343_v60 = vpop.f32.mrb[172].mxu1 }
 0xe49   : > { %v6439_v17 = vpop.f32.mrb[173].mxu1 }
 0xe4a   : > { %v8344_v7 = vpop.f32.mrb[174].mxu1 }
 0xe4b   : > { %v6639_v25 = vpack.c.bf16 %v8344_v7, %v8343_v60  ;;  %v6442_v33 = vpop.f32.mrb[175].mxu1  ;;  %v8359_v6 = vpop.f32.mrb[164].mxu0 }
 0xe4c   : > { %v6638_v45 = vpack.c.bf16 %v6442_v33, %v6439_v17  ;;  %v6528_v19 = vpop.f32.mrb[165].mxu0 }
 0xe4d   : > { %6678 = vrot.lane.b32.xlu0 %v6639_v25, %s9202_s10  ;;  %v8360_v32 = vpop.f32.mrb[166].mxu0 }
 0xe4e   : > { %v6643_v4 = vpack.c.bf16 %v8360_v32, %v8359_v6  ;;  %6676 = vrot.lane.b32.xlu1 %v6638_v45, %s9202_s10  ;;  %v6531_v44 = vpop.f32.mrb[167].mxu0 }
 0xe4f   : > { %v6642_v2 = vpack.c.bf16 %v6531_v44, %v6528_v19 }
 0xe51   : > { %5436 = vrot.lane.b32.xlu0 %v13312_v12, %s9201_s25 }
 0xe52   : > { %5434 = vrot.lane.b32.xlu1 %v13315_v49, %s9201_s25 }
 0xe54   : > { %v8371_v21 = vpop.f32.mrb[176].mxu1 }
 0xe55   : > { %6686 = vrot.lane.b32.xlu0 %v6643_v4, %s9202_s10  ;;  %v6601_v54 = vpop.f32.mrb[177].mxu1 }
 0xe56   : > { %4188 = vrot.lane.b32.xlu1 %v13318_v59, %s9200_s24  ;;  %v8372_v16 = vpop.f32.mrb[178].mxu1 }
 0xe57   : > { %v6645_v28 = vpack.c.bf16 %v8372_v16, %v8371_v21  ;;  %v6604_v39 = vpop.f32.mrb[179].mxu1 }
 0xe58   : > { %v6644_v24 = vpack.c.bf16 %v6604_v39, %v6601_v54 }
 0xe59   : > { %4190 = vrot.lane.b32.xlu0 %v13321_v10, %s9200_s24 }
 0xe5a   : > { %5438 = vrot.lane.b32.xlu1 %v13324_v56, %s9201_s25 }
 0xe5c   : > { %v8375_v58 = vpop.f32.mrb[180].mxu1 }
 0xe5d   : > { %5440 = vrot.lane.b32.xlu0 %v13327_v8, %s9201_s25  ;;  %v6617_v41 = vpop.f32.mrb[181].mxu1  ;;  %v12706_v8 = vld [vmem:[%s12819_s7] ss:$0 sm:$0xff] }
 0xe5e   : > { %6684 = vrot.lane.b32.xlu1 %v6642_v2, %s9202_s10  ;;  %v8376_v11 = vpop.f32.mrb[182].mxu1 }
 0xe5f   : > { %v6647_v47 = vpack.c.bf16 %v8376_v11, %v8375_v58  ;;  %v6620_v27 = vpop.f32.mrb[183].mxu1 }
 0xe60   : > { %v6646_v22 = vpack.c.bf16 %v6620_v27, %v6617_v41 }
 0xe61   : > { %4194 = vrot.lane.b32.xlu0 %v13330_v40, %s9200_s24 }
 0xe62   : > { %4192 = vrot.lane.b32.xlu1 %v13333_v35, %s9200_s24 }
 0xe65   : > { %6690 = vrot.lane.b32.xlu0 %v6645_v28, %s9202_s10 }
 0xe66   : > { %6688 = vrot.lane.b32.xlu1 %v6644_v24, %s9202_s10 }
 0xe69   : > { %5444 = vrot.lane.b32.xlu0 %v13336_v26, %s9201_s25 }
 0xe6a   : > { %5442 = vrot.lane.b32.xlu1 %v13339_v50, %s9201_s25 }
 0xe6b   : > { %v6667_v18 = vpop.permute.xlu0 %6666 }
 0xe6c   : > { %6714 = vst.msk [vmem:[#allocation2 + $0x8] sm:$0xff] %vm6712_vm5, %v6667_v18  ;;  %v6665_v13 = vpop.permute.xlu1 %6664 }
 0xe6d   : > { %6713 = vst.msk [vmem:[#allocation2] sm:$0xff] %vm6712_vm5, %v6665_v13  ;;  %6694 = vrot.lane.b32.xlu0 %v6647_v47, %s9202_s10 }
 0xe6e   : > { %6692 = vrot.lane.b32.xlu1 %v6646_v22, %s9202_s10 }
 0xe6f   : > { %v5433_v42 = vpop.permute.xlu0 %5432 }
 0xe70   : > { %5472 = vst.msk [vmem:[#allocation2 + $0x48] sm:$0xff] %vm5462_vm4, %v5433_v42  ;;  %v5431_v31 = vpop.permute.xlu1 %5430 }
 0xe71   : > { %5471 = vst.msk [vmem:[#allocation2 + $0x40] sm:$0xff] %vm5462_vm4, %v5431_v31 }
 0xe73   : > { %v6671_v48 = vpop.permute.xlu0 %6670  ;;  %v6730_v34 = vld [vmem:[#allocation2 + $0x8] sm:$0xff] }
 0xe74   : > { %6716 = vst.msk [vmem:[#allocation2 + $0x18] sm:$0xff] %vm6712_vm5, %v6671_v48  ;;  %v6669_v0 = vpop.permute.xlu1 %6668  ;;  %v6729_v14 = vld [vmem:[#allocation2] sm:$0xff] }
 0xe75   : > { %6715 = vst.msk [vmem:[#allocation2 + $0x10] sm:$0xff] %vm6712_vm5, %v6669_v0  ;;  %8381 = vmatprep.mubr.msk.bf16.mxu0 %vm450_vm0, %v6729_v14 }
 0xe76   : > { %8382 = vmatmul.mubr.msk.bf16.vlgmr.msra.gmra.mrb[168].mxu0 %vm450_vm0, %v6730_v34 }
 0xe77   : > { %v4187_v63 = vpop.permute.xlu0 %4186 }
 0xe78   : > { %4224 = vst.msk [vmem:[#allocation2 + $0x58] sm:$0xff] %vm4212_vm3, %v4187_v63  ;;  %v4185_v61 = vpop.permute.xlu1 %4184 }
 0xe79   : > { %4223 = vst.msk [vmem:[#allocation2 + $0x50] sm:$0xff] %vm4212_vm3, %v4185_v61 }
 0xe7b   : > { %v6732_v17 = vld [vmem:[#allocation2 + $0x18] sm:$0xff] }
 0xe7c   : > { %v6731_v60 = vld [vmem:[#allocation2 + $0x10] sm:$0xff] }
 0xe7d   : > { %8385 = vmatprep.mubr.msk.bf16.mxu0 %vm450_vm0, %v6731_v60 }
 0xe7e   : > { %8386 = vmatmul.mubr.msk.bf16.gmra.mrb[172].mxu0 %vm450_vm0, %v6732_v17 }
 0xeae   : > { %v6675_v7 = vpop.permute.xlu0 %6674 }
 0xeaf   : > { %6718 = vst.msk [vmem:[#allocation2 + $0x28] sm:$0xff] %vm6712_vm5, %v6675_v7  ;;  %v6673_v25 = vpop.permute.xlu1 %6672 }
 0xeb0   : > { %6717 = vst.msk [vmem:[#allocation2 + $0x20] sm:$0xff] %vm6712_vm5, %v6673_v25 }
 0xeb3   : > { %v6683_v33 = vpop.permute.xlu0 %6682 }
 0xeb4   : > { %6722 = vst.msk [vmem:[#allocation2 + $0x48] sm:$0xff] %vm6712_vm5, %v6683_v33  ;;  %v6681_v6 = vpop.permute.xlu1 %6680 }
 0xeb5   : > { %6721 = vst.msk [vmem:[#allocation2 + $0x40] sm:$0xff] %vm6712_vm5, %v6681_v6 }
 0xeb6   : > { %v6734_v19 = vld [vmem:[#allocation2 + $0x28] sm:$0xff] }
 0xeb7   : > { %v6733_v45 = vld [vmem:[#allocation2 + $0x20] sm:$0xff] }
 0xeb8   : > { %8389 = vmatprep.mubr.msk.bf16.mxu0 %vm450_vm0, %v6733_v45 }
 0xeb9   : > { %8390 = vmatmul.mubr.msk.bf16.gmra.mrb[176].mxu0 %vm450_vm0, %v6734_v19 }
 0xebb   : > { %v6738_v37 = vld [vmem:[#allocation2 + $0x48] sm:$0xff] }
 0xebc   : > { %v6737_v3 = vld [vmem:[#allocation2 + $0x40] sm:$0xff] }
 0xebf   : > { %v6679_v32 = vpop.permute.xlu0 %6678 }
 0xec0   : > { %6720 = vst.msk [vmem:[#allocation2 + $0x38] sm:$0xff] %vm6712_vm5, %v6679_v32  ;;  %v6677_v4 = vpop.permute.xlu1 %6676 }
 0xec1   : > { %6719 = vst.msk [vmem:[#allocation2 + $0x30] sm:$0xff] %vm6712_vm5, %v6677_v4 }
 0xec3   : > { %v5437_v44 = vpop.permute.xlu0 %5436 }
 0xec4   : > { %5474 = vst.msk [vmem:[#allocation2 + $0x58] sm:$0xff] %vm5462_vm4, %v5437_v44  ;;  %v5435_v2 = vpop.permute.xlu1 %5434 }
 0xec5   : > { %5473 = vst.msk [vmem:[#allocation2 + $0x50] sm:$0xff] %vm5462_vm4, %v5435_v2 }
 0xec7   : > { %v6687_v9 = vpop.permute.xlu0 %6686  ;;  %v6736_v57 = vld [vmem:[#allocation2 + $0x38] sm:$0xff] }
 0xec8   : > { %6724 = vst.msk [vmem:[#allocation2 + $0x58] sm:$0xff] %vm6712_vm5, %v6687_v9  ;;  %v4189_v30 = vpop.permute.xlu1 %4188  ;;  %v6735_v12 = vld [vmem:[#allocation2 + $0x30] sm:$0xff] }
 0xec9   : > { %4225 = vst.msk [vmem:[#allocation2 + $0x60] sm:$0xff] %vm4212_vm3, %v4189_v30  ;;  %8393 = vmatprep.mubr.msk.bf16.mxu0 %vm450_vm0, %v6735_v12 }
 0xeca   : > { %8394 = vmatmul.mubr.msk.bf16.gmra.mrb[180].mxu0 %vm450_vm0, %v6736_v57 }
 0xecb   : > { %v4191_v49 = vpop.permute.xlu0 %4190  ;;  %8397 = vmatprep.mubr.msk.bf16.mxu0 %vm450_vm0, %v6737_v3 }
 0xecc   : > { %4226 = vst.msk [vmem:[#allocation2 + $0x68] sm:$0xff] %vm4212_vm3, %v4191_v49  ;;  %v5439_v21 = vpop.permute.xlu1 %5438 }
 0xecd   : > { %5475 = vst.msk [vmem:[#allocation2 + $0x60] sm:$0xff] %vm5462_vm4, %v5439_v21 }
 0xecf   : > { %v5441_v54 = vpop.permute.xlu0 %5440  ;;  %v6740_v46 = vld [vmem:[#allocation2 + $0x58] sm:$0xff] }
 0xed0   : > { %5476 = vst.msk [vmem:[#allocation2 + $0x68] sm:$0xff] %vm5462_vm4, %v5441_v54  ;;  %v6685_v62 = vpop.permute.xlu1 %6684 }
 0xed1   : > { %6723 = vst.msk [vmem:[#allocation2 + $0x50] sm:$0xff] %vm6712_vm5, %v6685_v62 }
 0xed2   : > { %8398 = vmatmul.mubr.msk.bf16.gmra.mrb[184].mxu0 %vm450_vm0, %v6738_v37 }
 0xed3   : > { %v4195_v59 = vpop.permute.xlu0 %4194 }
 0xed4   : > { %4228 = vst.msk [vmem:[#allocation2 + $0x78] sm:$0xff] %vm4212_vm3, %v4195_v59  ;;  %v4193_v16 = vpop.permute.xlu1 %4192 }
 0xed5   : > { %4227 = vst.msk [vmem:[#allocation2 + $0x70] sm:$0xff] %vm4212_vm3, %v4193_v16 }
 0xed7   : > { %v6691_v28 = vpop.permute.xlu0 %6690 }
 0xed8   : > { %6726 = vst.msk [vmem:[#allocation2 + $0x68] sm:$0xff] %vm6712_vm5, %v6691_v28  ;;  %v6689_v39 = vpop.permute.xlu1 %6688  ;;  %v6739_v24 = vld [vmem:[#allocation2 + $0x50] sm:$0xff] }
 0xed9   : > { %6725 = vst.msk [vmem:[#allocation2 + $0x60] sm:$0xff] %vm6712_vm5, %v6689_v39  ;;  %8401 = vmatprep.mubr.msk.bf16.mxu0 %vm450_vm0, %v6739_v24 }
 0xeda   : > { %8402 = vmatmul.mubr.msk.bf16.gmra.mrb[188].mxu0 %vm450_vm0, %v6740_v46 }
 0xedb   : > { %v5445_v36 = vpop.permute.xlu0 %5444 }
 0xedc   : > { %5478 = vst.msk [vmem:[#allocation2 + $0x78] sm:$0xff] %vm5462_vm4, %v5445_v36  ;;  %v5443_v10 = vpop.permute.xlu1 %5442 }
 0xedd   : > { %5477 = vst.msk [vmem:[#allocation2 + $0x70] sm:$0xff] %vm5462_vm4, %v5443_v10 }
 0xedf   : > { %v6695_v5 = vpop.permute.xlu0 %6694  ;;  %v6742_v58 = vld [vmem:[#allocation2 + $0x68] sm:$0xff] }
 0xee0   : > { %6728 = vst.msk [vmem:[#allocation2 + $0x78] sm:$0xff] %vm6712_vm5, %v6695_v5  ;;  %v6693_v53 = vpop.permute.xlu1 %6692  ;;  %v6741_v56 = vld [vmem:[#allocation2 + $0x60] sm:$0xff] }
 0xee1   : > { %6727 = vst.msk [vmem:[#allocation2 + $0x70] sm:$0xff] %vm6712_vm5, %v6693_v53  ;;  %8405 = vmatprep.mubr.msk.bf16.mxu0 %vm450_vm0, %v6741_v56 }
 0xee2   : > { %8406 = vmatmul.mubr.msk.bf16.gmra.mrb[192].mxu0 %vm450_vm0, %v6742_v58 }
 0xee7   : > { %v6744_v29 = vld [vmem:[#allocation2 + $0x78] sm:$0xff] }
 0xee8   : > { %v6743_v43 = vld [vmem:[#allocation2 + $0x70] sm:$0xff] }
 0xee9   : > { %8409 = vmatprep.mubr.msk.bf16.mxu0 %vm450_vm0, %v6743_v43 }
 0xeea   : > { %8410 = vmatmul.mubr.msk.bf16.gmra.mrb[196].mxu0 %vm450_vm0, %v6744_v29 }
 0xf49   : > { %v8383_v41 = vpop.f32.mrb[168].mxu0 }
 0xf4a   : > { %v6859_v11 = vadd.f32 %v8383_v41, %v12706_v8  ;;  %v6850_v47 = vpop.f32.mrb[169].mxu0 }
 0xf4b   : > { %v6851_v27 = vadd.f32 %v12706_v8, %v6850_v47  ;;  %v8384_v22 = vpop.f32.mrb[170].mxu0 }
 0xf4c   : > { %6979 = vst.msk [vmem:[%s12711_s16 + $0x10] sm:$0xff] %vm450_vm0, %v6859_v11  ;;  %v6862_v55 = vadd.f32 %v8384_v22, %v12706_v8  ;;  %v6853_v20 = vpop.f32.mrb[171].mxu0 }
 0xf4d   : > { %6977 = vst.msk [vmem:[%s12711_s16] sm:$0xff] %vm450_vm0, %v6851_v27  ;;  %v6854_v40 = vadd.f32 %v12706_v8, %v6853_v20 }
 0xf4e   : > { %6980 = vst.msk [vmem:[%s12711_s16 + $0x18] sm:$0xff] %vm450_vm0, %v6862_v55 }
 0xf4f   : > { %6978 = vst.msk [vmem:[%s12711_s16 + $0x8] sm:$0xff] %vm450_vm0, %v6854_v40 }
 0xf51   : > { %v8387_v51 = vpop.f32.mrb[172].mxu0 }
 0xf52   : > { %v6875_v15 = vadd.f32 %v8387_v51, %v12706_v8  ;;  %v6866_v35 = vpop.f32.mrb[173].mxu0 }
 0xf53   : > { %v6867_v23 = vadd.f32 %v12706_v8, %v6866_v35  ;;  %v8388_v52 = vpop.f32.mrb[174].mxu0 }
 0xf54   : > { %6983 = vst.msk [vmem:[%s12711_s16 + $0x30] sm:$0xff] %vm450_vm0, %v6875_v15  ;;  %v6878_v26 = vadd.f32 %v8388_v52, %v12706_v8  ;;  %v6869_v1 = vpop.f32.mrb[175].mxu0 }
 0xf55   : > { %6981 = vst.msk [vmem:[%s12711_s16 + $0x20] sm:$0xff] %vm450_vm0, %v6867_v23  ;;  %v6870_v38 = vadd.f32 %v12706_v8, %v6869_v1 }
 0xf56   : > { %6984 = vst.msk [vmem:[%s12711_s16 + $0x38] sm:$0xff] %vm450_vm0, %v6878_v26 }
 0xf57   : > { %6982 = vst.msk [vmem:[%s12711_s16 + $0x28] sm:$0xff] %vm450_vm0, %v6870_v38 }
 0xf8c   : > { %v8391_v50 = vpop.f32.mrb[176].mxu0 }
 0xf8d   : > { %v6891_v18 = vadd.f32 %v8391_v50, %v12706_v8  ;;  %v6882_v13 = vpop.f32.mrb[177].mxu0 }
 0xf8e   : > { %v6883_v42 = vadd.f32 %v12706_v8, %v6882_v13  ;;  %v8392_v31 = vpop.f32.mrb[178].mxu0 }
 0xf8f   : > { %6987 = vst.msk [vmem:[%s12711_s16 + $0x50] sm:$0xff] %vm450_vm0, %v6891_v18  ;;  %v6894_v48 = vadd.f32 %v8392_v31, %v12706_v8  ;;  %v6885_v0 = vpop.f32.mrb[179].mxu0 }
 0xf90   : > { %6985 = vst.msk [vmem:[%s12711_s16 + $0x40] sm:$0xff] %vm450_vm0, %v6883_v42  ;;  %v6886_v14 = vadd.f32 %v12706_v8, %v6885_v0 }
 0xf91   : > { %6988 = vst.msk [vmem:[%s12711_s16 + $0x58] sm:$0xff] %vm450_vm0, %v6894_v48 }
 0xf92   : > { %6986 = vst.msk [vmem:[%s12711_s16 + $0x48] sm:$0xff] %vm450_vm0, %v6886_v14 }
 0xf9d   : > { %v8395_v34 = vpop.f32.mrb[180].mxu0 }
 0xf9e   : > { %v6907_v63 = vadd.f32 %v8395_v34, %v12706_v8  ;;  %v6898_v61 = vpop.f32.mrb[181].mxu0 }
 0xf9f   : > { %v6899_v60 = vadd.f32 %v12706_v8, %v6898_v61  ;;  %v8396_v17 = vpop.f32.mrb[182].mxu0 }
 0xfa0   : > { %6991 = vst.msk [vmem:[%s12711_s16 + $0x70] sm:$0xff] %vm450_vm0, %v6907_v63  ;;  %v6910_v7 = vadd.f32 %v8396_v17, %v12706_v8  ;;  %v6901_v25 = vpop.f32.mrb[183].mxu0 }
 0xfa1   : > { %6989 = vst.msk [vmem:[%s12711_s16 + $0x60] sm:$0xff] %vm450_vm0, %v6899_v60  ;;  %v6902_v33 = vadd.f32 %v12706_v8, %v6901_v25 }
 0xfa2   : > { %6992 = vst.msk [vmem:[%s12711_s16 + $0x78] sm:$0xff] %vm450_vm0, %v6910_v7 }
 0xfa3   : > { %6990 = vst.msk [vmem:[%s12711_s16 + $0x68] sm:$0xff] %vm450_vm0, %v6902_v33 }
 0xfa5   : > { %v8399_v6 = vpop.f32.mrb[184].mxu0 }
 0xfa6   : > { %v6923_v45 = vadd.f32 %v8399_v6, %v12706_v8  ;;  %v6914_v19 = vpop.f32.mrb[185].mxu0 }
 0xfa7   : > { %v6915_v32 = vadd.f32 %v12706_v8, %v6914_v19  ;;  %v8400_v4 = vpop.f32.mrb[186].mxu0 }
 0xfa8   : > { %6995 = vst.msk [vmem:[%s12711_s16 + $0x90] sm:$0xff] %vm450_vm0, %v6923_v45  ;;  %v6926_v44 = vadd.f32 %v8400_v4, %v12706_v8  ;;  %v6917_v2 = vpop.f32.mrb[187].mxu0 }
 0xfa9   : > { %6993 = vst.msk [vmem:[%s12711_s16 + $0x80] sm:$0xff] %vm450_vm0, %v6915_v32  ;;  %v6918_v9 = vadd.f32 %v12706_v8, %v6917_v2 }
 0xfaa   : > { %6996 = vst.msk [vmem:[%s12711_s16 + $0x98] sm:$0xff] %vm450_vm0, %v6926_v44 }
 0xfab   : > { %6994 = vst.msk [vmem:[%s12711_s16 + $0x88] sm:$0xff] %vm450_vm0, %v6918_v9 }
 0xfad   : > { %v8403_v30 = vpop.f32.mrb[188].mxu0 }
 0xfae   : > { %v6939_v12 = vadd.f32 %v8403_v30, %v12706_v8  ;;  %v6930_v57 = vpop.f32.mrb[189].mxu0 }
 0xfaf   : > { %v6931_v3 = vadd.f32 %v12706_v8, %v6930_v57  ;;  %v8404_v49 = vpop.f32.mrb[190].mxu0 }
 0xfb0   : > { %6999 = vst.msk [vmem:[%s12711_s16 + $0xb0] sm:$0xff] %vm450_vm0, %v6939_v12  ;;  %v6942_v21 = vadd.f32 %v8404_v49, %v12706_v8  ;;  %v6933_v54 = vpop.f32.mrb[191].mxu0 }
 0xfb1   : > { %6997 = vst.msk [vmem:[%s12711_s16 + $0xa0] sm:$0xff] %vm450_vm0, %v6931_v3  ;;  %v6934_v62 = vadd.f32 %v12706_v8, %v6933_v54 }
 0xfb2   : > { %7000 = vst.msk [vmem:[%s12711_s16 + $0xb8] sm:$0xff] %vm450_vm0, %v6942_v21 }
 0xfb3   : > { %6998 = vst.msk [vmem:[%s12711_s16 + $0xa8] sm:$0xff] %vm450_vm0, %v6934_v62 }
 0xfb5   : > { %v8407_v37 = vpop.f32.mrb[192].mxu0 }
 0xfb6   : > { %v6955_v59 = vadd.f32 %v8407_v37, %v12706_v8  ;;  %v6946_v16 = vpop.f32.mrb[193].mxu0 }
 0xfb7   : > { %v6947_v28 = vadd.f32 %v12706_v8, %v6946_v16  ;;  %v8408_v39 = vpop.f32.mrb[194].mxu0 }
 0xfb8   : > { %7003 = vst.msk [vmem:[%s12711_s16 + $0xd0] sm:$0xff] %vm450_vm0, %v6955_v59  ;;  %v6958_v24 = vadd.f32 %v8408_v39, %v12706_v8  ;;  %v6949_v46 = vpop.f32.mrb[195].mxu0 }
 0xfb9   : > { %7001 = vst.msk [vmem:[%s12711_s16 + $0xc0] sm:$0xff] %vm450_vm0, %v6947_v28  ;;  %v6950_v36 = vadd.f32 %v12706_v8, %v6949_v46 }
 0xfba   : > { %7004 = vst.msk [vmem:[%s12711_s16 + $0xd8] sm:$0xff] %vm450_vm0, %v6958_v24 }
 0xfbb   : > { %7002 = vst.msk [vmem:[%s12711_s16 + $0xc8] sm:$0xff] %vm450_vm0, %v6950_v36 }
 0xfbd   : > { %v8411_v10 = vpop.f32.mrb[196].mxu0 }
 0xfbe   : > { %v6971_v5 = vadd.f32 %v8411_v10, %v12706_v8  ;;  %v6962_v53 = vpop.f32.mrb[197].mxu0 }
 0xfbf   : > { %v6963_v56 = vadd.f32 %v12706_v8, %v6962_v53  ;;  %v8412_v58 = vpop.f32.mrb[198].mxu0 }
 0xfc0   : > { %7007 = vst.msk [vmem:[%s12711_s16 + $0xf0] sm:$0xff] %vm450_vm0, %v6971_v5  ;;  %v6974_v43 = vadd.f32 %v8412_v58, %v12706_v8  ;;  %v6965_v29 = vpop.f32.mrb[199].mxu0 }
 0xfc1   : > { %7005 = vst.msk [vmem:[%s12711_s16 + $0xe0] sm:$0xff] %vm450_vm0, %v6963_v56  ;;  %v6966_v41 = vadd.f32 %v12706_v8, %v6965_v29 }
 0xfc2   : > { %7008 = vst.msk [vmem:[%s12711_s16 + $0xf8] sm:$0xff] %vm450_vm0, %v6974_v43 }
 0xfc3   : > { %7006 = vst.msk [vmem:[%s12711_s16 + $0xe8] sm:$0xff] %vm450_vm0, %v6966_v41 }
 0xfc4 PF: > { %s18_s27 = sadd.s32 1, %s9186_s27  }
 0xfc5   : > { %p15_p4 = scmp.ge.s32.totalorder %s18_s27, 4  }
 0xfc7   :  { %17 = sbr.rel (!%p15_p4) target bundleno = 1 (0x1), region = 85 }

</bundles_post_ra>
